<compile_context>
chip_gen: v5e
topology: v5e:2x2
jax: 0.10.0
libtpu: 0.0.40
codegen_flags: <defaults>
</compile_context>

<pallas_src>
import jax
import jax.numpy as jnp
from jax import lax
from jax.experimental import pallas as pl
from jax.experimental.pallas import tpu as pltpu


BN_EPS = 2e-05

CIN = 64                              # module input channels (fixed)
C3, CR, C5, C7A, C7B = 32, 16, 16, 16, 16
COUT = C3 + C5 + C7B                  # 64


def _round_up(x, m):
    return ((x + m - 1) // m) * m


# ----------------------------------------------------------------------------
# Fused kernel
# ----------------------------------------------------------------------------

def _make_fused_kernel(H, W):
    HW = H * W
    # Shifted-plane layout: rows [0, W) and [W + HW, 2W + HW) are the height
    # zero padding, image rows live at [W, W + HW).  Lane group g (width Cin)
    # holds the image pre-shifted by dx = g - 1 (width padding pre-masked), so
    # the tap for kernel row ky is the single aligned slice [ky*W, ky*W + HW).
    PLANE = _round_up(HW + 2 * W, 16)

    def kernel(x_ref, w1_ref, w2_ref, w3_ref, b1_ref, b2_ref, b3_ref,
               o_ref, xs_ref, rs_ref, as_ref):
        col = lax.broadcasted_iota(jnp.int32, (HW, 1), 0) % W
        keep_l = col != 0            # source col 0  -> masked in the dx=+1 group
        keep_r = col != (W - 1)      # source col W-1 -> masked in the dx=-1 group

        def build_plane(sb_ref, img, cin):
            img_bf = img.astype(jnp.bfloat16)
            zero = jnp.zeros_like(img_bf)
            # Zero only the padding bands (one extra row each side covers the
            # edge rows the shifted stores below intentionally skip).
            sb_ref[pl.ds(0, W + 1), :] = jnp.zeros((W + 1, 3 * cin), sb_ref.dtype)
            sb_ref[pl.ds(W + HW - 1, W + 1), :] = (
                jnp.zeros((W + 1, 3 * cin), sb_ref.dtype))
            # center (dx=0), left tap (dx=-1), right tap (dx=+1)
            sb_ref[pl.ds(W, HW), cin:2 * cin] = img_bf
            sb_ref[pl.ds(W + 1, HW), 0:cin] = jnp.where(keep_r, img_bf, zero)
            sb_ref[pl.ds(W - 1, HW), 2 * cin:3 * cin] = jnp.where(keep_l, img_bf, zero)

        def conv3x3(sb_ref, w_ref, b_ref):
            # 3 MXU dots with K = 3*Cin (kx folded into the contraction dim).
            y = (jnp.dot(sb_ref[pl.ds(0 * W, HW), :], w_ref[0],
                         preferred_element_type=jnp.float32)
                 + jnp.dot(sb_ref[pl.ds(1 * W, HW), :], w_ref[1],
                           preferred_element_type=jnp.float32)
                 + jnp.dot(sb_ref[pl.ds(2 * W, HW), :], w_ref[2],
                           preferred_element_type=jnp.float32))
            return jnp.maximum(y + b_ref[...], 0.0)

        # Pass 1: x -> [ctx_3x3 (32) | red (16)]
        build_plane(xs_ref, x_ref[0], CIN)
        y1 = conv3x3(xs_ref, w1_ref, b1_ref)
        o_ref[0, :, 0:C3] = y1[:, 0:C3].astype(o_ref.dtype)

        # Pass 2: red -> [ctx_5x5 (16) | ctx_7x7_a (16)]
        build_plane(rs_ref, y1[:, C3:], CR)
        y2 = conv3x3(rs_ref, w2_ref, b2_ref)
        o_ref[0, :, C3:C3 + C5] = y2[:, 0:C5].astype(o_ref.dtype)

        # Pass 3: ctx_7x7_a -> ctx_7x7 (16)
        build_plane(as_ref, y2[:, C5:], C7A)
        y3 = conv3x3(as_ref, w3_ref, b3_ref)
        o_ref[0, :, C3 + C5:COUT] = y3.astype(o_ref.dtype)

    return kernel, PLANE


def _context_module_pallas(x_flat, w1, w2, w3, b1, b2, b3, H, W):
    N, HW, _ = x_flat.shape
    kernel, PLANE = _make_fused_kernel(H, W)

    def const_spec(shape):
        return pl.BlockSpec(shape, lambda n, _s=shape: (0,) * len(_s))

    # Per-step VMEM working set: double-buffered in/out blocks + resident
    # planes / weights / biases.  Only raise the scoped limit when needed.
    vmem_need = (2 * HW * CIN * 2 + 2 * HW * COUT * 4
                 + PLANE * 3 * (CIN + CR + C7A) * 2
                 + (w1.size + w2.size + w3.size) * 2
                 + (b1.size + b2.size + b3.size) * 4
                 + (64 << 10))
    vmem_limit = None
    if vmem_need > (16 << 20):          # smallest (v5e) scoped-VMEM default
        vmem_limit = min(vmem_need * 5 // 4, 60 << 20)

    return pl.pallas_call(
        kernel,
        out_shape=jax.ShapeDtypeStruct((N, HW, COUT), jnp.float32),
        grid_spec=pltpu.PrefetchScalarGridSpec(
            num_scalar_prefetch=0,
            grid=(N,),
            in_specs=[
                pl.BlockSpec((1, HW, CIN), lambda n: (n, 0, 0)),
                const_spec(w1.shape), const_spec(w2.shape), const_spec(w3.shape),
                const_spec(b1.shape), const_spec(b2.shape), const_spec(b3.shape),
            ],
            out_specs=pl.BlockSpec((1, HW, COUT), lambda n: (n, 0, 0)),
            scratch_shapes=[
                pltpu.VMEM((PLANE, 3 * CIN), jnp.bfloat16),   # shifted x plane
                pltpu.VMEM((PLANE, 3 * CR), jnp.bfloat16),    # shifted red plane
                pltpu.VMEM((PLANE, 3 * C7A), jnp.bfloat16),   # shifted 7x7_a plane
            ],
        ),
        compiler_params=pltpu.CompilerParams(
            dimension_semantics=("parallel",),
            vmem_limit_bytes=vmem_limit),
    )(x_flat, w1, w2, w3, b1, b2, b3)


# ----------------------------------------------------------------------------
# Parameters (deterministic, synthetic) and BN folding (eval mode).
# TODO(synk): BatchNorm running-stat updates (training mode) are not modeled;
#             this implements the eval-time forward with folded statistics.
# ----------------------------------------------------------------------------

def _make_conv_bn(key, cin, cout):
    k_w, k_b, k_g, k_bt, k_m, k_v = jax.random.split(key, 6)
    fan_in = cin * 9
    bound = 1.0 / jnp.sqrt(fan_in)
    w = jax.random.uniform(k_w, (3, 3, cin, cout), jnp.float32, -bound, bound)  # HWIO
    b = jax.random.uniform(k_b, (cout,), jnp.float32, -bound, bound)
    gamma = 1.0 + 0.1 * jax.random.normal(k_g, (cout,), jnp.float32)
    beta = 0.1 * jax.random.normal(k_bt, (cout,), jnp.float32)
    mean = 0.1 * jax.random.normal(k_m, (cout,), jnp.float32)
    var = jnp.abs(1.0 + 0.1 * jax.random.normal(k_v, (cout,), jnp.float32))
    inv_std = 1.0 / jnp.sqrt(var + BN_EPS)
    scale = gamma * inv_std
    bias = beta + scale * (b - mean)
    return {"w": w, "scale": scale, "bias": bias}


def init_context_module_params(key):
    keys = jax.random.split(key, 5)
    return {
        "context_3x3": _make_conv_bn(keys[0], CIN, C3),
        "dim_reducer": _make_conv_bn(keys[1], CIN, CR),
        "context_5x5": _make_conv_bn(keys[2], CR, C5),
        "context_7x7_a": _make_conv_bn(keys[3], CR, C7A),
        "context_7x7_b": _make_conv_bn(keys[4], C7A, C7B),
    }


@jax.jit
def context_module_forward(x_nchw, params):
    """ContextModule.forward. Input/output are NCHW (PyTorch convention)."""
    N, C, H, W = x_nchw.shape
    x = (jnp.transpose(x_nchw, (0, 2, 3, 1))
         .reshape(N, H * W, C).astype(jnp.bfloat16))

    def folded_w(*branches):
        # BN scale folded into the conv weights (f32), branches fused along
        # Cout, packed HWIO (3,3,Cin,Cout) -> (3, 3*Cin, Cout) so the
        # contraction index is kx*Cin + ci (matches the plane lane layout),
        # then cast to bf16 (matmul input dtype).
        ws = [p["w"] * p["scale"][None, None, None, :] for p in branches]
        w = jnp.concatenate(ws, axis=-1)
        return w.reshape(3, 3 * w.shape[2], w.shape[3]).astype(jnp.bfloat16)

    def folded_b(*branches):
        return (jnp.concatenate([p["bias"] for p in branches])[None, :]
                .astype(jnp.float32))

    p3, pr = params["context_3x3"], params["dim_reducer"]
    p5, p7a, p7b = (params["context_5x5"], params["context_7x7_a"],
                    params["context_7x7_b"])

    w1, b1 = folded_w(p3, pr), folded_b(p3, pr)     # (3,192,48), (1,48)
    w2, b2 = folded_w(p5, p7a), folded_b(p5, p7a)   # (3, 48,32), (1,32)
    w3, b3 = folded_w(p7b), folded_b(p7b)           # (3, 48,16), (1,16)

    out = _context_module_pallas(x, w1, w2, w3, b1, b2, b3, H, W)
    return jnp.transpose(out.reshape(N, H, W, COUT), (0, 3, 1, 2))


# ----------------------------------------------------------------------------
# Pure-JAX reference (same folded-bf16-weight / f32-accumulate convention).
# ----------------------------------------------------------------------------

def _ref_branch(x_nhwc, p):
    w = (p["w"] * p["scale"][None, None, None, :]).astype(jnp.bfloat16)
    y = lax.conv_general_dilated(
        x_nhwc.astype(jnp.bfloat16), w,
        window_strides=(1, 1), padding="SAME",
        dimension_numbers=("NHWC", "HWIO", "NHWC"),
        preferred_element_type=jnp.float32)
    return jnp.maximum(y + p["bias"], 0.0)


def _ref_forward(x_nchw, params):
    x = jnp.transpose(x_nchw, (0, 2, 3, 1))
    red = _ref_branch(x, params["dim_reducer"])
    c3 = _ref_branch(x, params["context_3x3"])
    c5 = _ref_branch(red, params["context_5x5"])
    c7 = _ref_branch(_ref_branch(red, params["context_7x7_a"]),
                     params["context_7x7_b"])
    out = jnp.concatenate([c3, c5, c7], axis=-1)
    return jnp.transpose(out, (0, 3, 1, 2))


if __name__ == "__main__":
    key = jax.random.PRNGKey(0)
    k_x, k_p = jax.random.split(key)

    N, C, H, W = 2, 64, 16, 16   # Cin=64 is fixed by the module
    x = jax.random.normal(k_x, (N, C, H, W), jnp.float32)
    params = init_context_module_params(k_p)

    out = jax.block_until_ready(context_module_forward(x, params))
    assert out.shape == (N, COUT, H, W), out.shape

    ref = _ref_forward(x, params)
    err = float(jnp.max(jnp.abs(out - ref)))
    assert err < 2e-3, f"max abs error {err}"

    print("KERNEL_OK")
</pallas_src>

<mosaic_0001>
module attributes {stable_mosaic.version = 11 : i64} {
  func.func @kernel(%arg0: i32, %arg1: memref<1x256x64xbf16, #tpu.memory_space<vmem>>, %arg2: memref<3x192x48xbf16, #tpu.memory_space<vmem>>, %arg3: memref<3x48x32xbf16, #tpu.memory_space<vmem>>, %arg4: memref<3x48x16xbf16, #tpu.memory_space<vmem>>, %arg5: memref<1x48xf32, #tpu.memory_space<vmem>>, %arg6: memref<1x32xf32, #tpu.memory_space<vmem>>, %arg7: memref<1x16xf32, #tpu.memory_space<vmem>>, %arg8: memref<1x256x64xf32, #tpu.memory_space<vmem>>, %arg9: memref<288x192xbf16, #tpu.memory_space<vmem>>, %arg10: memref<288x48xbf16, #tpu.memory_space<vmem>>, %arg11: memref<288x48xbf16, #tpu.memory_space<vmem>>) attributes {dimension_semantics = [#tpu.dimension_semantics<parallel>], iteration_bounds = array<i64: 2>, scalar_prefetch = 0 : i64, scratch_operands = 3 : i64, tpu.core_type = #tpu.core_type<tc>, window_params = [{transform_indices = @transform_0, window_bounds = array<i64: 1, 256, 64>}, {pipeline_mode = #tpu.pipeline_mode<synchronous>, transform_indices = @transform_1, window_bounds = array<i64: 3, 192, 48>}, {pipeline_mode = #tpu.pipeline_mode<synchronous>, transform_indices = @transform_2, window_bounds = array<i64: 3, 48, 32>}, {pipeline_mode = #tpu.pipeline_mode<synchronous>, transform_indices = @transform_3, window_bounds = array<i64: 3, 48, 16>}, {pipeline_mode = #tpu.pipeline_mode<synchronous>, transform_indices = @transform_4, window_bounds = array<i64: 1, 48>}, {pipeline_mode = #tpu.pipeline_mode<synchronous>, transform_indices = @transform_5, window_bounds = array<i64: 1, 32>}, {pipeline_mode = #tpu.pipeline_mode<synchronous>, transform_indices = @transform_6, window_bounds = array<i64: 1, 16>}, {transform_indices = @transform_7, window_bounds = array<i64: 1, 256, 64>}]} {
    %0 = tpu.iota {dimensions = array<i32: 0>} : vector<256x1xi32>
    %c16_i32 = arith.constant 16 : i32
    %c0_i32 = arith.constant 0 : i32
    %1 = arith.cmpi eq, %c16_i32, %c0_i32 : i32
    %c1_i32 = arith.constant 1 : i32
    %2 = arith.select %1, %c1_i32, %c16_i32 : i32
    %3 = vector.broadcast %2 : i32 to vector<256x1xi32>
    %4 = arith.remsi %0, %3 : vector<256x1xi32>
    %c0_i32_0 = arith.constant 0 : i32
    %5 = vector.broadcast %c0_i32_0 : i32 to vector<256x1xi32>
    %6 = arith.cmpi ne, %4, %5 : vector<256x1xi32>
    %c0_i32_1 = arith.constant 0 : i32
    %7 = vector.broadcast %c0_i32_1 : i32 to vector<256x1xi32>
    %8 = arith.cmpi slt, %4, %7 : vector<256x1xi32>
    %c0_i32_2 = arith.constant 0 : i32
    %9 = arith.cmpi slt, %2, %c0_i32_2 : i32
    %10 = vector.broadcast %9 : i1 to vector<256x1xi1>
    %11 = vector.broadcast %10 : vector<256x1xi1> to vector<256x1xi1>
    %12 = arith.xori %8, %11 : vector<256x1xi1>
    %13 = arith.andi %12, %6 : vector<256x1xi1>
    %14 = vector.broadcast %2 : i32 to vector<256x1xi32>
    %15 = arith.addi %4, %14 : vector<256x1xi32>
    %16 = arith.select %13, %15, %4 : vector<256x1xi1>, vector<256x1xi32>
    %c0_i32_3 = arith.constant 0 : i32
    %17 = vector.broadcast %c0_i32_3 : i32 to vector<256x1xi32>
    %18 = arith.cmpi ne, %16, %17 : vector<256x1xi32>
    %c15_i32 = arith.constant 15 : i32
    %19 = vector.broadcast %c15_i32 : i32 to vector<256x1xi32>
    %20 = arith.cmpi ne, %16, %19 : vector<256x1xi32>
    %c0 = arith.constant 0 : index
    %c0_4 = arith.constant 0 : index
    %c0_5 = arith.constant 0 : index
    %21 = vector.load %arg1[%c0, %c0_4, %c0_5] : memref<1x256x64xbf16, #tpu.memory_space<vmem>>, vector<1x256x64xbf16>
    %22 = vector.shape_cast %21 : vector<1x256x64xbf16> to vector<256x64xbf16>
    %cst = arith.constant 0.000000e+00 : bf16
    %23 = vector.broadcast %cst : bf16 to vector<256x64xbf16>
    %cst_6 = arith.constant 0.000000e+00 : bf16
    %24 = vector.broadcast %cst_6 : bf16 to vector<17x192xbf16>
    %c0_7 = arith.constant 0 : index
    %c0_8 = arith.constant 0 : index
    %25 = vector.load %arg9[%c0_7, %c0_8] : memref<288x192xbf16, #tpu.memory_space<vmem>>, vector<17x192xbf16>
    tpu.vector_store %arg9[%c0_7, %c0_8], %24 {strides = array<i32>} : memref<288x192xbf16, #tpu.memory_space<vmem>>, vector<17x192xbf16>,
    %cst_9 = arith.constant 0.000000e+00 : bf16
    %26 = vector.broadcast %cst_9 : bf16 to vector<17x192xbf16>
    %c271 = arith.constant 271 : index
    %c0_10 = arith.constant 0 : index
    %27 = vector.load %arg9[%c271, %c0_10] : memref<288x192xbf16, #tpu.memory_space<vmem>>, vector<17x192xbf16>
    tpu.vector_store %arg9[%c271, %c0_10], %26 {strides = array<i32>} : memref<288x192xbf16, #tpu.memory_space<vmem>>, vector<17x192xbf16>,
    %c16 = arith.constant 16 : index
    %c64 = arith.constant 64 : index
    %28 = vector.load %arg9[%c16, %c64] : memref<288x192xbf16, #tpu.memory_space<vmem>>, vector<256x64xbf16>
    tpu.vector_store %arg9[%c16, %c64], %22 {strides = array<i32>} : memref<288x192xbf16, #tpu.memory_space<vmem>>, vector<256x64xbf16>,
    %29 = vector.shape_cast %20 : vector<256x1xi1> to vector<256x1xi1>
    %30 = vector.broadcast %29 : vector<256x1xi1> to vector<256x64xi1>
    %31 = arith.select %30, %22, %23 : vector<256x64xi1>, vector<256x64xbf16>
    %c17 = arith.constant 17 : index
    %c0_11 = arith.constant 0 : index
    %32 = vector.load %arg9[%c17, %c0_11] : memref<288x192xbf16, #tpu.memory_space<vmem>>, vector<256x64xbf16>
    tpu.vector_store %arg9[%c17, %c0_11], %31 {strides = array<i32>} : memref<288x192xbf16, #tpu.memory_space<vmem>>, vector<256x64xbf16>,
    %33 = vector.shape_cast %18 : vector<256x1xi1> to vector<256x1xi1>
    %34 = vector.broadcast %33 : vector<256x1xi1> to vector<256x64xi1>
    %35 = arith.select %34, %22, %23 : vector<256x64xi1>, vector<256x64xbf16>
    %c15 = arith.constant 15 : index
    %c128 = arith.constant 128 : index
    %36 = vector.load %arg9[%c15, %c128] : memref<288x192xbf16, #tpu.memory_space<vmem>>, vector<256x64xbf16>
    tpu.vector_store %arg9[%c15, %c128], %35 {strides = array<i32>} : memref<288x192xbf16, #tpu.memory_space<vmem>>, vector<256x64xbf16>,
    %c0_12 = arith.constant 0 : index
    %c0_13 = arith.constant 0 : index
    %37 = vector.load %arg9[%c0_12, %c0_13] : memref<288x192xbf16, #tpu.memory_space<vmem>>, vector<256x192xbf16>
    %c0_14 = arith.constant 0 : index
    %c0_15 = arith.constant 0 : index
    %c0_16 = arith.constant 0 : index
    %38 = vector.load %arg2[%c0_14, %c0_15, %c0_16] : memref<3x192x48xbf16, #tpu.memory_space<vmem>>, vector<1x192x48xbf16>
    %39 = vector.shape_cast %38 : vector<1x192x48xbf16> to vector<192x48xbf16>
    %cst_17 = arith.constant dense<0.000000e+00> : vector<256x48xf32>
    %40 = tpu.matmul %37, %39, %cst_17 {dimension_numbers = #tpu.dot_dimension_numbers<[1], [0], [0], [1], [0, 0, 1, 1], [], []>} : vector<256x192xbf16>, vector<192x48xbf16>, vector<256x48xf32> -> vector<256x48xf32>
    %c16_18 = arith.constant 16 : index
    %c0_19 = arith.constant 0 : index
    %41 = vector.load %arg9[%c16_18, %c0_19] : memref<288x192xbf16, #tpu.memory_space<vmem>>, vector<256x192xbf16>
    %c1 = arith.constant 1 : index
    %c0_20 = arith.constant 0 : index
    %c0_21 = arith.constant 0 : index
    %42 = vector.load %arg2[%c1, %c0_20, %c0_21] : memref<3x192x48xbf16, #tpu.memory_space<vmem>>, vector<1x192x48xbf16>
    %43 = vector.shape_cast %42 : vector<1x192x48xbf16> to vector<192x48xbf16>
    %cst_22 = arith.constant dense<0.000000e+00> : vector<256x48xf32>
    %44 = tpu.matmul %41, %43, %cst_22 {dimension_numbers = #tpu.dot_dimension_numbers<[1], [0], [0], [1], [0, 0, 1, 1], [], []>} : vector<256x192xbf16>, vector<192x48xbf16>, vector<256x48xf32> -> vector<256x48xf32>
    %45 = arith.addf %40, %44 : vector<256x48xf32>
    %c32 = arith.constant 32 : index
    %c0_23 = arith.constant 0 : index
    %46 = vector.load %arg9[%c32, %c0_23] : memref<288x192xbf16, #tpu.memory_space<vmem>>, vector<256x192xbf16>
    %c2 = arith.constant 2 : index
    %c0_24 = arith.constant 0 : index
    %c0_25 = arith.constant 0 : index
    %47 = vector.load %arg2[%c2, %c0_24, %c0_25] : memref<3x192x48xbf16, #tpu.memory_space<vmem>>, vector<1x192x48xbf16>
    %48 = vector.shape_cast %47 : vector<1x192x48xbf16> to vector<192x48xbf16>
    %cst_26 = arith.constant dense<0.000000e+00> : vector<256x48xf32>
    %49 = tpu.matmul %46, %48, %cst_26 {dimension_numbers = #tpu.dot_dimension_numbers<[1], [0], [0], [1], [0, 0, 1, 1], [], []>} : vector<256x192xbf16>, vector<192x48xbf16>, vector<256x48xf32> -> vector<256x48xf32>
    %50 = arith.addf %45, %49 : vector<256x48xf32>
    %c0_27 = arith.constant 0 : index
    %c0_28 = arith.constant 0 : index
    %51 = vector.load %arg5[%c0_27, %c0_28] : memref<1x48xf32, #tpu.memory_space<vmem>>, vector<1x48xf32>
    %52 = vector.broadcast %51 : vector<1x48xf32> to vector<256x48xf32>
    %53 = arith.addf %50, %52 : vector<256x48xf32>
    %cst_29 = arith.constant 0.000000e+00 : f32
    %54 = vector.broadcast %cst_29 : f32 to vector<256x48xf32>
    %55 = arith.maximumf %53, %54 : vector<256x48xf32>
    %56 = vector.extract_strided_slice %55 {offsets = [0, 0], sizes = [256, 32], strides = [1, 1]} : vector<256x48xf32> to vector<256x32xf32>
    %c0_30 = arith.constant 0 : index
    %c0_31 = arith.constant 0 : index
    %c0_32 = arith.constant 0 : index
    %57 = vector.load %arg8[%c0_30, %c0_31, %c0_32] : memref<1x256x64xf32, #tpu.memory_space<vmem>>, vector<1x256x32xf32>
    %58 = vector.shape_cast %57 : vector<1x256x32xf32> to vector<256x32xf32>
    %59 = vector.shape_cast %56 : vector<256x32xf32> to vector<1x256x32xf32>
    tpu.vector_store %arg8[%c0_30, %c0_31, %c0_32], %59 {strides = array<i32>} : memref<1x256x64xf32, #tpu.memory_space<vmem>>, vector<1x256x32xf32>,
    %60 = vector.extract_strided_slice %55 {offsets = [0, 32], sizes = [256, 16], strides = [1, 1]} : vector<256x48xf32> to vector<256x16xf32>
    %61 = arith.truncf %60 : vector<256x16xf32> to vector<256x16xbf16>
    %cst_33 = arith.constant 0.000000e+00 : bf16
    %62 = vector.broadcast %cst_33 : bf16 to vector<256x16xbf16>
    %cst_34 = arith.constant 0.000000e+00 : bf16
    %63 = vector.broadcast %cst_34 : bf16 to vector<17x48xbf16>
    %c0_35 = arith.constant 0 : index
    %c0_36 = arith.constant 0 : index
    %64 = vector.load %arg10[%c0_35, %c0_36] : memref<288x48xbf16, #tpu.memory_space<vmem>>, vector<17x48xbf16>
    tpu.vector_store %arg10[%c0_35, %c0_36], %63 {strides = array<i32>} : memref<288x48xbf16, #tpu.memory_space<vmem>>, vector<17x48xbf16>,
    %cst_37 = arith.constant 0.000000e+00 : bf16
    %65 = vector.broadcast %cst_37 : bf16 to vector<17x48xbf16>
    %c271_38 = arith.constant 271 : index
    %c0_39 = arith.constant 0 : index
    %66 = vector.load %arg10[%c271_38, %c0_39] : memref<288x48xbf16, #tpu.memory_space<vmem>>, vector<17x48xbf16>
    tpu.vector_store %arg10[%c271_38, %c0_39], %65 {strides = array<i32>} : memref<288x48xbf16, #tpu.memory_space<vmem>>, vector<17x48xbf16>,
    %c16_40 = arith.constant 16 : index
    %c16_41 = arith.constant 16 : index
    %67 = vector.load %arg10[%c16_40, %c16_41] : memref<288x48xbf16, #tpu.memory_space<vmem>>, vector<256x16xbf16>
    tpu.vector_store %arg10[%c16_40, %c16_41], %61 {strides = array<i32>} : memref<288x48xbf16, #tpu.memory_space<vmem>>, vector<256x16xbf16>,
    %68 = vector.shape_cast %20 : vector<256x1xi1> to vector<256x1xi1>
    %69 = vector.broadcast %68 : vector<256x1xi1> to vector<256x16xi1>
    %70 = arith.select %69, %61, %62 : vector<256x16xi1>, vector<256x16xbf16>
    %c17_42 = arith.constant 17 : index
    %c0_43 = arith.constant 0 : index
    %71 = vector.load %arg10[%c17_42, %c0_43] : memref<288x48xbf16, #tpu.memory_space<vmem>>, vector<256x16xbf16>
    tpu.vector_store %arg10[%c17_42, %c0_43], %70 {strides = array<i32>} : memref<288x48xbf16, #tpu.memory_space<vmem>>, vector<256x16xbf16>,
    %72 = vector.shape_cast %18 : vector<256x1xi1> to vector<256x1xi1>
    %73 = vector.broadcast %72 : vector<256x1xi1> to vector<256x16xi1>
    %74 = arith.select %73, %61, %62 : vector<256x16xi1>, vector<256x16xbf16>
    %c15_44 = arith.constant 15 : index
    %c32_45 = arith.constant 32 : index
    %75 = vector.load %arg10[%c15_44, %c32_45] : memref<288x48xbf16, #tpu.memory_space<vmem>>, vector<256x16xbf16>
    tpu.vector_store %arg10[%c15_44, %c32_45], %74 {strides = array<i32>} : memref<288x48xbf16, #tpu.memory_space<vmem>>, vector<256x16xbf16>,
    %c0_46 = arith.constant 0 : index
    %c0_47 = arith.constant 0 : index
    %76 = vector.load %arg10[%c0_46, %c0_47] : memref<288x48xbf16, #tpu.memory_space<vmem>>, vector<256x48xbf16>
    %c0_48 = arith.constant 0 : index
    %c0_49 = arith.constant 0 : index
    %c0_50 = arith.constant 0 : index
    %77 = vector.load %arg3[%c0_48, %c0_49, %c0_50] : memref<3x48x32xbf16, #tpu.memory_space<vmem>>, vector<1x48x32xbf16>
    %78 = vector.shape_cast %77 : vector<1x48x32xbf16> to vector<48x32xbf16>
    %cst_51 = arith.constant dense<0.000000e+00> : vector<256x32xf32>
    %79 = tpu.matmul %76, %78, %cst_51 {dimension_numbers = #tpu.dot_dimension_numbers<[1], [0], [0], [1], [0, 0, 1, 1], [], []>} : vector<256x48xbf16>, vector<48x32xbf16>, vector<256x32xf32> -> vector<256x32xf32>
    %c16_52 = arith.constant 16 : index
    %c0_53 = arith.constant 0 : index
    %80 = vector.load %arg10[%c16_52, %c0_53] : memref<288x48xbf16, #tpu.memory_space<vmem>>, vector<256x48xbf16>
    %c1_54 = arith.constant 1 : index
    %c0_55 = arith.constant 0 : index
    %c0_56 = arith.constant 0 : index
    %81 = vector.load %arg3[%c1_54, %c0_55, %c0_56] : memref<3x48x32xbf16, #tpu.memory_space<vmem>>, vector<1x48x32xbf16>
    %82 = vector.shape_cast %81 : vector<1x48x32xbf16> to vector<48x32xbf16>
    %cst_57 = arith.constant dense<0.000000e+00> : vector<256x32xf32>
    %83 = tpu.matmul %80, %82, %cst_57 {dimension_numbers = #tpu.dot_dimension_numbers<[1], [0], [0], [1], [0, 0, 1, 1], [], []>} : vector<256x48xbf16>, vector<48x32xbf16>, vector<256x32xf32> -> vector<256x32xf32>
    %84 = arith.addf %79, %83 : vector<256x32xf32>
    %c32_58 = arith.constant 32 : index
    %c0_59 = arith.constant 0 : index
    %85 = vector.load %arg10[%c32_58, %c0_59] : memref<288x48xbf16, #tpu.memory_space<vmem>>, vector<256x48xbf16>
    %c2_60 = arith.constant 2 : index
    %c0_61 = arith.constant 0 : index
    %c0_62 = arith.constant 0 : index
    %86 = vector.load %arg3[%c2_60, %c0_61, %c0_62] : memref<3x48x32xbf16, #tpu.memory_space<vmem>>, vector<1x48x32xbf16>
    %87 = vector.shape_cast %86 : vector<1x48x32xbf16> to vector<48x32xbf16>
    %cst_63 = arith.constant dense<0.000000e+00> : vector<256x32xf32>
    %88 = tpu.matmul %85, %87, %cst_63 {dimension_numbers = #tpu.dot_dimension_numbers<[1], [0], [0], [1], [0, 0, 1, 1], [], []>} : vector<256x48xbf16>, vector<48x32xbf16>, vector<256x32xf32> -> vector<256x32xf32>
    %89 = arith.addf %84, %88 : vector<256x32xf32>
    %c0_64 = arith.constant 0 : index
    %c0_65 = arith.constant 0 : index
    %90 = vector.load %arg6[%c0_64, %c0_65] : memref<1x32xf32, #tpu.memory_space<vmem>>, vector<1x32xf32>
    %91 = vector.broadcast %90 : vector<1x32xf32> to vector<256x32xf32>
    %92 = arith.addf %89, %91 : vector<256x32xf32>
    %cst_66 = arith.constant 0.000000e+00 : f32
    %93 = vector.broadcast %cst_66 : f32 to vector<256x32xf32>
    %94 = arith.maximumf %92, %93 : vector<256x32xf32>
    %95 = vector.extract_strided_slice %94 {offsets = [0, 0], sizes = [256, 16], strides = [1, 1]} : vector<256x32xf32> to vector<256x16xf32>
    %c0_67 = arith.constant 0 : index
    %c0_68 = arith.constant 0 : index
    %c32_69 = arith.constant 32 : index
    %96 = vector.load %arg8[%c0_67, %c0_68, %c32_69] : memref<1x256x64xf32, #tpu.memory_space<vmem>>, vector<1x256x16xf32>
    %97 = vector.shape_cast %96 : vector<1x256x16xf32> to vector<256x16xf32>
    %98 = vector.shape_cast %95 : vector<256x16xf32> to vector<1x256x16xf32>
    tpu.vector_store %arg8[%c0_67, %c0_68, %c32_69], %98 {strides = array<i32>} : memref<1x256x64xf32, #tpu.memory_space<vmem>>, vector<1x256x16xf32>,
    %99 = vector.extract_strided_slice %94 {offsets = [0, 16], sizes = [256, 16], strides = [1, 1]} : vector<256x32xf32> to vector<256x16xf32>
    %100 = arith.truncf %99 : vector<256x16xf32> to vector<256x16xbf16>
    %cst_70 = arith.constant 0.000000e+00 : bf16
    %101 = vector.broadcast %cst_70 : bf16 to vector<256x16xbf16>
    %cst_71 = arith.constant 0.000000e+00 : bf16
    %102 = vector.broadcast %cst_71 : bf16 to vector<17x48xbf16>
    %c0_72 = arith.constant 0 : index
    %c0_73 = arith.constant 0 : index
    %103 = vector.load %arg11[%c0_72, %c0_73] : memref<288x48xbf16, #tpu.memory_space<vmem>>, vector<17x48xbf16>
    tpu.vector_store %arg11[%c0_72, %c0_73], %102 {strides = array<i32>} : memref<288x48xbf16, #tpu.memory_space<vmem>>, vector<17x48xbf16>,
    %cst_74 = arith.constant 0.000000e+00 : bf16
    %104 = vector.broadcast %cst_74 : bf16 to vector<17x48xbf16>
    %c271_75 = arith.constant 271 : index
    %c0_76 = arith.constant 0 : index
    %105 = vector.load %arg11[%c271_75, %c0_76] : memref<288x48xbf16, #tpu.memory_space<vmem>>, vector<17x48xbf16>
    tpu.vector_store %arg11[%c271_75, %c0_76], %104 {strides = array<i32>} : memref<288x48xbf16, #tpu.memory_space<vmem>>, vector<17x48xbf16>,
    %c16_77 = arith.constant 16 : index
    %c16_78 = arith.constant 16 : index
    %106 = vector.load %arg11[%c16_77, %c16_78] : memref<288x48xbf16, #tpu.memory_space<vmem>>, vector<256x16xbf16>
    tpu.vector_store %arg11[%c16_77, %c16_78], %100 {strides = array<i32>} : memref<288x48xbf16, #tpu.memory_space<vmem>>, vector<256x16xbf16>,
    %107 = vector.shape_cast %20 : vector<256x1xi1> to vector<256x1xi1>
    %108 = vector.broadcast %107 : vector<256x1xi1> to vector<256x16xi1>
    %109 = arith.select %108, %100, %101 : vector<256x16xi1>, vector<256x16xbf16>
    %c17_79 = arith.constant 17 : index
    %c0_80 = arith.constant 0 : index
    %110 = vector.load %arg11[%c17_79, %c0_80] : memref<288x48xbf16, #tpu.memory_space<vmem>>, vector<256x16xbf16>
    tpu.vector_store %arg11[%c17_79, %c0_80], %109 {strides = array<i32>} : memref<288x48xbf16, #tpu.memory_space<vmem>>, vector<256x16xbf16>,
    %111 = vector.shape_cast %18 : vector<256x1xi1> to vector<256x1xi1>
    %112 = vector.broadcast %111 : vector<256x1xi1> to vector<256x16xi1>
    %113 = arith.select %112, %100, %101 : vector<256x16xi1>, vector<256x16xbf16>
    %c15_81 = arith.constant 15 : index
    %c32_82 = arith.constant 32 : index
    %114 = vector.load %arg11[%c15_81, %c32_82] : memref<288x48xbf16, #tpu.memory_space<vmem>>, vector<256x16xbf16>
    tpu.vector_store %arg11[%c15_81, %c32_82], %113 {strides = array<i32>} : memref<288x48xbf16, #tpu.memory_space<vmem>>, vector<256x16xbf16>,
    %c0_83 = arith.constant 0 : index
    %c0_84 = arith.constant 0 : index
    %115 = vector.load %arg11[%c0_83, %c0_84] : memref<288x48xbf16, #tpu.memory_space<vmem>>, vector<256x48xbf16>
    %c0_85 = arith.constant 0 : index
    %c0_86 = arith.constant 0 : index
    %c0_87 = arith.constant 0 : index
    %116 = vector.load %arg4[%c0_85, %c0_86, %c0_87] : memref<3x48x16xbf16, #tpu.memory_space<vmem>>, vector<1x48x16xbf16>
    %117 = vector.shape_cast %116 : vector<1x48x16xbf16> to vector<48x16xbf16>
    %cst_88 = arith.constant dense<0.000000e+00> : vector<256x16xf32>
    %118 = tpu.matmul %115, %117, %cst_88 {dimension_numbers = #tpu.dot_dimension_numbers<[1], [0], [0], [1], [0, 0, 1, 1], [], []>} : vector<256x48xbf16>, vector<48x16xbf16>, vector<256x16xf32> -> vector<256x16xf32>
    %c16_89 = arith.constant 16 : index
    %c0_90 = arith.constant 0 : index
    %119 = vector.load %arg11[%c16_89, %c0_90] : memref<288x48xbf16, #tpu.memory_space<vmem>>, vector<256x48xbf16>
    %c1_91 = arith.constant 1 : index
    %c0_92 = arith.constant 0 : index
    %c0_93 = arith.constant 0 : index
    %120 = vector.load %arg4[%c1_91, %c0_92, %c0_93] : memref<3x48x16xbf16, #tpu.memory_space<vmem>>, vector<1x48x16xbf16>
    %121 = vector.shape_cast %120 : vector<1x48x16xbf16> to vector<48x16xbf16>
    %cst_94 = arith.constant dense<0.000000e+00> : vector<256x16xf32>
    %122 = tpu.matmul %119, %121, %cst_94 {dimension_numbers = #tpu.dot_dimension_numbers<[1], [0], [0], [1], [0, 0, 1, 1], [], []>} : vector<256x48xbf16>, vector<48x16xbf16>, vector<256x16xf32> -> vector<256x16xf32>
    %123 = arith.addf %118, %122 : vector<256x16xf32>
    %c32_95 = arith.constant 32 : index
    %c0_96 = arith.constant 0 : index
    %124 = vector.load %arg11[%c32_95, %c0_96] : memref<288x48xbf16, #tpu.memory_space<vmem>>, vector<256x48xbf16>
    %c2_97 = arith.constant 2 : index
    %c0_98 = arith.constant 0 : index
    %c0_99 = arith.constant 0 : index
    %125 = vector.load %arg4[%c2_97, %c0_98, %c0_99] : memref<3x48x16xbf16, #tpu.memory_space<vmem>>, vector<1x48x16xbf16>
    %126 = vector.shape_cast %125 : vector<1x48x16xbf16> to vector<48x16xbf16>
    %cst_100 = arith.constant dense<0.000000e+00> : vector<256x16xf32>
    %127 = tpu.matmul %124, %126, %cst_100 {dimension_numbers = #tpu.dot_dimension_numbers<[1], [0], [0], [1], [0, 0, 1, 1], [], []>} : vector<256x48xbf16>, vector<48x16xbf16>, vector<256x16xf32> -> vector<256x16xf32>
    %128 = arith.addf %123, %127 : vector<256x16xf32>
    %c0_101 = arith.constant 0 : index
    %c0_102 = arith.constant 0 : index
    %129 = vector.load %arg7[%c0_101, %c0_102] : memref<1x16xf32, #tpu.memory_space<vmem>>, vector<1x16xf32>
    %130 = vector.broadcast %129 : vector<1x16xf32> to vector<256x16xf32>
    %131 = arith.addf %128, %130 : vector<256x16xf32>
    %cst_103 = arith.constant 0.000000e+00 : f32
    %132 = vector.broadcast %cst_103 : f32 to vector<256x16xf32>
    %133 = arith.maximumf %131, %132 : vector<256x16xf32>
    %c0_104 = arith.constant 0 : index
    %c0_105 = arith.constant 0 : index
    %c48 = arith.constant 48 : index
    %134 = vector.load %arg8[%c0_104, %c0_105, %c48] : memref<1x256x64xf32, #tpu.memory_space<vmem>>, vector<1x256x16xf32>
    %135 = vector.shape_cast %134 : vector<1x256x16xf32> to vector<256x16xf32>
    %136 = vector.shape_cast %133 : vector<256x16xf32> to vector<1x256x16xf32>
    tpu.vector_store %arg8[%c0_104, %c0_105, %c48], %136 {strides = array<i32>} : memref<1x256x64xf32, #tpu.memory_space<vmem>>, vector<1x256x16xf32>,
    return
  }
  func.func @transform_0(%arg0: i32) -> (i32, i32, i32) {
    %c0_i32 = arith.constant 0 : i32
    %c0_i32_0 = arith.constant 0 : i32
    %c0_i32_1 = arith.constant 0 : i32
    return %arg0, %c0_i32, %c0_i32_0 : i32, i32, i32
  }
  func.func @transform_1(%arg0: i32) -> (i32, i32, i32) {
    %c0_i32 = arith.constant 0 : i32
    %c0_i32_0 = arith.constant 0 : i32
    %c0_i32_1 = arith.constant 0 : i32
    %c0_i32_2 = arith.constant 0 : i32
    return %c0_i32, %c0_i32_0, %c0_i32_1 : i32, i32, i32
  }
  func.func @transform_2(%arg0: i32) -> (i32, i32, i32) {
    %c0_i32 = arith.constant 0 : i32
    %c0_i32_0 = arith.constant 0 : i32
    %c0_i32_1 = arith.constant 0 : i32
    %c0_i32_2 = arith.constant 0 : i32
    return %c0_i32, %c0_i32_0, %c0_i32_1 : i32, i32, i32
  }
  func.func @transform_3(%arg0: i32) -> (i32, i32, i32) {
    %c0_i32 = arith.constant 0 : i32
    %c0_i32_0 = arith.constant 0 : i32
    %c0_i32_1 = arith.constant 0 : i32
    %c0_i32_2 = arith.constant 0 : i32
    return %c0_i32, %c0_i32_0, %c0_i32_1 : i32, i32, i32
  }
  func.func @transform_4(%arg0: i32) -> (i32, i32) {
    %c0_i32 = arith.constant 0 : i32
    %c0_i32_0 = arith.constant 0 : i32
    %c0_i32_1 = arith.constant 0 : i32
    return %c0_i32, %c0_i32_0 : i32, i32
  }
  func.func @transform_5(%arg0: i32) -> (i32, i32) {
    %c0_i32 = arith.constant 0 : i32
    %c0_i32_0 = arith.constant 0 : i32
    %c0_i32_1 = arith.constant 0 : i32
    return %c0_i32, %c0_i32_0 : i32, i32
  }
  func.func @transform_6(%arg0: i32) -> (i32, i32) {
    %c0_i32 = arith.constant 0 : i32
    %c0_i32_0 = arith.constant 0 : i32
    %c0_i32_1 = arith.constant 0 : i32
    return %c0_i32, %c0_i32_0 : i32, i32
  }
  func.func @transform_7(%arg0: i32) -> (i32, i32, i32) {
    %c0_i32 = arith.constant 0 : i32
    %c0_i32_0 = arith.constant 0 : i32
    %c0_i32_1 = arith.constant 0 : i32
    return %arg0, %c0_i32, %c0_i32_0 : i32, i32, i32
  }
}

</mosaic_0001>

<bundles_post_ra>
// kernel: context_module_forward.1
= control target key start
LH: loop header
LB: loop body
LE: loop exit
PB: predicated region body
PF: predicated region fallthrough
CT: control target
= control target key end

     0   :  { %12 = vsyncpa [#allocation6], 0  ;;  %s12491_s0 = inlined_call_operand.vmem [shape: bf16[2,256,64], index: 0, kind: input, shape index: {}]   ;;  %s12492_s1 = inlined_call_operand.vmem [shape: bf16[3,192,48], index: 1, kind: input, shape index: {}]   ;;  %s12493_s2 = inlined_call_operand.vmem [shape: bf16[3,48,32], index: 2, kind: input, shape index: {}]   ;;  %s12494_s3 = inlined_call_operand.vmem [shape: bf16[3,48,16], index: 3, kind: input, shape index: {}]   ;;  %s12495_s4 = inlined_call_operand.vmem [shape: f32[1,48], index: 4, kind: input, shape index: {}]   ;;  %s12496_s5 = inlined_call_operand.vmem [shape: f32[1,32], index: 5, kind: input, shape index: {}]   ;;  %s12497_s6 = inlined_call_operand.vmem [shape: f32[1,16], index: 6, kind: input, shape index: {}]   ;;  %s12498_s7 = inlined_call_operand.hbm [shape: f32[2,256,64], index: 7, kind: output, shape index: {}]  }
   0x1   :  { %14 = vsyncpa [#allocation6 + $0x1], 0  ;;  %s8802_s24 = smov 0   ;;  %s8804_s25 = smov 0  }
   0x2   :  { %s8806_s26 = smov 0   ;;  %s8808_s27 = smov 0  }
   0x3 LB: > { %s8823_s28 = sadd.s32 4294967295, %s8750_s27   ;;  %s7468_s29 = sadd.s32 4294967294, %s8750_s27   ;;  %s8750_s27 = sphi %s8808_s27, %s13367_s27   ;;  %s8746_s26 = sphi %s8806_s26, %s13366_s26   ;;  %s8742_s25 = sphi %s8804_s25, %s13365_s25   ;;  %s8738_s24 = sphi %s8802_s24, %s13364_s24  }
   0x4   : > { %s8827_s30 = sadd.s32 1, %s8750_s27   ;;  %s179_s8 = sadd.s32 1, %s8746_s26 }
   0x5   : > { %s176_s9 = ssub.s32 %s8750_s27, %s8827_s30  ;;  %p189_p0 = scmp.ne.s32.totalorder %s8746_s26, %s8742_s25 }
   0x6   : > { %p177_p1 = scmp.eq.s32.totalorder %s176_s9, 0  ;;  %p190_p2 = scmp.eq.s32.totalorder %s8823_s28, 1 }
   0x7   : > { %p195_p3 = scmp.ne.s32.totalorder %s8742_s25, %s8738_s24  ;;  %p196_p4 = scmp.eq.s32.totalorder %s7468_s29, 1 }
   0x8   : > { %s8838_s10 = scalar_select %p177_p1, %s8746_s26, %s179_s8  }
   0x9   : > { %p8840_p5 = por %p190_p2, %p189_p0  ;;  %p8844_p6 = por %p196_p4, %p195_p3 }
   0xa   : > { %p7471_p7 = scmp.ge.s32.totalorder %s8750_s27, 1  ;;  %p240_p8 = scmp.lt.s32.totalorder %s8750_s27, 3 }
   0xc   : > { %p241_p9 = pnand %p7471_p7, %p240_p8 }
   0xe   : > { %244 = sbr.rel (%p241_p9) target bundleno = 1459 (0x5b3), region = 48 }
  0x13   : > { %p272_p10 = scmp.lt.s32.totalorder %s8823_s28, 1  ;;  %v278_v0 = vlaneseq  ;;  %vm791_vm0 = vcmask 1043456   ;;  %vm792_vm1 = vcmask 523268   ;;  %v8484_v1 = vld [vmem:[%s12492_s1 + $0x58] sm:$0xff]  ;;  %v12526_v4 = vmov 0   ;;  %v8483_v6 = vld [vmem:[%s12492_s1 + $0x50] sm:$0xff] }
  0x14   : > { %vm8854_vm2 = vmor %vm792_vm1, %vm791_vm0  ;;  %2698 = vmatpush.bf16.msra.mxu3 %v8484_v1  ;;  %v8498_v5 = vld [vmem:[%s12492_s1 + $0xb8] sm:$0xff]  ;;  %vm12500_vm3 = vsmask.f32 7950  ;;  %vm1955_vm4 = vcmask 519171   ;;  %vm8753_vm5 = vmmov 1   ;;  %vm796_vm7 = vcmask 1040384  }
  0x15   : > { %s273_s15 = scalar_select %p272_p10, %s8823_s28, 1  ;;  %v8859_v3 = vshrl.u32 %v278_v0, 7  ;;  %794 = vst.msk [vmem:[#allocation2] sm:$0xff] %vm8854_vm2, %v12526_v4  ;;  %2436 = vmatpush.bf16.msra.mxu1 %v8498_v5  ;;  %vm8882_vm6 = vmpackc.low %vm8753_vm5, %vm8753_vm5  ;;  %vm12503_vm8 = vsmask.f32 256  ;;  %vm799_vm12 = vcmask 520196  }
  0x16   : > { %795 = vst.msk [vmem:[#allocation2 + $0x8] sm:$0xff] %vm8854_vm2, %v12526_v4  ;;  %vm800_vm9 = vsmask.f32 4352  ;;  %vm8894_vm11 = vmand %vm1955_vm4, %vm12500_vm3  ;;  %v12637_v12 = vmov 0  ;;  %s8754_s29 = smov 64   ;;  %v8497_v17 = vld [vmem:[%s12492_s1 + $0xb0] sm:$0xff] }
  0x17   : > { %s8440_s20 = sshll.u32 %s273_s15, 7  ;;  %v315_v7 = vand.u32 15, %v8859_v3  ;;  %817 = vst.msk [vmem:[#allocation2 + $0x118] sm:$0xff] %vm8854_vm2, %v12526_v4  ;;  %v803_v13 = vld [vmem:[#allocation2 + $0x10] sm:$0x11]  ;;  %vm8915_vm15 = vmand %vm796_vm7, %vm12503_vm8  ;;  %v8482_v18 = vld [vmem:[%s12492_s1 + $0x48] sm:$0xff] }
  0x18   : > { %s8880_s23 = scalar_lea.vmem %s12491_s0, %s8440_s20  ;;  %816 = vst.msk [vmem:[#allocation2 + $0x110] sm:$0xff] %vm8854_vm2, %v12526_v4  ;;  %2699 = vmatpush.bf16.msra.mxu3 %v8483_v6  ;;  %vm12499_vm14 = vsmask.f32 3328  ;;  %vm1601_vm0 = vsmask.f32 7440  ;;  %vm801_vm1 = vmand %vm799_vm12, %vm800_vm9  ;;  %v8496_v23 = vld [vmem:[%s12492_s1 + $0xa8] sm:$0xff] }
  0x19   : > { %vm695_vm10 = vcmp.ne.s32.totalorder %v315_v7, 0  ;;  %v8890_v9 = vld [vmem:[%s8880_s23] sm:$0xf]  ;;  %v8899_v11 = vld [vmem:[%s8880_s23 + $0x4] sm:$0xf]  ;;  %vm802_vm2 = vmor %vm801_vm1, %vm8915_vm15  ;;  %2437 = vmatpush.bf16.msra.mxu1 %v8497_v17  ;;  %v281_v26 = vadd.s32 16, %v8859_v3 }
  0x1a   : > { %vm8901_vm13 = vmpackc.low %vm695_vm10, %vm695_vm10  ;;  %850 = vrot.lane.b32.xlu0 %v8890_v9, %s8754_s29  ;;  %v1569_v14 = vsel %vm8882_vm6, %v8899_v11, 0  ;;  %v8481_v24 = vld [vmem:[%s12492_s1 + $0x40] sm:$0xff]  ;;  %v8936_v27 = vld [vmem:[%s8880_s23 + $0x8] sm:$0xf]  ;;  %v804_v30 = vsel %vm802_vm2, 0, %v803_v13  ;;  %vm12501_vm5 = vcmask 519168  }
  0x1b   : > { %v12638_v12 = vsel %vm8901_vm13, 4294967295, %v12637_v12  ;;  %v1568_v15 = vsel %vm8901_vm13, %v8890_v9, 0  ;;  %v1613_v21 = vshll.u32 %v1569_v14, 16  ;;  %v1617_v22 = vshrl.u32 %v1569_v14, 16  ;;  %854 = vrot.lane.b32.xlu1 %v8936_v27, %s8754_s29  ;;  %805 = vst [vmem:[#allocation2 + $0x10] sm:$0x11] %v804_v30  ;;  %vm8947_vm4 = vmor %vm12499_vm14, %vm1601_vm0 }
  0x1c   : > { %12639 = vst [vmem:[#allocation8_spill] sm:$0xff] %v12638_v12  ;;  %v1604_v19 = vshll.u32 %v1568_v15, 16  ;;  %v1607_v20 = vshrl.u32 %v1568_v15, 16  ;;  %2700 = vmatpush.bf16.msra.mxu3 %v8482_v18  ;;  %v8542_v33 = vld [vmem:[%s12492_s1 + $0x118] sm:$0xff]  ;;  %v329_v38 = vand.u32 15, %v281_v26  ;;  %v8495_v39 = vld [vmem:[%s12492_s1 + $0xa0] sm:$0xff] }
  0x1d   : > { %v1957_v25 = vld [vmem:[#allocation2 + $0xc] sm:$0x8]  ;;  %v1615_v31 = vrot.slane %v1613_v21, 5  ;;  %v1619_v32 = vrot.slane %v1617_v22, 4  ;;  %2438 = vmatpush.bf16.msra.mxu1 %v8496_v23  ;;  %v8538_v41 = vld [vmem:[%s12492_s1 + $0xf8] sm:$0xff]  ;;  %v283_v42 = vadd.s32 32, %v8859_v3 }
  0x1e   : > { %v1606_v28 = vrot.slane %v1604_v19, 5  ;;  %v1609_v29 = vrot.slane %v1607_v20, 4  ;;  %vm697_vm7 = vcmp.ne.s32.totalorder %v329_v38, 0  ;;  %v8961_v43 = vld [vmem:[%s8880_s23 + $0x10] sm:$0xf]  ;;  %v12644_v45 = vmov 0 }
  0x1f   : > { %v1620_v37 = vor.u32 %v1619_v32, %v1615_v31  ;;  %vm8965_vm9 = vmpackc.low %vm697_vm7, %vm697_vm7  ;;  %v8441_v46 = vld [vmem:[#allocation2 + $0x4] sm:$0xf]  ;;  %v8970_v47 = vld [vmem:[%s8880_s23 + $0xc] sm:$0xf]  ;;  %858 = vrot.lane.b32.xlu2 %v8961_v43, %s8754_s29  ;;  %v285_v50 = vadd.s32 48, %v8859_v3  ;;  %v343_v51 = vand.u32 15, %v283_v42 }
  0x20   : > { %v1610_v34 = vor.u32 %v1609_v29, %v1606_v28  ;;  %v1958_v35 = vsel %vm8894_vm11, %v1606_v28, %v1957_v25  ;;  %2701 = vmatpush.bf16.msra.mxu3 %v8481_v24  ;;  %v12645_v45 = vsel %vm8965_vm9, 4294967295, %v12644_v45  ;;  %v1570_v49 = vsel %vm8965_vm9, %v8936_v27, 0  ;;  %v8980_v52 = vld [vmem:[%s8880_s23 + $0x14] sm:$0xf]  ;;  %v8983_v55 = vld [vmem:[%s8880_s23 + $0x18] sm:$0xf] }
  0x21   : > { %1959 = vst [vmem:[#allocation2 + $0xc] sm:$0x8] %v1958_v35  ;;  %v1621_v48 = vrot.slane %v1620_v37, 4  ;;  %2439 = vmatpush.bf16.msra.mxu1 %v8495_v39  ;;  %v1623_v53 = vshll.u32 %v1570_v49, 16  ;;  %v1627_v54 = vshrl.u32 %v1570_v49, 16  ;;  %v357_v56 = vand.u32 15, %v285_v50 }
  0x22   : > { %v1611_v40 = vrot.slane %v1610_v34, 4  ;;  %852 = vrot.lane.b32.xlu0 %v8899_v11, %s8754_s29  ;;  %12646 = vst [vmem:[#allocation9_spill] sm:$0xff] %v12645_v45  ;;  %vm699_vm10 = vcmp.ne.s32.totalorder %v343_v51, 0  ;;  %v1571_v57 = vsel %vm8882_vm6, %v8970_v47, 0  ;;  %vm12502_vm11 = vcmask 523264   ;;  %s8755_s20 = smov 112  }
  0x23   : > { %856 = vrot.lane.b32.xlu1 %v8970_v47, %s8754_s29  ;;  %v1625_v58 = vrot.slane %v1623_v53, 5  ;;  %v1629_v59 = vrot.slane %v1627_v54, 4  ;;  %v1633_v61 = vshll.u32 %v1571_v57, 16  ;;  %vm701_vm12 = vcmp.ne.s32.totalorder %v357_v56, 0  ;;  %vm8990_vm15 = vmpackc.low %vm699_vm10, %vm699_vm10  ;;  %v9019_v32 = vld [vmem:[%s8880_s23 + $0x1c] sm:$0xf] }
  0x24   : > { %3197 = vmatpush.bf16.msrb.mxu3 %v8542_v33  ;;  %v1616_v44 = vsel %vm8947_vm4, %v1611_v40, %v1615_v31  ;;  %v12647_v63 = vmov 0  ;;  %v1637_v0 = vshrl.u32 %v1571_v57, 16  ;;  %vm8996_vm0 = vmpackc.low %vm701_vm12, %vm701_vm12  ;;  %v12650_v5 = vmov 0  ;;  %v9033_v49 = vld [vmem:[%s8880_s23 + $0x20] sm:$0xf]  ;;  %v8537_v53 = vld [vmem:[%s12492_s1 + $0xf0] sm:$0xff] }
  0x25   : > { %1960 = vst.msk [vmem:[#allocation2 + $0x14] sm:$0xf] %vm12501_vm5, %v1616_v44  ;;  %3104 = vmatpush.bf16.msrb.mxu1 %v8538_v41  ;;  %v12648_v63 = vsel %vm8990_vm15, 4294967295, %v12647_v63  ;;  %v1626_v1 = vsel %vm8947_vm4, %v1621_v48, %v1625_v58  ;;  %v1630_v2 = vor.u32 %v1629_v59, %v1625_v58  ;;  %v12651_v5 = vsel %vm8996_vm0, 4294967295, %v12650_v5  ;;  %s8756_s21 = smov 96   ;;  %s8759_s13 = smov 48  }
  0x26   : > { %12649 = vst [vmem:[#allocation10_spill] sm:$0xff] %v12648_v63  ;;  %v1573_v6 = vsel %vm8882_vm6, %v8980_v52, 0  ;;  %v1572_v7 = vsel %vm8990_vm15, %v8961_v43, 0  ;;  %v1574_v10 = vsel %vm8996_vm0, %v8983_v55, 0  ;;  %v1635_v13 = vrot.slane %v1633_v61, 5  ;;  %s8627_s14 = sshll.u32 %s8823_s28, 8 }
  0x27   : > { %12652 = vst [vmem:[#allocation11_spill] sm:$0xff] %v12651_v5  ;;  %v1639_v14 = vrot.slane %v1637_v0, 4  ;;  %v1631_v15 = vrot.slane %v1630_v2, 4  ;;  %v1643_v16 = vshll.u32 %v1572_v7, 16  ;;  %v1647_v17 = vshrl.u32 %v1572_v7, 16  ;;  %860 = vrot.lane.b32.xlu2 %v8980_v52, %s8754_s29  ;;  %s7402_s17 = scalar_lea.hbm %s12498_s7, %s8627_s14 }
  0x28   : > { %v7695_v60 = vld [vmem:[#allocation2 + $0x8] sm:$0xf0]  ;;  %1961 = vst.msk [vmem:[#allocation2 + $0x1c] sm:$0xf] %vm12501_vm5, %v1626_v1  ;;  %v1653_v19 = vshll.u32 %v1573_v6, 16  ;;  %v1657_v20 = vshrl.u32 %v1573_v6, 16 }
  0x29   : > { %v7698_v62 = vor.u32 %v8441_v46, %v7695_v60  ;;  %v1640_v18 = vor.u32 %v1639_v14, %v1635_v13  ;;  %v1663_v21 = vshll.u32 %v1574_v10, 16  ;;  %v1645_v22 = vrot.slane %v1643_v16, 5  ;;  %3105 = vmatpush.bf16.msrb.mxu1 %v8537_v53  ;;  %s7405_s22 = sshll.u32 %s7402_s17, 4  ;;  %s7406_s22 = int_to_ptr.hbm [resolvable:$true] %s7405_s22 }
  0x2a   : > { %862 = vrot.lane.b32.xlu0 %v8983_v55, %s8754_s29  ;;  %v1649_v23 = vrot.slane %v1647_v17, 4  ;;  %v1655_v25 = vrot.slane %v1653_v19, 5  ;;  %v1659_v26 = vrot.slane %v1657_v20, 4  ;;  %v1636_v30 = vsel %vm8947_vm4, %v1631_v15, %v1635_v13  ;;  %v9061_v15 = vld [vmem:[%s8880_s23 + $0x24] sm:$0xf]  ;;  %s8702_s9 = sshra.s32 %s7406_s22, 4  ;;  %s8703_s9 = int_to_ptr.hbm [resolvable:$true] %s8702_s9 }
  0x2b   : > { %7747 = vmatmul.msk.bf16.vlgmr.msra.gmra.mxu3 %vm12502_vm11, %v7698_v62  ;;  %v1641_v24 = vrot.slane %v1640_v18, 4  ;;  %v287_v31 = vadd.s32 64, %v8859_v3  ;;  %v1665_v35 = vrot.slane %v1663_v21, 5  ;;  %1962 = vst.msk [vmem:[#allocation2 + $0x24] sm:$0xf] %vm12501_vm5, %v1636_v30  ;;  %v1575_v37 = vsel %vm8882_vm6, %v9019_v32, 0  ;;  %864 = vrot.lane.b32.xlu1 %v9019_v32, %s8754_s29  ;;  %p8709_p0 = scmp.lt.s32.totalorder %s8703_s9, %s12498_s7 }
  0x2c   : > { %v8443_v28 = vld [vmem:[#allocation2 + $0x14] sm:$0xf]  ;;  %v1650_v29 = vor.u32 %v1649_v23, %v1645_v22  ;;  %v1660_v34 = vor.u32 %v1659_v26, %v1655_v25  ;;  %v1667_v44 = vshrl.u32 %v1574_v10, 16  ;;  %v1673_v46 = vshll.u32 %v1575_v37, 16 }
  0x2d   : > { %v1646_v33 = vsel %vm8947_vm4, %v1641_v24, %v1645_v22  ;;  %v371_v40 = vand.u32 15, %v287_v31  ;;  %v1677_v50 = vshrl.u32 %v1575_v37, 16  ;;  %v12653_v54 = vmov 0  ;;  %v9069_v22 = vld [vmem:[%s8880_s23 + $0x28] sm:$0xf] }
  0x2e   : > { %v1651_v39 = vrot.slane %v1650_v29, 4  ;;  %1963 = vst.msk [vmem:[#allocation2 + $0x2c] sm:$0xf] %vm12501_vm5, %v1646_v33  ;;  %v1661_v42 = vrot.slane %v1660_v34, 4  ;;  %v1669_v56 = vrot.slane %v1667_v44, 4  ;;  %v1675_v57 = vrot.slane %v1673_v46, 5 }
  0x2f   : > { %v7503_v38 = vld [vmem:[#allocation2 + $0x18] sm:$0xf0]  ;;  %vm703_vm1 = vcmp.ne.s32.totalorder %v371_v40, 0  ;;  %866 = vrot.lane.b32.xlu2 %v9033_v49, %s8754_s29  ;;  %v1679_v59 = vrot.slane %v1677_v50, 4  ;;  %v289_v14 = vadd.s32 80, %v8859_v3  ;;  %v1577_v18 = vsel %vm8882_vm6, %v9061_v15, 0 }
  0x30   : > { %v7506_v41 = vor.u32 %v8443_v28, %v7503_v38  ;;  %v1656_v48 = vsel %vm8947_vm4, %v1651_v39, %v1655_v25  ;;  %v1666_v51 = vsel %vm8947_vm4, %v1661_v42, %v1665_v35  ;;  %vm9042_vm2 = vmpackc.low %vm703_vm1, %vm703_vm1  ;;  %v1670_v60 = vor.u32 %v1669_v56, %v1665_v35  ;;  %v9078_v28 = vld [vmem:[%s8880_s23 + $0x2c] sm:$0xf]  ;;  %v771_v38 = vld [vmem:[%s8880_s23 + $0x30] sm:$0xf] }
  0x31   : > { %1964 = vst.msk [vmem:[#allocation2 + $0x34] sm:$0xf] %vm12501_vm5, %v1656_v48  ;;  %v12654_v54 = vsel %vm9042_vm2, 4294967295, %v12653_v54  ;;  %v1576_v58 = vsel %vm9042_vm2, %v9033_v49, 0  ;;  %v1680_v62 = vor.u32 %v1679_v59, %v1675_v57  ;;  %v385_v17 = vand.u32 15, %v289_v14 }
  0x32   : > { %7675 = vmatmul.msk.bf16.vlgmr.msra.gmra.mxu1 %vm12502_vm11, %v7506_v41  ;;  %12655 = vst [vmem:[#allocation12_spill] sm:$0xff] %v12654_v54  ;;  %v1683_v61 = vshll.u32 %v1576_v58, 16  ;;  %v1671_v0 = vrot.slane %v1670_v60, 4  ;;  %v8445_v10 = vld [vmem:[#allocation2 + $0x24] sm:$0xf]  ;;  %868 = vrot.lane.b32.xlu0 %v9061_v15, %s8754_s29  ;;  %v1687_v19 = vshrl.u32 %v1576_v58, 16 }
  0x33   : > { %1965 = vst.msk [vmem:[#allocation2 + $0x3c] sm:$0xf] %vm12501_vm5, %v1666_v51  ;;  %v1681_v2 = vrot.slane %v1680_v62, 4  ;;  %v1693_v20 = vshll.u32 %v1577_v18, 16  ;;  %v1697_v21 = vshrl.u32 %v1577_v18, 16  ;;  %vm705_vm7 = vcmp.ne.s32.totalorder %v385_v17, 0  ;;  %870 = vrot.lane.b32.xlu1 %v9069_v22, %s8754_s29 }
  0x34   : > { %v1685_v1 = vrot.slane %v1683_v61, 5  ;;  %v1676_v6 = vsel %vm8947_vm4, %v1671_v0, %v1675_v57  ;;  %vm9071_vm10 = vmpackc.low %vm705_vm7, %vm705_vm7  ;;  %v12656_v23 = vmov 0  ;;  %v1689_v24 = vrot.slane %v1687_v19, 4  ;;  %v8541_v58 = vld [vmem:[%s12492_s1 + $0x110] sm:$0xff]  ;;  %v8480_v18 = vld [vmem:[%s12492_s1 + $0x38] sm:$0xff] }
  0x35   : > { %1966 = vst.msk [vmem:[#allocation2 + $0x44] sm:$0xf] %vm12501_vm5, %v1676_v6  ;;  %v7511_v13 = vld [vmem:[#allocation2 + $0x28] sm:$0xf0]  ;;  %v12657_v23 = vsel %vm9071_vm10, 4294967295, %v12656_v23  ;;  %v1695_v25 = vrot.slane %v1693_v20, 5  ;;  %3198 = vmatpush.bf16.msrb.mxu3 %v8541_v58  ;;  %2605 = vmatpush.bf16.msra.mxu2 %v8480_v18 }
  0x36   : > { %v1686_v7 = vsel %vm8947_vm4, %v1681_v2, %v1685_v1  ;;  %v7514_v16 = vor.u32 %v8445_v10, %v7511_v13  ;;  %12658 = vst [vmem:[#allocation13_spill] sm:$0xff] %v12657_v23  ;;  %v291_v26 = vadd.s32 96, %v8859_v3  ;;  %v1578_v29 = vsel %vm9071_vm10, %v9069_v22, 0  ;;  %v8493_v58 = vld [vmem:[%s12492_s1 + $0x90] sm:$0xff] }
  0x37   : > { %1967 = vst.msk [vmem:[#allocation2 + $0x4c] sm:$0xf] %vm12501_vm5, %v1686_v7  ;;  %v1579_v30 = vsel %vm8882_vm6, %v9078_v28, 0  ;;  %v1690_v31 = vor.u32 %v1689_v24, %v1685_v1  ;;  %v1699_v33 = vrot.slane %v1697_v21, 4  ;;  %872 = vrot.lane.b32.xlu2 %v9078_v28, %s8754_s29  ;;  %v1703_v35 = vshll.u32 %v1578_v29, 16 }
  0x38   : > { %v399_v34 = vand.u32 15, %v291_v26  ;;  %v1707_v37 = vshrl.u32 %v1578_v29, 16  ;;  %v1717_v42 = vshrl.u32 %v1579_v30, 16  ;;  %v12659_v56 = vmov 0  ;;  %v8447_v1 = vld [vmem:[#allocation2 + $0x34] sm:$0xf] }
  0x39   : > { %v1691_v39 = vrot.slane %v1690_v31, 4  ;;  %v1700_v40 = vor.u32 %v1699_v33, %v1695_v25  ;;  %v1705_v44 = vrot.slane %v1703_v35, 5  ;;  %v280_v17 = vadd.s32 8, %v8859_v3  ;;  %v773_v35 = vld [vmem:[%s8880_s23 + $0x38] sm:$0xf] }
  0x3a   : > { %vm707_vm12 = vcmp.ne.s32.totalorder %v399_v34, 0  ;;  %v1709_v46 = vrot.slane %v1707_v37, 4  ;;  %874 = vrot.lane.b32.xlu0 %v771_v38, %s8754_s29  ;;  %v1719_v53 = vrot.slane %v1717_v42, 4  ;;  %v7519_v2 = vld [vmem:[#allocation2 + $0x38] sm:$0xf0]  ;;  %v293_v24 = vadd.s32 112, %v8859_v3 }
  0x3b   : > { %7748 = vmatmul.msk.bf16.gmra.mxu3 %vm12502_vm11, %v7506_v41  ;;  %v1713_v41 = vshll.u32 %v1579_v30, 16  ;;  %v1696_v48 = vsel %vm8947_vm4, %v1691_v39, %v1695_v25  ;;  %v1701_v50 = vrot.slane %v1700_v40, 4  ;;  %vm9095_vm1 = vmpackc.low %vm707_vm12, %vm707_vm12  ;;  %v7522_v13 = vor.u32 %v8447_v1, %v7519_v2  ;;  %v9125_v25 = vld [vmem:[%s8880_s23 + $0x34] sm:$0xf]  ;;  %v8680_v23 = vld [vmem:[%s8880_s23 + $0x30] sm:$0xf] }
  0x3c   : > { %v12660_v56 = vsel %vm9095_vm1, 4294967295, %v12659_v56  ;;  %v1710_v57 = vor.u32 %v1709_v46, %v1705_v44  ;;  %1968 = vst.msk [vmem:[#allocation2 + $0x54] sm:$0xf] %vm12501_vm5, %v1696_v48  ;;  %v1580_v59 = vsel %vm9095_vm1, %v771_v38, 0  ;;  %v322_v19 = vand.u32 15, %v280_v17  ;;  %876 = vrot.lane.b32.xlu1 %v9125_v25, %s8754_s29  ;;  %v8479_v46 = vld [vmem:[%s12492_s1 + $0x30] sm:$0xff] }
  0x3d   : > { %v1715_v51 = vrot.slane %v1713_v41, 5  ;;  %12661 = vst [vmem:[#allocation14_spill] sm:$0xff] %v12660_v56  ;;  %v1706_v60 = vsel %vm8947_vm4, %v1701_v50, %v1705_v44  ;;  %v1723_v0 = vshll.u32 %v1580_v59, 16  ;;  %v8449_v20 = vld [vmem:[#allocation2 + $0x44] sm:$0xf]  ;;  %v413_v29 = vand.u32 15, %v293_v24  ;;  %2606 = vmatpush.bf16.msra.mxu2 %v8479_v46 }
  0x3e   : > { %v1711_v61 = vrot.slane %v1710_v57, 4  ;;  %1969 = vst.msk [vmem:[#allocation2 + $0x5c] sm:$0xf] %vm12501_vm5, %v1706_v60  ;;  %v7527_v21 = vld [vmem:[#allocation2 + $0x48] sm:$0xf0]  ;;  %v1581_v30 = vsel %vm8882_vm6, %v9125_v25, 0 }
  0x3f   : > { %v1720_v62 = vor.u32 %v1719_v53, %v1715_v51  ;;  %v1725_v10 = vrot.slane %v1723_v0, 5  ;;  %v7530_v26 = vor.u32 %v8449_v20, %v7527_v21  ;;  %vm728_vm7 = vcmp.ne.s32.totalorder %v322_v19, 15  ;;  %v8494_v44 = vld [vmem:[%s12492_s1 + $0x98] sm:$0xff]  ;;  %878 = vrot.lane.b32.xlu2 %v773_v35, %s8754_s29  ;;  %v8478_v0 = vld [vmem:[%s12492_s1 + $0x28] sm:$0xff] }
  0x40   : > { %v1716_v6 = vsel %vm8947_vm4, %v1711_v61, %v1715_v51  ;;  %v1727_v31 = vshrl.u32 %v1580_v59, 16  ;;  %v1733_v33 = vshll.u32 %v1581_v30, 16  ;;  %v1737_v34 = vshrl.u32 %v1581_v30, 16  ;;  %vm9137_vm3 = vmpackc.low %vm728_vm7, %vm728_vm7  ;;  %2343 = vmatpush.bf16.msra.mxu0 %v8494_v44  ;;  %v8476_v30 = vld [vmem:[%s12492_s1 + $0x18] sm:$0xff] }
  0x41   : > { %v1721_v7 = vrot.slane %v1720_v62, 4  ;;  %1970 = vst.msk [vmem:[#allocation2 + $0x64] sm:$0xf] %vm12501_vm5, %v1716_v6  ;;  %vm709_vm12 = vcmp.ne.s32.totalorder %v413_v29, 0  ;;  %v12662_v37 = vmov 0  ;;  %v12665_v41 = vmov 0  ;;  %2607 = vmatpush.bf16.msra.mxu2 %v8478_v0 }
  0x42   : > { %7676 = vmatmul.msk.bf16.gmra.mxu1 %vm12502_vm11, %v7514_v16  ;;  %vm9133_vm14 = vmpackc.low %vm709_vm12, %vm709_vm12  ;;  %v1729_v38 = vrot.slane %v1727_v31, 4  ;;  %v1735_v39 = vrot.slane %v1733_v33, 5  ;;  %v1739_v40 = vrot.slane %v1737_v34, 4  ;;  %v12666_v41 = vsel %vm9137_vm3, 4294967295, %v12665_v41  ;;  %v8491_v29 = vld [vmem:[%s12492_s1 + $0x80] sm:$0xff] }
  0x43   : > { %v1726_v14 = vsel %vm8947_vm4, %v1721_v7, %v1725_v10  ;;  %v12663_v37 = vsel %vm9133_vm14, 4294967295, %v12662_v37  ;;  %12667 = vst [vmem:[#allocation16_spill] sm:$0xff] %v12666_v41  ;;  %v282_v42 = vadd.s32 24, %v8859_v3  ;;  %v1582_v48 = vsel %vm9133_vm14, %v773_v35, 0 }
  0x44   : > { %1971 = vst.msk [vmem:[#allocation2 + $0x6c] sm:$0xf] %vm12501_vm5, %v1726_v14  ;;  %v1730_v50 = vor.u32 %v1729_v38, %v1725_v10  ;;  %v1740_v51 = vor.u32 %v1739_v40, %v1735_v39  ;;  %v1743_v53 = vshll.u32 %v1582_v48, 16  ;;  %v9155_v57 = vsel %vm8882_vm6, %v8890_v9, 0  ;;  %2344 = vmatpush.bf16.msra.mxu0 %v8493_v58  ;;  %v8477_v10 = vld [vmem:[%s12492_s1 + $0x20] sm:$0xff] }
  0x45   : > { %12664 = vst [vmem:[#allocation15_spill] sm:$0xff] %v12663_v37  ;;  %v1076_v59 = vsel %vm9137_vm3, %v8899_v11, 0  ;;  %v336_v9 = vand.u32 15, %v282_v42  ;;  %v1110_v1 = vshrl.u32 %v9155_v57, 16  ;;  %v8492_v11 = vld [vmem:[%s12492_s1 + $0x88] sm:$0xff]  ;;  %v295_v20 = vadd.s32 128, %v8859_v3  ;;  %2608 = vmatpush.bf16.msra.mxu2 %v8477_v10 }
  0x46   : > { %v1731_v60 = vrot.slane %v1730_v50, 4  ;;  %v1741_v61 = vrot.slane %v1740_v51, 4  ;;  %v9163_v62 = vrot.slane %v1743_v53, 5  ;;  %v1118_v7 = vshrl.u32 %v1076_v59, 16  ;;  %v7535_v17 = vld [vmem:[#allocation2 + $0x58] sm:$0xf0] }
  0x47   : > { %vm730_vm7 = vcmp.ne.s32.totalorder %v336_v9, 15  ;;  %v9186_v14 = vrot.slane %v1110_v1, 7  ;;  %v1121_v19 = vshll.u32 %v1076_v59, 16  ;;  %vm1107_vm12 = vsmask.f32 4368  ;;  %v8535_v1 = vld [vmem:[%s12492_s1 + $0xe0] sm:$0xff] }
  0x48   : > { %v1736_v2 = vsel %vm8947_vm4, %v1731_v60, %v1735_v39  ;;  %v1746_v6 = vsel %vm8947_vm4, %v1741_v61, %v9163_v62  ;;  %v9188_v18 = vrot.slane %v1118_v7, 7  ;;  %2345 = vmatpush.bf16.msra.mxu0 %v8492_v11  ;;  %v12668_v24 = vmov 0  ;;  %v8475_v61 = vld [vmem:[%s12492_s1 + $0x10] sm:$0xff] }
  0x49   : > { %1972 = vst.msk [vmem:[#allocation2 + $0x74] sm:$0xf] %vm12501_vm5, %v1736_v2  ;;  %v427_v31 = vand.u32 15, %v295_v20  ;;  %v1116_v34 = vrot.slane %v9186_v14, 4  ;;  %v1747_v35 = vshrl.u32 %v1582_v48, 16  ;;  %2609 = vmatpush.bf16.msra.mxu2 %v8476_v30  ;;  %v12673_v51 = vmov 0 }
  0x4a   : > { %1973 = vst.msk [vmem:[#allocation2 + $0x7c] sm:$0xf] %vm12501_vm5, %v1746_v6  ;;  %vm9191_vm5 = vmpackc.low %vm730_vm7, %vm730_vm7  ;;  %v1123_v42 = vor.u32 %v1121_v19, %v9188_v18  ;;  %v9225_v48 = vld [vmem:[%s8880_s23 + $0x40] sm:$0xf]  ;;  %v1125_v60 = vrot.slane %v9188_v18, 4  ;;  %v297_v2 = vadd.s32 144, %v8859_v3 }
  0x4b   : > { %7749 = vmatmul.msk.bf16.gmra.mxu3 %vm12502_vm11, %v7514_v16  ;;  %v8536_v16 = vld [vmem:[%s12492_s1 + $0xe8] sm:$0xff]  ;;  %v12669_v24 = vsel %vm9191_vm5, 4294967295, %v12668_v24  ;;  %vm9212_vm7 = vmor %vm12503_vm8, %vm1107_vm12  ;;  %v9220_v46 = vsel %vm9191_vm5, %v8970_v47, 0  ;;  %v1749_v53 = vrot.slane %v1747_v35, 4  ;;  %vm12676_vm8 = vcmask 523264   ;;  %v8490_v47 = vld [vmem:[%s12492_s1 + $0x78] sm:$0xff]  ;;  %882 = vrot.lane.b32.xlu1 %v9225_v48, %s8754_s29 }
  0x4c   : > { %3106 = vmatpush.bf16.msrb.mxu1 %v8536_v16  ;;  %v8451_v16 = vld [vmem:[#allocation2 + $0x54] sm:$0xf]  ;;  %12670 = vst [vmem:[#allocation17_spill] sm:$0xff] %v12669_v24  ;;  %2346 = vmatpush.bf16.msra.mxu0 %v8491_v29  ;;  %v1136_v9 = vshrl.u32 %v9220_v46, 16  ;;  %v776_v6 = vld [vmem:[%s8880_s23 + $0x44] sm:$0xf] }
  0x4d   : > { %v1750_v7 = vor.u32 %v1749_v53, %v9163_v62  ;;  %v1585_v10 = vsel %vm8882_vm6, %v776_v6, 0  ;;  %v8489_v18 = vld [vmem:[%s12492_s1 + $0x70] sm:$0xff]  ;;  %884 = vrot.lane.b32.xlu2 %v776_v6, %s8754_s29  ;;  %2610 = vmatpush.bf16.msra.mxu2 %v8475_v61  ;;  %v441_v62 = vand.u32 15, %v297_v2  ;;  %v777_v20 = vld [vmem:[%s8880_s23 + $0x48] sm:$0xf]  ;;  %v1139_v2 = vshll.u32 %v9220_v46, 16 }
  0x4e   : > { %v8474_v30 = vld [vmem:[%s12492_s1 + $0x8] sm:$0xff]  ;;  %v1777_v35 = vshrl.u32 %v1585_v10, 16 }
  0x4f   : > { %v8442_v61 = vld [vmem:[#allocation2 + $0x4] sm:$0xf0] }
  0x50   : > { %2347 = vmatpush.bf16.msra.mxu0 %v8490_v47  ;;  %3107 = vmatpush.bf16.msrb.mxu1 %v8535_v1  ;;  %v1779_v53 = vrot.slane %v1777_v35, 4  ;;  %v8473_v47 = vld [vmem:[%s12492_s1] sm:$0xff]  ;;  %v1138_v1 = vrot.slane %v1136_v9, 7 }
  0x51   : > { %2611 = vmatpush.bf16.msra.mxu2 %v8474_v30 }
  0x52   : > { %7677 = vmatmul.msk.bf16.gmra.mxu1 %vm12502_vm11, %v7522_v13 }
  0x54   : > { %2348 = vmatpush.bf16.msra.mxu0 %v8489_v18 }
  0x55   : > { %2612 = vmatpush.bf16.msra.mxu2 %v8473_v47  ;;  %v284_v47 = vadd.s32 40, %v8859_v3 }
  0x5b   : > { %7750 = vmatmul.msk.bf16.gmra.mxu3 %vm12502_vm11, %v7522_v13  ;;  %v1077_v13 = vsel %vm8882_vm6, %v8936_v27, 0  ;;  %v7538_v27 = vor.u32 %v8451_v16, %v7535_v17  ;;  %v9255_v17 = vsel %vm9212_vm7, %v1116_v34, %v1123_v42  ;;  %v1773_v34 = vshll.u32 %v1585_v10, 16  ;;  %v7543_v10 = vld [vmem:[#allocation2 + $0x68] sm:$0xf0] }
  0x5c   : > { %v1127_v21 = vshrl.u32 %v1077_v13, 16  ;;  %v1130_v44 = vshll.u32 %v1077_v13, 16 }
  0x5e   : > { %v9222_v50 = vrot.slane %v1127_v21, 7  ;;  %v1751_v21 = vrot.slane %v1750_v7, 4 }
  0x60   : > { %v1132_v19 = vor.u32 %v1130_v44, %v9222_v50  ;;  %v1775_v44 = vrot.slane %v1773_v34, 5 }
  0x62   : > { %7678 = vmatmul.msk.bf16.gmra.mxu1 %vm12502_vm11, %v7530_v26 }
  0x6b   : > { %7751 = vmatmul.msk.bf16.gmra.mxu3 %vm12502_vm11, %v7530_v26  ;;  %v9196_v26 = vld [vmem:[%s8880_s23 + $0x3c] sm:$0xf]  ;;  %vm711_vm11 = vcmp.ne.s32.totalorder %v427_v31, 0 }
  0x6c   : > { %v1583_v33 = vsel %vm8882_vm6, %v9196_v26, 0  ;;  %880 = vrot.lane.b32.xlu0 %v9196_v26, %s8754_s29  ;;  %vm9227_vm12 = vmpackc.low %vm711_vm11, %vm711_vm11  ;;  %vm12677_vm11 = vcmask 523264  }
  0x6d   : > { %v1753_v38 = vshll.u32 %v1583_v33, 16  ;;  %v1757_v39 = vshrl.u32 %v1583_v33, 16  ;;  %v12674_v51 = vsel %vm9227_vm12, 4294967295, %v12673_v51  ;;  %v1584_v0 = vsel %vm9227_vm12, %v9225_v48, 0 }
  0x6e   : > { %12675 = vst [vmem:[#allocation18_spill] sm:$0xff] %v12674_v51  ;;  %v1763_v13 = vshll.u32 %v1584_v0, 16  ;;  %v1767_v16 = vshrl.u32 %v1584_v0, 16  ;;  %vm12678_vm12 = vcmask 519168   ;;  %v1133_v0 = vsel %vm9212_vm7, %v1125_v60, %v1132_v19  ;;  %v8487_v60 = vld [vmem:[%s12492_s1 + $0x60] sm:$0xff] }
  0x6f   : > { %v1755_v58 = vrot.slane %v1753_v38, 5  ;;  %v1759_v59 = vrot.slane %v1757_v39, 4  ;;  %v1134_v19 = vrot.slane %v9222_v50, 4  ;;  %v8540_v50 = vld [vmem:[%s12492_s1 + $0x108] sm:$0xff] }
  0x70   : > { %v1765_v31 = vrot.slane %v1763_v13, 5  ;;  %v1769_v33 = vrot.slane %v1767_v16, 4  ;;  %v1780_v13 = vor.u32 %v1779_v53, %v1775_v44  ;;  %3199 = vmatpush.bf16.msrb.mxu3 %v8540_v50  ;;  %v7551_v53 = vld [vmem:[#allocation2 + $0x78] sm:$0xf0] }
  0x71   : > { %v1760_v11 = vor.u32 %v1759_v59, %v1755_v58  ;;  %v1756_v38 = vsel %vm8947_vm4, %v1751_v21, %v1755_v58  ;;  %v8488_v59 = vld [vmem:[%s12492_s1 + $0x68] sm:$0xff]  ;;  %v12679_v58 = vmov 0 }
  0x72   : > { %7679 = vmatmul.msk.bf16.gmra.mxu1 %vm12676_vm8, %v7538_v27  ;;  %vm713_vm8 = vcmp.ne.s32.totalorder %v441_v62, 0  ;;  %v1770_v42 = vor.u32 %v1769_v33, %v1765_v31  ;;  %1974 = vst.msk [vmem:[#allocation2 + $0x84] sm:$0xf] %vm12678_vm12, %v1756_v38  ;;  %2349 = vmatpush.bf16.msra.mxu0 %v8488_v59  ;;  %v1781_v46 = vrot.slane %v1780_v13, 4  ;;  %v1079_v33 = vsel %vm8882_vm6, %v8961_v43, 0 }
  0x73   : > { %v1761_v29 = vrot.slane %v1760_v11, 4  ;;  %vm9279_vm14 = vmpackc.low %vm713_vm8, %vm713_vm8  ;;  %v8453_v11 = vld [vmem:[#allocation2 + $0x64] sm:$0xf]  ;;  %v1145_v35 = vshrl.u32 %v1079_v33, 16  ;;  %v1148_v38 = vshll.u32 %v1079_v33, 16  ;;  %v299_v43 = vadd.s32 160, %v8859_v3 }
  0x74   : > { %886 = vrot.lane.b32.xlu0 %v777_v20, %s8754_s29  ;;  %v12680_v58 = vsel %vm9279_vm14, 4294967295, %v12679_v58  ;;  %v9289_v6 = vsel %vm9279_vm14, %v777_v20, 0  ;;  %v1771_v7 = vrot.slane %v1770_v42, 4  ;;  %v1141_v20 = vor.u32 %v1139_v2, %v1138_v1  ;;  %v9326_v2 = vld [vmem:[%s8880_s23 + $0x4c] sm:$0xf] }
  0x75   : > { %v1766_v39 = vsel %vm8947_vm4, %v1761_v29, %v1765_v31  ;;  %12681 = vst [vmem:[#allocation19_spill] sm:$0xff] %v12680_v58  ;;  %v1783_v16 = vshll.u32 %v9289_v6, 16  ;;  %v7546_v21 = vor.u32 %v8453_v11, %v7543_v10  ;;  %v1143_v42 = vrot.slane %v1138_v1, 4  ;;  %888 = vrot.lane.b32.xlu1 %v9326_v2, %s8754_s29 }
  0x76   : > { %v1776_v18 = vsel %vm8947_vm4, %v1771_v7, %v1775_v44  ;;  %2350 = vmatpush.bf16.msra.mxu0 %v8487_v60  ;;  %v9308_v30 = vsel %vm9212_vm7, %v1134_v19, %v1141_v20  ;;  %v8455_v44 = vld [vmem:[#allocation2 + $0x74] sm:$0xf]  ;;  %v9320_v59 = vrot.slane %v1145_v35, 7  ;;  %v350_v7 = vand.u32 15, %v284_v47  ;;  %v9348_v19 = vld [vmem:[%s8880_s23 + $0x50] sm:$0xf] }
  0x77   : > { %v9297_v9 = vrot.slane %v1783_v16, 5  ;;  %v7554_v1 = vor.u32 %v8455_v44, %v7551_v53  ;;  %v455_v11 = vand.u32 15, %v299_v43  ;;  %v1587_v10 = vsel %vm8882_vm6, %v9326_v2, 0  ;;  %890 = vrot.lane.b32.xlu2 %v9348_v19, %s8754_s29 }
  0x78   : > { %v286_v16 = vadd.s32 56, %v8859_v3  ;;  %v12691_v20 = vmov 0 }
  0x79   : > { %v1786_v29 = vsel %vm8947_vm4, %v1781_v46, %v9297_v9  ;;  %v859_v31 = vpop.permute.xlu2 %858  ;;  %vm715_vm10 = vcmp.ne.s32.totalorder %v455_v11, 0 }
  0x7a   : > { %v364_v53 = vand.u32 15, %v286_v16 }
  0x7b   : > { %7752 = vmatmul.msk.bf16.gmra.mxu3 %vm12677_vm11, %v7538_v27  ;;  %vm12682_vm11 = vmmov %vm12678_vm12  ;;  %v7693_v27 = vld [vmem:[#allocation2] sm:$0xf] }
  0x7c   : > { %1975 = vst.msk [vmem:[#allocation2 + $0x8c] sm:$0xf] %vm12682_vm11, %v1766_v39  ;;  %v7694_v62 = vor.u32 %v8442_v61, %v7693_v27  ;;  %vm12683_vm12 = vmmov %vm12682_vm11  ;;  %v1113_v39 = vshll.u32 %v9155_v57, 16  ;;  %v1150_v61 = vor.u32 %v1148_v38, %v9320_v59 }
  0x7d   : > { %1976 = vst.msk [vmem:[#allocation2 + $0x94] sm:$0xf] %vm12683_vm12, %v1776_v18  ;;  %vm12684_vm8 = vmmov %vm12682_vm11  ;;  %vm12685_vm11 = vcmask 523264   ;;  %vm12512_vm12 = vcmask 1043968   ;;  %v1787_v18 = vshrl.u32 %v9289_v6, 16  ;;  %v8534_v6 = vld [vmem:[%s12492_s1 + $0xd8] sm:$0xff] }
  0x7e   : > { %1977 = vst.msk [vmem:[#allocation2 + $0x9c] sm:$0xf] %vm12684_vm8, %v1786_v29  ;;  %2613 = vmatmul.bf16.vlgmr.msra.gmra.mxu2 %v7694_v62  ;;  %vm12686_vm14 = vmmov %vm12685_vm11  ;;  %v1115_v57 = vor.u32 %v1113_v39, %v9186_v14  ;;  %v1151_v14 = vsel %vm9212_vm7, %v1143_v42, %v1150_v61  ;;  %v1793_v62 = vshll.u32 %v1587_v10, 16  ;;  %3108 = vmatpush.bf16.msrb.mxu1 %v8534_v6 }
  0x7f   : > { %951 = vst.msk [vmem:[#allocation2 + $0x30] sm:$0xf] %vm12512_vm12, %v859_v31  ;;  %vm12689_vm1 = vmmov %vm12684_vm8  ;;  %v1789_v50 = vrot.slane %v1787_v18, 4  ;;  %v12696_v31 = vmov 0  ;;  %v12706_v18 = vmov 0 }
  0x81   : > { %v861_v33 = vpop.permute.xlu2 %860  ;;  %v1790_v42 = vor.u32 %v1789_v50, %v9297_v9  ;;  %v1152_v9 = vrot.slane %v9320_v59, 4  ;;  %v8457_v59 = vld [vmem:[#allocation2 + $0x84] sm:$0xf] }
  0x82   : > { %7680 = vmatmul.msk.bf16.gmra.mxu1 %vm12685_vm11, %v7546_v21 }
  0x8b   : > { %7753 = vmatmul.msk.bf16.gmra.mxu3 %vm12686_vm14, %v7546_v21  ;;  %vm12515_vm14 = vsmask.f32 7938 }
  0x8c   : > { %v851_v34 = vpop.permute.xlu0 %850  ;;  %vm9337_vm11 = vmand %vm12684_vm8, %vm12515_vm14  ;;  %vm12694_vm14 = vcmask 523264  }
  0x8d   : > { %947 = vst.msk [vmem:[#allocation2 + $0x10] sm:$0xf] %vm12512_vm12, %v851_v34  ;;  %v855_v27 = vpop.permute.xlu1 %854  ;;  %vm9350_vm8 = vmpackc.low %vm715_vm10, %vm715_vm10  ;;  %v1795_v34 = vrot.slane %v1793_v62, 5 }
  0x8e   : > { %949 = vst.msk [vmem:[#allocation2 + $0x20] sm:$0xf] %vm12512_vm12, %v855_v27  ;;  %vm12690_vm12 = vmmov %vm12689_vm1  ;;  %v12692_v20 = vsel %vm9350_vm8, 4294967295, %v12691_v20  ;;  %v1588_v29 = vsel %vm9350_vm8, %v9348_v19, 0  ;;  %vm734_vm8 = vcmp.ne.s32.totalorder %v364_v53, 15 }
  0x8f   : > { %1437 = vst.msk [vmem:[#allocation2 + $0x20] sm:$0xf] %vm12689_vm1, %v1133_v0  ;;  %v1797_v0 = vshrl.u32 %v1587_v10, 16  ;;  %vm732_vm1 = vcmp.ne.s32.totalorder %v350_v7, 15  ;;  %v1803_v38 = vshll.u32 %v1588_v29, 16  ;;  %v1791_v7 = vrot.slane %v1790_v42, 4 }
  0x90   : > { %1439 = vst.msk [vmem:[#allocation2 + $0x30] sm:$0xf] %vm12690_vm12, %v1151_v14  ;;  %vm12695_vm12 = vcmask 1043968   ;;  %vm9364_vm10 = vmpackc.low %vm732_vm1, %vm732_vm1  ;;  %v288_v10 = vadd.s32 72, %v8859_v3  ;;  %v12710_v42 = vmov 0 }
  0x91   : > { %12693 = vst [vmem:[#allocation20_spill] sm:$0xff] %v12692_v20  ;;  %v12697_v31 = vsel %vm9364_vm10, 4294967295, %v12696_v31  ;;  %v1799_v35 = vrot.slane %v1797_v0, 4  ;;  %v1080_v39 = vsel %vm9364_vm10, %v8980_v52, 0  ;;  %v9376_v27 = vrot.slane %v1803_v38, 5 }
  0x92   : > { %7681 = vmatmul.msk.bf16.gmra.mxu1 %vm12694_vm14, %v7554_v1  ;;  %12698 = vst [vmem:[#allocation21_spill] sm:$0xff] %v12697_v31  ;;  %vm12699_vm14 = vcmask 519168   ;;  %v1154_v44 = vshrl.u32 %v1080_v39, 16  ;;  %v1157_v61 = vshll.u32 %v1080_v39, 16  ;;  %v378_v0 = vand.u32 15, %v288_v10 }
  0x93   : > { %v1800_v43 = vor.u32 %v1799_v35, %v1795_v34  ;;  %v9415_v39 = vld [vmem:[%s8880_s23 + $0x58] sm:$0xf] }
  0x94   : > { %v1432_v60 = vld [vmem:[#allocation2 + $0x10] sm:$0xf]  ;;  %v853_v46 = vpop.permute.xlu0 %852  ;;  %894 = vrot.lane.b32.xlu1 %v9415_v39, %s8754_s29 }
  0x95   : > { %v1433_v21 = vsel %vm9337_vm11, %v1115_v57, %v1432_v60  ;;  %948 = vst.msk [vmem:[#allocation2 + $0x18] sm:$0xf] %vm12695_vm12, %v853_v46  ;;  %v857_v47 = vpop.permute.xlu1 %856  ;;  %vm12700_vm11 = vmmov %vm12695_vm12  ;;  %v1801_v52 = vrot.slane %v1800_v43, 4  ;;  %v1796_v57 = vsel %vm8947_vm4, %v1791_v7, %v1795_v34  ;;  %v301_v60 = vadd.s32 176, %v8859_v3  ;;  %v9404_v46 = vld [vmem:[%s8880_s23 + $0x54] sm:$0xf] }
  0x96   : > { %1434 = vst [vmem:[#allocation2 + $0x10] sm:$0xf] %v1433_v21  ;;  %vm12701_vm1 = vmmov %vm12700_vm11  ;;  %v1589_v50 = vsel %vm8882_vm6, %v9404_v46, 0  ;;  %v1807_v34 = vshrl.u32 %v1588_v29, 16  ;;  %892 = vrot.lane.b32.xlu0 %v9404_v46, %s8754_s29  ;;  %v9428_v29 = vld [vmem:[%s8880_s23 + $0x5c] sm:$0xf] }
  0x97   : > { %1436 = vst.msk [vmem:[#allocation2 + $0x18] sm:$0xf] %vm12699_vm14, %v9255_v17  ;;  %vm12702_vm12 = vmmov %vm12699_vm14  ;;  %v9382_v17 = vrot.slane %v1154_v44, 7  ;;  %vm12703_vm14 = vcmask 523264   ;;  %v1806_v11 = vsel %vm8947_vm4, %v1801_v52, %v9376_v27  ;;  %v469_v6 = vand.u32 15, %v301_v60  ;;  %896 = vrot.lane.b32.xlu2 %v9428_v29, %s8754_s29 }
  0x98   : > { %952 = vst.msk [vmem:[#allocation2 + $0x38] sm:$0xf] %vm12700_vm11, %v861_v33  ;;  %vm12704_vm11 = vmmov %vm12702_vm12  ;;  %v1813_v35 = vshll.u32 %v1589_v50, 16  ;;  %v1817_v38 = vshrl.u32 %v1589_v50, 16  ;;  %v1809_v44 = vrot.slane %v1807_v34, 4 }
  0x99   : > { %950 = vst.msk [vmem:[#allocation2 + $0x28] sm:$0xf] %vm12701_vm1, %v857_v47  ;;  %vm12705_vm1 = vmmov %vm12704_vm11  ;;  %v7509_v10 = vld [vmem:[#allocation2 + $0x20] sm:$0xf] }
  0x9a   : > { %1438 = vst.msk [vmem:[#allocation2 + $0x28] sm:$0xf] %vm12702_vm12, %v9308_v30  ;;  %v1159_v30 = vor.u32 %v1157_v61, %v9382_v17  ;;  %vm9397_vm12 = vmpackc.low %vm734_vm8, %vm734_vm8  ;;  %vm717_vm8 = vcmp.ne.s32.totalorder %v469_v6, 0  ;;  %v1815_v53 = vrot.slane %v1813_v35, 5  ;;  %v9453_v6 = vld [vmem:[%s8880_s23 + $0x60] sm:$0xf] }
  0x9b   : > { %7754 = vmatmul.msk.bf16.gmra.mxu3 %vm12703_vm14, %v7554_v1  ;;  %1978 = vst.msk [vmem:[#allocation2 + $0xa4] sm:$0xf] %vm12704_vm11, %v1796_v57  ;;  %v7559_v1 = vld [vmem:[#allocation2 + $0x88] sm:$0xf0]  ;;  %v12707_v18 = vsel %vm9397_vm12, 4294967295, %v12706_v18  ;;  %vm12709_vm14 = vmmov %vm12705_vm1  ;;  %v1082_v33 = vsel %vm9397_vm12, %v9019_v32, 0 }
  0x9c   : > { %1979 = vst.msk [vmem:[#allocation2 + $0xac] sm:$0xf] %vm12705_vm1, %v1806_v11  ;;  %v1160_v16 = vsel %vm9212_vm7, %v1152_v9, %v1159_v30  ;;  %v7562_v21 = vor.u32 %v8457_v59, %v7559_v1  ;;  %vm9417_vm11 = vmpackc.low %vm717_vm8, %vm717_vm8  ;;  %v1172_v47 = vshrl.u32 %v1082_v33, 16  ;;  %v1175_v43 = vshll.u32 %v1082_v33, 16  ;;  %v863_v52 = vpop.permute.xlu0 %862 }
  0x9d   : > { %v7501_v13 = vld [vmem:[#allocation2 + $0x10] sm:$0xf]  ;;  %12708 = vst [vmem:[#allocation22_spill] sm:$0xff] %v12707_v18  ;;  %v12711_v42 = vsel %vm9417_vm11, 4294967295, %v12710_v42  ;;  %vm9421_vm1 = vcmp.ne.s32.totalorder %v378_v0, 15  ;;  %v303_v32 = vadd.s32 192, %v8859_v3  ;;  %v865_v7 = vpop.permute.xlu1 %864  ;;  %v1810_v11 = vor.u32 %v1809_v44, %v9376_v27 }
  0x9e   : > { %v8444_v14 = vld [vmem:[#allocation2 + $0x14] sm:$0xf0]  ;;  %1440 = vst.msk [vmem:[#allocation2 + $0x38] sm:$0xf] %vm12709_vm14, %v1160_v16  ;;  %vm12715_vm14 = vcmask 523264   ;;  %v1590_v9 = vsel %vm9417_vm11, %v9415_v39, 0  ;;  %898 = vrot.lane.b32.xlu0 %v9453_v6, %s8754_s29 }
  0x9f   : > { %v7502_v62 = vor.u32 %v8444_v14, %v7501_v13  ;;  %12712 = vst [vmem:[#allocation23_spill] sm:$0xff] %v12711_v42  ;;  %v1591_v57 = vsel %vm8882_vm6, %v9428_v29, 0  ;;  %v1819_v30 = vrot.slane %v1817_v38, 4  ;;  %v483_v59 = vand.u32 15, %v303_v32 }
  0xa0   : > { %v1823_v1 = vshll.u32 %v1590_v9, 16  ;;  %vm12716_vm8 = vcmask 1043968   ;;  %v12717_v14 = vmov 0  ;;  %v1811_v16 = vrot.slane %v1810_v11, 4 }
  0xa1   : > { %2351 = vmatmul.bf16.vlgmr.msra.gmra.mxu0 %v7502_v62  ;;  %2618 = vmatmul.bf16.gmra.mxu2 %v7502_v62  ;;  %v8446_v13 = vld [vmem:[#allocation2 + $0x24] sm:$0xf0]  ;;  %954 = vst.msk [vmem:[#allocation2 + $0x48] sm:$0xf] %vm12716_vm8, %v865_v7  ;;  %v1820_v27 = vor.u32 %v1819_v30, %v1815_v53  ;;  %v1827_v62 = vshrl.u32 %v1590_v9, 16  ;;  %v1833_v60 = vshll.u32 %v1591_v57, 16  ;;  %vm12720_vm11 = vmmov %vm12716_vm8 }
  0xa2   : > { %7682 = vmatmul.msk.bf16.gmra.mxu1 %vm12715_vm14, %v7562_v21  ;;  %vm9445_vm14 = vmpackc.low %vm9421_vm1, %vm9421_vm1  ;;  %953 = vst.msk [vmem:[#allocation2 + $0x40] sm:$0xf] %vm12720_vm11, %v863_v52  ;;  %v9450_v0 = vrot.slane %v1172_v47, 7  ;;  %vm719_vm2 = vcmp.ne.s32.totalorder %v483_v59, 0  ;;  %v1825_v50 = vrot.slane %v1823_v1, 5  ;;  %v1837_v33 = vshrl.u32 %v1591_v57, 16 }
  0xa3   : > { %v12718_v14 = vsel %vm9445_vm14, 4294967295, %v12717_v14  ;;  %v1816_v34 = vsel %vm8947_vm4, %v1811_v16, %v1815_v53  ;;  %v1821_v35 = vrot.slane %v1820_v27, 4  ;;  %v1829_v38 = vrot.slane %v1827_v62, 4  ;;  %vm9463_vm1 = vmpackc.low %vm719_vm2, %vm719_vm2  ;;  %v8459_v7 = vld [vmem:[#allocation2 + $0x94] sm:$0xf] }
  0xa4   : > { %12719 = vst [vmem:[#allocation24_spill] sm:$0xff] %v12718_v14  ;;  %v1835_v44 = vrot.slane %v1833_v60, 5  ;;  %v1084_v61 = vsel %vm9445_vm14, %v9061_v15, 0  ;;  %vm12721_vm11 = vcmask 523264   ;;  %v12722_v47 = vmov 0 }
  0xa5   : > { %v12723_v47 = vsel %vm9463_vm1, 4294967295, %v12722_v47  ;;  %v1839_v32 = vrot.slane %v1837_v33, 4  ;;  %vm12725_vm8 = vcmask 519168   ;;  %v1081_v53 = vsel %vm8882_vm6, %v8983_v55, 0 }
  0xa6   : > { %12724 = vst [vmem:[#allocation25_spill] sm:$0xff] %v12723_v47  ;;  %v7510_v52 = vor.u32 %v8446_v13, %v7509_v10  ;;  %v9474_v9 = vsel %vm9463_vm1, %v9453_v6, 0  ;;  %v1826_v15 = vsel %vm8947_vm4, %v1821_v35, %v1825_v50  ;;  %v1830_v57 = vor.u32 %v1829_v38, %v1825_v50  ;;  %vm12726_vm2 = vmmov %vm12725_vm8 }
  0xa7   : > { %1980 = vst.msk [vmem:[#allocation2 + $0xb4] sm:$0xf] %vm12725_vm8, %v1816_v34  ;;  %v1840_v11 = vor.u32 %v1839_v32, %v1835_v44  ;;  %v1843_v30 = vshll.u32 %v9474_v9, 16  ;;  %v1163_v59 = vshrl.u32 %v1081_v53, 16  ;;  %v1177_v55 = vor.u32 %v1175_v43, %v9450_v0  ;;  %vm12728_vm8 = vmmov %vm12726_vm2 }
  0xa8   : > { %1981 = vst.msk [vmem:[#allocation2 + $0xbc] sm:$0xf] %vm12726_vm2, %v1826_v15  ;;  %v1190_v1 = vshrl.u32 %v1084_v61, 16  ;;  %v1161_v13 = vrot.slane %v9382_v17, 4  ;;  %v1166_v16 = vshll.u32 %v1081_v53, 16  ;;  %v1831_v27 = vrot.slane %v1830_v57, 4  ;;  %v867_v57 = vpop.permute.xlu2 %866 }
  0xa9   : > { %v1841_v62 = vrot.slane %v1840_v11, 4  ;;  %v9484_v60 = vrot.slane %v1843_v30, 5  ;;  %v1165_v33 = vrot.slane %v1163_v59, 7  ;;  %v1193_v53 = vshll.u32 %v1084_v61, 16  ;;  %v8533_v61 = vld [vmem:[%s12492_s1 + $0xd0] sm:$0xff]  ;;  %v869_v11 = vpop.permute.xlu0 %868 }
  0xaa   : > { %v1836_v34 = vsel %vm8947_vm4, %v1831_v27, %v1835_v44  ;;  %v9494_v17 = vrot.slane %v1190_v1, 7  ;;  %vm12729_vm1 = vcmask 523264   ;;  %v1179_v59 = vrot.slane %v9450_v0, 4  ;;  %3109 = vmatpush.bf16.msrb.mxu1 %v8533_v61  ;;  %v7517_v27 = vld [vmem:[#allocation2 + $0x30] sm:$0xf] }
  0xab   : > { %7755 = vmatmul.msk.bf16.gmra.mxu3 %vm12721_vm11, %v7562_v21  ;;  %v7567_v21 = vld [vmem:[#allocation2 + $0x98] sm:$0xf0]  ;;  %v1846_v43 = vsel %vm8947_vm4, %v1841_v62, %v9484_v60  ;;  %v1170_v35 = vrot.slane %v1165_v33, 4  ;;  %v1168_v38 = vor.u32 %v1166_v16, %v1165_v33  ;;  %vm12727_vm11 = vmmov %vm12726_vm2  ;;  %v8448_v62 = vld [vmem:[#allocation2 + $0x34] sm:$0xf0]  ;;  %vm806_vm12 = vcmask 1043459  }
  0xac   : > { %v7570_v50 = vor.u32 %v8459_v7, %v7567_v21  ;;  %1982 = vst.msk [vmem:[#allocation2 + $0xc4] sm:$0xf] %vm12727_vm11, %v1836_v34  ;;  %vm12730_vm11 = vmmov %vm12726_vm2  ;;  %v7518_v34 = vor.u32 %v8448_v62, %v7517_v27  ;;  %v1197_v47 = vrot.slane %v9494_v17, 4 }
  0xad   : > { %1983 = vst.msk [vmem:[#allocation2 + $0xcc] sm:$0xf] %vm12728_vm8, %v1846_v43  ;;  %v1178_v7 = vsel %vm9212_vm7, %v1170_v35, %v1177_v55  ;;  %v1169_v44 = vsel %vm9212_vm7, %v1161_v13, %v1168_v38  ;;  %vm12731_vm8 = vcmask 1043968   ;;  %v8461_v35 = vld [vmem:[#allocation2 + $0xa4] sm:$0xf] }
  0xae   : > { %v9481_v10 = vpop.f32.mrf.mxu3  ;;  %1442 = vst.msk [vmem:[#allocation2 + $0x48] sm:$0xf] %vm12726_vm2, %v1178_v7  ;;  %vm12733_vm2 = vcmask 523264   ;;  %v7575_v38 = vld [vmem:[#allocation2 + $0xa8] sm:$0xf0]  ;;  %v305_v7 = vadd.s32 208, %v8859_v3 }
  0xaf   : > { %v9491_v32 = vpop.f32.mrf.mxu1  ;;  %1441 = vst.msk [vmem:[#allocation2 + $0x40] sm:$0xf] %vm12730_vm11, %v1169_v44  ;;  %v7578_v61 = vor.u32 %v8461_v35, %v7575_v38  ;;  %v871_v35 = vpop.permute.xlu1 %870 }
  0xb0   : > { %955 = vst.msk [vmem:[#allocation2 + $0x50] sm:$0xf] %vm12731_vm8, %v867_v57 }
  0xb1   : > { %2356 = vmatmul.bf16.gmra.mxu0 %v7510_v52  ;;  %2623 = vmatmul.bf16.gmra.mxu2 %v7510_v52  ;;  %v1083_v52 = vsel %vm8882_vm6, %v9033_v49, 0  ;;  %v1195_v49 = vor.u32 %v1193_v53, %v9494_v17  ;;  %v290_v53 = vadd.s32 88, %v8859_v3  ;;  %v8539_v17 = vld [vmem:[%s12492_s1 + $0x100] sm:$0xff] }
  0xb2   : > { %7683 = vmatmul.msk.bf16.gmra.mxu1 %vm12729_vm1, %v7570_v50  ;;  %v1181_v15 = vshrl.u32 %v1083_v52, 16  ;;  %v1184_v21 = vshll.u32 %v1083_v52, 16  ;;  %vm12732_vm1 = vmmov %vm12731_vm8  ;;  %v292_v52 = vadd.s32 104, %v8859_v3  ;;  %3200 = vmatpush.bf16.msrb.mxu3 %v8539_v17  ;;  %v9623_v17 = vld [vmem:[%s8880_s23 + $0x70] sm:$0xf] }
  0xb3   : > { %956 = vst.msk [vmem:[#allocation2 + $0x58] sm:$0xf] %vm12732_vm1, %v869_v11  ;;  %vm12734_vm8 = vmmov %vm12730_vm11  ;;  %v392_v44 = vand.u32 15, %v290_v53  ;;  %v1847_v11 = vshrl.u32 %v9474_v9, 16 }
  0xb4   : > { %v1183_v55 = vrot.slane %v1181_v15, 7  ;;  %v497_v15 = vand.u32 15, %v305_v7  ;;  %v406_v62 = vand.u32 15, %v292_v52 }
  0xb6   : > { %v9510_v30 = vpop.f32.mrf.mxu3  ;;  %v1186_v1 = vor.u32 %v1184_v21, %v1183_v55  ;;  %v1188_v13 = vrot.slane %v1183_v55, 4  ;;  %vm721_vm1 = vcmp.ne.s32.totalorder %v497_v15, 0  ;;  %v9542_v55 = vld [vmem:[%s8880_s23 + $0x68] sm:$0xf] }
  0xb7   : > { %v9516_v16 = vpop.f32.mrf.mxu1  ;;  %902 = vrot.lane.b32.xlu2 %v9542_v55, %s8754_s29 }
  0xb8   : > { %v1187_v33 = vsel %vm9212_vm7, %v1179_v59, %v1186_v1  ;;  %v1196_v0 = vsel %vm9212_vm7, %v1188_v13, %v1195_v49  ;;  %v12735_v1 = vmov 0  ;;  %v1849_v13 = vrot.slane %v1847_v11, 4 }
  0xb9   : > { %1443 = vst.msk [vmem:[#allocation2 + $0x50] sm:$0xf] %vm12730_vm11, %v1187_v33  ;;  %vm9544_vm11 = vmpackc.low %vm721_vm1, %vm721_vm1  ;;  %vm12742_vm1 = vcmask 1043968  }
  0xba   : > { %1444 = vst.msk [vmem:[#allocation2 + $0x58] sm:$0xf] %vm12734_vm8, %v1196_v0  ;;  %v12736_v1 = vsel %vm9544_vm11, 4294967295, %v12735_v1  ;;  %vm12738_vm8 = vcmask 523264   ;;  %v9552_v9 = vsel %vm9544_vm11, %v9542_v55, 0  ;;  %v12739_v0 = vmov 0 }
  0xbb   : > { %7756 = vmatmul.msk.bf16.gmra.mxu3 %vm12733_vm2, %v7570_v50  ;;  %v9530_v50 = vld [vmem:[%s8880_s23 + $0x64] sm:$0xf]  ;;  %vm738_vm2 = vcmp.ne.s32.totalorder %v392_v44, 15  ;;  %12737 = vst [vmem:[#allocation26_spill] sm:$0xff] %v12736_v1  ;;  %v1850_v53 = vor.u32 %v1849_v13, %v9484_v60  ;;  %v1863_v7 = vshll.u32 %v9552_v9, 16  ;;  %v1085_v44 = vsel %vm8882_vm6, %v9069_v22, 0 }
  0xbc   : > { %v1593_v21 = vsel %vm8882_vm6, %v9530_v50, 0  ;;  %900 = vrot.lane.b32.xlu1 %v9530_v50, %s8754_s29  ;;  %vm9554_vm14 = vmpackc.low %vm738_vm2, %vm738_vm2  ;;  %v1202_v13 = vshll.u32 %v1085_v44, 16 }
  0xbd   : > { %v1853_v59 = vshll.u32 %v1593_v21, 16  ;;  %v1857_v49 = vshrl.u32 %v1593_v21, 16  ;;  %v12740_v0 = vsel %vm9554_vm14, 4294967295, %v12739_v0  ;;  %v1086_v52 = vsel %vm9554_vm14, %v9078_v28, 0  ;;  %vm12743_vm2 = vmmov %vm12742_vm1 }
  0xbe   : > { %v9525_v43 = vpop.f32.mrf.mxu3  ;;  %12741 = vst [vmem:[#allocation27_spill] sm:$0xff] %v12740_v0  ;;  %v1199_v21 = vshrl.u32 %v1085_v44, 16  ;;  %v1208_v11 = vshrl.u32 %v1086_v52, 16  ;;  %v1211_v60 = vshll.u32 %v1086_v52, 16  ;;  %v8463_v52 = vld [vmem:[#allocation2 + $0xb4] sm:$0xf] }
  0xbf   : > { %v9536_v57 = vpop.f32.mrf.mxu1  ;;  %v1855_v27 = vrot.slane %v1853_v59, 5  ;;  %v1859_v33 = vrot.slane %v1857_v49, 4  ;;  %957 = vst.msk [vmem:[#allocation2 + $0x60] sm:$0xf] %vm12743_vm2, %v871_v35  ;;  %v1851_v59 = vrot.slane %v1850_v53, 4  ;;  %v9572_v49 = vrot.slane %v1863_v7, 5 }
  0xc0   : > { %v1201_v1 = vrot.slane %v1199_v21, 7  ;;  %v9574_v22 = vrot.slane %v1208_v11, 7  ;;  %vm12745_vm2 = vcmask 519168   ;;  %v12746_v7 = vmov 0  ;;  %v7533_v58 = vld [vmem:[#allocation2 + $0x50] sm:$0xf] }
  0xc1   : > { %2361 = vmatmul.bf16.gmra.mxu0 %v7518_v34  ;;  %2628 = vmatmul.bf16.gmra.mxu2 %v7518_v34  ;;  %v873_v34 = vpop.permute.xlu2 %872  ;;  %v1860_v15 = vor.u32 %v1859_v33, %v1855_v27  ;;  %v8450_v33 = vld [vmem:[#allocation2 + $0x44] sm:$0xf0]  ;;  %v1856_v42 = vsel %vm8947_vm4, %v1851_v59, %v1855_v27  ;;  %vm12749_vm14 = vmmov %vm12745_vm2  ;;  %v294_v27 = vadd.s32 120, %v8859_v3  ;;  %v307_v11 = vadd.s32 224, %v8859_v3  ;;  %v9611_v59 = vld [vmem:[%s8880_s23 + $0x6c] sm:$0xf] }
  0xc2   : > { %7684 = vmatmul.msk.bf16.gmra.mxu1 %vm12738_vm8, %v7578_v61  ;;  %958 = vst.msk [vmem:[#allocation2 + $0x68] sm:$0xf] %vm12742_vm1, %v873_v34  ;;  %vm740_vm8 = vcmp.ne.s32.totalorder %v406_v62, 15  ;;  %v7525_v34 = vld [vmem:[#allocation2 + $0x40] sm:$0xf]  ;;  %vm12744_vm1 = vcmask 523264   ;;  %v1213_v53 = vor.u32 %v1211_v60, %v9574_v22  ;;  %904 = vrot.lane.b32.xlu0 %v9611_v59, %s8754_s29 }
  0xc3   : > { %v1861_v4 = vrot.slane %v1860_v15, 4  ;;  %1984 = vst.msk [vmem:[#allocation2 + $0xd4] sm:$0xf] %vm12745_vm2, %v1856_v42  ;;  %v1206_v62 = vrot.slane %v1201_v1, 4  ;;  %vm9590_vm11 = vmpackc.low %vm740_vm8, %vm740_vm8  ;;  %v7583_v15 = vld [vmem:[#allocation2 + $0xb8] sm:$0xf0] }
  0xc4   : > { %v12747_v7 = vsel %vm9590_vm11, 4294967295, %v12746_v7  ;;  %v420_v60 = vand.u32 15, %v294_v27  ;;  %906 = vrot.lane.b32.xlu1 %v9623_v17, %s8754_s29 }
  0xc5   : > { %v1866_v35 = vsel %vm8947_vm4, %v1861_v4, %v9572_v49  ;;  %12748 = vst [vmem:[#allocation28_spill] sm:$0xff] %v12747_v7  ;;  %v7526_v4 = vor.u32 %v8450_v33, %v7525_v34  ;;  %v1214_v42 = vsel %vm9212_vm7, %v1206_v62, %v1213_v53  ;;  %v511_v34 = vand.u32 15, %v307_v11  ;;  %v877_v11 = vpop.permute.xlu1 %876 }
  0xc6   : > { %v9560_v38 = vpop.f32.mrf.mxu3  ;;  %1985 = vst.msk [vmem:[#allocation2 + $0xdc] sm:$0xf] %vm12749_vm14, %v1866_v35  ;;  %v1867_v35 = vshrl.u32 %v9552_v9, 16  ;;  %v8532_v9 = vld [vmem:[%s12492_s1 + $0xc8] sm:$0xff] }
  0xc7   : > { %v9577_v28 = vpop.f32.mrf.mxu1  ;;  %vm723_vm8 = vcmp.ne.s32.totalorder %v511_v34, 0  ;;  %v875_v34 = vpop.permute.xlu0 %874  ;;  %3110 = vmatpush.bf16.msrb.mxu1 %v8532_v9  ;;  %v9667_v9 = vld [vmem:[%s8880_s23 + $0x78] sm:$0xf] }
  0xc8   : > { %v1869_v27 = vrot.slane %v1867_v35, 4 }
  0xca   : > { %910 = vrot.lane.b32.xlu0 %v9667_v9, %s8754_s29 }
  0xcb   : > { %7757 = vmatmul.msk.bf16.gmra.mxu3 %vm12744_vm1, %v7578_v61  ;;  %v1204_v61 = vor.u32 %v1202_v13, %v1201_v1  ;;  %vm12750_vm1 = vmmov %vm12745_vm2  ;;  %v9606_v1 = vsel %vm9590_vm11, %v9125_v25, 0  ;;  %v7586_v13 = vor.u32 %v8463_v52, %v7583_v15  ;;  %v309_v15 = vadd.s32 240, %v8859_v3 }
  0xcc   : > { %1446 = vst.msk [vmem:[#allocation2 + $0x68] sm:$0xf] %vm12750_vm1, %v1214_v42  ;;  %vm12751_vm14 = vmmov %vm12750_vm1  ;;  %v1226_v33 = vshrl.u32 %v9606_v1, 16  ;;  %vm9629_vm1 = vcmp.ne.s32.totalorder %v420_v60, 15 }
  0xcd   : > { %v1205_v21 = vsel %vm9212_vm7, %v1197_v47, %v1204_v61  ;;  %v1595_v47 = vsel %vm8882_vm6, %v9611_v59, 0  ;;  %vm9625_vm2 = vmpackc.low %vm723_vm8, %vm723_vm8  ;;  %v12752_v61 = vmov 0  ;;  %v525_v51 = vand.u32 15, %v309_v15 }
  0xce   : > { %v9598_v44 = vpop.f32.mrf.mxu3  ;;  %1445 = vst.msk [vmem:[#allocation2 + $0x60] sm:$0xf] %vm12751_vm14, %v1205_v21  ;;  %v1873_v62 = vshll.u32 %v1595_v47, 16  ;;  %v1877_v53 = vshrl.u32 %v1595_v47, 16  ;;  %v12753_v61 = vsel %vm9625_vm2, 4294967295, %v12752_v61  ;;  %vm12757_vm14 = vcmask 523264  }
  0xcf   : > { %v9617_v25 = vpop.f32.mrf.mxu1  ;;  %12754 = vst [vmem:[#allocation29_spill] sm:$0xff] %v12753_v61  ;;  %v1596_v21 = vsel %vm9625_vm2, %v9623_v17, 0  ;;  %v9643_v60 = vrot.slane %v1226_v33, 7  ;;  %v1229_v47 = vshll.u32 %v9606_v1, 16  ;;  %v8452_v61 = vld [vmem:[#allocation2 + $0x54] sm:$0xf0] }
  0xd0   : > { %v1879_v42 = vrot.slane %v1877_v53, 4  ;;  %v1870_v53 = vor.u32 %v1869_v27, %v9572_v49  ;;  %vm12758_vm8 = vcmask 1043968   ;;  %v12759_v49 = vmov 0 }
  0xd1   : > { %2366 = vmatmul.bf16.gmra.mxu0 %v7526_v4  ;;  %2633 = vmatmul.bf16.gmra.mxu2 %v7526_v4  ;;  %v1875_v4 = vrot.slane %v1873_v62, 5  ;;  %v9649_v62 = vld [vmem:[%s8880_s23 + $0x74] sm:$0xf]  ;;  %960 = vst.msk [vmem:[#allocation2 + $0x78] sm:$0xf] %vm12758_vm8, %v877_v11  ;;  %v1883_v27 = vshll.u32 %v1596_v21, 16  ;;  %vm12762_vm2 = vmmov %vm12758_vm8 }
  0xd2   : > { %7685 = vmatmul.msk.bf16.gmra.mxu1 %vm12757_vm14, %v7586_v13  ;;  %v1597_v37 = vsel %vm8882_vm6, %v9649_v62, 0  ;;  %908 = vrot.lane.b32.xlu2 %v9649_v62, %s8754_s29  ;;  %vm9661_vm14 = vmpackc.low %vm9629_vm1, %vm9629_vm1  ;;  %v1871_v1 = vrot.slane %v1870_v53, 4  ;;  %959 = vst.msk [vmem:[#allocation2 + $0x70] sm:$0xf] %vm12762_vm2, %v875_v34  ;;  %vm725_vm11 = vcmp.ne.s32.totalorder %v525_v51, 0  ;;  %vm12763_vm2 = vcmask 523264  }
  0xd3   : > { %v1880_v20 = vor.u32 %v1879_v42, %v1875_v4  ;;  %v12760_v49 = vsel %vm9661_vm14, 4294967295, %v12759_v49  ;;  %v1887_v42 = vshrl.u32 %v1596_v21, 16  ;;  %v1893_v15 = vshll.u32 %v1597_v37, 16  ;;  %vm9682_vm1 = vmpackc.low %vm725_vm11, %vm725_vm11  ;;  %v8465_v53 = vld [vmem:[#allocation2 + $0xc4] sm:$0xf] }
  0xd4   : > { %12761 = vst [vmem:[#allocation30_spill] sm:$0xff] %v12760_v49  ;;  %v1897_v11 = vshrl.u32 %v1597_v37, 16  ;;  %v1876_v52 = vsel %vm8947_vm4, %v1871_v1, %v1875_v4  ;;  %v1885_v56 = vrot.slane %v1883_v27, 5  ;;  %v1090_v51 = vsel %vm9661_vm14, %v9196_v26, 0 }
  0xd5   : > { %v1881_v33 = vrot.slane %v1880_v20, 4  ;;  %v1889_v0 = vrot.slane %v1887_v42, 4  ;;  %v1087_v20 = vsel %vm8882_vm6, %v8680_v23, 0  ;;  %v12764_v37 = vmov 0 }
  0xd6   : > { %v9646_v35 = vpop.f32.mrf.mxu3  ;;  %v12765_v37 = vsel %vm9682_vm1, 4294967295, %v12764_v37  ;;  %v1895_v4 = vrot.slane %v1893_v15, 5  ;;  %v1899_v21 = vrot.slane %v1897_v11, 4  ;;  %vm12767_vm8 = vcmask 519168  }
  0xd7   : > { %v9669_v7 = vpop.f32.mrf.mxu1  ;;  %12766 = vst [vmem:[#allocation31_spill] sm:$0xff] %v12765_v37  ;;  %v1217_v34 = vshrl.u32 %v1087_v20, 16  ;;  %v1231_v23 = vor.u32 %v1229_v47, %v9643_v60  ;;  %v7534_v1 = vor.u32 %v8452_v61, %v7533_v58  ;;  %v9691_v27 = vsel %vm9682_vm1, %v9667_v9, 0  ;;  %vm12768_vm11 = vmmov %vm12767_vm8 }
  0xd8   : > { %1986 = vst.msk [vmem:[#allocation2 + $0xe4] sm:$0xf] %vm12767_vm8, %v1876_v52  ;;  %v1886_v26 = vsel %vm8947_vm4, %v1881_v33, %v1885_v56  ;;  %v1890_v42 = vor.u32 %v1889_v0, %v1885_v56  ;;  %v1900_v49 = vor.u32 %v1899_v21, %v1895_v4  ;;  %v1903_v15 = vshll.u32 %v9691_v27, 16 }
  0xd9   : > { %1987 = vst.msk [vmem:[#allocation2 + $0xec] sm:$0xf] %vm12768_vm11, %v1886_v26  ;;  %v1219_v11 = vrot.slane %v1217_v34, 7  ;;  %v1244_v52 = vshrl.u32 %v1090_v51, 16  ;;  %v1215_v58 = vrot.slane %v9574_v22, 4  ;;  %v1220_v61 = vshll.u32 %v1087_v20, 16 }
  0xda   : > { %v1891_v37 = vrot.slane %v1890_v42, 4  ;;  %v1901_v14 = vrot.slane %v1900_v49, 4  ;;  %v9700_v54 = vrot.slane %v1903_v15, 5  ;;  %vm12772_vm1 = vcmask 523264  }
  0xdb   : > { %7758 = vmatmul.msk.bf16.gmra.mxu3 %vm12763_vm2, %v7586_v13  ;;  %v7591_v13 = vld [vmem:[#allocation2 + $0xc8] sm:$0xf0]  ;;  %v1224_v33 = vrot.slane %v1219_v11, 4  ;;  %v1222_v56 = vor.u32 %v1220_v61, %v1219_v11  ;;  %vm12769_vm2 = vmmov %vm12767_vm8  ;;  %v9714_v34 = vrot.slane %v1244_v52, 7  ;;  %v298_v61 = vadd.s32 152, %v8859_v3 }
  0xdc   : > { %v7594_v18 = vor.u32 %v8465_v53, %v7591_v13  ;;  %v1896_v0 = vsel %vm8947_vm4, %v1891_v37, %v1895_v4  ;;  %v1906_v21 = vsel %vm8947_vm4, %v1901_v14, %v9700_v54  ;;  %v1247_v53 = vshll.u32 %v1090_v51, 16  ;;  %vm12770_vm8 = vmmov %vm12769_vm2  ;;  %v8681_v37 = vld [vmem:[%s8880_s23 + $0x38] sm:$0xf] }
  0xdd   : > { %v1232_v22 = vsel %vm9212_vm7, %v1224_v33, %v1231_v23  ;;  %1988 = vst.msk [vmem:[#allocation2 + $0xf4] sm:$0xf] %vm12769_vm2, %v1896_v0  ;;  %v1223_v49 = vsel %vm9212_vm7, %v1215_v58, %v1222_v56  ;;  %vm12771_vm11 = vmmov %vm12769_vm2  ;;  %v1089_v14 = vsel %vm8882_vm6, %v8681_v37, 0  ;;  %v1233_v51 = vrot.slane %v9643_v60, 4  ;;  %v7541_v60 = vld [vmem:[#allocation2 + $0x60] sm:$0xf] }
  0xde   : > { %v9697_v47 = vpop.f32.mrf.mxu3  ;;  %1989 = vst.msk [vmem:[#allocation2 + $0xfc] sm:$0xf] %vm12770_vm8, %v1906_v21  ;;  %vm12773_vm14 = vmmov %vm12769_vm2  ;;  %v1235_v4 = vshrl.u32 %v1089_v14, 16  ;;  %v1238_v23 = vshll.u32 %v1089_v14, 16  ;;  %v881_v26 = vpop.permute.xlu0 %880  ;;  %vm12774_vm2 = vcmask 1043968   ;;  %v1249_v42 = vor.u32 %v1247_v53, %v9714_v34 }
  0xdf   : > { %v9709_v20 = vpop.f32.mrf.mxu1  ;;  %1448 = vst.msk [vmem:[#allocation2 + $0x78] sm:$0xf] %vm12771_vm11, %v1232_v22  ;;  %vm12775_vm8 = vmmov %vm12774_vm2  ;;  %vm809_vm11 = vcmask 523271   ;;  %v8454_v56 = vld [vmem:[#allocation2 + $0x64] sm:$0xf0]  ;;  %v448_v53 = vand.u32 15, %v298_v61 }
  0xe0   : > { %1447 = vst.msk [vmem:[#allocation2 + $0x70] sm:$0xf] %vm12773_vm14, %v1223_v49  ;;  %v1237_v15 = vrot.slane %v1235_v4, 7  ;;  %vm12776_vm14 = vsmask.f32 7950  ;;  %v7542_v49 = vor.u32 %v8454_v56, %v7541_v60  ;;  %v296_v4 = vadd.s32 136, %v8859_v3 }
  0xe1   : > { %2371 = vmatmul.bf16.gmra.mxu0 %v7534_v1  ;;  %2638 = vmatmul.bf16.gmra.mxu2 %v7534_v1  ;;  %v879_v1 = vpop.permute.xlu2 %878  ;;  %962 = vst.msk [vmem:[#allocation2 + $0x88] sm:$0xf] %vm12775_vm8, %v881_v26  ;;  %vm9730_vm0 = vmand %vm806_vm12, %vm12776_vm14  ;;  %vm12781_vm8 = vcmask 523264   ;;  %vm12782_vm12 = vcmask 519168   ;;  %v7599_v14 = vld [vmem:[#allocation2 + $0xd8] sm:$0xf0] }
  0xe2   : > { %7686 = vmatmul.msk.bf16.gmra.mxu1 %vm12772_vm1, %v7594_v18  ;;  %961 = vst.msk [vmem:[#allocation2 + $0x80] sm:$0xf] %vm12774_vm2, %v879_v1  ;;  %vm810_vm1 = vsmask.f32 7966  ;;  %v1240_v11 = vor.u32 %v1238_v23, %v1237_v15  ;;  %v1242_v52 = vrot.slane %v1237_v15, 4  ;;  %vm12783_vm14 = vmmov %vm12782_vm12  ;;  %v434_v26 = vand.u32 15, %v296_v4 }
  0xe3   : > { %vm9737_vm2 = vmand %vm809_vm11, %vm810_vm1  ;;  %v790_v23 = vld [vmem:[%s8880_s23 + $0x7c] sm:$0xf]  ;;  %v813_v1 = vld [vmem:[#allocation2 + $0x108] sm:$0x88]  ;;  %vm746_vm1 = vcmp.ne.s32.totalorder %v448_v53, 15  ;;  %v1091_v56 = vsel %vm8882_vm6, %v9225_v48, 0  ;;  %v883_v53 = vpop.permute.xlu1 %882 }
  0xe4   : > { %v1241_v21 = vsel %vm9212_vm7, %v1233_v51, %v1240_v11  ;;  %v1250_v22 = vsel %vm9212_vm7, %v1242_v52, %v1249_v42  ;;  %vm812_vm11 = vmor %vm9737_vm2, %vm9730_vm0  ;;  %v1599_v15 = vsel %vm8882_vm6, %v790_v23, 0  ;;  %912 = vrot.lane.b32.xlu1 %v790_v23, %s8754_s29  ;;  %v1907_v52 = vshrl.u32 %v9691_v27, 16  ;;  %v8531_v27 = vld [vmem:[%s12492_s1 + $0xc0] sm:$0xff]  ;;  %s8757_s29 = smov 16  }
  0xe5   : > { %1449 = vst.msk [vmem:[#allocation2 + $0x80] sm:$0xf] %vm12782_vm12, %v1241_v21  ;;  %v814_v42 = vsel %vm812_vm11, 0, %v813_v1  ;;  %v1913_v58 = vshll.u32 %v1599_v15, 16  ;;  %v1917_v61 = vshrl.u32 %v1599_v15, 16  ;;  %vm9762_vm0 = vcmp.ne.s32.totalorder %v434_v26, 15  ;;  %vm9769_vm2 = vmpackc.low %vm746_vm1, %vm746_vm1  ;;  %3111 = vmatpush.bf16.msrb.mxu1 %v8531_v27 }
  0xe6   : > { %v9723_v13 = vpop.f32.mrf.mxu3  ;;  %1450 = vst.msk [vmem:[#allocation2 + $0x88] sm:$0xf] %vm12783_vm14, %v1250_v22  ;;  %v12787_v0 = vmov 0  ;;  %v310_v21 = vadd.s32 248, %v8859_v3  ;;  %v1909_v22 = vrot.slane %v1907_v52, 4  ;;  %v1253_v4 = vshrl.u32 %v1091_v56, 16  ;;  %vm9786_vm14 = vmpackc.low %vm9762_vm0, %vm9762_vm0 }
  0xe7   : > { %v9735_v33 = vpop.f32.mrf.mxu1  ;;  %815 = vst [vmem:[#allocation2 + $0x108] sm:$0x88] %v814_v42  ;;  %v12788_v0 = vsel %vm9769_vm2, 4294967295, %v12787_v0  ;;  %v1919_v48 = vrot.slane %v1917_v61, 4  ;;  %vm12791_vm12 = vcmask 1043968   ;;  %v1256_v1 = vshll.u32 %v1091_v56, 16 }
  0xe8   : > { %12789 = vst [vmem:[#allocation33_spill] sm:$0xff] %v12788_v0  ;;  %v1251_v26 = vrot.slane %v9714_v34, 4  ;;  %v532_v42 = vand.u32 15, %v310_v21  ;;  %v1910_v15 = vor.u32 %v1909_v22, %v9700_v54  ;;  %v12792_v52 = vmov 0  ;;  %vm12795_vm11 = vmmov %vm12791_vm12  ;;  %v8682_v34 = vld [vmem:[%s8880_s23 + $0x44] sm:$0xf] }
  0xe9   : > { %v12793_v52 = vsel %vm9786_vm14, 4294967295, %v12792_v52  ;;  %963 = vst.msk [vmem:[#allocation2 + $0x90] sm:$0xf] %vm12795_vm11, %v883_v53  ;;  %v1092_v56 = vsel %vm9786_vm14, %v8682_v34, 0  ;;  %v1255_v54 = vrot.slane %v1253_v4, 7  ;;  %vm12797_vm0 = vcmask 519168  }
  0xea   : > { %12794 = vst [vmem:[#allocation35_spill] sm:$0xff] %v12793_v52  ;;  %vm758_vm1 = vcmp.ne.s32.totalorder %v532_v42, 15  ;;  %v1911_v60 = vrot.slane %v1910_v15, 4  ;;  %v1262_v22 = vshrl.u32 %v1092_v56, 16  ;;  %v12801_v0 = vmov 0 }
  0xeb   : > { %7759 = vmatmul.msk.bf16.gmra.mxu3 %vm12781_vm8, %v7594_v18  ;;  %v8467_v18 = vld [vmem:[#allocation2 + $0xd4] sm:$0xf]  ;;  %vm9807_vm11 = vmpackc.low %vm758_vm1, %vm758_vm1  ;;  %v1258_v42 = vor.u32 %v1256_v1, %v1255_v54  ;;  %vm12804_vm14 = vcmask 523264   ;;  %vm12807_vm1 = vsmask.f32 256 }
  0xec   : > { %v7602_v51 = vor.u32 %v8467_v18, %v7599_v14  ;;  %v1915_v14 = vrot.slane %v1913_v58, 5  ;;  %v9794_v58 = vsel %vm9769_vm2, %v9326_v2, 0  ;;  %v7549_v2 = vld [vmem:[#allocation2 + $0x70] sm:$0xf]  ;;  %v12802_v0 = vsel %vm9807_vm11, 4294967295, %v12801_v0 }
  0xed   : > { %12803 = vst [vmem:[#allocation37_spill] sm:$0xff] %v12802_v0  ;;  %vm1467_vm2 = vcmask 516096   ;;  %v1106_v15 = vsel %vm9807_vm11, %v790_v23, 0  ;;  %v1264_v52 = vrot.slane %v1262_v22, 7  ;;  %v1259_v1 = vsel %vm9212_vm7, %v1251_v26, %v1258_v42  ;;  %v1469_v27 = vld [vmem:[#allocation2 + $0x110] sm:$0x1] }
  0xee   : > { %v9752_v37 = vpop.f32.mrf.mxu3  ;;  %v1920_v61 = vor.u32 %v1919_v48, %v1915_v14  ;;  %v1992_v21 = vld [vmem:[#allocation2 + $0x10c] sm:$0xf]  ;;  %v8456_v48 = vld [vmem:[#allocation2 + $0x74] sm:$0xf0]  ;;  %v1916_v34 = vsel %vm8947_vm4, %v1911_v60, %v1915_v14  ;;  %v300_v23 = vadd.s32 168, %v8859_v3  ;;  %v1280_v60 = vshrl.u32 %v9794_v58, 16 }
  0xef   : > { %12784 = vst [vmem:[#allocation32_spill] sm:$0xff] %v9752_v37  ;;  %v9758_v11 = vpop.f32.mrf.mxu1  ;;  %v1391_v37 = vshll.u32 %v1106_v15, 16  ;;  %v7607_v14 = vld [vmem:[#allocation2 + $0xe8] sm:$0xf0]  ;;  %v8683_v42 = vld [vmem:[%s8880_s23 + $0x48] sm:$0xf] }
  0xf0   : > { %v1921_v4 = vrot.slane %v1920_v61, 4  ;;  %v8469_v61 = vld [vmem:[#allocation2 + $0xe4] sm:$0xf]  ;;  %s269_s23 = sand.u32 1, %s8742_s25  }
  0xf1   : > { %2376 = vmatmul.bf16.gmra.mxu0 %v7542_v49  ;;  %2643 = vmatmul.bf16.gmra.mxu2 %v7542_v49  ;;  %v885_v49 = vpop.permute.xlu2 %884  ;;  %s7472_s18 = sshll.u32 %s269_s23, 8  ;;  %s7391_s8 = scalar_lea.sflag [#allocation6], %s269_s23 }
  0xf2   : > { %7687 = vmatmul.msk.bf16.gmra.mxu1 %vm12781_vm8, %v7602_v51  ;;  %964 = vst.msk [vmem:[#allocation2 + $0x98] sm:$0xf] %vm12791_vm12, %v885_v49  ;;  %vm12796_vm8 = vsmask.f32 3328  ;;  %v1265_v49 = vshll.u32 %v1092_v56, 16  ;;  %v1260_v56 = vrot.slane %v1255_v54, 4 }
  0xf3   : > { %vm9801_vm12 = vmand %vm12797_vm0, %vm12796_vm8  ;;  %s10143_s19 = scalar_lea.vmem [#allocation5], %s7472_s18 }
  0xf4   : > { %vm12805_vm8 = vmmov %vm12797_vm0  ;;  %v1267_v0 = vor.u32 %v1265_v49, %v1264_v52  ;;  %v7610_v49 = vor.u32 %v8469_v61, %v7607_v14  ;;  %s7403_s18 = sshll.u32 %s10143_s19, 4  ;;  %s7404_s18 = int_to_ptr.vmem [resolvable:$true] %s7403_s18 }
  0xf5   : > { %1990 = vst.msk [vmem:[#allocation2 + $0x104] sm:$0xf] %vm12805_vm8, %v1916_v34 }
  0xf6   : > { %v9778_v18 = vpop.f32.mrf.mxu3  ;;  %v1268_v26 = vsel %vm9212_vm7, %v1260_v56, %v1267_v0  ;;  %v1093_v0 = vsel %vm8882_vm6, %v8683_v42, 0  ;;  %v887_v56 = vpop.permute.xlu0 %886  ;;  %v8471_v42 = vld [vmem:[#allocation2 + $0xf4] sm:$0xf] }
  0xf7   : > { %12790 = vst [vmem:[#allocation34_spill] sm:$0xff] %v9778_v18  ;;  %v9805_v53 = vpop.f32.mrf.mxu1  ;;  %v1388_v18 = vshrl.u32 %v1106_v15, 16  ;;  %v889_v15 = vpop.permute.xlu1 %888  ;;  %v1274_v34 = vshll.u32 %v1093_v0, 16 }
  0xf8   : > { %12800 = vst [vmem:[#allocation36_spill] sm:$0xff] %v9805_v53  ;;  %v1993_v53 = vsel %vm9801_vm12, %v1921_v4, %v1992_v21  ;;  %vm12808_vm12 = vmmov %vm12805_vm8  ;;  %v1283_v4 = vshll.u32 %v9794_v58, 16  ;;  %v12812_v58 = vmov 0 }
  0xf9   : > { %1994 = vst [vmem:[#allocation2 + $0x10c] sm:$0xf] %v1993_v53  ;;  %v1390_v54 = vrot.slane %v1388_v18, 7  ;;  %v462_v18 = vand.u32 15, %v300_v23  ;;  %v1269_v23 = vrot.slane %v1264_v52, 4 }
  0xfa   : > { %1452 = vst.msk [vmem:[#allocation2 + $0x98] sm:$0xf] %vm12808_vm12, %v1268_v26  ;;  %v8458_v26 = vld [vmem:[#allocation2 + $0x84] sm:$0xf0] }
  0xfb   : > { %7760 = vmatmul.msk.bf16.gmra.mxu3 %vm12804_vm14, %v7602_v51  ;;  %v7550_v51 = vor.u32 %v8456_v48, %v7549_v2  ;;  %vm12806_vm14 = vmmov %vm12797_vm0  ;;  %v9830_v21 = vor.u32 %v1391_v37, %v1390_v54  ;;  %v1395_v22 = vrot.slane %v1390_v54, 4  ;;  %v1282_v48 = vrot.slane %v1280_v60, 7 }
  0xfc   : > { %1451 = vst.msk [vmem:[#allocation2 + $0x90] sm:$0xf] %vm12806_vm14, %v1259_v1  ;;  %vm1468_vm0 = vmand %vm1467_vm2, %vm12807_vm1  ;;  %vm12809_vm2 = vcmask 523264   ;;  %v1271_v37 = vshrl.u32 %v1093_v0, 16  ;;  %vm748_vm8 = vcmp.ne.s32.totalorder %v462_v18, 15  ;;  %vm12810_vm14 = vcmask 1043968  }
  0xfd   : > { %v1470_v2 = vsel %vm1468_vm0, %v1395_v22, %v1469_v27  ;;  %966 = vst.msk [vmem:[#allocation2 + $0xa8] sm:$0xf] %vm12810_vm14, %v889_v15  ;;  %v1285_v61 = vor.u32 %v1283_v4, %v1282_v48  ;;  %vm12811_vm1 = vmmov %vm12810_vm14  ;;  %v7557_v27 = vld [vmem:[#allocation2 + $0x80] sm:$0xf]  ;;  %v7615_v0 = vld [vmem:[#allocation2 + $0xf8] sm:$0xf0] }
  0xfe   : > { %v9822_v5 = vpop.f32.mrf.mxu3  ;;  %1471 = vst [vmem:[#allocation2 + $0x110] sm:$0x1] %v1470_v2  ;;  %vm9844_vm0 = vmpackc.low %vm748_vm8, %vm748_vm8  ;;  %v7558_v2 = vor.u32 %v8458_v26, %v7557_v27  ;;  %v7618_v15 = vor.u32 %v8471_v42, %v7615_v0  ;;  %v1287_v26 = vrot.slane %v1282_v48, 4 }
  0xff   : > { %v9833_v53 = vpop.f32.mrf.mxu1  ;;  %965 = vst.msk [vmem:[#allocation2 + $0xa0] sm:$0xf] %vm12811_vm1, %v887_v56  ;;  %v12813_v58 = vsel %vm9844_vm0, 4294967295, %v12812_v58  ;;  %vm12815_vm12 = vmmov %vm12809_vm2  ;;  %v1096_v18 = vsel %vm9844_vm0, %v9404_v46, 0  ;;  %v1095_v46 = vsel %vm8882_vm6, %v9348_v19, 0 }
 0x100   : > { %12814 = vst [vmem:[#allocation38_spill] sm:$0xff] %v12813_v58  ;;  %vm12818_vm14 = vmmov %vm12815_vm12 }
 0x101   : > { %2381 = vmatmul.bf16.gmra.mxu0 %v7550_v51  ;;  %2648 = vmatmul.bf16.gmra.mxu2 %v7550_v51  ;;  %v1273_v51 = vrot.slane %v1271_v37, 7  ;;  %v2614_v37 = vpop.f32.mrf.mxu2  ;;  %v8460_v0 = vld [vmem:[#allocation2 + $0x94] sm:$0xf0] }
 0x102   : > { %7688 = vmatmul.msk.bf16.gmra.mxu1 %vm12809_vm2, %v7610_v49  ;;  %vm12816_vm2 = vcmask 519168  }
 0x103   : > { %v1278_v14 = vrot.slane %v1273_v51, 4  ;;  %v1276_v54 = vor.u32 %v1274_v34, %v1273_v51  ;;  %vm12817_vm8 = vmmov %vm12816_vm2  ;;  %v1289_v51 = vshrl.u32 %v1095_v46, 16  ;;  %v7565_v19 = vld [vmem:[#allocation2 + $0x90] sm:$0xf] }
 0x105   : > { %v1286_v22 = vsel %vm9212_vm7, %v1278_v14, %v1285_v61  ;;  %v1277_v52 = vsel %vm9212_vm7, %v1269_v23, %v1276_v54  ;;  %v1301_v61 = vshll.u32 %v1096_v18, 16  ;;  %v1292_v23 = vshll.u32 %v1095_v46, 16  ;;  %v891_v14 = vpop.permute.xlu2 %890 }
 0x106   : > { %v9840_v1 = vpop.f32.mrf.mxu3  ;;  %1454 = vst.msk [vmem:[#allocation2 + $0xa8] sm:$0xf] %vm12816_vm2, %v1286_v22  ;;  %vm12821_vm2 = vmmov %vm12818_vm14 }
 0x107   : > { %v9848_v60 = vpop.f32.mrf.mxu1  ;;  %1453 = vst.msk [vmem:[#allocation2 + $0xa0] sm:$0xf] %vm12817_vm8, %v1277_v52  ;;  %v1291_v52 = vrot.slane %v1289_v51, 7  ;;  %v7566_v51 = vor.u32 %v8460_v0, %v7565_v19  ;;  %v12825_v19 = vmov 0  ;;  %v8499_v0 = vld [vmem:[#allocation2 + $0x24] sm:$0xf] }
 0x108   : > { %v893_v54 = vpop.permute.xlu0 %892  ;;  %967 = vst.msk [vmem:[#allocation2 + $0xb0] sm:$0xf] %vm12811_vm1, %v891_v14 }
 0x10b   : > { %7761 = vmatmul.msk.bf16.gmra.mxu3 %vm12815_vm12, %v7610_v49  ;;  %v1298_v49 = vshrl.u32 %v1096_v18, 16  ;;  %vm12820_vm12 = vmmov %vm12811_vm1  ;;  %v1294_v18 = vor.u32 %v1292_v23, %v1291_v52 }
 0x10c   : > { %968 = vst.msk [vmem:[#allocation2 + $0xb8] sm:$0xf] %vm12820_vm12, %v893_v54  ;;  %v8485_v54 = vld [vmem:[#allocation2 + $0x104] sm:$0xf] }
 0x10d   : > { %v9864_v56 = vrot.slane %v1298_v49, 7  ;;  %v2616_v49 = vpop.f32.mrf.mxu2  ;;  %v1295_v46 = vsel %vm9212_vm7, %v1287_v26, %v1294_v18 }
 0x10e   : > { %v9860_v4 = vpop.f32.mrf.mxu3  ;;  %1455 = vst.msk [vmem:[#allocation2 + $0xb0] sm:$0xf] %vm12817_vm8, %v1295_v46  ;;  %v7791_v46 = vld [vmem:[#allocation2 + $0x28] sm:$0xf0] }
 0x10f   : > { %v9862_v34 = vpop.f32.mrf.mxu1  ;;  %v1303_v22 = vor.u32 %v1301_v61, %v9864_v56  ;;  %v304_v61 = vadd.s32 200, %v8859_v3 }
 0x111   : > { %2386 = vmatmul.bf16.gmra.mxu0 %v7558_v2  ;;  %2653 = vmatmul.bf16.gmra.mxu2 %v7558_v2  ;;  %v1296_v2 = vrot.slane %v1291_v52, 4  ;;  %v7623_v52 = vld [vmem:[#allocation2 + $0x108] sm:$0xf0]  ;;  %v490_v18 = vand.u32 15, %v304_v61 }
 0x112   : > { %7689 = vmatmul.msk.bf16.gmra.mxu1 %vm12818_vm14, %v7618_v15  ;;  %vm12822_vm14 = vmmov %vm12817_vm8  ;;  %vm12830_vm8 = vcmask 523264  }
 0x113   : > { %v1304_v48 = vsel %vm9212_vm7, %v1296_v2, %v1303_v22 }
 0x114   : > { %1456 = vst.msk [vmem:[#allocation2 + $0xb8] sm:$0xf] %vm12822_vm14, %v1304_v48  ;;  %vm12832_vm14 = vcmask 1043968  }
 0x116   : > { %v9870_v27 = vpop.f32.mrf.mxu3 }
 0x117   : > { %12819 = vst [vmem:[#allocation39_spill] sm:$0xff] %v9870_v27  ;;  %v9875_v42 = vpop.f32.mrf.mxu1  ;;  %v7626_v27 = vor.u32 %v8485_v54, %v7623_v52  ;;  %v897_v54 = vpop.permute.xlu2 %896 }
 0x118   : > { %v895_v52 = vpop.permute.xlu1 %894  ;;  %970 = vst.msk [vmem:[#allocation2 + $0xc8] sm:$0xf] %vm12832_vm14, %v897_v54 }
 0x11b   : > { %7762 = vmatmul.msk.bf16.gmra.mxu3 %vm12821_vm2, %v7618_v15  ;;  %v302_v15 = vadd.s32 184, %v8859_v3  ;;  %vm9903_vm2 = vcmp.ne.s32.totalorder %v490_v18, 15  ;;  %v7794_v18 = vor.u32 %v8499_v0, %v7791_v46  ;;  %v7573_v0 = vld [vmem:[#allocation2 + $0xa0] sm:$0xf]  ;;  %v8462_v46 = vld [vmem:[#allocation2 + $0xa4] sm:$0xf0] }
 0x11d   : > { %v476_v26 = vand.u32 15, %v302_v15  ;;  %v1305_v15 = vrot.slane %v9864_v56, 4 }
 0x11e   : > { %v2352_v23 = vpop.f32.mrf.mxu0  ;;  %v9885_v14 = vpop.f32.mrf.mxu3 }
 0x11f   : > { %12823 = vst [vmem:[#allocation40_spill] sm:$0xff] %v9885_v14  ;;  %v2442_v58 = vadd.f32 %v9491_v32, %v2352_v23  ;;  %v9891_v2 = vpop.f32.mrf.mxu1  ;;  %vm750_vm1 = vcmp.ne.s32.totalorder %v476_v26, 15  ;;  %v1097_v32 = vsel %vm8882_vm6, %v9415_v39, 0 }
 0x120   : > { %12824 = vst [vmem:[#allocation41_spill] sm:$0xff] %v9891_v2  ;;  %vm9893_vm12 = vmpackc.low %vm750_vm1, %vm750_vm1  ;;  %v1307_v61 = vshrl.u32 %v1097_v32, 16  ;;  %v1310_v39 = vshll.u32 %v1097_v32, 16 }
 0x121   : > { %v9889_v22 = vadd.f32 %v2614_v37, %v2442_v58  ;;  %2391 = vmatmul.bf16.gmra.mxu0 %v7566_v51  ;;  %2658 = vmatmul.bf16.gmra.mxu2 %v7566_v51  ;;  %v12826_v19 = vsel %vm9893_vm12, 4294967295, %v12825_v19  ;;  %v1098_v58 = vsel %vm9893_vm12, %v9428_v29, 0  ;;  %vm12833_vm1 = vmmov %vm12832_vm14  ;;  %vm12837_vm14 = vcmask 523264  }
 0x122   : > { %12827 = vst [vmem:[#allocation42_spill] sm:$0xff] %v12826_v19  ;;  %7690 = vmatmul.msk.bf16.gmra.mxu1 %vm12830_vm8, %v7626_v27  ;;  %v1316_v51 = vshrl.u32 %v1098_v58, 16  ;;  %v1319_v23 = vshll.u32 %v1098_v58, 16  ;;  %v1309_v19 = vrot.slane %v1307_v61, 7  ;;  %vm9919_vm8 = vmpackc.low %vm9903_vm2, %vm9903_vm2  ;;  %v12834_v27 = vmov 0 }
 0x123   : > { %969 = vst.msk [vmem:[#allocation2 + $0xc0] sm:$0xf] %vm12833_vm1, %v895_v52  ;;  %v12835_v27 = vsel %vm9919_vm8, 4294967295, %v12834_v27  ;;  %v1100_v61 = vsel %vm9919_vm8, %v9530_v50, 0  ;;  %vm12838_vm2 = vcmask 519168   ;;  %v306_v52 = vadd.s32 216, %v8859_v3 }
 0x124   : > { %v2619_v48 = vpop.f32.mrf.mxu2  ;;  %v9913_v2 = vrot.slane %v1316_v51, 7  ;;  %12836 = vst [vmem:[#allocation44_spill] sm:$0xff] %v12835_v27  ;;  %v1314_v58 = vrot.slane %v1309_v19, 4  ;;  %v1312_v54 = vor.u32 %v1310_v39, %v1309_v19  ;;  %v7574_v19 = vor.u32 %v8462_v46, %v7573_v0  ;;  %vm12839_vm1 = vmmov %vm12838_vm2  ;;  %v7789_v50 = vld [vmem:[#allocation2 + $0x20] sm:$0xf] }
 0x125   : > { %v504_v0 = vand.u32 15, %v306_v52 }
 0x126   : > { %v2354_v26 = vpop.f32.mrf.mxu0  ;;  %v9909_v14 = vpop.f32.mrf.mxu3  ;;  %v1321_v32 = vor.u32 %v1319_v23, %v9913_v2  ;;  %v1334_v23 = vshrl.u32 %v1100_v61, 16 }
 0x127   : > { %12831 = vst [vmem:[#allocation43_spill] sm:$0xff] %v9909_v14  ;;  %v2444_v29 = vadd.f32 %v9516_v16, %v2354_v26  ;;  %v9926_v16 = vpop.f32.mrf.mxu1  ;;  %v8464_v14 = vld [vmem:[#allocation2 + $0xb4] sm:$0xf0] }
 0x128   : > { %v1322_v37 = vsel %vm9212_vm7, %v1314_v58, %v1321_v32 }
 0x129   : > { %v9923_v56 = vadd.f32 %v2616_v49, %v2444_v29  ;;  %v1313_v49 = vsel %vm9212_vm7, %v1305_v15, %v1312_v54  ;;  %1458 = vst.msk [vmem:[#allocation2 + $0xc8] sm:$0xf] %vm12838_vm2, %v1322_v37  ;;  %v8500_v29 = vld [vmem:[#allocation2 + $0x24] sm:$0xf0]  ;;  %v9944_v15 = vrot.slane %v1334_v23, 7  ;;  %v1337_v54 = vshll.u32 %v1100_v61, 16 }
 0x12a   : > { %1457 = vst.msk [vmem:[#allocation2 + $0xc0] sm:$0xf] %vm12839_vm1, %v1313_v49  ;;  %v7790_v32 = vor.u32 %v8500_v29, %v7789_v50  ;;  %v8501_v37 = vld [vmem:[#allocation2 + $0x34] sm:$0xf]  ;;  %v7799_v49 = vld [vmem:[#allocation2 + $0x38] sm:$0xf0] }
 0x12b   : > { %7963 = vmatmul.msk.bf16.vlgmr.msrb.gmra.mxu3 %vm12837_vm14, %v7794_v18  ;;  %v1339_v61 = vor.u32 %v1337_v54, %v9944_v15  ;;  %vm754_vm14 = vcmp.ne.s32.totalorder %v504_v0, 15  ;;  %vm12843_vm2 = vcmask 1043968  }
 0x12c   : > { %v2621_v51 = vpop.f32.mrf.mxu2  ;;  %vm12844_vm1 = vmmov %vm12843_vm2 }
 0x12d   : > { %vm9961_vm11 = vmpackc.low %vm754_vm14, %vm754_vm14  ;;  %vm12849_vm14 = vcmask 519168  }
 0x12e   : > { %v2357_v26 = vpop.f32.mrf.mxu0  ;;  %v9939_v39 = vpop.f32.mrf.mxu3 }
 0x12f   : > { %12840 = vst [vmem:[#allocation45_spill] sm:$0xff] %v9939_v39  ;;  %v2447_v18 = vadd.f32 %v9536_v57, %v2357_v26  ;;  %v9946_v46 = vpop.f32.mrf.mxu1  ;;  %v1099_v39 = vsel %vm8882_vm6, %v9453_v6, 0  ;;  %v8561_v57 = vld [vmem:[%s12493_s2 + $0x10] sm:$0xff]  ;;  %v899_v26 = vpop.permute.xlu0 %898  ;;  %v7802_v6 = vor.u32 %v8501_v37, %v7799_v49  ;;  %v1102_v49 = vsel %vm9961_vm11, %v9611_v59, 0 }
 0x130   : > { %12841 = vst [vmem:[#allocation46_spill] sm:$0xff] %v9946_v46  ;;  %v1328_v23 = vshll.u32 %v1099_v39, 16  ;;  %4823 = vmatpush.bf16.msrb.mxu2 %v8561_v57 }
 0x131   : > { %v9942_v58 = vadd.f32 %v2619_v48, %v2447_v18  ;;  %2396 = vmatmul.bf16.gmra.mxu0 %v7574_v19  ;;  %2663 = vmatmul.bf16.gmra.mxu2 %v7574_v19  ;;  %v1325_v48 = vshrl.u32 %v1099_v39, 16  ;;  %v901_v19 = vpop.permute.xlu1 %900  ;;  %971 = vst.msk [vmem:[#allocation2 + $0xd0] sm:$0xf] %vm12844_vm1, %v899_v26  ;;  %v12845_v39 = vmov 0  ;;  %vm12850_vm1 = vmmov %vm12849_vm14  ;;  %v7797_v26 = vld [vmem:[#allocation2 + $0x30] sm:$0xf] }
 0x132   : > { %3112 = vmatmul.bf16.vlgmr.msrb.gmra.mxu1 %v7790_v32  ;;  %972 = vst.msk [vmem:[#allocation2 + $0xd8] sm:$0xf] %vm12843_vm2, %v901_v19  ;;  %v1323_v32 = vrot.slane %v9913_v2, 4  ;;  %v12846_v39 = vsel %vm9961_vm11, 4294967295, %v12845_v39  ;;  %v7581_v19 = vld [vmem:[#allocation2 + $0xb0] sm:$0xf] }
 0x133   : > { %v1327_v18 = vrot.slane %v1325_v48, 7  ;;  %12847 = vst [vmem:[#allocation48_spill] sm:$0xff] %v12846_v39  ;;  %vm12848_vm2 = vcmask 523264   ;;  %v7582_v57 = vor.u32 %v8464_v14, %v7581_v19  ;;  %v7807_v19 = vld [vmem:[#allocation2 + $0x48] sm:$0xf0] }
 0x134   : > { %v2624_v27 = vpop.f32.mrf.mxu2  ;;  %v7589_v39 = vld [vmem:[#allocation2 + $0xc0] sm:$0xf] }
 0x135   : > { %v1332_v0 = vrot.slane %v1327_v18, 4  ;;  %v1330_v46 = vor.u32 %v1328_v23, %v1327_v18 }
 0x136   : > { %v2359_v52 = vpop.f32.mrf.mxu0  ;;  %v9955_v50 = vpop.f32.mrf.mxu3 }
 0x137   : > { %12842 = vst [vmem:[#allocation47_spill] sm:$0xff] %v9955_v50  ;;  %v2449_v29 = vadd.f32 %v9577_v28, %v2359_v52  ;;  %v9967_v50 = vpop.f32.mrf.mxu1  ;;  %v8565_v28 = vld [vmem:[%s12493_s2 + $0x28] sm:$0xff]  ;;  %v1340_v2 = vsel %vm9212_vm7, %v1332_v0, %v1339_v61  ;;  %v1331_v37 = vsel %vm9212_vm7, %v1323_v32, %v1330_v46  ;;  %v8502_v46 = vld [vmem:[#allocation2 + $0x34] sm:$0xf0]  ;;  %v1352_v61 = vshrl.u32 %v1102_v49, 16 }
 0x138   : > { %1460 = vst.msk [vmem:[#allocation2 + $0xd8] sm:$0xf] %vm12849_vm14, %v1340_v2  ;;  %4708 = vmatpush.bf16.msrb.mxu0 %v8565_v28  ;;  %v7798_v18 = vor.u32 %v8502_v46, %v7797_v26  ;;  %v1355_v32 = vshll.u32 %v1102_v49, 16  ;;  %v8503_v0 = vld [vmem:[#allocation2 + $0x44] sm:$0xf]  ;;  %v1101_v28 = vsel %vm8882_vm6, %v9542_v55, 0 }
 0x139   : > { %v9965_v54 = vadd.f32 %v2621_v51, %v2449_v29  ;;  %v8584_v51 = vld [vmem:[%s12493_s2 + $0x40] sm:$0xff]  ;;  %1459 = vst.msk [vmem:[#allocation2 + $0xd0] sm:$0xf] %vm12850_vm1, %v1331_v37  ;;  %v9992_v14 = vrot.slane %v1352_v61, 7  ;;  %v1343_v2 = vshrl.u32 %v1101_v28, 16  ;;  %v903_v37 = vpop.permute.xlu2 %902  ;;  %v7810_v46 = vor.u32 %v8503_v0, %v7807_v19 }
 0x13a   : > { %5097 = vmatpush.bf16.msra.mxu1 %v8584_v51  ;;  %v1341_v51 = vrot.slane %v9944_v15, 4  ;;  %vm12854_vm1 = vcmask 523264  }
 0x13b   : > { %7964 = vmatmul.msk.bf16.gmra.mxu3 %vm12848_vm2, %v7802_v6  ;;  %vm12852_vm2 = vcmask 1043968   ;;  %v1357_v49 = vor.u32 %v1355_v32, %v9992_v14  ;;  %v1345_v61 = vrot.slane %v1343_v2, 7  ;;  %v7805_v2 = vld [vmem:[#allocation2 + $0x40] sm:$0xf] }
 0x13c   : > { %v2626_v29 = vpop.f32.mrf.mxu2  ;;  %973 = vst.msk [vmem:[#allocation2 + $0xe0] sm:$0xf] %vm12852_vm2, %v903_v37  ;;  %vm12853_vm14 = vmmov %vm12852_vm2  ;;  %vm12855_vm2 = vcmask 519168   ;;  %v308_v37 = vadd.s32 232, %v8859_v3  ;;  %v1103_v3 = vsel %vm8882_vm6, %v9623_v17, 0 }
 0x13e   : > { %v2362_v48 = vpop.f32.mrf.mxu0  ;;  %v9985_v23 = vpop.f32.mrf.mxu3 }
 0x13f   : > { %12851 = vst [vmem:[#allocation49_spill] sm:$0xff] %v9985_v23  ;;  %v2452_v52 = vadd.f32 %v9617_v25, %v2362_v48  ;;  %v9990_v59 = vpop.f32.mrf.mxu1  ;;  %v1346_v25 = vshll.u32 %v1101_v28, 16  ;;  %v8466_v23 = vld [vmem:[#allocation2 + $0xc4] sm:$0xf0] }
 0x140   : > { %v7590_v0 = vor.u32 %v8466_v23, %v7589_v39  ;;  %v8505_v23 = vld [vmem:[#allocation2 + $0x54] sm:$0xf] }
 0x141   : > { %v9988_v6 = vadd.f32 %v2624_v27, %v2452_v52  ;;  %2401 = vmatmul.bf16.gmra.mxu0 %v7582_v57  ;;  %2668 = vmatmul.bf16.gmra.mxu2 %v7582_v57  ;;  %v905_v27 = vpop.permute.xlu0 %904  ;;  %v1348_v52 = vor.u32 %v1346_v25, %v1345_v61  ;;  %v8504_v25 = vld [vmem:[#allocation2 + $0x44] sm:$0xf0] }
 0x142   : > { %3117 = vmatmul.bf16.gmra.mxu1 %v7798_v18  ;;  %974 = vst.msk [vmem:[#allocation2 + $0xe8] sm:$0xf] %vm12853_vm14, %v905_v27  ;;  %v1350_v18 = vrot.slane %v1345_v61, 4  ;;  %vm12856_vm14 = vmmov %vm12855_vm2  ;;  %v12858_v61 = vmov 0 }
 0x143   : > { %v1349_v32 = vsel %vm9212_vm7, %v1341_v51, %v1348_v52  ;;  %v7806_v51 = vor.u32 %v8504_v25, %v7805_v2  ;;  %v1361_v52 = vshrl.u32 %v1103_v3, 16  ;;  %v1359_v25 = vrot.slane %v9992_v14, 4 }
 0x144   : > { %v2629_v15 = vpop.f32.mrf.mxu2  ;;  %1461 = vst.msk [vmem:[#allocation2 + $0xe0] sm:$0xf] %vm12855_vm2, %v1349_v32  ;;  %v907_v32 = vpop.permute.xlu1 %906 }
 0x146   : > { %v2364_v48 = vpop.f32.mrf.mxu0  ;;  %v9998_v57 = vpop.f32.mrf.mxu3 }
 0x147   : > { %v2454_v26 = vadd.f32 %v9669_v7, %v2364_v48  ;;  %v10006_v28 = vpop.f32.mrf.mxu1  ;;  %v1358_v7 = vsel %vm9212_vm7, %v1350_v18, %v1357_v49  ;;  %v518_v48 = vand.u32 15, %v308_v37  ;;  %v909_v18 = vpop.permute.xlu2 %908 }
 0x148   : > { %1462 = vst.msk [vmem:[#allocation2 + $0xe8] sm:$0xf] %vm12856_vm14, %v1358_v7  ;;  %vm12862_vm14 = vcmask 1043968  }
 0x149   : > { %v10004_v55 = vadd.f32 %v2626_v29, %v2454_v26  ;;  %976 = vst.msk [vmem:[#allocation2 + $0xf8] sm:$0xf] %vm12862_vm14, %v909_v18 }
 0x14b   : > { %7965 = vmatmul.msk.bf16.gmra.mxu3 %vm12854_vm1, %v7810_v46  ;;  %vm756_vm1 = vcmp.ne.s32.totalorder %v518_v48, 15  ;;  %v7815_v46 = vld [vmem:[#allocation2 + $0x58] sm:$0xf0] }
 0x14c   : > { %v2631_v39 = vpop.f32.mrf.mxu2  ;;  %vm10023_vm2 = vmpackc.low %vm756_vm1, %vm756_vm1  ;;  %v7818_v37 = vor.u32 %v8505_v23, %v7815_v46  ;;  %v7813_v46 = vld [vmem:[#allocation2 + $0x50] sm:$0xf] }
 0x14d   : > { %v12859_v61 = vsel %vm10023_vm2, 4294967295, %v12858_v61  ;;  %vm12863_vm1 = vmmov %vm12862_vm14  ;;  %vm12865_vm14 = vcmask 519168  }
 0x14e   : > { %v2367_v29 = vpop.f32.mrf.mxu0  ;;  %v10015_v19 = vpop.f32.mrf.mxu3  ;;  %12860 = vst [vmem:[#allocation51_spill] sm:$0xff] %v12859_v61 }
 0x14f   : > { %12857 = vst [vmem:[#allocation50_spill] sm:$0xff] %v10015_v19  ;;  %v2457_v27 = vadd.f32 %v9709_v20, %v2367_v29  ;;  %v10021_v49 = vpop.f32.mrf.mxu1  ;;  %v1104_v20 = vsel %vm10023_vm2, %v9649_v62, 0  ;;  %v8468_v19 = vld [vmem:[#allocation2 + $0xd4] sm:$0xf0]  ;;  %vm12864_vm2 = vcmask 523264  }
 0x150   : > { %v1370_v29 = vshrl.u32 %v1104_v20, 16  ;;  %v1373_v2 = vshll.u32 %v1104_v20, 16  ;;  %975 = vst.msk [vmem:[#allocation2 + $0xf0] sm:$0xf] %vm12863_vm1, %v907_v32  ;;  %vm12866_vm1 = vmmov %vm12865_vm14  ;;  %v8507_v32 = vld [vmem:[#allocation2 + $0x64] sm:$0xf] }
 0x151   : > { %v10019_v26 = vadd.f32 %v2629_v15, %v2457_v27  ;;  %2406 = vmatmul.bf16.gmra.mxu0 %v7590_v0  ;;  %2673 = vmatmul.bf16.gmra.mxu2 %v7590_v0  ;;  %v1364_v15 = vshll.u32 %v1103_v3, 16  ;;  %v1363_v27 = vrot.slane %v1361_v52, 7  ;;  %v8506_v52 = vld [vmem:[#allocation2 + $0x54] sm:$0xf0] }
 0x152   : > { %3122 = vmatmul.bf16.gmra.mxu1 %v7806_v51  ;;  %v1372_v62 = vrot.slane %v1370_v29, 7  ;;  %v7814_v18 = vor.u32 %v8506_v52, %v7813_v46  ;;  %v1105_v29 = vsel %vm8882_vm6, %v9667_v9, 0  ;;  %v8470_v9 = vld [vmem:[#allocation2 + $0xe4] sm:$0xf0] }
 0x153   : > { %v1368_v51 = vrot.slane %v1363_v27, 4  ;;  %v1366_v3 = vor.u32 %v1364_v15, %v1363_v27 }
 0x154   : > { %v1375_v20 = vor.u32 %v1373_v2, %v1372_v62  ;;  %v1379_v2 = vshrl.u32 %v1105_v29, 16 }
 0x155   : > { %v1367_v14 = vsel %vm9212_vm7, %v1359_v25, %v1366_v3  ;;  %v911_v25 = vpop.permute.xlu0 %910 }
 0x156   : > { %v2369_v7 = vpop.f32.mrf.mxu0  ;;  %v10033_v0 = vpop.f32.mrf.mxu3  ;;  %1463 = vst.msk [vmem:[#allocation2 + $0xf0] sm:$0xf] %vm12865_vm14, %v1367_v14  ;;  %v1381_v27 = vrot.slane %v1379_v2, 7  ;;  %v8509_v2 = vld [vmem:[#allocation2 + $0x74] sm:$0xf] }
 0x157   : > { %12861 = vst [vmem:[#allocation52_spill] sm:$0xff] %v10033_v0  ;;  %v2459_v17 = vadd.f32 %v9735_v33, %v2369_v7  ;;  %v10041_v61 = vpop.f32.mrf.mxu1  ;;  %v7597_v0 = vld [vmem:[#allocation2 + $0xd0] sm:$0xf]  ;;  %v1376_v33 = vsel %vm9212_vm7, %v1368_v51, %v1375_v20  ;;  %v7823_v7 = vld [vmem:[#allocation2 + $0x68] sm:$0xf0]  ;;  %v1377_v51 = vrot.slane %v1372_v62, 4 }
 0x158   : > { %v7598_v23 = vor.u32 %v8468_v19, %v7597_v0  ;;  %1464 = vst.msk [vmem:[#allocation2 + $0xf8] sm:$0xf] %vm12866_vm1, %v1376_v33  ;;  %v913_v19 = vpop.permute.xlu1 %912  ;;  %v1382_v0 = vshll.u32 %v1105_v29, 16  ;;  %v1386_v3 = vrot.slane %v1381_v27, 4  ;;  %v7605_v33 = vld [vmem:[#allocation2 + $0xe0] sm:$0xf] }
 0x159   : > { %v10039_v48 = vadd.f32 %v2631_v39, %v2459_v17  ;;  %vm12872_vm1 = vcmask 523264   ;;  %v7606_v62 = vor.u32 %v8470_v9, %v7605_v33  ;;  %v8510_v33 = vld [vmem:[#allocation2 + $0x74] sm:$0xf0] }
 0x15a   : > { %v1384_v20 = vor.u32 %v1382_v0, %v1381_v27 }
 0x15b   : > { %7966 = vmatmul.msk.bf16.gmra.mxu3 %vm12864_vm2, %v7818_v37  ;;  %vm12869_vm2 = vcmask 1043968   ;;  %v7826_v37 = vor.u32 %v8507_v32, %v7823_v7  ;;  %v8508_v32 = vld [vmem:[#allocation2 + $0x64] sm:$0xf0] }
 0x15c   : > { %978 = vst.msk [vmem:[#allocation2 + $0x108] sm:$0xf] %vm12869_vm2, %v913_v19  ;;  %vm12870_vm14 = vmmov %vm12869_vm2  ;;  %v1385_v46 = vsel %vm9212_vm7, %v1377_v51, %v1384_v20  ;;  %vm12873_vm2 = vcmask 519168   ;;  %v7831_v19 = vld [vmem:[#allocation2 + $0x78] sm:$0xf0] }
 0x15d   : > { %977 = vst.msk [vmem:[#allocation2 + $0x100] sm:$0xf] %vm12870_vm14, %v911_v25  ;;  %vm12874_vm11 = vmmov %vm12873_vm2  ;;  %v7834_v0 = vor.u32 %v8509_v2, %v7831_v19  ;;  %v7829_v20 = vld [vmem:[#allocation2 + $0x70] sm:$0xf] }
 0x15e   : > { %v10050_v39 = vpop.f32.mrf.mxu3  ;;  %1465 = vst.msk [vmem:[#allocation2 + $0x100] sm:$0xf] %vm12874_vm11, %v1385_v46  ;;  %vm12879_vm11 = vmmov %vm12872_vm1  ;;  %v7830_v9 = vor.u32 %v8510_v33, %v7829_v20  ;;  %v8511_v46 = vld [vmem:[#allocation2 + $0x84] sm:$0xf]  ;;  %v7837_v20 = vld [vmem:[#allocation2 + $0x80] sm:$0xf] }
 0x15f   : > { %12867 = vst [vmem:[#allocation53_spill] sm:$0xff] %v10050_v39  ;;  %v10052_v15 = vpop.f32.mrf.mxu1  ;;  %v8472_v27 = vld [vmem:[#allocation2 + $0xf4] sm:$0xf0]  ;;  %vm12884_vm14 = vmmov %vm12872_vm1  ;;  %v8512_v33 = vld [vmem:[#allocation2 + $0x84] sm:$0xf0] }
 0x161   : > { %2411 = vmatmul.bf16.gmra.mxu0 %v7598_v23  ;;  %2678 = vmatmul.bf16.gmra.mxu2 %v7598_v23  ;;  %v1394_v23 = vsel %vm9212_vm7, %v1386_v3, %v9830_v21 }
 0x162   : > { %3127 = vmatmul.bf16.gmra.mxu1 %v7814_v18  ;;  %1466 = vst.msk [vmem:[#allocation2 + $0x108] sm:$0xf] %vm12873_vm2, %v1394_v23  ;;  %v7821_v18 = vld [vmem:[#allocation2 + $0x60] sm:$0xf]  ;;  %vm3447_vm2 = vcmask 388096  }
 0x163   : > { %v7822_v7 = vor.u32 %v8508_v32, %v7821_v18 }
 0x165   : > { %v7621_v2 = vld [vmem:[#allocation2 + $0x100] sm:$0xf] }
 0x166   : > { %v10057_v17 = vpop.f32.mrf.mxu3 }
 0x167   : > { %12868 = vst [vmem:[#allocation54_spill] sm:$0xff] %v10057_v17  ;;  %v10061_v14 = vpop.f32.mrf.mxu1 }
 0x168   : > { %12871 = vst [vmem:[#allocation55_spill] sm:$0xff] %v10061_v14 }
 0x169   : > { %v8486_v19 = vld [vmem:[#allocation2 + $0x104] sm:$0xf0] }
 0x16b   : > { %7967 = vmatmul.msk.bf16.gmra.mxu3 %vm12872_vm1, %v7826_v37  ;;  %v7613_v37 = vld [vmem:[#allocation2 + $0xf0] sm:$0xf] }
 0x16c   : > { %v7614_v51 = vor.u32 %v8472_v27, %v7613_v37  ;;  %v8564_v37 = vld [vmem:[%s12493_s2 + $0x20] sm:$0xff]  ;;  %v7622_v27 = vor.u32 %v8486_v19, %v7621_v2 }
 0x16d   : > { %4709 = vmatpush.bf16.msrb.mxu0 %v8564_v37 }
 0x16e   : > { %v10071_v52 = vpop.f32.mrf.mxu3 }
 0x16f   : > { %12875 = vst [vmem:[#allocation56_spill] sm:$0xff] %v10071_v52  ;;  %v10073_v29 = vpop.f32.mrf.mxu1 }
 0x170   : > { %12876 = vst [vmem:[#allocation57_spill] sm:$0xff] %v10073_v29 }
 0x171   : > { %2416 = vmatmul.bf16.gmra.mxu0 %v7606_v62  ;;  %2683 = vmatmul.bf16.gmra.mxu2 %v7606_v62  ;;  %v7839_v62 = vld [vmem:[#allocation2 + $0x88] sm:$0xf0] }
 0x172   : > { %3132 = vmatmul.bf16.gmra.mxu1 %v7822_v7  ;;  %v7842_v32 = vor.u32 %v8511_v46, %v7839_v62  ;;  %v8583_v62 = vld [vmem:[%s12493_s2 + $0x38] sm:$0xff] }
 0x173   : > { %5098 = vmatpush.bf16.msra.mxu1 %v8583_v62  ;;  %v7855_v62 = vld [vmem:[#allocation2 + $0xa8] sm:$0xf0] }
 0x176   : > { %v10075_v21 = vpop.f32.mrf.mxu3 }
 0x177   : > { %12877 = vst [vmem:[#allocation58_spill] sm:$0xff] %v10075_v21  ;;  %v10077_v25 = vpop.f32.mrf.mxu1 }
 0x178   : > { %12878 = vst [vmem:[#allocation59_spill] sm:$0xff] %v10077_v25 }
 0x17b   : > { %7968 = vmatmul.msk.bf16.gmra.mxu3 %vm12879_vm11, %v7834_v0  ;;  %v8560_v0 = vld [vmem:[%s12493_s2 + $0x8] sm:$0xff]  ;;  %vm12894_vm11 = vmmov %vm12872_vm1 }
 0x17c   : > { %4824 = vmatpush.bf16.msrb.mxu2 %v8560_v0  ;;  %v12889_v0 = vmov 0  }
 0x17d   : > { %3449 = vst.msk [vmem:[#allocation3 + $0x4] sm:$0xf] %vm3447_vm2, %v12889_v0 }
 0x17e   : > { %v10080_v3 = vpop.f32.mrf.mxu3  ;;  %3448 = vst.msk [vmem:[#allocation3] sm:$0xf] %vm3447_vm2, %v12889_v0 }
 0x17f   : > { %12880 = vst [vmem:[#allocation60_spill] sm:$0xff] %v10080_v3  ;;  %v10082_v23 = vpop.f32.mrf.mxu1 }
 0x180   : > { %12881 = vst [vmem:[#allocation61_spill] sm:$0xff] %v10082_v23 }
 0x181   : > { %2421 = vmatmul.bf16.gmra.mxu0 %v7614_v51  ;;  %2688 = vmatmul.bf16.gmra.mxu2 %v7614_v51  ;;  %3460 = vst.msk [vmem:[#allocation3 + $0x88] sm:$0xf] %vm3447_vm2, %v12889_v0 }
 0x182   : > { %3137 = vmatmul.bf16.gmra.mxu1 %v7830_v9  ;;  %v7838_v9 = vor.u32 %v8512_v33, %v7837_v20  ;;  %v8514_v20 = vld [vmem:[#allocation2 + $0x94] sm:$0xf0]  ;;  %3461 = vst.msk [vmem:[#allocation3 + $0x8c] sm:$0xf] %vm3447_vm2, %v12889_v0 }
 0x183   : > { %5474 = vst.msk [vmem:[#allocation4] sm:$0xf] %vm3447_vm2, %v12889_v0 }
 0x184   : > { %5475 = vst.msk [vmem:[#allocation4 + $0x4] sm:$0xf] %vm3447_vm2, %v12889_v0 }
 0x185   : > { %5482 = vst.msk [vmem:[#allocation4 + $0x88] sm:$0xf] %vm3447_vm2, %v12889_v0 }
 0x186   : > { %v10084_v18 = vpop.f32.mrf.mxu3  ;;  %5483 = vst.msk [vmem:[#allocation4 + $0x8c] sm:$0xf] %vm3447_vm2, %v12889_v0  ;;  %vm4467_vm2 = vcmask 388355  }
 0x187   : > { %12882 = vst [vmem:[#allocation62_spill] sm:$0xff] %v10084_v18  ;;  %v10086_v7 = vpop.f32.mrf.mxu1  ;;  %v7847_v18 = vld [vmem:[#allocation2 + $0x98] sm:$0xf0] }
 0x188   : > { %12883 = vst [vmem:[#allocation63_spill] sm:$0xff] %v10086_v7 }
 0x18b   : > { %7969 = vmatmul.msk.bf16.gmra.mxu3 %vm12884_vm14, %v7842_v32  ;;  %v8513_v32 = vld [vmem:[#allocation2 + $0x94] sm:$0xf]  ;;  %vm12614_vm14 = vcmask 261120  }
 0x18c   : > { %v7850_v2 = vor.u32 %v8513_v32, %v7847_v18 }
 0x18e   : > { %v10095_v51 = vpop.f32.mrf.mxu3 }
 0x18f   : > { %12885 = vst [vmem:[#allocation64_spill] sm:$0xff] %v10095_v51  ;;  %v10097_v46 = vpop.f32.mrf.mxu1 }
 0x190   : > { %12886 = vst [vmem:[#allocation65_spill] sm:$0xff] %v10097_v46 }
 0x191   : > { %2426 = vmatmul.bf16.gmra.mxu0 %v7622_v27  ;;  %v7845_v27 = vld [vmem:[#allocation2 + $0x90] sm:$0xf] }
 0x192   : > { %3142 = vmatmul.bf16.gmra.mxu1 %v7838_v9  ;;  %v7846_v18 = vor.u32 %v8514_v20, %v7845_v27  ;;  %v8515_v9 = vld [vmem:[#allocation2 + $0xa4] sm:$0xf] }
 0x196   : > { %v10102_v3 = vpop.f32.mrf.mxu3 }
 0x197   : > { %12887 = vst [vmem:[#allocation66_spill] sm:$0xff] %v10102_v3  ;;  %v10104_v19 = vpop.f32.mrf.mxu1  ;;  %v8516_v3 = vld [vmem:[#allocation2 + $0xa4] sm:$0xf0] }
 0x198   : > { %12888 = vst [vmem:[#allocation67_spill] sm:$0xff] %v10104_v19 }
 0x19b   : > { %7970 = vmatmul.msk.bf16.gmra.mxu3 %vm12872_vm1, %v7850_v2  ;;  %v7858_v2 = vor.u32 %v8515_v9, %v7855_v62  ;;  %v10133_v62 = vld [vmem:[%s12495_s4] ss:$0 sm:$0xff] }
 0x19e   : > { %v10109_v37 = vpop.f32.mrf.mxu3 }
 0x19f   : > { %12890 = vst [vmem:[#allocation68_spill] sm:$0xff] %v10109_v37  ;;  %v10115_v33 = vpop.f32.mrf.mxu1  ;;  %v8559_v37 = vld [vmem:[%s12493_s2] sm:$0xff] }
 0x1a0   : > { %12891 = vst [vmem:[#allocation69_spill] sm:$0xff] %v10115_v33  ;;  %4825 = vmatpush.bf16.msrb.mxu2 %v8559_v37  ;;  %v7853_v33 = vld [vmem:[#allocation2 + $0xa0] sm:$0xf] }
 0x1a1   : > { %v7854_v0 = vor.u32 %v8516_v3, %v7853_v33 }
 0x1a2   : > { %3147 = vmatmul.bf16.gmra.mxu1 %v7846_v18  ;;  %v2704_v18 = vadd.f32 %v9481_v10, %v9889_v22 }
 0x1a6   : > { %v10119_v32 = vpop.f32.mrf.mxu3 }
 0x1a7   : > { %12892 = vst [vmem:[#allocation70_spill] sm:$0xff] %v10119_v32  ;;  %v10124_v27 = vpop.f32.mrf.mxu1  ;;  %v8517_v32 = vld [vmem:[#allocation2 + $0xb4] sm:$0xf] }
 0x1a8   : > { %12893 = vst [vmem:[#allocation71_spill] sm:$0xff] %v10124_v27  ;;  %v7863_v27 = vld [vmem:[#allocation2 + $0xb8] sm:$0xf0] }
 0x1a9   : > { %v7866_v33 = vor.u32 %v8517_v32, %v7863_v27 }
 0x1ab   : > { %7971 = vmatmul.msk.bf16.gmra.mxu3 %vm12894_vm11, %v7858_v2  ;;  %v10138_v2 = vpop.f32.mrf.mxu0  ;;  %vm12895_vm11 = vsmask.f32 7950 }
 0x1ae   : > { %v3202_v20 = vpop.f32.mrf.mxu3 }
 0x1af   : > { %v3113_v51 = vpop.f32.mrf.mxu1 }
 0x1b0   : > { %v3203_v9 = vadd.f32 %v3202_v20, %v3113_v51  ;;  %v2706_v51 = vadd.f32 %v9510_v30, %v9923_v56  ;;  %v7861_v56 = vld [vmem:[#allocation2 + $0xb0] sm:$0xf] }
 0x1b2   : > { %v3282_v19 = vadd.f32 %v3203_v9, %v2704_v18  ;;  %3152 = vmatmul.bf16.gmra.mxu1 %v7854_v0 }
 0x1b3   : > { %v10164_v29 = vpop.f32.mrf.mxu0 }
 0x1b4   : > { %v3318_v3 = vadd.f32 %v10133_v62, %v3282_v19  ;;  %v10147_v19 = vpop.f32.mrf.mxu2 }
 0x1b6   : > { %v3204_v37 = vpop.f32.mrf.mxu3  ;;  %v3350_v10 = vmax.f32 %v3318_v3, 0.0  ;;  %v8518_v3 = vld [vmem:[#allocation2 + $0xb4] sm:$0xf0] }
 0x1b7   : > { %v3115_v22 = vpop.f32.mrf.mxu1 }
 0x1b8   : > { %v3205_v20 = vadd.f32 %v3204_v37, %v3115_v22  ;;  %v3415_v46 = vpack.c.bf16 %v3350_v10, %v3350_v10  ;;  %3383 = vst.msk [vmem:[%s10143_s19] sm:$0xff] %vm12614_vm14, %v3350_v10  ;;  %v12896_v10 = vmov 0  ;;  %v4469_v22 = vld [vmem:[#allocation3 + $0x4] sm:$0x8] }
 0x1ba   : > { %v3283_v32 = vadd.f32 %v3205_v20, %v2706_v51  ;;  %3494 = vrot.lane.b32.xlu2 %v3415_v46, %s8755_s20  ;;  %v4083_v27 = vsel %vm8901_vm13, %v3415_v46, 0  ;;  %v3623_v30 = vsel %vm8882_vm6, %v3415_v46, 0  ;;  %v7862_v46 = vor.u32 %v8518_v3, %v7861_v56  ;;  %v7871_v56 = vld [vmem:[#allocation2 + $0xc8] sm:$0xf0] }
 0x1bb   : > { %7972 = vmatmul.msk.bf16.gmra.mxu3 %vm12872_vm1, %v7866_v33  ;;  %v4116_v0 = vshll.u32 %v4083_v27, 16  ;;  %v4119_v18 = vshrl.u32 %v4083_v27, 16  ;;  %v3656_v37 = vshrl.u32 %v3623_v30, 16  ;;  %vm10156_vm1 = vmand %vm4467_vm2, %vm12895_vm11  ;;  %v3659_v7 = vshll.u32 %v3623_v30, 16  ;;  %v8519_v30 = vld [vmem:[#allocation2 + $0xc4] sm:$0xf] }
 0x1bc   : > { %v3319_v33 = vadd.f32 %v10133_v62, %v3283_v32  ;;  %v12897_v10 = vsel %vm10156_vm1, 4294967295, %v12896_v10  ;;  %v2709_v32 = vadd.f32 %v9525_v43, %v9942_v58  ;;  %v10174_v3 = vpop.f32.mrf.mxu2  ;;  %vm12612_vm2 = vcmask 392192  }
 0x1bd   : > { %12898 = vst [vmem:[#allocation72_spill] sm:$0xff] %v12897_v10  ;;  %v4118_v51 = vrot.slane %v4116_v0, 5  ;;  %v4121_v20 = vrot.slane %v4119_v18, 4  ;;  %v3658_v12 = vrot.slane %v3656_v37, 7  ;;  %vm12899_vm11 = vcmask 523264  }
 0x1be   : > { %v3207_v9 = vpop.f32.mrf.mxu3  ;;  %v3351_v23 = vmax.f32 %v3319_v33, 0.0 }
 0x1bf   : > { %v4122_v21 = vor.u32 %v4121_v20, %v4118_v51  ;;  %v4470_v27 = vsel %vm10156_vm1, %v4118_v51, %v4469_v22  ;;  %v3118_v52 = vpop.f32.mrf.mxu1  ;;  %v3661_v25 = vor.u32 %v3659_v7, %v3658_v12  ;;  %vm12907_vm1 = vsmask.f32 256 }
 0x1c0   : > { %4471 = vst [vmem:[#allocation3 + $0x4] sm:$0x8] %v4470_v27  ;;  %v3208_v17 = vadd.f32 %v3207_v9, %v3118_v52  ;;  %v3416_v0 = vpack.c.bf16 %v3351_v23, %v3351_v23  ;;  %v2711_v27 = vadd.f32 %v9560_v38, %v9965_v54  ;;  %v10194_v54 = vpop.f32.mrf.mxu0 }
 0x1c1   : > { %3942 = vrot.lane.b32.xlu1 %v3661_v25, %s8756_s21  ;;  %3384 = vst.msk [vmem:[%s10143_s19 + $0x8] sm:$0xff] %vm12614_vm14, %v3351_v23  ;;  %v10176_v25 = vrot.slane %v4122_v21, 4 }
 0x1c2   : > { %v3284_v18 = vadd.f32 %v3208_v17, %v2709_v32  ;;  %3157 = vmatmul.bf16.gmra.mxu1 %v7862_v46  ;;  %3496 = vrot.lane.b32.xlu0 %v3416_v0, %s8755_s20  ;;  %v3624_v7 = vsel %vm9137_vm3, %v3416_v0, 0  ;;  %v4084_v43 = vsel %vm8882_vm6, %v3416_v0, 0  ;;  %v7874_v17 = vor.u32 %v8519_v30, %v7871_v56 }
 0x1c3   : > { %v4125_v58 = vshll.u32 %v4084_v43, 16  ;;  %v4129_v52 = vshrl.u32 %v4084_v43, 16  ;;  %v3664_v37 = vshrl.u32 %v3624_v7, 16  ;;  %v3667_v20 = vshll.u32 %v3624_v7, 16 }
 0x1c4   : > { %v3320_v23 = vadd.f32 %v10133_v62, %v3284_v18  ;;  %v3662_v18 = vrot.slane %v3658_v12, 4 }
 0x1c5   : > { %v10179_v33 = vrot.slane %v4125_v58, 5  ;;  %v4131_v22 = vrot.slane %v4129_v52, 4  ;;  %v3666_v51 = vrot.slane %v3664_v37, 7 }
 0x1c6   : > { %v3209_v9 = vpop.f32.mrf.mxu3  ;;  %v3352_v46 = vmax.f32 %v3320_v23, 0.0 }
 0x1c7   : > { %v3120_v32 = vpop.f32.mrf.mxu1  ;;  %v8543_v0 = vld [vmem:[#allocation3] sm:$0xff]  ;;  %v3669_v30 = vor.u32 %v3667_v20, %v3666_v51  ;;  %v4132_v56 = vor.u32 %v4131_v22, %v10179_v33  ;;  %v8520_v22 = vld [vmem:[#allocation2 + $0xc4] sm:$0xf0]  ;;  %v3671_v10 = vrot.slane %v3666_v51, 4  ;;  %v7879_v51 = vld [vmem:[#allocation2 + $0xd8] sm:$0xf0] }
 0x1c8   : > { %v3210_v43 = vadd.f32 %v3209_v9, %v3120_v32  ;;  %v3417_v58 = vpack.c.bf16 %v3352_v46, %v3352_v46  ;;  %3385 = vst.msk [vmem:[%s10143_s19 + $0x10] sm:$0xff] %vm12614_vm14, %v3352_v46  ;;  %8093 = vmatmul.msk.bf16.vlgmr.msrb.gmra.mxu2 %vm12612_vm2, %v8543_v0  ;;  %v7869_v9 = vld [vmem:[#allocation2 + $0xc0] sm:$0xf] }
 0x1c9   : > { %v3670_v38 = vsel %vm9212_vm7, %v3662_v18, %v3669_v30  ;;  %v10202_v46 = vrot.slane %v4132_v56, 4 }
 0x1ca   : > { %v3285_v7 = vadd.f32 %v3210_v43, %v2711_v27  ;;  %3944 = vrot.lane.b32.xlu2 %v3670_v38, %s8756_s21  ;;  %3498 = vrot.lane.b32.xlu0 %v3417_v58, %s8755_s20  ;;  %v3625_v12 = vsel %vm8882_vm6, %v3417_v58, 0  ;;  %v4085_v52 = vsel %vm8965_vm9, %v3417_v58, 0  ;;  %v10207_v43 = vpop.f32.mrf.mxu2  ;;  %v7870_v38 = vor.u32 %v8520_v22, %v7869_v9  ;;  %v8521_v9 = vld [vmem:[#allocation2 + $0xd4] sm:$0xf] }
 0x1cb   : > { %7973 = vmatmul.msk.bf16.gmra.mxu3 %vm12899_vm11, %v7874_v17  ;;  %v4135_v37 = vshll.u32 %v4085_v52, 16  ;;  %v4139_v23 = vshrl.u32 %v4085_v52, 16  ;;  %v3673_v20 = vshrl.u32 %v3625_v12, 16  ;;  %v3676_v30 = vshll.u32 %v3625_v12, 16 }
 0x1cc   : > { %v3321_v27 = vadd.f32 %v10133_v62, %v3285_v7  ;;  %v2714_v7 = vadd.f32 %v9598_v44, %v9988_v6 }
 0x1cd   : > { %v10205_v32 = vrot.slane %v4135_v37, 5  ;;  %v4141_v0 = vrot.slane %v4139_v23, 4  ;;  %v3675_v18 = vrot.slane %v3673_v20, 7 }
 0x1ce   : > { %v3212_v17 = vpop.f32.mrf.mxu3  ;;  %v3353_v58 = vmax.f32 %v3321_v27, 0.0 }
 0x1cf   : > { %v3123_v21 = vpop.f32.mrf.mxu1  ;;  %v3678_v52 = vor.u32 %v3676_v30, %v3675_v18  ;;  %v4142_v37 = vor.u32 %v4141_v0, %v10205_v32  ;;  %v10226_v30 = vpop.f32.mrf.mxu0  ;;  %v3680_v24 = vrot.slane %v3675_v18, 4 }
 0x1d0   : > { %v3213_v23 = vadd.f32 %v3212_v17, %v3123_v21  ;;  %v3418_v20 = vpack.c.bf16 %v3353_v58, %v3353_v58  ;;  %3386 = vst.msk [vmem:[%s10143_s19 + $0x18] sm:$0xff] %vm12614_vm14, %v3353_v58  ;;  %v7882_v58 = vor.u32 %v8521_v9, %v7879_v51 }
 0x1d1   : > { %v3679_v12 = vsel %vm9212_vm7, %v3671_v10, %v3678_v52  ;;  %v10228_v10 = vrot.slane %v4142_v37, 4 }
 0x1d2   : > { %v3286_v22 = vadd.f32 %v3213_v23, %v2714_v7  ;;  %3162 = vmatmul.bf16.gmra.mxu1 %v7870_v38  ;;  %3946 = vrot.lane.b32.xlu2 %v3679_v12, %s8756_s21  ;;  %v3626_v27 = vsel %vm9191_vm5, %v3418_v20, 0  ;;  %v4086_v44 = vsel %vm8882_vm6, %v3418_v20, 0 }
 0x1d3   : > { %3500 = vrot.lane.b32.xlu1 %v3418_v20, %s8755_s20  ;;  %v4145_v6 = vshll.u32 %v4086_v44, 16  ;;  %v4149_v21 = vshrl.u32 %v4086_v44, 16  ;;  %v3682_v0 = vshrl.u32 %v3626_v27, 16  ;;  %v3685_v12 = vshll.u32 %v3626_v27, 16 }
 0x1d4   : > { %v3322_v38 = vadd.f32 %v10133_v62, %v3286_v22  ;;  %v2716_v20 = vadd.f32 %v9646_v35, %v10004_v55  ;;  %v10239_v22 = vpop.f32.mrf.mxu2 }
 0x1d5   : > { %v10231_v52 = vrot.slane %v4145_v6, 5  ;;  %v4151_v7 = vrot.slane %v4149_v21, 4  ;;  %v3684_v23 = vrot.slane %v3682_v0, 7  ;;  %v7877_v21 = vld [vmem:[#allocation2 + $0xd0] sm:$0xf] }
 0x1d6   : > { %v3214_v17 = vpop.f32.mrf.mxu3  ;;  %v3354_v56 = vmax.f32 %v3322_v38, 0.0 }
 0x1d7   : > { %v3125_v44 = vpop.f32.mrf.mxu1  ;;  %v3687_v45 = vor.u32 %v3685_v12, %v3684_v23  ;;  %v4152_v27 = vor.u32 %v4151_v7, %v10231_v52  ;;  %v3689_v63 = vrot.slane %v3684_v23, 4  ;;  %v7887_v23 = vld [vmem:[#allocation2 + $0xe8] sm:$0xf0] }
 0x1d8   : > { %v3215_v9 = vadd.f32 %v3214_v17, %v3125_v44  ;;  %v3419_v51 = vpack.c.bf16 %v3354_v56, %v3354_v56  ;;  %3387 = vst.msk [vmem:[%s10143_s19 + $0x20] sm:$0xff] %vm12614_vm14, %v3354_v56 }
 0x1d9   : > { %v3688_v35 = vsel %vm9212_vm7, %v3680_v24, %v3687_v45  ;;  %v10254_v45 = vrot.slane %v4152_v27, 4  ;;  %v2719_v27 = vadd.f32 %v9697_v47, %v10019_v26 }
 0x1da   : > { %v3287_v55 = vadd.f32 %v3215_v9, %v2716_v20  ;;  %3948 = vrot.lane.b32.xlu0 %v3688_v35, %s8756_s21  ;;  %v3627_v18 = vsel %vm8882_vm6, %v3419_v51, 0  ;;  %v4087_v6 = vsel %vm8990_vm15, %v3419_v51, 0  ;;  %v10258_v9 = vpop.f32.mrf.mxu0 }
 0x1db   : > { %7974 = vmatmul.msk.bf16.gmra.mxu3 %vm12899_vm11, %v7882_v58  ;;  %3502 = vrot.lane.b32.xlu1 %v3419_v51, %s8755_s20  ;;  %v4155_v17 = vshll.u32 %v4087_v6, 16  ;;  %v4159_v0 = vshrl.u32 %v4087_v6, 16  ;;  %v8522_v58 = vld [vmem:[#allocation2 + $0xd4] sm:$0xf0]  ;;  %v3691_v56 = vshrl.u32 %v3627_v18, 16  ;;  %v3694_v44 = vshll.u32 %v3627_v18, 16 }
 0x1dc   : > { %v3323_v7 = vadd.f32 %v10133_v62, %v3287_v55  ;;  %v7878_v35 = vor.u32 %v8522_v58, %v7877_v21  ;;  %v8523_v21 = vld [vmem:[#allocation2 + $0xe4] sm:$0xf]  ;;  %v10271_v58 = vpop.f32.mrf.mxu2 }
 0x1dd   : > { %v10256_v24 = vrot.slane %v4155_v17, 5  ;;  %v4161_v12 = vrot.slane %v4159_v0, 4  ;;  %v3693_v20 = vrot.slane %v3691_v56, 7 }
 0x1de   : > { %v3217_v38 = vpop.f32.mrf.mxu3  ;;  %v3355_v37 = vmax.f32 %v3323_v7, 0.0 }
 0x1df   : > { %v3128_v51 = vpop.f32.mrf.mxu1  ;;  %v3696_v6 = vor.u32 %v3694_v44, %v3693_v20  ;;  %v4162_v0 = vor.u32 %v4161_v12, %v10256_v24  ;;  %v7890_v44 = vor.u32 %v8523_v21, %v7887_v23  ;;  %v2721_v21 = vadd.f32 %v9723_v13, %v10039_v48 }
 0x1e0   : > { %v3218_v17 = vadd.f32 %v3217_v38, %v3128_v51  ;;  %v3420_v41 = vpack.c.bf16 %v3355_v37, %v3355_v37  ;;  %3388 = vst.msk [vmem:[%s10143_s19 + $0x28] sm:$0xff] %vm12614_vm14, %v3355_v37  ;;  %v3698_v23 = vrot.slane %v3693_v20, 4 }
 0x1e1   : > { %v3697_v18 = vsel %vm9212_vm7, %v3689_v63, %v3696_v6  ;;  %v10280_v51 = vrot.slane %v4162_v0, 4 }
 0x1e2   : > { %v3288_v56 = vadd.f32 %v3218_v17, %v2719_v27  ;;  %3167 = vmatmul.bf16.gmra.mxu1 %v7878_v35  ;;  %3950 = vrot.lane.b32.xlu0 %v3697_v18, %s8756_s21  ;;  %v3628_v47 = vsel %vm9364_vm10, %v3420_v41, 0  ;;  %v4088_v26 = vsel %vm8882_vm6, %v3420_v41, 0 }
 0x1e3   : > { %3504 = vrot.lane.b32.xlu2 %v3420_v41, %s8755_s20  ;;  %v4165_v37 = vshll.u32 %v4088_v26, 16  ;;  %v4169_v38 = vshrl.u32 %v4088_v26, 16  ;;  %v3700_v63 = vshrl.u32 %v3628_v47, 16  ;;  %v3703_v17 = vshll.u32 %v3628_v47, 16  ;;  %v8563_v41 = vld [vmem:[%s12493_s2 + $0x18] sm:$0xff]  ;;  %v8582_v26 = vld [vmem:[%s12493_s2 + $0x30] sm:$0xff] }
 0x1e4   : > { %v3324_v12 = vadd.f32 %v10133_v62, %v3288_v56  ;;  %4710 = vmatpush.bf16.msrb.mxu0 %v8563_v41  ;;  %5099 = vmatpush.bf16.msra.mxu1 %v8582_v26 }
 0x1e5   : > { %v10282_v35 = vrot.slane %v4165_v37, 5  ;;  %v4171_v6 = vrot.slane %v4169_v38, 4  ;;  %v3702_v27 = vrot.slane %v3700_v63, 7  ;;  %v2462_v37 = vadd.f32 %v9758_v11, %v10138_v2  ;;  %v10298_v38 = vpop.f32.mrf.mxu0  ;;  %v12900_v2 = vld [vmem:[#allocation11_spill] sm:$0xff] }
 0x1e6   : > { %v3219_v7 = vpop.f32.mrf.mxu3  ;;  %v3356_v18 = vmax.f32 %v3324_v12, 0.0  ;;  %vm12901_vm2 = vnez %v12900_v2 }
 0x1e7   : > { %v3130_v0 = vpop.f32.mrf.mxu1  ;;  %v3705_v56 = vor.u32 %v3703_v17, %v3702_v27  ;;  %v4172_v48 = vor.u32 %v4171_v6, %v10282_v35  ;;  %v7885_v17 = vld [vmem:[#allocation2 + $0xe0] sm:$0xf]  ;;  %v2635_v26 = vadd.f32 %v10147_v19, %v2462_v37  ;;  %v10313_v6 = vpop.f32.mrf.mxu2  ;;  %v3707_v14 = vrot.slane %v3702_v27, 4 }
 0x1e8   : > { %v3220_v63 = vadd.f32 %v3219_v7, %v3130_v0  ;;  %v3421_v12 = vpack.c.bf16 %v3356_v18, %v3356_v18  ;;  %3389 = vst.msk [vmem:[%s10143_s19 + $0x30] sm:$0xff] %vm12614_vm14, %v3356_v18  ;;  %v8524_v0 = vld [vmem:[#allocation2 + $0xe4] sm:$0xf0] }
 0x1e9   : > { %v3706_v13 = vsel %vm9212_vm7, %v3698_v23, %v3705_v56  ;;  %v10318_v47 = vrot.slane %v4172_v48, 4  ;;  %v8525_v48 = vld [vmem:[#allocation2 + $0xf4] sm:$0xf] }
 0x1ea   : > { %v3289_v20 = vadd.f32 %v3220_v63, %v2721_v21  ;;  %3952 = vrot.lane.b32.xlu1 %v3706_v13, %s8756_s21  ;;  %v3629_v11 = vsel %vm8882_vm6, %v3421_v12, 0  ;;  %v4089_v7 = vsel %vm12901_vm2, %v3421_v12, 0 }
 0x1eb   : > { %7975 = vmatmul.msk.bf16.gmra.mxu3 %vm12899_vm11, %v7890_v44  ;;  %3506 = vrot.lane.b32.xlu2 %v3421_v12, %s8755_s20  ;;  %v4175_v44 = vshll.u32 %v4089_v7, 16  ;;  %v4179_v18 = vshrl.u32 %v4089_v7, 16  ;;  %v3709_v23 = vshrl.u32 %v3629_v11, 16  ;;  %v3712_v13 = vshll.u32 %v3629_v11, 16  ;;  %v12902_v12 = vld [vmem:[#allocation36_spill] sm:$0xff] }
 0x1ec   : > { %v3325_v21 = vadd.f32 %v10133_v62, %v3289_v20  ;;  %v2464_v55 = vadd.f32 %v12902_v12, %v10164_v29  ;;  %v7886_v7 = vor.u32 %v8524_v0, %v7885_v17  ;;  %v12903_v20 = vld [vmem:[#allocation32_spill] sm:$0xff]  ;;  %v7895_v17 = vld [vmem:[#allocation2 + $0xf8] sm:$0xf0] }
 0x1ed   : > { %v10316_v56 = vrot.slane %v4175_v44, 5  ;;  %v3711_v63 = vrot.slane %v3709_v23, 7  ;;  %v4181_v31 = vrot.slane %v4179_v18, 4  ;;  %v2724_v44 = vadd.f32 %v12903_v20, %v2635_v26  ;;  %v10332_v27 = vpop.f32.mrf.mxu0 }
 0x1ee   : > { %v3222_v41 = vpop.f32.mrf.mxu3  ;;  %v3357_v2 = vmax.f32 %v3325_v21, 0.0  ;;  %v2637_v18 = vadd.f32 %v10174_v3, %v2464_v55  ;;  %v12904_v21 = vld [vmem:[#allocation22_spill] sm:$0xff]  ;;  %v7898_v12 = vor.u32 %v8525_v48, %v7895_v17 }
 0x1ef   : > { %v3133_v39 = vpop.f32.mrf.mxu1  ;;  %v3714_v19 = vor.u32 %v3712_v13, %v3711_v63  ;;  %vm12905_vm11 = vnez %v12904_v21  ;;  %v4182_v3 = vor.u32 %v4181_v31, %v10316_v56  ;;  %v2467_v31 = vadd.f32 %v9833_v53, %v10194_v54  ;;  %v10352_v37 = vpop.f32.mrf.mxu2 }
 0x1f0   : > { %v3223_v23 = vadd.f32 %v3222_v41, %v3133_v39  ;;  %v3422_v11 = vpack.c.bf16 %v3357_v2, %v3357_v2  ;;  %3390 = vst.msk [vmem:[%s10143_s19 + $0x38] sm:$0xff] %vm12614_vm14, %v3357_v2  ;;  %vm3450_vm14 = vcmask 385024  }
 0x1f1   : > { %v3715_v29 = vsel %vm9212_vm7, %v3707_v14, %v3714_v19  ;;  %v10358_v21 = vrot.slane %v4182_v3, 4  ;;  %v12913_v3 = vld [vmem:[#allocation12_spill] sm:$0xff] }
 0x1f2   : > { %v3290_v0 = vadd.f32 %v3223_v23, %v2724_v44  ;;  %3172 = vmatmul.bf16.gmra.mxu1 %v7886_v7  ;;  %3954 = vrot.lane.b32.xlu1 %v3715_v29, %s8756_s21  ;;  %v3630_v26 = vsel %vm12905_vm11, %v3422_v11, 0  ;;  %v4090_v39 = vsel %vm8882_vm6, %v3422_v11, 0  ;;  %v3452_v7 = vld [vmem:[#allocation3 + $0x8] sm:$0x1]  ;;  %vm10345_vm11 = vmand %vm3450_vm14, %vm12907_vm1  ;;  %vm12911_vm14 = vcmask 523264  }
 0x1f3   : > { %3508 = vrot.lane.b32.xlu0 %v3422_v11, %s8755_s20  ;;  %v4185_v2 = vshll.u32 %v4090_v39, 16  ;;  %v4189_v14 = vshrl.u32 %v4090_v39, 16  ;;  %v3718_v13 = vshrl.u32 %v3630_v26, 16  ;;  %v3721_v23 = vshll.u32 %v3630_v26, 16  ;;  %v12910_v11 = vld [vmem:[#allocation34_spill] sm:$0xff] }
 0x1f4   : > { %v3326_v55 = vadd.f32 %v10133_v62, %v3290_v0  ;;  %v2726_v39 = vadd.f32 %v12910_v11, %v2637_v18  ;;  %v3453_v17 = vsel %vm10345_vm11, 0, %v3452_v7  ;;  %v5476_v0 = vld [vmem:[#allocation4 + $0x8] sm:$0x1]  ;;  %v3716_v26 = vrot.slane %v3711_v63, 4 }
 0x1f5   : > { %v10342_v19 = vrot.slane %v4185_v2, 5  ;;  %v4191_v20 = vrot.slane %v4189_v14, 4  ;;  %v3720_v44 = vrot.slane %v3718_v13, 7  ;;  %3454 = vst [vmem:[#allocation3 + $0x8] sm:$0x1] %v3453_v17  ;;  %v5477_v13 = vsel %vm10345_vm11, 0, %v5476_v0 }
 0x1f6   : > { %v3224_v41 = vpop.f32.mrf.mxu3  ;;  %v3358_v48 = vmax.f32 %v3326_v55, 0.0  ;;  %5478 = vst [vmem:[#allocation4 + $0x8] sm:$0x1] %v5477_v13  ;;  %vm12912_vm1 = vcmask 261120   ;;  %vm12914_vm11 = vnez %v12913_v3  ;;  %v8526_v17 = vld [vmem:[#allocation2 + $0xf4] sm:$0xf0] }
 0x1f7   : > { %12906 = vst [vmem:[#allocation36_spill] sm:$0xff] %v10342_v19  ;;  %v3135_v2 = vpop.f32.mrf.mxu1  ;;  %v3723_v14 = vor.u32 %v3721_v23, %v3720_v44  ;;  %v4192_v18 = vor.u32 %v4191_v20, %v10342_v19  ;;  %v7893_v20 = vld [vmem:[#allocation2 + $0xf0] sm:$0xf]  ;;  %v3725_v19 = vrot.slane %v3720_v44, 4  ;;  %v7903_v44 = vld [vmem:[#allocation2 + $0x108] sm:$0xf0] }
 0x1f8   : > { %v3225_v53 = vadd.f32 %v3224_v41, %v3135_v2  ;;  %v3423_v54 = vpack.c.bf16 %v3358_v48, %v3358_v48  ;;  %3391 = vst.msk [vmem:[%s10143_s19 + $0x40] sm:$0xff] %vm12912_vm1, %v3358_v48  ;;  %v2640_v2 = vadd.f32 %v10207_v43, %v2467_v31  ;;  %v10377_v48 = vpop.f32.mrf.mxu0 }
 0x1f9   : > { %v3724_v55 = vsel %vm9212_vm7, %v3716_v26, %v3723_v14 }
 0x1fa   : > { %v3291_v7 = vadd.f32 %v3225_v53, %v2726_v39  ;;  %3956 = vrot.lane.b32.xlu2 %v3724_v55, %s8756_s21  ;;  %v3631_v41 = vsel %vm8882_vm6, %v3423_v54, 0  ;;  %v10379_v39 = vrot.slane %v4192_v18, 4  ;;  %v2729_v18 = vadd.f32 %v9822_v5, %v2640_v2  ;;  %v12916_v5 = vld [vmem:[#allocation24_spill] sm:$0xff] }
 0x1fb   : > { %7976 = vmatmul.msk.bf16.gmra.mxu3 %vm12911_vm14, %v7898_v12  ;;  %v4091_v12 = vsel %vm12914_vm11, %v3423_v54, 0  ;;  %3510 = vrot.lane.b32.xlu0 %v3423_v54, %s8755_s20  ;;  %v3727_v0 = vshrl.u32 %v3631_v41, 16  ;;  %v3730_v55 = vshll.u32 %v3631_v41, 16  ;;  %v2469_v54 = vadd.f32 %v9848_v60, %v10226_v30  ;;  %vm12915_vm14 = vmmov %vm12912_vm1  ;;  %v8527_v30 = vld [vmem:[#allocation2 + $0x104] sm:$0xf] }
 0x1fc   : > { %v4195_v23 = vshll.u32 %v4091_v12, 16  ;;  %v4199_v29 = vshrl.u32 %v4091_v12, 16  ;;  %v3327_v26 = vadd.f32 %v10133_v62, %v3291_v7  ;;  %v7894_v12 = vor.u32 %v8526_v17, %v7893_v20  ;;  %v10391_v7 = vpop.f32.mrf.mxu2 }
 0x1fd   : > { %v3729_v53 = vrot.slane %v3727_v0, 7  ;;  %v2642_v20 = vadd.f32 %v10239_v22, %v2469_v54  ;;  %vm12917_vm1 = vnez %v12916_v5 }
 0x1fe   : > { %v3227_v11 = vpop.f32.mrf.mxu3  ;;  %v10382_v14 = vrot.slane %v4195_v23, 5  ;;  %v4201_v13 = vrot.slane %v4199_v29, 4  ;;  %v3359_v63 = vmax.f32 %v3327_v26, 0.0 }
 0x1ff   : > { %v3138_v3 = vpop.f32.mrf.mxu1  ;;  %v3732_v43 = vor.u32 %v3730_v55, %v3729_v53 }
 0x200   : > { %v4202_v23 = vor.u32 %v4201_v13, %v10382_v14  ;;  %v3228_v41 = vadd.f32 %v3227_v11, %v3138_v3  ;;  %v3424_v29 = vpack.c.bf16 %v3359_v63, %v3359_v63  ;;  %3392 = vst.msk [vmem:[%s10143_s19 + $0x48] sm:$0xff] %vm12915_vm14, %v3359_v63  ;;  %v7906_v13 = vor.u32 %v8527_v30, %v7903_v44 }
 0x201   : > { %v3733_v60 = vsel %vm9212_vm7, %v3725_v19, %v3732_v43  ;;  %vm12918_vm14 = vcmask 523264  }
 0x202   : > { %v3292_v17 = vadd.f32 %v3228_v41, %v2729_v18  ;;  %3177 = vmatmul.bf16.gmra.mxu1 %v7894_v12  ;;  %3958 = vrot.lane.b32.xlu2 %v3733_v60, %s8756_s21  ;;  %v3632_v0 = vsel %vm12917_vm1, %v3424_v29, 0  ;;  %v4092_v3 = vsel %vm8882_vm6, %v3424_v29, 0  ;;  %v10405_v26 = vrot.slane %v4202_v23, 4  ;;  %v10411_v41 = vpop.f32.mrf.mxu0 }
 0x203   : > { %3512 = vrot.lane.b32.xlu1 %v3424_v29, %s8755_s20  ;;  %v4205_v63 = vshll.u32 %v4092_v3, 16  ;;  %v4209_v11 = vshrl.u32 %v4092_v3, 16  ;;  %v3736_v19 = vshrl.u32 %v3632_v0, 16  ;;  %v3739_v43 = vshll.u32 %v3632_v0, 16  ;;  %v12920_v0 = vld [vmem:[#allocation13_spill] sm:$0xff] }
 0x204   : > { %v3328_v22 = vadd.f32 %v10133_v62, %v3292_v17  ;;  %v2731_v18 = vadd.f32 %v9840_v1, %v2642_v20  ;;  %v2472_v60 = vadd.f32 %v9862_v34, %v10258_v9  ;;  %v3734_v23 = vrot.slane %v3729_v53, 4  ;;  %v10425_v34 = vpop.f32.mrf.mxu2 }
 0x205   : > { %v10408_v55 = vrot.slane %v4205_v63, 5  ;;  %v4211_v54 = vrot.slane %v4209_v11, 4  ;;  %v3738_v12 = vrot.slane %v3736_v19, 7  ;;  %vm12919_vm1 = vcmask 261120   ;;  %v7901_v11 = vld [vmem:[#allocation2 + $0x100] sm:$0xf] }
 0x206   : > { %v3229_v2 = vpop.f32.mrf.mxu3  ;;  %v3360_v29 = vmax.f32 %v3328_v22, 0.0  ;;  %vm12921_vm11 = vnez %v12920_v0 }
 0x207   : > { %v3140_v3 = vpop.f32.mrf.mxu1  ;;  %v3741_v31 = vor.u32 %v3739_v43, %v3738_v12  ;;  %v4212_v1 = vor.u32 %v4211_v54, %v10408_v55  ;;  %v2474_v43 = vadd.f32 %v9875_v42, %v10298_v38  ;;  %v3743_v0 = vrot.slane %v3738_v12, 4 }
 0x208   : > { %v3230_v44 = vadd.f32 %v3229_v2, %v3140_v3  ;;  %v3425_v17 = vpack.c.bf16 %v3360_v29, %v3360_v29  ;;  %3393 = vst.msk [vmem:[%s10143_s19 + $0x50] sm:$0xff] %vm12919_vm1, %v3360_v29 }
 0x209   : > { %v3742_v20 = vsel %vm9212_vm7, %v3734_v23, %v3741_v31  ;;  %v2645_v31 = vadd.f32 %v10271_v58, %v2472_v60  ;;  %v10437_v29 = vrot.slane %v4212_v1, 4 }
 0x20a   : > { %v3293_v9 = vadd.f32 %v3230_v44, %v2731_v18  ;;  %3960 = vrot.lane.b32.xlu0 %v3742_v20, %s8756_s21  ;;  %v3633_v53 = vsel %vm8882_vm6, %v3425_v17, 0  ;;  %v4093_v63 = vsel %vm12921_vm11, %v3425_v17, 0  ;;  %v10446_v38 = vpop.f32.mrf.mxu0  ;;  %vm12618_vm11 = vcmask 257152  }
 0x20b   : > { %7977 = vmatmul.msk.bf16.gmra.mxu3 %vm12918_vm14, %v7906_v13  ;;  %3514 = vrot.lane.b32.xlu1 %v3425_v17, %s8755_s20  ;;  %v4215_v2 = vshll.u32 %v4093_v63, 16  ;;  %v4219_v19 = vshrl.u32 %v4093_v63, 16  ;;  %v8528_v13 = vld [vmem:[#allocation2 + $0x104] sm:$0xf0]  ;;  %v3745_v54 = vshrl.u32 %v3633_v53, 16  ;;  %v3748_v17 = vshll.u32 %v3633_v53, 16 }
 0x20c   : > { %v3329_v18 = vadd.f32 %v10133_v62, %v3293_v9  ;;  %v7902_v20 = vor.u32 %v8528_v13, %v7901_v11  ;;  %v2734_v58 = vadd.f32 %v9860_v4, %v2645_v31  ;;  %v2647_v53 = vadd.f32 %v10313_v6, %v2474_v43  ;;  %v8529_v11 = vld [vmem:[#allocation2 + $0x114] sm:$0xf]  ;;  %v12923_v4 = vld [vmem:[#allocation27_spill] sm:$0xff] }
 0x20d   : > { %v10439_v3 = vrot.slane %v4215_v2, 5  ;;  %v4221_v23 = vrot.slane %v4219_v19, 4  ;;  %v3747_v44 = vrot.slane %v3745_v54, 7  ;;  %v7911_v2 = vld [vmem:[#allocation2 + $0x118] sm:$0xf0]  ;;  %vm12924_vm14 = vnez %v12923_v4 }
 0x20e   : > { %v3232_v22 = vpop.f32.mrf.mxu3  ;;  %v3361_v63 = vmax.f32 %v3329_v18, 0.0  ;;  %v7914_v18 = vor.u32 %v8529_v11, %v7911_v2 }
 0x20f   : > { %12922 = vst [vmem:[#allocation32_spill] sm:$0xff] %v10439_v3  ;;  %v3143_v30 = vpop.f32.mrf.mxu1  ;;  %v3750_v5 = vor.u32 %v3748_v17, %v3747_v44  ;;  %v4222_v9 = vor.u32 %v4221_v23, %v10439_v3 }
 0x210   : > { %v3233_v60 = vadd.f32 %v3232_v22, %v3143_v30  ;;  %v3426_v1 = vpack.c.bf16 %v3361_v63, %v3361_v63  ;;  %3394 = vst.msk [vmem:[%s10143_s19 + $0x58] sm:$0xff] %vm12919_vm1, %v3361_v63  ;;  %vm12927_vm1 = vcmask 523264  }
 0x211   : > { %v3751_v12 = vsel %vm9212_vm7, %v3743_v0, %v3750_v5  ;;  %v10460_v5 = vpop.f32.mrf.mxu2  ;;  %v10463_v23 = vrot.slane %v4222_v9, 4 }
 0x212   : > { %v3294_v19 = vadd.f32 %v3233_v60, %v2734_v58  ;;  %3182 = vmatmul.bf16.gmra.mxu1 %v7902_v20  ;;  %3962 = vrot.lane.b32.xlu0 %v3751_v12, %s8756_s21  ;;  %v3634_v13 = vsel %vm12924_vm14, %v3426_v1, 0  ;;  %v4094_v30 = vsel %vm8882_vm6, %v3426_v1, 0  ;;  %v12925_v60 = vld [vmem:[#allocation39_spill] sm:$0xff] }
 0x213   : > { %3516 = vrot.lane.b32.xlu2 %v3426_v1, %s8755_s20  ;;  %v4225_v22 = vshll.u32 %v4094_v30, 16  ;;  %v4229_v6 = vshrl.u32 %v4094_v30, 16  ;;  %v3754_v31 = vshrl.u32 %v3634_v13, 16  ;;  %v3757_v58 = vshll.u32 %v3634_v13, 16  ;;  %v12926_v30 = vld [vmem:[#allocation41_spill] sm:$0xff] }
 0x214   : > { %v3330_v0 = vadd.f32 %v10133_v62, %v3294_v19  ;;  %v3495_v43 = vpop.permute.xlu2 %3494  ;;  %v2736_v1 = vadd.f32 %v12925_v60, %v2647_v53  ;;  %v2477_v42 = vadd.f32 %v12926_v30, %v10332_v27  ;;  %v3752_v19 = vrot.slane %v3747_v44, 4  ;;  %v10481_v27 = vpop.f32.mrf.mxu0 }
 0x215   : > { %v10465_v17 = vrot.slane %v4225_v22, 5  ;;  %v4231_v20 = vrot.slane %v4229_v6, 4  ;;  %3591 = vst.msk [vmem:[#allocation3 + $0x8] sm:$0xf] %vm12618_vm11, %v3495_v43  ;;  %v3756_v63 = vrot.slane %v3754_v31, 7  ;;  %vm12928_vm11 = vcmask 261120  }
 0x216   : > { %v3234_v54 = vpop.f32.mrf.mxu3  ;;  %v3362_v12 = vmax.f32 %v3330_v0, 0.0  ;;  %v12929_v6 = vld [vmem:[#allocation14_spill] sm:$0xff] }
 0x217   : > { %v3145_v4 = vpop.f32.mrf.mxu1  ;;  %v3759_v3 = vor.u32 %v3757_v58, %v3756_v63  ;;  %v4232_v13 = vor.u32 %v4231_v20, %v10465_v17  ;;  %vm12930_vm14 = vnez %v12929_v6  ;;  %v3761_v6 = vrot.slane %v3756_v63, 4 }
 0x218   : > { %v3235_v11 = vadd.f32 %v3234_v54, %v3145_v4  ;;  %v3427_v2 = vpack.c.bf16 %v3362_v12, %v3362_v12  ;;  %3395 = vst.msk [vmem:[%s10143_s19 + $0x60] sm:$0xff] %vm12928_vm11, %v3362_v12  ;;  %v7909_v54 = vld [vmem:[#allocation2 + $0x110] sm:$0xf] }
 0x219   : > { %v3760_v53 = vsel %vm9212_vm7, %v3752_v19, %v3759_v3  ;;  %v2650_v3 = vadd.f32 %v10352_v37, %v2477_v42  ;;  %v10491_v60 = vrot.slane %v4232_v13, 4  ;;  %v12931_v13 = vld [vmem:[#allocation40_spill] sm:$0xff] }
 0x21a   : > { %v3295_v44 = vadd.f32 %v3235_v11, %v2736_v1  ;;  %3964 = vrot.lane.b32.xlu1 %v3760_v53, %s8756_s21  ;;  %v3635_v22 = vsel %vm8882_vm6, %v3427_v2, 0  ;;  %v4095_v4 = vsel %vm12930_vm14, %v3427_v2, 0  ;;  %v10495_v11 = vpop.f32.mrf.mxu2  ;;  %vm12943_vm14 = vcmask 125952  }
 0x21b   : > { %7978 = vmatmul.msk.bf16.gmra.mxu3 %vm12927_vm1, %v7914_v18  ;;  %3518 = vrot.lane.b32.xlu2 %v3427_v2, %s8755_s20  ;;  %v4235_v31 = vshll.u32 %v4095_v4, 16  ;;  %v4239_v0 = vshrl.u32 %v4095_v4, 16  ;;  %v8530_v18 = vld [vmem:[#allocation2 + $0x114] sm:$0xf0]  ;;  %v3763_v20 = vshrl.u32 %v3635_v22, 16  ;;  %v3766_v19 = vshll.u32 %v3635_v22, 16 }
 0x21c   : > { %v3331_v58 = vadd.f32 %v10133_v62, %v3295_v44  ;;  %v7910_v2 = vor.u32 %v8530_v18, %v7909_v54  ;;  %v2479_v4 = vadd.f32 %v9926_v16, %v10377_v48  ;;  %v2739_v44 = vadd.f32 %v12931_v13, %v2650_v3  ;;  %v12932_v48 = vld [vmem:[#allocation28_spill] sm:$0xff] }
 0x21d   : > { %v10493_v1 = vrot.slane %v4235_v31, 5  ;;  %v4241_v12 = vrot.slane %v4239_v0, 4  ;;  %v3765_v30 = vrot.slane %v3763_v20, 7  ;;  %vm12933_vm1 = vnez %v12932_v48 }
 0x21e   : > { %v3237_v43 = vpop.f32.mrf.mxu3  ;;  %v3363_v53 = vmax.f32 %v3331_v58, 0.0 }
 0x21f   : > { %v3148_v9 = vpop.f32.mrf.mxu1  ;;  %v3768_v37 = vor.u32 %v3766_v19, %v3765_v30  ;;  %v4242_v22 = vor.u32 %v4241_v12, %v10493_v1  ;;  %v10516_v12 = vpop.f32.mrf.mxu0 }
 0x220   : > { %v3238_v31 = vadd.f32 %v3237_v43, %v3148_v9  ;;  %v3428_v0 = vpack.c.bf16 %v3363_v53, %v3363_v53  ;;  %3396 = vst.msk [vmem:[%s10143_s19 + $0x68] sm:$0xff] %vm12928_vm11, %v3363_v53  ;;  %v2652_v9 = vadd.f32 %v10391_v7, %v2479_v4  ;;  %v12934_v7 = vld [vmem:[#allocation43_spill] sm:$0xff] }
 0x221   : > { %v3769_v54 = vsel %vm9212_vm7, %v3761_v6, %v3768_v37  ;;  %v10519_v19 = vrot.slane %v4242_v22, 4  ;;  %v12935_v22 = vld [vmem:[#allocation46_spill] sm:$0xff] }
 0x222   : > { %v3296_v16 = vadd.f32 %v3238_v31, %v2739_v44  ;;  %3187 = vmatmul.bf16.gmra.mxu1 %v7910_v2  ;;  %3966 = vrot.lane.b32.xlu1 %v3769_v54, %s8756_s21  ;;  %v3636_v63 = vsel %vm12933_vm1, %v3428_v0, 0  ;;  %v4096_v18 = vsel %vm8882_vm6, %v3428_v0, 0  ;;  %v2741_v4 = vadd.f32 %v12934_v7, %v2652_v9  ;;  %v10530_v42 = vpop.f32.mrf.mxu2 }
 0x223   : > { %3520 = vrot.lane.b32.xlu0 %v3428_v0, %s8755_s20  ;;  %v4245_v43 = vshll.u32 %v4096_v18, 16  ;;  %v4249_v20 = vshrl.u32 %v4096_v18, 16  ;;  %v3772_v58 = vshrl.u32 %v3636_v63, 16  ;;  %v3775_v13 = vshll.u32 %v3636_v63, 16 }
 0x224   : > { %v3332_v6 = vadd.f32 %v10133_v62, %v3296_v16  ;;  %v3770_v0 = vrot.slane %v3765_v30, 4  ;;  %v2482_v16 = vadd.f32 %v12935_v22, %v10411_v41  ;;  %v2484_v18 = vadd.f32 %v9967_v50, %v10446_v38 }
 0x225   : > { %v10521_v2 = vrot.slane %v4245_v43, 5  ;;  %v4251_v53 = vrot.slane %v4249_v20, 4  ;;  %v3774_v37 = vrot.slane %v3772_v58, 7  ;;  %v12944_v38 = vmov 0 }
 0x226   : > { %v3239_v3 = vpop.f32.mrf.mxu3  ;;  %v3364_v44 = vmax.f32 %v3332_v6, 0.0  ;;  %v12936_v6 = vld [vmem:[#allocation15_spill] sm:$0xff] }
 0x227   : > { %v3150_v31 = vpop.f32.mrf.mxu1  ;;  %v3777_v54 = vor.u32 %v3775_v13, %v3774_v37  ;;  %v4252_v43 = vor.u32 %v4251_v53, %v10521_v2  ;;  %vm12937_vm1 = vnez %v12936_v6  ;;  %v10542_v13 = vpop.permute.xlu2 %3944  ;;  %v3779_v48 = vrot.slane %v3774_v37, 4 }
 0x228   : > { %v3240_v20 = vadd.f32 %v3239_v3, %v3150_v31  ;;  %v3429_v63 = vpack.c.bf16 %v3364_v44, %v3364_v44  ;;  %3397 = vst.msk [vmem:[%s10143_s19 + $0x70] sm:$0xff] %vm12928_vm11, %v3364_v44  ;;  %v2655_v31 = vadd.f32 %v10425_v34, %v2482_v16  ;;  %v12940_v16 = vld [vmem:[#allocation45_spill] sm:$0xff]  ;;  %v2657_v37 = vadd.f32 %v10460_v5, %v2484_v18 }
 0x229   : > { %v3778_v30 = vsel %vm9212_vm7, %v3770_v0, %v3777_v54  ;;  %v10546_v0 = vrot.slane %v4252_v43, 4 }
 0x22a   : > { %v3297_v9 = vadd.f32 %v3240_v20, %v2741_v4  ;;  %3968 = vrot.lane.b32.xlu2 %v3778_v30, %s8756_s21  ;;  %v3637_v58 = vsel %vm8882_vm6, %v3429_v63, 0  ;;  %v4097_v41 = vsel %vm12937_vm1, %v3429_v63, 0  ;;  %v2744_v43 = vadd.f32 %v12940_v16, %v2655_v31  ;;  %vm12941_vm1 = vmmov %vm12928_vm11 }
 0x22b   : > { %3522 = vrot.lane.b32.xlu0 %v3429_v63, %s8755_s20  ;;  %v4255_v3 = vshll.u32 %v4097_v41, 16  ;;  %v4259_v53 = vshrl.u32 %v4097_v41, 16  ;;  %v3781_v44 = vshrl.u32 %v3637_v58, 16  ;;  %12938 = vst [vmem:[#allocation34_spill] sm:$0xff] %v10546_v0  ;;  %v3784_v30 = vshll.u32 %v3637_v58, 16  ;;  %v10553_v63 = vpop.f32.mrf.mxu0 }
 0x22c   : > { %v3333_v4 = vadd.f32 %v10133_v62, %v3297_v9  ;;  %vm12942_vm11 = vsmask.f32 7938 }
 0x22d   : > { %v10549_v54 = vrot.slane %v4255_v3, 5  ;;  %v4261_v22 = vrot.slane %v4259_v53, 4  ;;  %v3783_v20 = vrot.slane %v3781_v44, 7  ;;  %vm10567_vm2 = vmand %vm12943_vm14, %vm12942_vm11  ;;  %v10572_v53 = vpop.f32.mrf.mxu2  ;;  %vm12621_vm14 = vcmask 388352  }
 0x22e   : > { %v3242_v7 = vpop.f32.mrf.mxu3  ;;  %v3365_v41 = vmax.f32 %v3333_v4, 0.0  ;;  %v12945_v38 = vsel %vm10567_vm2, 4294967295, %v12944_v38  ;;  %vm12950_vm11 = vcmask 257152  }
 0x22f   : > { %12939 = vst [vmem:[#allocation39_spill] sm:$0xff] %v10549_v54  ;;  %v3153_v6 = vpop.f32.mrf.mxu1  ;;  %v3786_v34 = vor.u32 %v3784_v30, %v3783_v20  ;;  %v4262_v9 = vor.u32 %v4261_v22, %v10549_v54  ;;  %v4043_v22 = vld [vmem:[#allocation3 + $0x8] sm:$0xf]  ;;  %v12948_v54 = vsel %vm8947_vm4, %v10176_v25, %v10179_v33 }
 0x230   : > { %v3243_v58 = vadd.f32 %v3242_v7, %v3153_v6  ;;  %v3430_v3 = vpack.c.bf16 %v3365_v41, %v3365_v41  ;;  %3398 = vst.msk [vmem:[%s10143_s19 + $0x78] sm:$0xff] %vm12941_vm1, %v3365_v41  ;;  %v12946_v6 = vld [vmem:[#allocation30_spill] sm:$0xff] }
 0x231   : > { %v3787_v50 = vsel %vm9212_vm7, %v3779_v48, %v3786_v34  ;;  %vm12947_vm1 = vnez %v12946_v6  ;;  %v10580_v18 = vrot.slane %v4262_v9, 4  ;;  %v10585_v34 = vld [vmem:[%s12495_s4] ss:$0 sm:$0xff] }
 0x232   : > { %v3298_v44 = vadd.f32 %v3243_v58, %v2744_v43  ;;  %3970 = vrot.lane.b32.xlu2 %v3787_v50, %s8756_s21  ;;  %3524 = vrot.lane.b32.xlu1 %v3430_v3, %s8755_s20  ;;  %v3638_v7 = vsel %vm12947_vm1, %v3430_v3, 0  ;;  %v4098_v48 = vsel %vm8882_vm6, %v3430_v3, 0  ;;  %v3947_v3 = vpop.permute.xlu2 %3946 }
 0x233   : > { %v4265_v31 = vshll.u32 %v4098_v48, 16  ;;  %v4269_v4 = vshrl.u32 %v4098_v48, 16  ;;  %v3943_v30 = vpop.permute.xlu1 %3942  ;;  %v3790_v5 = vshrl.u32 %v3638_v7, 16  ;;  %v3793_v6 = vshll.u32 %v3638_v7, 16 }
 0x234   : > { %v3334_v16 = vadd.f32 %v10585_v34, %v3298_v44  ;;  %v4044_v43 = vsel %vm10567_vm2, %v3943_v30, %v4043_v22  ;;  %v3497_v58 = vpop.permute.xlu0 %3496  ;;  %v12949_v44 = vld [vmem:[#allocation47_spill] sm:$0xff]  ;;  %v3788_v30 = vrot.slane %v3783_v20, 4  ;;  %v12952_v20 = vsel %vm8947_vm4, %v10202_v46, %v10205_v32 }
 0x235   : > { %v10590_v50 = vrot.slane %v4265_v31, 5  ;;  %v4271_v48 = vrot.slane %v4269_v4, 4  ;;  %4045 = vst [vmem:[#allocation3 + $0x8] sm:$0xf] %v4044_v43  ;;  %v3792_v62 = vrot.slane %v3790_v5, 7  ;;  %v2746_v0 = vadd.f32 %v12949_v44, %v2657_v37  ;;  %v10606_v5 = vpop.f32.mrf.mxu0 }
 0x236   : > { %v3244_v41 = vpop.f32.mrf.mxu3  ;;  %v3366_v9 = vmax.f32 %v3334_v16, 0.0  ;;  %4473 = vst.msk [vmem:[#allocation3 + $0x8] sm:$0xf] %vm12621_vm14, %v12948_v54  ;;  %v2487_v4 = vadd.f32 %v9990_v59, %v10481_v27  ;;  %vm12951_vm14 = vcmask 125952   ;;  %vm12956_vm2 = vcmask 261120  }
 0x237   : > { %3592 = vst.msk [vmem:[#allocation3 + $0xc] sm:$0xf] %vm12950_vm11, %v3497_v58  ;;  %v3155_v22 = vpop.f32.mrf.mxu1  ;;  %v3795_v31 = vor.u32 %v3793_v6, %v3792_v62  ;;  %v4272_v54 = vor.u32 %v4271_v48, %v10590_v50  ;;  %vm12953_vm11 = vcmask 388352   ;;  %v10628_v58 = vpop.f32.mrf.mxu2 }
 0x238   : > { %4047 = vst.msk [vmem:[#allocation3 + $0xc] sm:$0xf] %vm12951_vm14, %v10542_v13  ;;  %v3245_v25 = vadd.f32 %v3244_v41, %v3155_v22  ;;  %v3431_v33 = vpack.c.bf16 %v3366_v9, %v3366_v9  ;;  %v12954_v13 = vld [vmem:[#allocation18_spill] sm:$0xff]  ;;  %v2660_v43 = vadd.f32 %v10495_v11, %v2487_v4  ;;  %v2489_v11 = vadd.f32 %v10006_v28, %v10516_v12 }
 0x239   : > { %4474 = vst.msk [vmem:[#allocation3 + $0xc] sm:$0xf] %vm12953_vm11, %v12952_v20  ;;  %v3796_v37 = vsel %vm9212_vm7, %v3788_v30, %v3795_v31  ;;  %vm12955_vm14 = vnez %v12954_v13  ;;  %v10631_v44 = vrot.slane %v4272_v54, 4  ;;  %vm12957_vm11 = vcmask 257152  }
 0x23a   : > { %v3299_v59 = vadd.f32 %v3245_v25, %v2746_v0  ;;  %3972 = vrot.lane.b32.xlu0 %v3796_v37, %s8756_s21  ;;  %3526 = vrot.lane.b32.xlu1 %v3431_v33, %s8755_s20  ;;  %v3639_v27 = vsel %vm8882_vm6, %v3431_v33, 0  ;;  %v4099_v6 = vsel %vm12955_vm14, %v3431_v33, 0  ;;  %3399 = vst.msk [vmem:[%s10143_s19 + $0x80] sm:$0xff] %vm12956_vm2, %v3366_v9  ;;  %vm12958_vm2 = vcmask 125952  }
 0x23b   : > { %v4275_v41 = vshll.u32 %v4099_v6, 16  ;;  %v4279_v46 = vshrl.u32 %v4099_v6, 16  ;;  %v3799_v16 = vshrl.u32 %v3639_v27, 16  ;;  %v3802_v25 = vshll.u32 %v3639_v27, 16 }
 0x23c   : > { %v3335_v0 = vadd.f32 %v10585_v34, %v3299_v59  ;;  %v3499_v48 = vpop.permute.xlu0 %3498  ;;  %v12959_v4 = vsel %vm8947_vm4, %v10228_v10, %v10231_v52  ;;  %vm12960_vm14 = vcmask 388352   ;;  %v3797_v20 = vrot.slane %v3792_v62, 4 }
 0x23d   : > { %v10633_v22 = vrot.slane %v4275_v41, 5  ;;  %v4281_v30 = vrot.slane %v4279_v46, 4  ;;  %3593 = vst.msk [vmem:[#allocation3 + $0x10] sm:$0xf] %vm12957_vm11, %v3499_v48  ;;  %v3505_v31 = vpop.permute.xlu2 %3504  ;;  %v3801_v9 = vrot.slane %v3799_v16, 7  ;;  %v10656_v52 = vpop.f32.mrf.mxu0  ;;  %v12965_v46 = vld [vmem:[#allocation35_spill] sm:$0xff] }
 0x23e   : > { %v3247_v32 = vpop.f32.mrf.mxu3  ;;  %4048 = vst.msk [vmem:[#allocation3 + $0x10] sm:$0xf] %vm12958_vm2, %v3947_v3  ;;  %v3367_v33 = vmax.f32 %v3335_v0, 0.0  ;;  %v12961_v3 = vld [vmem:[#allocation49_spill] sm:$0xff]  ;;  %vm12963_vm2 = vcmask 392192   ;;  %vm12966_vm10 = vnez %v12965_v46 }
 0x23f   : > { %4475 = vst.msk [vmem:[#allocation3 + $0x10] sm:$0xf] %vm12960_vm14, %v12959_v4  ;;  %v3158_v54 = vpop.f32.mrf.mxu1  ;;  %v3804_v37 = vor.u32 %v3802_v25, %v3801_v9  ;;  %v2749_v27 = vadd.f32 %v12961_v3, %v2660_v43  ;;  %v4282_v41 = vor.u32 %v4281_v30, %v10633_v22  ;;  %vm12962_vm14 = vcmask 261120   ;;  %vm12964_vm1 = vmmov %vm12963_vm2 }
 0x240   : > { %3596 = vst.msk [vmem:[#allocation3 + $0x1c] sm:$0xf] %vm12957_vm11, %v3505_v31  ;;  %v3248_v28 = vadd.f32 %v3247_v32, %v3158_v54  ;;  %v8544_v12 = vld [vmem:[#allocation3 + $0x8] sm:$0xff]  ;;  %v3432_v6 = vpack.c.bf16 %v3367_v33, %v3367_v33  ;;  %v2662_v43 = vadd.f32 %v10530_v42, %v2489_v11  ;;  %v10672_v11 = vpop.f32.mrf.mxu2 }
 0x241   : > { %v3805_v10 = vsel %vm9212_vm7, %v3797_v20, %v3804_v37  ;;  %3400 = vst.msk [vmem:[%s10143_s19 + $0x88] sm:$0xff] %vm12962_vm14, %v3367_v33  ;;  %8061 = vmatmul.msk.bf16.vlgmr.msrb.gmra.mxu0 %vm12963_vm2, %v8544_v12  ;;  %8094 = vmatmul.msk.bf16.gmra.mxu2 %vm12964_vm1, %v8544_v12  ;;  %v10668_v33 = vrot.slane %v4282_v41, 4  ;;  %vm12967_vm1 = vmmov %vm12957_vm11 }
 0x242   : > { %v3300_v62 = vadd.f32 %v3248_v28, %v2749_v27  ;;  %v3640_v16 = vsel %vm12966_vm10, %v3432_v6, 0  ;;  %v4100_v32 = vsel %vm8882_vm6, %v3432_v6, 0  ;;  %3974 = vrot.lane.b32.xlu0 %v3805_v10, %s8756_s21  ;;  %3528 = vrot.lane.b32.xlu2 %v3432_v6, %s8755_s20  ;;  %v2751_v28 = vadd.f32 %v9998_v57, %v2662_v43  ;;  %vm12968_vm11 = vmmov %vm12967_vm1 }
 0x243   : > { %v4285_v0 = vshll.u32 %v4100_v32, 16  ;;  %v4289_v48 = vshrl.u32 %v4100_v32, 16  ;;  %v3808_v31 = vshrl.u32 %v3640_v16, 16  ;;  %v3811_v42 = vshll.u32 %v3640_v16, 16 }
 0x244   : > { %v3336_v25 = vadd.f32 %v10585_v34, %v3300_v62  ;;  %v3806_v6 = vrot.slane %v3801_v9, 4  ;;  %v2492_v62 = vadd.f32 %v10021_v49, %v10553_v63 }
 0x245   : > { %v10670_v4 = vrot.slane %v4285_v0, 5  ;;  %v4291_v54 = vrot.slane %v4289_v48, 4  ;;  %v3501_v20 = vpop.permute.xlu1 %3500  ;;  %v3507_v37 = vpop.permute.xlu2 %3506  ;;  %v3810_v3 = vrot.slane %v3808_v31, 7  ;;  %v12969_v48 = vld [vmem:[#allocation19_spill] sm:$0xff] }
 0x246   : > { %v3249_v30 = vpop.f32.mrf.mxu3  ;;  %v3368_v27 = vmax.f32 %v3336_v25, 0.0  ;;  %3594 = vst.msk [vmem:[#allocation3 + $0x14] sm:$0xf] %vm12967_vm1, %v3501_v20  ;;  %vm12970_vm2 = vnez %v12969_v48  ;;  %v10695_v20 = vpop.f32.mrf.mxu0  ;;  %vm12971_vm1 = vcmask 125952  }
 0x247   : > { %3597 = vst.msk [vmem:[#allocation3 + $0x20] sm:$0xf] %vm12968_vm11, %v3507_v37  ;;  %v3160_v12 = vpop.f32.mrf.mxu1  ;;  %v3813_v41 = vor.u32 %v3811_v42, %v3810_v3  ;;  %v4292_v0 = vor.u32 %v4291_v54, %v10670_v4  ;;  %v2665_v54 = vadd.f32 %v10572_v53, %v2492_v62  ;;  %v12972_v53 = vsel %vm8947_vm4, %v10254_v45, %v10256_v24 }
 0x248   : > { %v3250_v16 = vadd.f32 %v3249_v30, %v3160_v12  ;;  %v3433_v32 = vpack.c.bf16 %v3368_v27, %v3368_v27  ;;  %3401 = vst.msk [vmem:[%s10143_s19 + $0x90] sm:$0xff] %vm12962_vm14, %v3368_v27  ;;  %vm12973_vm11 = vcmask 388352   ;;  %vm12974_vm14 = vcmask 257152  }
 0x249   : > { %v3814_v57 = vsel %vm9212_vm7, %v3806_v6, %v3813_v41  ;;  %v10698_v27 = vrot.slane %v4292_v0, 4 }
 0x24a   : > { %v3301_v43 = vadd.f32 %v3250_v16, %v2751_v28  ;;  %3976 = vrot.lane.b32.xlu1 %v3814_v57, %s8756_s21  ;;  %v3641_v9 = vsel %vm8882_vm6, %v3433_v32, 0  ;;  %v4101_v31 = vsel %vm12970_vm2, %v3433_v32, 0  ;;  %3530 = vrot.lane.b32.xlu2 %v3433_v32, %s8755_s20  ;;  %v2494_v32 = vadd.f32 %v10041_v61, %v10606_v5  ;;  %v10717_v5 = vpop.f32.mrf.mxu2 }
 0x24b   : > { %v4295_v49 = vshll.u32 %v4101_v31, 16  ;;  %v4299_v63 = vshrl.u32 %v4101_v31, 16  ;;  %v3817_v25 = vshrl.u32 %v3641_v9, 16  ;;  %v3820_v16 = vshll.u32 %v3641_v9, 16  ;;  %v12975_v31 = vld [vmem:[#allocation50_spill] sm:$0xff] }
 0x24c   : > { %v3337_v37 = vadd.f32 %v10585_v34, %v3301_v43  ;;  %v3949_v42 = vpop.permute.xlu0 %3948  ;;  %v3815_v57 = vrot.slane %v3810_v3, 4  ;;  %v2754_v61 = vadd.f32 %v12975_v31, %v2665_v54  ;;  %v2667_v3 = vadd.f32 %v10628_v58, %v2494_v32  ;;  %v12980_v31 = vld [vmem:[#allocation52_spill] sm:$0xff] }
 0x24d   : > { %v10700_v28 = vrot.slane %v4295_v49, 5  ;;  %v4301_v12 = vrot.slane %v4299_v63, 4  ;;  %4049 = vst.msk [vmem:[#allocation3 + $0x14] sm:$0xf] %vm12971_vm1, %v3949_v42  ;;  %v3503_v6 = vpop.permute.xlu1 %3502  ;;  %v3819_v41 = vrot.slane %v3817_v25, 7  ;;  %vm12976_vm1 = vcmask 261120  }
 0x24e   : > { %v3252_v30 = vpop.f32.mrf.mxu3  ;;  %4476 = vst.msk [vmem:[#allocation3 + $0x14] sm:$0xf] %vm12973_vm11, %v12972_v53  ;;  %v3369_v62 = vmax.f32 %v3337_v37, 0.0  ;;  %v12977_v37 = vld [vmem:[#allocation33_spill] sm:$0xff] }
 0x24f   : > { %3595 = vst.msk [vmem:[#allocation3 + $0x18] sm:$0xf] %vm12974_vm14, %v3503_v6  ;;  %v3163_v0 = vpop.f32.mrf.mxu1  ;;  %v3822_v43 = vor.u32 %v3820_v16, %v3819_v41  ;;  %v4302_v45 = vor.u32 %v4301_v12, %v10700_v28  ;;  %vm12978_vm11 = vnez %v12977_v37  ;;  %vm12979_vm14 = vcmask 125952  }
 0x250   : > { %v3253_v49 = vadd.f32 %v3252_v30, %v3163_v0  ;;  %v3434_v63 = vpack.c.bf16 %v3369_v62, %v3369_v62  ;;  %3402 = vst.msk [vmem:[%s10143_s19 + $0x98] sm:$0xff] %vm12976_vm1, %v3369_v62  ;;  %vm12982_vm1 = vcmask 388352  }
 0x251   : > { %v3823_v24 = vsel %vm9212_vm7, %v3815_v57, %v3822_v43  ;;  %v10732_v0 = vrot.slane %v4302_v45, 4 }
 0x252   : > { %v3302_v25 = vadd.f32 %v3253_v49, %v2754_v61  ;;  %3978 = vrot.lane.b32.xlu1 %v3823_v24, %s8756_s21  ;;  %3532 = vrot.lane.b32.xlu0 %v3434_v63, %s8755_s20  ;;  %v3642_v54 = vsel %vm12978_vm11, %v3434_v63, 0  ;;  %v4102_v30 = vsel %vm8882_vm6, %v3434_v63, 0  ;;  %v2756_v61 = vadd.f32 %v12980_v31, %v2667_v3  ;;  %v10738_v49 = vpop.f32.mrf.mxu0 }
 0x253   : > { %v4305_v42 = vshll.u32 %v4102_v30, 16  ;;  %v4309_v12 = vshrl.u32 %v4102_v30, 16  ;;  %v3826_v16 = vshrl.u32 %v3642_v54, 16  ;;  %v12981_v24 = vsel %vm8947_vm4, %v10280_v51, %v10282_v35 }
 0x254   : > { %v3338_v53 = vadd.f32 %v10585_v34, %v3302_v25  ;;  %v3951_v62 = vpop.permute.xlu0 %3950  ;;  %v3829_v25 = vshll.u32 %v3642_v54, 16  ;;  %v2497_v30 = vadd.f32 %v10052_v15, %v10656_v52  ;;  %v3824_v35 = vrot.slane %v3819_v41, 4  ;;  %v10758_v15 = vpop.f32.mrf.mxu2 }
 0x255   : > { %v10734_v58 = vrot.slane %v4305_v42, 5  ;;  %v4311_v32 = vrot.slane %v4309_v12, 4  ;;  %4050 = vst.msk [vmem:[#allocation3 + $0x18] sm:$0xf] %vm12979_vm14, %v3951_v62  ;;  %v8545_v57 = vld [vmem:[#allocation3 + $0x10] sm:$0xff]  ;;  %v3828_v45 = vrot.slane %v3826_v16, 7 }
 0x256   : > { %v3254_v6 = vpop.f32.mrf.mxu3  ;;  %v8566_v43 = vld [vmem:[#allocation3 + $0x10] sm:$0xff]  ;;  %v3370_v63 = vmax.f32 %v3338_v53, 0.0  ;;  %4477 = vst.msk [vmem:[#allocation3 + $0x18] sm:$0xf] %vm12982_vm1, %v12981_v24  ;;  %vm12983_vm14 = vcmask 392192   ;;  %vm12986_vm1 = vcmask 261120  }
 0x257   : > { %v4312_v42 = vor.u32 %v4311_v32, %v10734_v58  ;;  %v3165_v12 = vpop.f32.mrf.mxu1  ;;  %8062 = vmatmul.msk.bf16.gmra.mxu0 %vm12983_vm14, %v8545_v57  ;;  %vm12984_vm11 = vmmov %vm12983_vm14  ;;  %v3831_v54 = vor.u32 %v3829_v25, %v3828_v45  ;;  %v12987_v32 = vld [vmem:[#allocation20_spill] sm:$0xff]  ;;  %vm12992_vm14 = vcmask 388352  }
 0x258   : > { %8095 = vmatmul.msk.bf16.gmra.mxu2 %vm12984_vm11, %v8545_v57  ;;  %v3255_v51 = vadd.f32 %v3254_v6, %v3165_v12  ;;  %vm12985_vm2 = vmmov %vm12984_vm11  ;;  %v3435_v16 = vpack.c.bf16 %v3370_v63, %v3370_v63  ;;  %3403 = vst.msk [vmem:[%s10143_s19 + $0xa0] sm:$0xff] %vm12986_vm1, %v3370_v63  ;;  %vm12988_vm11 = vnez %v12987_v32  ;;  %v3957_v57 = vpop.permute.xlu2 %3956 }
 0x259   : > { %8191 = vmatmul.msk.bf16.vlgmr.msra.gmra.mxu1 %vm12985_vm2, %v8566_v43  ;;  %v3832_v53 = vsel %vm9212_vm7, %v3824_v35, %v3831_v54  ;;  %v10769_v24 = vrot.slane %v4312_v42, 4  ;;  %vm12989_vm2 = vcmask 125952  }
 0x25a   : > { %v3303_v52 = vadd.f32 %v3255_v51, %v2756_v61  ;;  %3534 = vrot.lane.b32.xlu0 %v3435_v16, %s8755_s20  ;;  %v3643_v62 = vsel %vm8882_vm6, %v3435_v16, 0  ;;  %v4103_v6 = vsel %vm12988_vm11, %v3435_v16, 0  ;;  %3980 = vrot.lane.b32.xlu2 %v3832_v53, %s8756_s21  ;;  %v2670_v61 = vadd.f32 %v10672_v11, %v2497_v30  ;;  %v12990_v53 = vld [vmem:[#allocation55_spill] sm:$0xff] }
 0x25b   : > { %v4315_v41 = vshll.u32 %v4103_v6, 16  ;;  %v4319_v43 = vshrl.u32 %v4103_v6, 16  ;;  %v3835_v63 = vshrl.u32 %v3643_v62, 16  ;;  %v3838_v16 = vshll.u32 %v3643_v62, 16  ;;  %v12993_v62 = vld [vmem:[#allocation53_spill] sm:$0xff] }
 0x25c   : > { %v3339_v25 = vadd.f32 %v10585_v34, %v3303_v52  ;;  %v3953_v12 = vpop.permute.xlu1 %3952  ;;  %v2499_v6 = vadd.f32 %v12990_v53, %v10695_v20  ;;  %v12991_v11 = vsel %vm8947_vm4, %v10318_v47, %v10316_v56  ;;  %v3833_v52 = vrot.slane %v3828_v45, 4 }
 0x25d   : > { %v10772_v51 = vrot.slane %v4315_v41, 5  ;;  %v4321_v35 = vrot.slane %v4319_v43, 4  ;;  %4051 = vst.msk [vmem:[#allocation3 + $0x1c] sm:$0xf] %vm12989_vm2, %v3953_v12  ;;  %v3837_v54 = vrot.slane %v3835_v63, 7  ;;  %v2759_v63 = vadd.f32 %v12993_v62, %v2670_v61  ;;  %v10788_v12 = vpop.f32.mrf.mxu0  ;;  %v12995_v43 = vld [vmem:[#allocation54_spill] sm:$0xff] }
 0x25e   : > { %v3257_v31 = vpop.f32.mrf.mxu3  ;;  %4478 = vst.msk [vmem:[#allocation3 + $0x1c] sm:$0xf] %vm12992_vm14, %v12991_v11  ;;  %v3371_v30 = vmax.f32 %v3339_v25, 0.0  ;;  %v2672_v56 = vadd.f32 %v10717_v5, %v2499_v6  ;;  %v12994_v25 = vld [vmem:[#allocation38_spill] sm:$0xff] }
 0x25f   : > { %v3168_v42 = vpop.f32.mrf.mxu1  ;;  %v3840_v41 = vor.u32 %v3838_v16, %v3837_v54  ;;  %v4322_v20 = vor.u32 %v4321_v35, %v10772_v51 }
 0x260   : > { %v3258_v53 = vadd.f32 %v3257_v31, %v3168_v42  ;;  %v3436_v3 = vpack.c.bf16 %v3371_v30, %v3371_v30  ;;  %3404 = vst.msk [vmem:[%s10143_s19 + $0xa8] sm:$0xff] %vm12986_vm1, %v3371_v30  ;;  %v10802_v42 = vpop.f32.mrf.mxu2  ;;  %vm12999_vm1 = vcmask 257152  }
 0x261   : > { %v3841_v47 = vsel %vm9212_vm7, %v3833_v52, %v3840_v41  ;;  %v10804_v52 = vrot.slane %v4322_v20, 4  ;;  %v3959_v41 = vpop.permute.xlu2 %3958  ;;  %v12996_v20 = vld [vmem:[#allocation36_spill] sm:$0xff] }
 0x262   : > { %v3304_v45 = vadd.f32 %v3258_v53, %v2759_v63  ;;  %3536 = vrot.lane.b32.xlu1 %v3436_v3, %s8755_s20  ;;  %v3644_v16 = vsel %vm9844_vm0, %v3436_v3, 0  ;;  %v4104_v61 = vsel %vm8882_vm6, %v3436_v3, 0  ;;  %3982 = vrot.lane.b32.xlu2 %v3841_v47, %s8756_s21  ;;  %v12997_v10 = vsel %vm8947_vm4, %v10358_v21, %v12996_v20 }
 0x263   : > { %v4325_v31 = vshll.u32 %v4104_v61, 16  ;;  %v4329_v35 = vshrl.u32 %v4104_v61, 16  ;;  %v3844_v30 = vshrl.u32 %v3644_v16, 16  ;;  %v2761_v61 = vadd.f32 %v12995_v43, %v2672_v56 }
 0x264   : > { %v3340_v5 = vadd.f32 %v10585_v34, %v3304_v45  ;;  %v3955_v6 = vpop.permute.xlu1 %3954  ;;  %v3847_v59 = vshll.u32 %v3644_v16, 16 }
 0x265   : > { %v10807_v62 = vrot.slane %v4325_v31, 5  ;;  %v4331_v63 = vrot.slane %v4329_v35, 4  ;;  %4052 = vst.msk [vmem:[#allocation3 + $0x20] sm:$0xf] %vm12989_vm2, %v3955_v6  ;;  %v3509_v3 = vpop.permute.xlu0 %3508  ;;  %v8546_v53 = vld [vmem:[#allocation3 + $0x18] sm:$0xff]  ;;  %v3846_v45 = vrot.slane %v3844_v30, 7  ;;  %v13004_v30 = vsel %vm8947_vm4, %v10379_v39, %v10382_v14 }
 0x266   : > { %v3259_v11 = vpop.f32.mrf.mxu3  ;;  %v8567_v47 = vld [vmem:[#allocation3 + $0x18] sm:$0xff]  ;;  %v3372_v9 = vmax.f32 %v3340_v5, 0.0  ;;  %4479 = vst.msk [vmem:[#allocation3 + $0x20] sm:$0xf] %vm12992_vm14, %v12997_v10  ;;  %v12998_v31 = vld [vmem:[#allocation57_spill] sm:$0xff]  ;;  %vm13000_vm2 = vcmask 392192   ;;  %v2417_v5 = vpop.f32.mrf.mxu0 }
 0x267   : > { %v2502_v35 = vadd.f32 %v12998_v31, %v10738_v49  ;;  %3598 = vst.msk [vmem:[#allocation3 + $0x24] sm:$0xf] %vm12999_vm1, %v3509_v3  ;;  %v3170_v6 = vpop.f32.mrf.mxu1  ;;  %8063 = vmatmul.msk.bf16.gmra.mxu0 %vm13000_vm2, %v8546_v53  ;;  %vm13001_vm0 = vmmov %vm13000_vm2  ;;  %v4332_v10 = vor.u32 %v4331_v63, %v10807_v62  ;;  %vm13002_vm14 = vcmask 125952   ;;  %v3842_v49 = vrot.slane %v3837_v54, 4  ;;  %v13006_v54 = vld [vmem:[#allocation23_spill] sm:$0xff] }
 0x268   : > { %8096 = vmatmul.msk.bf16.gmra.mxu2 %vm13001_vm0, %v8546_v53  ;;  %4053 = vst.msk [vmem:[#allocation3 + $0x24] sm:$0xf] %vm13002_vm14, %v3957_v57  ;;  %v3260_v43 = vadd.f32 %v3259_v11, %v3170_v6  ;;  %vm13003_vm11 = vmmov %vm13001_vm0  ;;  %v3849_v56 = vor.u32 %v3847_v59, %v3846_v45  ;;  %v3437_v16 = vpack.c.bf16 %v3372_v9, %v3372_v9  ;;  %vm13005_vm0 = vcmask 388352  }
 0x269   : > { %8192 = vmatmul.msk.bf16.gmra.mxu1 %vm13003_vm11, %v8567_v47  ;;  %4480 = vst.msk [vmem:[#allocation3 + $0x24] sm:$0xf] %vm13005_vm0, %v13004_v30  ;;  %vm13007_vm11 = vnez %v13006_v54  ;;  %vm13008_vm1 = vcmask 261120   ;;  %v2675_v47 = vadd.f32 %v10758_v15, %v2502_v35  ;;  %v10847_v20 = vrot.slane %v4332_v10, 4 }
 0x26a   : > { %v3305_v3 = vadd.f32 %v3260_v43, %v2761_v61  ;;  %v3850_v63 = vsel %vm9212_vm7, %v3842_v49, %v3849_v56  ;;  %3538 = vrot.lane.b32.xlu1 %v3437_v16, %s8755_s20  ;;  %v3645_v57 = vsel %vm8882_vm6, %v3437_v16, 0  ;;  %v4105_v59 = vsel %vm13007_vm11, %v3437_v16, 0  ;;  %3405 = vst.msk [vmem:[%s10143_s19 + $0xb0] sm:$0xff] %vm13008_vm1, %v3372_v9  ;;  %v13009_v9 = vld [vmem:[#allocation59_spill] sm:$0xff] }
 0x26b   : > { %3984 = vrot.lane.b32.xlu0 %v3850_v63, %s8756_s21  ;;  %v4335_v39 = vshll.u32 %v4105_v59, 16  ;;  %v4339_v14 = vshrl.u32 %v4105_v59, 16  ;;  %v3853_v53 = vshrl.u32 %v3645_v57, 16  ;;  %v3856_v16 = vshll.u32 %v3645_v57, 16  ;;  %v2679_v59 = vpop.f32.mrf.mxu2 }
 0x26c   : > { %v3341_v61 = vadd.f32 %v10585_v34, %v3305_v3  ;;  %v2504_v30 = vadd.f32 %v13009_v9, %v10788_v12  ;;  %vm13010_vm2 = vcmask 257152   ;;  %v3851_v35 = vrot.slane %v3846_v45, 4 }
 0x26d   : > { %v10849_v31 = vrot.slane %v4335_v39, 5  ;;  %v4341_v6 = vrot.slane %v4339_v14, 4  ;;  %v3511_v43 = vpop.permute.xlu0 %3510  ;;  %v3517_v49 = vpop.permute.xlu2 %3516  ;;  %v3855_v56 = vrot.slane %v3853_v53, 7  ;;  %v13011_v39 = vld [vmem:[#allocation56_spill] sm:$0xff]  ;;  %v13012_v12 = vsel %vm8947_vm4, %v10405_v26, %v10408_v55  ;;  %vm13013_vm1 = vmmov %vm13010_vm2 }
 0x26e   : > { %v3262_v11 = vpop.f32.mrf.mxu3  ;;  %3599 = vst.msk [vmem:[#allocation3 + $0x28] sm:$0xf] %vm13010_vm2, %v3511_v43  ;;  %v3373_v63 = vmax.f32 %v3341_v61, 0.0  ;;  %v2764_v57 = vadd.f32 %v13011_v39, %v2675_v47  ;;  %v2677_v61 = vadd.f32 %v10802_v42, %v2504_v30  ;;  %v13014_v47 = vld [vmem:[#allocation42_spill] sm:$0xff]  ;;  %vm13015_vm2 = vcmask 261120   ;;  %v2419_v9 = vpop.f32.mrf.mxu0 }
 0x26f   : > { %4054 = vst.msk [vmem:[#allocation3 + $0x28] sm:$0xf] %vm13002_vm14, %v3959_v41  ;;  %v3173_v15 = vpop.f32.mrf.mxu1  ;;  %v3858_v10 = vor.u32 %v3856_v16, %v3855_v56  ;;  %v4342_v53 = vor.u32 %v4341_v6, %v10849_v31  ;;  %vm13018_vm14 = vmmov %vm13013_vm1 }
 0x270   : > { %4481 = vst.msk [vmem:[#allocation3 + $0x28] sm:$0xf] %vm13005_vm0, %v13012_v12  ;;  %v3263_v14 = vadd.f32 %v3262_v11, %v3173_v15  ;;  %v3438_v41 = vpack.c.bf16 %v3373_v63, %v3373_v63  ;;  %v8568_v21 = vld [vmem:[#allocation3 + $0x20] sm:$0xff]  ;;  %vm13019_vm0 = vmmov %vm13013_vm1 }
 0x271   : > { %3602 = vst.msk [vmem:[#allocation3 + $0x34] sm:$0xf] %vm13013_vm1, %v3517_v49  ;;  %v3859_v45 = vsel %vm9212_vm7, %v3851_v35, %v3858_v10  ;;  %v10880_v30 = vrot.slane %v4342_v53, 4  ;;  %vm13020_vm1 = vcmask 392192  }
 0x272   : > { %v3306_v43 = vadd.f32 %v3263_v14, %v2764_v57  ;;  %3540 = vrot.lane.b32.xlu2 %v3438_v41, %s8755_s20  ;;  %v3646_v16 = vsel %vm9893_vm12, %v3438_v41, 0  ;;  %v4106_v26 = vsel %vm8882_vm6, %v3438_v41, 0  ;;  %3406 = vst.msk [vmem:[%s10143_s19 + $0xb8] sm:$0xff] %vm13015_vm2, %v3373_v63  ;;  %v8547_v57 = vld [vmem:[#allocation3 + $0x20] sm:$0xff]  ;;  %v13016_v63 = vld [vmem:[#allocation58_spill] sm:$0xff]  ;;  %vm13021_vm2 = vmmov %vm13020_vm1 }
 0x273   : > { %3986 = vrot.lane.b32.xlu0 %v3859_v45, %s8756_s21  ;;  %v4345_v55 = vshll.u32 %v4106_v26, 16  ;;  %v4349_v11 = vshrl.u32 %v4106_v26, 16  ;;  %v3862_v49 = vshrl.u32 %v3646_v16, 16  ;;  %v3865_v14 = vshll.u32 %v3646_v16, 16  ;;  %v13017_v45 = vld [vmem:[#allocation61_spill] sm:$0xff]  ;;  %vm13022_vm12 = vmmov %vm13020_vm1 }
 0x274   : > { %v3342_v42 = vadd.f32 %v10585_v34, %v3306_v43  ;;  %v2766_v41 = vadd.f32 %v13016_v63, %v2677_v61  ;;  %v2507_v26 = vadd.f32 %v13017_v45, %v2417_v5  ;;  %v3860_v43 = vrot.slane %v3855_v56, 4 }
 0x275   : > { %v10882_v15 = vrot.slane %v4345_v55, 5  ;;  %v4351_v35 = vrot.slane %v4349_v11, 4  ;;  %v3513_v10 = vpop.permute.xlu1 %3512  ;;  %v3519_v39 = vpop.permute.xlu2 %3518  ;;  %v3864_v12 = vrot.slane %v3862_v49, 7 }
 0x276   : > { %v3264_v6 = vpop.f32.mrf.mxu3  ;;  %v3374_v3 = vmax.f32 %v3342_v42, 0.0  ;;  %3600 = vst.msk [vmem:[#allocation3 + $0x2c] sm:$0xf] %vm13018_vm14, %v3513_v10  ;;  %vm13023_vm14 = vcmask 261120   ;;  %v2681_v49 = vpop.f32.mrf.mxu2 }
 0x277   : > { %3603 = vst.msk [vmem:[#allocation3 + $0x38] sm:$0xf] %vm13019_vm0, %v3519_v39  ;;  %v3175_v53 = vpop.f32.mrf.mxu1  ;;  %8064 = vmatmul.msk.bf16.gmra.mxu0 %vm13020_vm1, %v8547_v57  ;;  %v3867_v55 = vor.u32 %v3865_v14, %v3864_v12  ;;  %v4352_v11 = vor.u32 %v4351_v35, %v10882_v15  ;;  %vm13030_vm1 = vcmask 388352  }
 0x278   : > { %8097 = vmatmul.msk.bf16.gmra.mxu2 %vm13021_vm2, %v8547_v57  ;;  %v3265_v16 = vadd.f32 %v3264_v6, %v3175_v53  ;;  %v3439_v5 = vpack.c.bf16 %v3374_v3, %v3374_v3  ;;  %3407 = vst.msk [vmem:[%s10143_s19 + $0xc0] sm:$0xff] %vm13023_vm14, %v3374_v3  ;;  %v13024_v6 = vld [vmem:[#allocation25_spill] sm:$0xff]  ;;  %v2680_v3 = vadd.f32 %v2679_v59, %v2507_v26  ;;  %v13028_v59 = vld [vmem:[#allocation32_spill] sm:$0xff]  ;;  %vm13031_vm2 = vcmask 257152  }
 0x279   : > { %8193 = vmatmul.msk.bf16.gmra.mxu1 %vm13022_vm12, %v8568_v21  ;;  %v3868_v42 = vsel %vm9212_vm7, %v3860_v43, %v3867_v55  ;;  %vm13025_vm0 = vnez %v13024_v6  ;;  %v10907_v53 = vrot.slane %v4352_v11, 4  ;;  %vm13026_vm12 = vcmask 125952  }
 0x27a   : > { %v3307_v10 = vadd.f32 %v3265_v16, %v2766_v41  ;;  %3988 = vrot.lane.b32.xlu1 %v3868_v42, %s8756_s21  ;;  %3542 = vrot.lane.b32.xlu2 %v3439_v5, %s8755_s20  ;;  %v3647_v56 = vsel %vm8882_vm6, %v3439_v5, 0  ;;  %v4107_v21 = vsel %vm13025_vm0, %v3439_v5, 0  ;;  %v13027_v5 = vld [vmem:[#allocation63_spill] sm:$0xff]  ;;  %v13029_v26 = vsel %vm8947_vm4, %v10437_v29, %v13028_v59 }
 0x27b   : > { %v4355_v39 = vshll.u32 %v4107_v21, 16  ;;  %v4359_v57 = vshrl.u32 %v4107_v21, 16  ;;  %v3871_v14 = vshrl.u32 %v3647_v56, 16  ;;  %v3874_v42 = vshll.u32 %v3647_v56, 16  ;;  %v2422_v21 = vpop.f32.mrf.mxu0 }
 0x27c   : > { %v3343_v63 = vadd.f32 %v10585_v34, %v3307_v10  ;;  %v3961_v45 = vpop.permute.xlu0 %3960  ;;  %v2509_v61 = vadd.f32 %v13027_v5, %v2419_v9  ;;  %v13032_v9 = vld [vmem:[#allocation60_spill] sm:$0xff] }
 0x27d   : > { %v10909_v41 = vrot.slane %v4355_v39, 5  ;;  %v4361_v43 = vrot.slane %v4359_v57, 4  ;;  %4055 = vst.msk [vmem:[#allocation3 + $0x2c] sm:$0xf] %vm13026_vm12, %v3961_v45  ;;  %v3515_v55 = vpop.permute.xlu1 %3514  ;;  %v3873_v16 = vrot.slane %v3871_v14, 7  ;;  %v3869_v39 = vrot.slane %v3864_v12, 4 }
 0x27e   : > { %v3267_v35 = vpop.f32.mrf.mxu3  ;;  %4482 = vst.msk [vmem:[#allocation3 + $0x2c] sm:$0xf] %vm13030_vm1, %v13029_v26  ;;  %v3375_v11 = vmax.f32 %v3343_v63, 0.0  ;;  %v2769_v14 = vadd.f32 %v13032_v9, %v2680_v3  ;;  %v2682_v63 = vadd.f32 %v2681_v49, %v2509_v61  ;;  %v2684_v3 = vpop.f32.mrf.mxu2 }
 0x27f   : > { %3601 = vst.msk [vmem:[#allocation3 + $0x30] sm:$0xf] %vm13031_vm2, %v3515_v55  ;;  %v3178_v10 = vpop.f32.mrf.mxu1  ;;  %v3876_v57 = vor.u32 %v3874_v42, %v3873_v16  ;;  %v4362_v7 = vor.u32 %v4361_v43, %v10909_v41  ;;  %vm13037_vm2 = vcmask 392192  }
 0x280   : > { %v3268_v45 = vadd.f32 %v3267_v35, %v3178_v10  ;;  %v3440_v5 = vpack.c.bf16 %v3375_v11, %v3375_v11  ;;  %3408 = vst.msk [vmem:[%s10143_s19 + $0xc8] sm:$0xff] %vm13023_vm14, %v3375_v11  ;;  %vm13038_vm14 = vmmov %vm13037_vm2 }
 0x281   : > { %v3877_v29 = vsel %vm9212_vm7, %v3869_v39, %v3876_v57  ;;  %v10937_v61 = vrot.slane %v4362_v7, 4 }
 0x282   : > { %v3308_v55 = vadd.f32 %v3268_v45, %v2769_v14  ;;  %3990 = vrot.lane.b32.xlu1 %v3877_v29, %s8756_s21  ;;  %3544 = vrot.lane.b32.xlu0 %v3440_v5, %s8755_s20  ;;  %v3648_v42 = vsel %vm9919_vm8, %v3440_v5, 0  ;;  %v4108_v35 = vsel %vm8882_vm6, %v3440_v5, 0  ;;  %v13034_v45 = vld [vmem:[#allocation62_spill] sm:$0xff] }
 0x283   : > { %v4365_v59 = vshll.u32 %v4108_v35, 16  ;;  %v4369_v43 = vshrl.u32 %v4108_v35, 16  ;;  %v3880_v11 = vshrl.u32 %v3648_v42, 16  ;;  %v2771_v29 = vadd.f32 %v13034_v45, %v2682_v63  ;;  %v13041_v45 = vld [vmem:[#allocation26_spill] sm:$0xff] }
 0x284   : > { %v3344_v10 = vadd.f32 %v10585_v34, %v3308_v55  ;;  %v3963_v39 = vpop.permute.xlu0 %3962  ;;  %v13035_v35 = vsel %vm8947_vm4, %v10463_v23, %v10465_v17  ;;  %v3883_v55 = vshll.u32 %v3648_v42, 16  ;;  %v2424_v23 = vpop.f32.mrf.mxu0 }
 0x285   : > { %v10939_v49 = vrot.slane %v4365_v59, 5  ;;  %v4371_v57 = vrot.slane %v4369_v43, 4  ;;  %4056 = vst.msk [vmem:[#allocation3 + $0x30] sm:$0xf] %vm13026_vm12, %v3963_v39  ;;  %v8548_v9 = vld [vmem:[#allocation3 + $0x28] sm:$0xff]  ;;  %v3882_v7 = vrot.slane %v3880_v11, 7  ;;  %vm13039_vm12 = vmmov %vm13037_vm2 }
 0x286   : > { %v3269_v26 = vpop.f32.mrf.mxu3  ;;  %v8569_v14 = vld [vmem:[#allocation3 + $0x28] sm:$0xff]  ;;  %v3376_v5 = vmax.f32 %v3344_v10, 0.0  ;;  %4483 = vst.msk [vmem:[#allocation3 + $0x30] sm:$0xf] %vm13030_vm1, %v13035_v35  ;;  %v3878_v11 = vrot.slane %v3873_v16, 4  ;;  %vm13040_vm1 = vcmask 261120  }
 0x287   : > { %v13036_v59 = vld [vmem:[#allocation65_spill] sm:$0xff]  ;;  %v4372_v43 = vor.u32 %v4371_v57, %v10939_v49  ;;  %v3180_v39 = vpop.f32.mrf.mxu1  ;;  %8065 = vmatmul.msk.bf16.gmra.mxu0 %vm13037_vm2, %v8548_v9  ;;  %v3885_v42 = vor.u32 %v3883_v55, %v3882_v7  ;;  %vm13042_vm2 = vnez %v13041_v45 }
 0x288   : > { %v2512_v56 = vadd.f32 %v13036_v59, %v2422_v21  ;;  %8098 = vmatmul.msk.bf16.gmra.mxu2 %vm13038_vm14, %v8548_v9  ;;  %v3270_v17 = vadd.f32 %v3269_v26, %v3180_v39  ;;  %v3441_v10 = vpack.c.bf16 %v3376_v5, %v3376_v5  ;;  %3409 = vst.msk [vmem:[%s10143_s19 + $0xd0] sm:$0xff] %vm13040_vm1, %v3376_v5  ;;  %v10967_v26 = vpop.permute.xlu2 %3968  ;;  %vm13043_vm14 = vcmask 125952  }
 0x289   : > { %8194 = vmatmul.msk.bf16.gmra.mxu1 %vm13039_vm12, %v8569_v14  ;;  %v3886_v57 = vsel %vm9212_vm7, %v3878_v11, %v3885_v42  ;;  %v2686_v11 = vpop.f32.mrf.mxu2  ;;  %vm13046_vm12 = vcmask 388352  }
 0x28a   : > { %v3309_v21 = vadd.f32 %v3270_v17, %v2771_v29  ;;  %3546 = vrot.lane.b32.xlu0 %v3441_v10, %s8755_s20  ;;  %v3649_v9 = vsel %vm8882_vm6, %v3441_v10, 0  ;;  %v4109_v35 = vsel %vm13042_vm2, %v3441_v10, 0  ;;  %3992 = vrot.lane.b32.xlu2 %v3886_v57, %s8756_s21  ;;  %v2685_v29 = vadd.f32 %v2684_v3, %v2512_v56  ;;  %v13044_v57 = vld [vmem:[#allocation67_spill] sm:$0xff] }
 0x28b   : > { %v4375_v16 = vshll.u32 %v4109_v35, 16  ;;  %v4379_v14 = vshrl.u32 %v4109_v35, 16  ;;  %v3889_v5 = vshrl.u32 %v3649_v9, 16  ;;  %v10971_v17 = vrot.slane %v4372_v43, 4 }
 0x28c   : > { %v3345_v59 = vadd.f32 %v10585_v34, %v3309_v21  ;;  %v3965_v39 = vpop.permute.xlu1 %3964  ;;  %v3892_v45 = vshll.u32 %v3649_v9, 16  ;;  %v2514_v12 = vadd.f32 %v13044_v57, %v2424_v23  ;;  %v13045_v56 = vsel %vm8947_vm4, %v10491_v60, %v10493_v1 }
 0x28d   : > { %v10973_v42 = vrot.slane %v4375_v16, 5  ;;  %v4381_v63 = vrot.slane %v4379_v14, 4  ;;  %4057 = vst.msk [vmem:[#allocation3 + $0x34] sm:$0xf] %vm13043_vm14, %v3965_v39  ;;  %v3891_v10 = vrot.slane %v3889_v5, 7  ;;  %v3887_v21 = vrot.slane %v3882_v7, 4 }
 0x28e   : > { %v3272_v55 = vpop.f32.mrf.mxu3  ;;  %4484 = vst.msk [vmem:[#allocation3 + $0x34] sm:$0xf] %vm13046_vm12, %v13045_v56  ;;  %v3377_v3 = vmax.f32 %v3345_v59, 0.0  ;;  %v13047_v14 = vld [vmem:[#allocation64_spill] sm:$0xff]  ;;  %v2687_v1 = vadd.f32 %v2686_v11, %v2514_v12  ;;  %v2427_v59 = vpop.f32.mrf.mxu0  ;;  %vm13050_vm12 = vcmask 125952   ;;  %v13051_v16 = vld [vmem:[#allocation66_spill] sm:$0xff] }
 0x28f   : > { %v3183_v43 = vpop.f32.mrf.mxu1  ;;  %v3894_v35 = vor.u32 %v3892_v45, %v3891_v10  ;;  %v2774_v9 = vadd.f32 %v13047_v14, %v2685_v29  ;;  %v4382_v23 = vor.u32 %v4381_v63, %v10973_v42  ;;  %v13048_v45 = vld [vmem:[#allocation48_spill] sm:$0xff] }
 0x290   : > { %v3273_v5 = vadd.f32 %v3272_v55, %v3183_v43  ;;  %v3442_v39 = vpack.c.bf16 %v3377_v3, %v3377_v3  ;;  %3410 = vst.msk [vmem:[%s10143_s19 + $0xd8] sm:$0xff] %vm13040_vm1, %v3377_v3  ;;  %vm13049_vm14 = vnez %v13048_v45  ;;  %v3971_v11 = vpop.permute.xlu2 %3970  ;;  %vm13053_vm1 = vcmask 388352  }
 0x291   : > { %v3895_v60 = vsel %vm9212_vm7, %v3887_v21, %v3894_v35  ;;  %v11000_v12 = vrot.slane %v4382_v23, 4 }
 0x292   : > { %v3310_v7 = vadd.f32 %v3273_v5, %v2774_v9  ;;  %3548 = vrot.lane.b32.xlu1 %v3442_v39, %s8755_s20  ;;  %v3650_v57 = vsel %vm13049_vm14, %v3442_v39, 0  ;;  %v4110_v29 = vsel %vm8882_vm6, %v3442_v39, 0  ;;  %3994 = vrot.lane.b32.xlu2 %v3895_v60, %s8756_s21  ;;  %v2776_v60 = vadd.f32 %v13051_v16, %v2687_v1 }
 0x293   : > { %v4385_v63 = vshll.u32 %v4110_v29, 16  ;;  %v4389_v55 = vshrl.u32 %v4110_v29, 16  ;;  %v3898_v3 = vshrl.u32 %v3650_v57, 16  ;;  %v3901_v29 = vshll.u32 %v3650_v57, 16 }
 0x294   : > { %v3346_v43 = vadd.f32 %v10585_v34, %v3310_v7  ;;  %v3967_v21 = vpop.permute.xlu1 %3966  ;;  %v13052_v7 = vsel %vm8947_vm4, %v10519_v19, %v10521_v2  ;;  %vm13055_vm14 = vcmask 257152   ;;  %v3896_v1 = vrot.slane %v3891_v10, 4 }
 0x295   : > { %v11002_v35 = vrot.slane %v4385_v63, 5  ;;  %v4391_v14 = vrot.slane %v4389_v55, 4  ;;  %4058 = vst.msk [vmem:[#allocation3 + $0x38] sm:$0xf] %vm13050_vm12, %v3967_v21  ;;  %v3521_v9 = vpop.permute.xlu0 %3520  ;;  %v8549_v5 = vld [vmem:[#allocation3 + $0x30] sm:$0xff]  ;;  %v3900_v23 = vrot.slane %v3898_v3, 7  ;;  %v2689_v55 = vpop.f32.mrf.mxu2 }
 0x296   : > { %v3274_v56 = vpop.f32.mrf.mxu3  ;;  %v8570_v39 = vld [vmem:[#allocation3 + $0x30] sm:$0xff]  ;;  %v3378_v45 = vmax.f32 %v3346_v43, 0.0  ;;  %4485 = vst.msk [vmem:[#allocation3 + $0x38] sm:$0xf] %vm13053_vm1, %v13052_v7  ;;  %v13054_v63 = vld [vmem:[#allocation69_spill] sm:$0xff]  ;;  %vm13056_vm12 = vcmask 392192  }
 0x297   : > { %v2517_v6 = vadd.f32 %v13054_v63, %v2427_v59  ;;  %3604 = vst.msk [vmem:[#allocation3 + $0x3c] sm:$0xf] %vm13055_vm14, %v3521_v9  ;;  %v3185_v21 = vpop.f32.mrf.mxu1  ;;  %8066 = vmatmul.msk.bf16.gmra.mxu0 %vm13056_vm12, %v8549_v5  ;;  %vm13057_vm2 = vmmov %vm13056_vm12  ;;  %v4392_v19 = vor.u32 %v4391_v14, %v11002_v35  ;;  %vm13058_vm1 = vcmask 125952   ;;  %v3903_v59 = vor.u32 %v3901_v29, %v3900_v23  ;;  %v13060_v3 = vld [vmem:[#allocation34_spill] sm:$0xff]  ;;  %v13061_v43 = vld [vmem:[#allocation39_spill] sm:$0xff] }
 0x298   : > { %8099 = vmatmul.msk.bf16.gmra.mxu2 %vm13057_vm2, %v8549_v5  ;;  %4059 = vst.msk [vmem:[#allocation3 + $0x3c] sm:$0xf] %vm13058_vm1, %v10967_v26  ;;  %v3275_v2 = vadd.f32 %v3274_v56, %v3185_v21  ;;  %vm13059_vm8 = vmmov %vm13057_vm2  ;;  %v3443_v57 = vpack.c.bf16 %v3378_v45, %v3378_v45  ;;  %v13062_v9 = vsel %vm8947_vm4, %v13060_v3, %v13061_v43  ;;  %vm13063_vm2 = vcmask 388352   ;;  %v8607_v14 = vld [vmem:[%s12494_s3 + $0x28] sm:$0xff]  ;;  %v8626_v7 = vld [vmem:[%s12494_s3 + $0x40] sm:$0xff] }
 0x299   : > { %8195 = vmatmul.msk.bf16.gmra.mxu1 %vm13059_vm8, %v8570_v39  ;;  %4486 = vst.msk [vmem:[#allocation3 + $0x3c] sm:$0xf] %vm13063_vm2, %v13062_v9  ;;  %v3904_v26 = vsel %vm9212_vm7, %v3896_v1, %v3903_v59  ;;  %v13064_v56 = vld [vmem:[#allocation29_spill] sm:$0xff]  ;;  %vm13066_vm14 = vcmask 261120   ;;  %v2690_v29 = vadd.f32 %v2689_v55, %v2517_v6  ;;  %6656 = vmatpush.bf16.msra.mxu3 %v8607_v14  ;;  %v2429_v1 = vpop.f32.mrf.mxu0  ;;  %v11047_v3 = vrot.slane %v4392_v19, 4 }
 0x29a   : > { %v3311_v5 = vadd.f32 %v3275_v2, %v2776_v60  ;;  %3550 = vrot.lane.b32.xlu1 %v3443_v57, %s8755_s20  ;;  %v3651_v10 = vsel %vm8882_vm6, %v3443_v57, 0  ;;  %vm13065_vm8 = vnez %v13064_v56  ;;  %3411 = vst.msk [vmem:[%s10143_s19 + $0xe0] sm:$0xff] %vm13066_vm14, %v3378_v45  ;;  %3996 = vrot.lane.b32.xlu0 %v3904_v26, %s8756_s21  ;;  %vm13067_vm12 = vcmask 257152   ;;  %v13068_v26 = vld [vmem:[#allocation68_spill] sm:$0xff] }
 0x29b   : > { %v4111_v39 = vsel %vm13065_vm8, %v3443_v57, 0  ;;  %v3907_v2 = vshrl.u32 %v3651_v10, 16  ;;  %7045 = vmatpush.bf16.msra.mxu2 %v8626_v7  ;;  %v3910_v6 = vshll.u32 %v3651_v10, 16  ;;  %v3905_v56 = vrot.slane %v3900_v23, 4  ;;  %v8603_v23 = vld [vmem:[%s12494_s3 + $0x10] sm:$0xff]  ;;  %vm13071_vm14 = vmmov %vm13067_vm12 }
 0x29c   : > { %v4395_v60 = vshll.u32 %v4111_v39, 16  ;;  %v4399_v63 = vshrl.u32 %v4111_v39, 16  ;;  %v3347_v59 = vadd.f32 %v10585_v34, %v3311_v5  ;;  %v3529_v16 = vpop.permute.xlu2 %3528  ;;  %v2779_v39 = vadd.f32 %v13068_v26, %v2690_v29  ;;  %v13069_v5 = vld [vmem:[#allocation71_spill] sm:$0xff]  ;;  %6771 = vmatpush.bf16.msra.mxu0 %v8603_v23 }
 0x29d   : > { %v3523_v9 = vpop.permute.xlu0 %3522  ;;  %v3909_v45 = vrot.slane %v3907_v2, 7  ;;  %v2519_v7 = vadd.f32 %v13069_v5, %v2429_v1  ;;  %v13070_v10 = vsel %vm8947_vm4, %v10580_v18, %v10590_v50  ;;  %3608 = vst.msk [vmem:[#allocation3 + $0x4c] sm:$0xf] %vm13071_vm14, %v3529_v16  ;;  %v13072_v18 = vld [vmem:[#allocation51_spill] sm:$0xff] }
 0x29e   : > { %v3277_v21 = vpop.f32.mrf.mxu3  ;;  %v11049_v57 = vrot.slane %v4395_v60, 5  ;;  %v4401_v43 = vrot.slane %v4399_v63, 4  ;;  %3605 = vst.msk [vmem:[#allocation3 + $0x40] sm:$0xf] %vm13067_vm12, %v3523_v9  ;;  %v3379_v55 = vmax.f32 %v3347_v59, 0.0  ;;  %v2691_v63 = vpop.f32.mrf.mxu2  ;;  %vm13073_vm12 = vnez %v13072_v18 }
 0x29f   : > { %4060 = vst.msk [vmem:[#allocation3 + $0x40] sm:$0xf] %vm13058_vm1, %v3971_v11  ;;  %v3188_v14 = vpop.f32.mrf.mxu1  ;;  %v3912_v34 = vor.u32 %v3910_v6, %v3909_v45  ;;  %vm13074_vm1 = vcmask 261120   ;;  %v2692_v9 = vadd.f32 %v2691_v63, %v2519_v7 }
 0x2a0   : > { %4487 = vst.msk [vmem:[#allocation3 + $0x40] sm:$0xf] %vm13063_vm2, %v13070_v10  ;;  %v3278_v29 = vadd.f32 %v3277_v21, %v3188_v14  ;;  %v3444_v11 = vpack.c.bf16 %v3379_v55, %v3379_v55  ;;  %v4402_v60 = vor.u32 %v4401_v43, %v11049_v57  ;;  %vm13075_vm2 = vmmov %vm13071_vm14  ;;  %v8571_v23 = vld [vmem:[#allocation3 + $0x38] sm:$0xff] }
 0x2a1   : > { %v3913_v2 = vsel %vm9212_vm7, %v3905_v56, %v3912_v34  ;;  %3412 = vst.msk [vmem:[%s10143_s19 + $0xe8] sm:$0xff] %vm13074_vm1, %v3379_v55  ;;  %v8685_v56 = vld [vmem:[%s12495_s4] ss:$0 sm:$0xff]  ;;  %vm13076_vm14 = vmmov %vm13075_vm2  ;;  %vm13077_vm1 = vcmask 392192  }
 0x2a2   : > { %v3312_v1 = vadd.f32 %v3278_v29, %v2779_v39  ;;  %3552 = vrot.lane.b32.xlu2 %v3444_v11, %s8755_s20  ;;  %v3652_v50 = vsel %vm13073_vm12, %v3444_v11, 0  ;;  %v4112_v21 = vsel %vm8882_vm6, %v3444_v11, 0  ;;  %3998 = vrot.lane.b32.xlu0 %v3913_v2, %s8756_s21  ;;  %v8550_v39 = vld [vmem:[#allocation3 + $0x38] sm:$0xff]  ;;  %v11083_v14 = vrot.slane %v4402_v60, 4  ;;  %vm13078_vm12 = vmmov %vm13077_vm1 }
 0x2a3   : > { %v4405_v59 = vshll.u32 %v4112_v21, 16  ;;  %v4409_v43 = vshrl.u32 %v4112_v21, 16  ;;  %v3916_v16 = vshrl.u32 %v3652_v50, 16  ;;  %v3919_v7 = vshll.u32 %v3652_v50, 16  ;;  %v13079_v21 = vld [vmem:[#allocation70_spill] sm:$0xff] }
 0x2a4   : > { %v3348_v6 = vadd.f32 %v8685_v56, %v3312_v1  ;;  %v3525_v26 = vpop.permute.xlu1 %3524  ;;  %v3531_v55 = vpop.permute.xlu2 %3530  ;;  %v3914_v60 = vrot.slane %v3909_v45, 4 }
 0x2a5   : > { %v11085_v34 = vrot.slane %v4405_v59, 5  ;;  %v4411_v5 = vrot.slane %v4409_v43, 4  ;;  %3606 = vst.msk [vmem:[#allocation3 + $0x44] sm:$0xf] %vm13075_vm2, %v3525_v26  ;;  %v11088_v29 = vrot.slane %v3916_v16, 7  ;;  %v2781_v59 = vadd.f32 %v13079_v21, %v2692_v9  ;;  %vm13080_vm2 = vmmov %vm13077_vm1 }
 0x2a6   : > { %v3279_v10 = vpop.f32.mrf.mxu3  ;;  %v3380_v11 = vmax.f32 %v3348_v6, 0.0  ;;  %3609 = vst.msk [vmem:[#allocation3 + $0x50] sm:$0xf] %vm13076_vm14, %v3531_v55  ;;  %vm13081_vm14 = vcmask 261120  }
 0x2a7   : > { %v3190_v63 = vpop.f32.mrf.mxu1  ;;  %8067 = vmatmul.msk.bf16.gmra.mxu0 %vm13077_vm1, %v8550_v39  ;;  %v3921_v2 = vor.u32 %v3919_v7, %v11088_v29  ;;  %v4412_v45 = vor.u32 %v4411_v5, %v11085_v34  ;;  %vm13084_vm1 = vcmask 125952  }
 0x2a8   : > { %8100 = vmatmul.msk.bf16.gmra.mxu2 %vm13078_vm12, %v8550_v39  ;;  %v3280_v50 = vadd.f32 %v3279_v10, %v3190_v63  ;;  %v3445_v43 = vpack.c.bf16 %v3380_v11, %v3380_v11  ;;  %3413 = vst.msk [vmem:[%s10143_s19 + $0xf0] sm:$0xff] %vm13081_vm14, %v3380_v11  ;;  %v13082_v39 = vld [vmem:[#allocation31_spill] sm:$0xff]  ;;  %vm13087_vm14 = vcmask 257152  }
 0x2a9   : > { %8196 = vmatmul.msk.bf16.gmra.mxu1 %vm13080_vm2, %v8571_v23  ;;  %v3922_v16 = vsel %vm9212_vm7, %v3914_v60, %v3921_v2  ;;  %vm13083_vm12 = vnez %v13082_v39  ;;  %v11113_v60 = vrot.slane %v4412_v45, 4  ;;  %v13085_v2 = vsel %vm8947_vm4, %v10631_v44, %v10633_v22  ;;  %v13089_v44 = vld [vmem:[#allocation37_spill] sm:$0xff] }
 0x2aa   : > { %v3313_v6 = vadd.f32 %v3280_v50, %v2781_v59  ;;  %4000 = vrot.lane.b32.xlu1 %v3922_v16, %s8756_s21  ;;  %v3653_v26 = vsel %vm8882_vm6, %v3445_v43, 0  ;;  %v4113_v9 = vsel %vm13083_vm12, %v3445_v43, 0  ;;  %vm13086_vm2 = vcmask 388352  }
 0x2ab   : > { %v4415_v55 = vshll.u32 %v4113_v9, 16  ;;  %v4419_v10 = vshrl.u32 %v4113_v9, 16  ;;  %v3925_v5 = vshrl.u32 %v3653_v26, 16 }
 0x2ac   : > { %v3349_v7 = vadd.f32 %v8685_v56, %v3313_v6  ;;  %v3973_v23 = vpop.permute.xlu0 %3972  ;;  %v3527_v11 = vpop.permute.xlu1 %3526 }
 0x2ad   : > { %4061 = vst.msk [vmem:[#allocation3 + $0x44] sm:$0xf] %vm13084_vm1, %v3973_v23  ;;  %v11111_v63 = vrot.slane %v4415_v55, 5  ;;  %v4421_v21 = vrot.slane %v4419_v10, 4  ;;  %vm13088_vm1 = vcmask 261120   ;;  %v3927_v16 = vrot.slane %v3925_v5, 7 }
 0x2ae   : > { %4488 = vst.msk [vmem:[#allocation3 + $0x44] sm:$0xf] %vm13086_vm2, %v13085_v2  ;;  %v3381_v59 = vmax.f32 %v3349_v7, 0.0  ;;  %vm13090_vm2 = vnez %v13089_v44  ;;  %v3928_v55 = vshll.u32 %v3653_v26, 16  ;;  %v13092_v26 = vsel %vm8947_vm4, %v10668_v33, %v10670_v4 }
 0x2af   : > { %3607 = vst.msk [vmem:[#allocation3 + $0x48] sm:$0xf] %vm13087_vm14, %v3527_v11  ;;  %v4422_v45 = vor.u32 %v4421_v21, %v11111_v63  ;;  %vm13091_vm14 = vcmask 125952  }
 0x2b0   : > { %v3446_v50 = vpack.c.bf16 %v3381_v59, %v3381_v59  ;;  %3414 = vst.msk [vmem:[%s10143_s19 + $0xf8] sm:$0xff] %vm13088_vm1, %v3381_v59  ;;  %v3930_v5 = vor.u32 %v3928_v55, %v3927_v16  ;;  %v4827_v59 = vpop.f32.mrf.mxu2  ;;  %vm13093_vm1 = vcmask 388352  }
 0x2b1   : > { %v11143_v56 = vrot.slane %v4422_v45, 4 }
 0x2b2   : > { %3554 = vrot.lane.b32.xlu1 %v3445_v43, %s8755_s20  ;;  %3556 = vrot.lane.b32.xlu2 %v3446_v50, %s8755_s20  ;;  %v3654_v22 = vsel %vm13090_vm2, %v3446_v50, 0  ;;  %v11135_v6 = vsel %vm8882_vm6, %v3446_v50, 0  ;;  %vm13094_vm2 = vcmask 392192   ;;  %v3923_v50 = vrot.slane %v11088_v29, 4 }
 0x2b3   : > { %v4425_v9 = vshll.u32 %v11135_v6, 16  ;;  %v3934_v10 = vshrl.u32 %v3654_v22, 16  ;;  %v3937_v21 = vshll.u32 %v3654_v22, 16  ;;  %vm13095_vm12 = vmmov %vm13094_vm2 }
 0x2b4   : > { %v3975_v23 = vpop.permute.xlu0 %3974  ;;  %vm13096_vm8 = vmmov %vm13094_vm2  ;;  %v3981_v55 = vpop.permute.xlu2 %3980  ;;  %v3931_v33 = vsel %vm9212_vm7, %v3923_v50, %v3930_v5  ;;  %v13101_v50 = vsel %vm8947_vm4, %v10732_v0, %v10734_v58 }
 0x2b5   : > { %v11138_v7 = vrot.slane %v4425_v9, 5  ;;  %v8551_v11 = vld [vmem:[#allocation3 + $0x40] sm:$0xff]  ;;  %v11140_v2 = vrot.slane %v3934_v10, 7  ;;  %4062 = vst.msk [vmem:[#allocation3 + $0x48] sm:$0xf] %vm13091_vm14, %v3975_v23  ;;  %v3932_v9 = vrot.slane %v3927_v16, 4  ;;  %v13098_v16 = vsel %vm8947_vm4, %v10698_v27, %v10700_v28 }
 0x2b6   : > { %v8572_v43 = vld [vmem:[#allocation3 + $0x40] sm:$0xff]  ;;  %4489 = vst.msk [vmem:[#allocation3 + $0x48] sm:$0xf] %vm13093_vm1, %v13092_v26  ;;  %v13108_v28 = vsel %vm8947_vm4, %v10769_v24, %v10772_v51 }
 0x2b7   : > { %8068 = vmatmul.msk.bf16.gmra.mxu0 %vm13094_vm2, %v8551_v11  ;;  %v3939_v22 = vor.u32 %v3937_v21, %v11140_v2 }
 0x2b8   : > { %8101 = vmatmul.msk.bf16.gmra.mxu2 %vm13095_vm12, %v8551_v11  ;;  %vm13097_vm12 = vmmov %vm13091_vm14  ;;  %v4829_v10 = vpop.f32.mrf.mxu2 }
 0x2b9   : > { %8197 = vmatmul.msk.bf16.gmra.mxu1 %vm13096_vm8, %v8572_v43  ;;  %v3940_v4 = vsel %vm9212_vm7, %v3932_v9, %v3939_v22  ;;  %vm13099_vm8 = vmmov %vm13093_vm1  ;;  %v13112_v22 = vsel %vm8947_vm4, %v10804_v52, %v10807_v62 }
 0x2ba   : > { %4002 = vrot.lane.b32.xlu2 %v3931_v33, %s8756_s21  ;;  %4004 = vrot.lane.b32.xlu0 %v3940_v4, %s8756_s21  ;;  %vm13100_vm2 = vmmov %vm13097_vm12  ;;  %v11205_v4 = vld [vmem:[%s12496_s5] ss:$0 sm:$0xff] }
 0x2bb   : > { %vm13102_vm14 = vmmov %vm13093_vm1  ;;  %vm13103_vm1 = vcmask 257152  }
 0x2bc   : > { %v3977_v29 = vpop.permute.xlu1 %3976  ;;  %v3983_v23 = vpop.permute.xlu2 %3982  ;;  %vm13106_vm0 = vmmov %vm13100_vm2 }
 0x2bd   : > { %4063 = vst.msk [vmem:[#allocation3 + $0x4c] sm:$0xf] %vm13097_vm12, %v3977_v29  ;;  %vm13104_vm12 = vcmask 392192  }
 0x2be   : > { %4490 = vst.msk [vmem:[#allocation3 + $0x4c] sm:$0xf] %vm13099_vm8, %v13098_v16  ;;  %v4712_v11 = vpop.f32.mrf.mxu0  ;;  %vm13105_vm8 = vmmov %vm13104_vm12 }
 0x2bf   : > { %vm13107_vm11 = vmmov %vm13105_vm8  ;;  %v4828_v24 = vadd.f32 %v4827_v59, %v4712_v11 }
 0x2c4   : > { %v3979_v43 = vpop.permute.xlu1 %3978  ;;  %v3533_v5 = vpop.permute.xlu0 %3532 }
 0x2c5   : > { %4064 = vst.msk [vmem:[#allocation3 + $0x50] sm:$0xf] %vm13100_vm2, %v3979_v43  ;;  %v8552_v21 = vld [vmem:[#allocation3 + $0x48] sm:$0xff]  ;;  %v4832_v27 = vpop.f32.mrf.mxu2  ;;  %vm13109_vm2 = vmmov %vm13102_vm14 }
 0x2c6   : > { %v8573_v26 = vld [vmem:[#allocation3 + $0x48] sm:$0xff]  ;;  %4491 = vst.msk [vmem:[#allocation3 + $0x50] sm:$0xf] %vm13102_vm14, %v13101_v50  ;;  %v4714_v9 = vpop.f32.mrf.mxu0  ;;  %vm13110_vm14 = vmmov %vm13103_vm1 }
 0x2c7   : > { %3610 = vst.msk [vmem:[#allocation3 + $0x54] sm:$0xf] %vm13103_vm1, %v3533_v5  ;;  %8069 = vmatmul.msk.bf16.gmra.mxu0 %vm13104_vm12, %v8552_v21  ;;  %vm13111_vm1 = vmmov %vm13106_vm0 }
 0x2c8   : > { %8102 = vmatmul.msk.bf16.gmra.mxu2 %vm13105_vm8, %v8552_v21  ;;  %4065 = vst.msk [vmem:[#allocation3 + $0x54] sm:$0xf] %vm13106_vm0, %v3981_v55  ;;  %vm13114_vm0 = vmmov %vm13110_vm14 }
 0x2c9   : > { %8198 = vmatmul.msk.bf16.gmra.mxu1 %vm13107_vm11, %v8573_v26  ;;  %4492 = vst.msk [vmem:[#allocation3 + $0x54] sm:$0xf] %vm13109_vm2, %v13108_v28  ;;  %vm13113_vm11 = vmmov %vm13109_vm2  ;;  %vm13117_vm2 = vcmask 392192   ;;  %v4830_v26 = vadd.f32 %v4829_v10, %v4714_v9  ;;  %v13123_v10 = vsel %vm8947_vm4, %v10847_v20, %v10849_v31 }
 0x2ca   : > { %vm13115_vm12 = vmmov %vm13114_vm0 }
 0x2cb   : > { %vm13116_vm8 = vmmov %vm13114_vm0 }
 0x2cc   : > { %v3535_v0 = vpop.permute.xlu0 %3534  ;;  %v3541_v58 = vpop.permute.xlu2 %3540 }
 0x2cd   : > { %3611 = vst.msk [vmem:[#allocation3 + $0x58] sm:$0xf] %vm13110_vm14, %v3535_v0  ;;  %v11200_v55 = vpop.f32.mrf.mxu2  ;;  %vm13118_vm14 = vmmov %vm13117_vm2 }
 0x2ce   : > { %4066 = vst.msk [vmem:[#allocation3 + $0x58] sm:$0xf] %vm13111_vm1, %v3983_v23  ;;  %vm13119_vm1 = vmmov %vm13117_vm2 }
 0x2cf   : > { %4493 = vst.msk [vmem:[#allocation3 + $0x58] sm:$0xf] %vm13113_vm11, %v13112_v22  ;;  %vm13120_vm11 = vmmov %vm13114_vm0 }
 0x2d0   : > { %3614 = vst.msk [vmem:[#allocation3 + $0x64] sm:$0xf] %vm13114_vm0, %v3541_v58  ;;  %v8553_v23 = vld [vmem:[#allocation3 + $0x50] sm:$0xff] }
 0x2d1   : > { %v8574_v62 = vld [vmem:[#allocation3 + $0x50] sm:$0xff] }
 0x2d4   : > { %v3537_v51 = vpop.permute.xlu1 %3536  ;;  %v3543_v33 = vpop.permute.xlu2 %3542 }
 0x2d5   : > { %3612 = vst.msk [vmem:[#allocation3 + $0x5c] sm:$0xf] %vm13115_vm12, %v3537_v51  ;;  %v4717_v29 = vpop.f32.mrf.mxu0  ;;  %vm13122_vm12 = vcmask 125952  }
 0x2d6   : > { %v5101_v16 = vpop.f32.mrf.mxu1  ;;  %3615 = vst.msk [vmem:[#allocation3 + $0x68] sm:$0xf] %vm13116_vm8, %v3543_v33  ;;  %vm13124_vm8 = vcmask 388352   ;;  %v4833_v0 = vadd.f32 %v4832_v27, %v4717_v29 }
 0x2d7   : > { %v5181_v52 = vadd.f32 %v5101_v16, %v4828_v24  ;;  %8070 = vmatmul.msk.bf16.gmra.mxu0 %vm13117_vm2, %v8553_v23  ;;  %vm13126_vm2 = vmmov %vm13114_vm0 }
 0x2d8   : > { %8103 = vmatmul.msk.bf16.gmra.mxu2 %vm13118_vm14, %v8553_v23  ;;  %vm13129_vm14 = vmmov %vm13124_vm8 }
 0x2d9   : > { %v5217_v59 = vadd.f32 %v11205_v4, %v5181_v52  ;;  %8199 = vmatmul.msk.bf16.gmra.mxu1 %vm13119_vm1, %v8574_v62 }
 0x2db   : > { %v11213_v11 = vmax.f32 %v5217_v59, 0.0  ;;  %v11215_v43 = vpop.f32.mrf.mxu2 }
 0x2dc   : > { %v3539_v21 = vpop.permute.xlu1 %3538 }
 0x2dd   : > { %v5442_v5 = vpack.c.bf16 %v11213_v11, %v11213_v11  ;;  %v3985_v50 = vpop.permute.xlu0 %3984  ;;  %3613 = vst.msk [vmem:[#allocation3 + $0x60] sm:$0xf] %vm13120_vm11, %v3539_v21  ;;  %v4719_v28 = vpop.f32.mrf.mxu0  ;;  %vm13130_vm11 = vmmov %vm13119_vm1 }
 0x2de   : > { %v5103_v22 = vpop.f32.mrf.mxu1  ;;  %4067 = vst.msk [vmem:[#allocation3 + $0x5c] sm:$0xf] %vm13122_vm12, %v3985_v50 }
 0x2df   : > { %v5971_v58 = vsel %vm8901_vm13, %v5442_v5, 0  ;;  %5484 = vst.msk [vmem:[#allocation4 + $0x8] sm:$0xf] %vm13114_vm0, %v5442_v5  ;;  %v5516_v24 = vsel %vm8882_vm6, %v5442_v5, 0  ;;  %v5182_v51 = vadd.f32 %v5103_v22, %v4830_v26  ;;  %vm13125_vm13 = vmmov %vm13122_vm12 }
 0x2e0   : > { %v5549_v33 = vshrl.u32 %v5516_v24, 16  ;;  %v6004_v16 = vshll.u32 %v5971_v58, 16  ;;  %4494 = vst.msk [vmem:[#allocation3 + $0x5c] sm:$0xf] %vm13124_vm8, %v13123_v10  ;;  %v6007_v9 = vshrl.u32 %v5971_v58, 16  ;;  %v5552_v62 = vshll.u32 %v5516_v24, 16  ;;  %vm13131_vm0 = vmmov %vm13119_vm1 }
 0x2e1   : > { %v5218_v23 = vadd.f32 %v11205_v4, %v5182_v51 }
 0x2e2   : > { %v5551_v52 = vrot.slane %v5549_v33, 7  ;;  %v11233_v59 = vrot.slane %v6004_v16, 5  ;;  %v6009_v21 = vrot.slane %v6007_v9, 4  ;;  %v13128_v9 = vsel %vm8947_vm4, %v10880_v30, %v10882_v15 }
 0x2e3   : > { %v11235_v5 = vpop.f32.mrf.mxu2  ;;  %v11237_v26 = vmax.f32 %v5218_v23, 0.0 }
 0x2e4   : > { %v5554_v50 = vor.u32 %v5552_v62, %v5551_v52  ;;  %v6010_v31 = vor.u32 %v6009_v21, %v11233_v59  ;;  %v11263_v15 = vpop.permute.xlu2 %3992  ;;  %v5555_v45 = vrot.slane %v5551_v52, 4 }
 0x2e5   : > { %v5443_v22 = vpack.c.bf16 %v11237_v26, %v11237_v26  ;;  %v3987_v20 = vpop.permute.xlu0 %3986  ;;  %v11244_v58 = vpop.f32.mrf.mxu0 }
 0x2e6   : > { %5835 = vrot.lane.b32.xlu0 %v5554_v50, %s8755_s20  ;;  %4068 = vst.msk [vmem:[#allocation3 + $0x60] sm:$0xf] %vm13125_vm13, %v3987_v20  ;;  %v5106_v24 = vpop.f32.mrf.mxu1  ;;  %vm13134_vm13 = vsmask.f32 7950 }
 0x2e7   : > { %5485 = vst.msk [vmem:[#allocation4 + $0xc] sm:$0xf] %vm13126_vm2, %v5443_v22  ;;  %v5183_v51 = vadd.f32 %v5106_v24, %v4833_v0  ;;  %v8554_v33 = vld [vmem:[#allocation3 + $0x58] sm:$0xff]  ;;  %v5972_v27 = vsel %vm8882_vm6, %v5443_v22, 0  ;;  %v5517_v10 = vsel %vm9137_vm3, %v5443_v22, 0  ;;  %v6011_v0 = vrot.slane %v6010_v31, 4  ;;  %vm13132_vm3 = vmmov %vm13122_vm12 }
 0x2e8   : > { %v8575_v16 = vld [vmem:[#allocation3 + $0x58] sm:$0xff]  ;;  %4495 = vst.msk [vmem:[#allocation3 + $0x60] sm:$0xf] %vm13129_vm14, %v13128_v9  ;;  %v6013_v23 = vshll.u32 %v5972_v27, 16  ;;  %v6017_v62 = vshrl.u32 %v5972_v27, 16  ;;  %v5557_v21 = vshrl.u32 %v5517_v10, 16  ;;  %8071 = vmatmul.msk.bf16.gmra.mxu0 %vm13119_vm1, %v8554_v33  ;;  %8104 = vmatmul.msk.bf16.gmra.mxu2 %vm13130_vm11, %v8554_v33  ;;  %v4835_v31 = vadd.f32 %v11200_v55, %v4719_v28  ;;  %vm13141_vm1 = vmmov %vm13124_vm8 }
 0x2e9   : > { %v5219_v50 = vadd.f32 %v11205_v4, %v5183_v51  ;;  %8200 = vmatmul.msk.bf16.gmra.mxu1 %vm13131_vm0, %v8575_v16  ;;  %v5560_v29 = vshll.u32 %v5517_v10, 16  ;;  %vm3455_vm12 = vcmask 388099   ;;  %v13133_v10 = vsel %vm8947_vm4, %v10907_v53, %v10909_v41 }
 0x2ea   : > { %v6015_v20 = vrot.slane %v6013_v23, 5  ;;  %v5559_v24 = vrot.slane %v5557_v21, 7  ;;  %v6019_v30 = vrot.slane %v6017_v62, 4  ;;  %vm11285_vm2 = vmand %vm3455_vm12, %vm13134_vm13  ;;  %v3457_v62 = vld [vmem:[#allocation3 + $0x84] sm:$0x8]  ;;  %vm13137_vm14 = vcmask 257152  }
 0x2eb   : > { %v11261_v22 = vpop.f32.mrf.mxu2  ;;  %v11265_v9 = vmax.f32 %v5219_v50, 0.0  ;;  %vm13142_vm11 = vmmov %vm13137_vm14  ;;  %vm13145_vm12 = vcmask 392192  }
 0x2ec   : > { %v3989_v27 = vpop.permute.xlu1 %3988  ;;  %v6016_v51 = vsel %vm8947_vm4, %v6011_v0, %v6015_v20  ;;  %v5562_v1 = vor.u32 %v5560_v29, %v5559_v24  ;;  %v6020_v16 = vor.u32 %v6019_v30, %v6015_v20  ;;  %v3458_v30 = vsel %vm11285_vm2, 0, %v3457_v62  ;;  %v3995_v62 = vpop.permute.xlu2 %3994  ;;  %vm13144_vm0 = vmmov %vm13142_vm11 }
 0x2ed   : > { %v5444_v33 = vpack.c.bf16 %v11265_v9, %v11265_v9  ;;  %4069 = vst.msk [vmem:[#allocation3 + $0x64] sm:$0xf] %vm13132_vm3, %v3989_v27  ;;  %6324 = vrot.lane.b32.xlu2 %v6016_v51, %s8757_s29  ;;  %v11280_v52 = vpop.f32.mrf.mxu0  ;;  %v5564_v19 = vrot.slane %v5559_v24, 4 }
 0x2ee   : > { %4496 = vst.msk [vmem:[#allocation3 + $0x64] sm:$0xf] %vm13124_vm8, %v13133_v10  ;;  %v5108_v55 = vpop.f32.mrf.mxu1  ;;  %v5563_v28 = vsel %vm9212_vm7, %v5555_v45, %v5562_v1  ;;  %v6021_v29 = vrot.slane %v6020_v16, 4  ;;  %v4838_v16 = vadd.f32 %v11215_v43, %v11244_v58  ;;  %vm13148_vm8 = vmmov %vm13141_vm1 }
 0x2ef   : > { %5486 = vst.msk [vmem:[#allocation4 + $0x10] sm:$0xf] %vm13137_vm14, %v5444_v33  ;;  %v5184_v21 = vadd.f32 %v5108_v55, %v4835_v31  ;;  %5837 = vrot.lane.b32.xlu1 %v5563_v28, %s8755_s20  ;;  %v5973_v41 = vsel %vm8965_vm9, %v5444_v33, 0  ;;  %v5518_v50 = vsel %vm8882_vm6, %v5444_v33, 0  ;;  %vm13139_vm9 = vmmov %vm13132_vm3 }
 0x2f0   : > { %v6023_v0 = vshll.u32 %v5973_v41, 16  ;;  %v6027_v20 = vshrl.u32 %v5973_v41, 16  ;;  %v5566_v1 = vshrl.u32 %v5518_v50, 16  ;;  %v5569_v10 = vshll.u32 %v5518_v50, 16  ;;  %3459 = vst [vmem:[#allocation3 + $0x84] sm:$0x8] %v3458_v30  ;;  %vm13150_vm14 = vmmov %vm13144_vm0 }
 0x2f1   : > { %v5220_v45 = vadd.f32 %v11205_v4, %v5184_v21 }
 0x2f2   : > { %v6025_v51 = vrot.slane %v6023_v0, 5  ;;  %v5568_v31 = vrot.slane %v5566_v1, 7  ;;  %v6029_v55 = vrot.slane %v6027_v20, 4  ;;  %v13140_v1 = vsel %vm8947_vm4, %v10937_v61, %v10939_v49  ;;  %v8606_v49 = vld [vmem:[%s12494_s3 + $0x20] sm:$0xff] }
 0x2f3   : > { %v11298_v27 = vpop.f32.mrf.mxu2  ;;  %v11300_v28 = vmax.f32 %v5220_v45, 0.0  ;;  %6657 = vmatpush.bf16.msra.mxu3 %v8606_v49 }
 0x2f4   : > { %v3991_v53 = vpop.permute.xlu1 %3990  ;;  %v3545_v33 = vpop.permute.xlu0 %3544  ;;  %v6026_v41 = vsel %vm8947_vm4, %v6021_v29, %v6025_v51  ;;  %v5571_v21 = vor.u32 %v5569_v10, %v5568_v31  ;;  %v6030_v20 = vor.u32 %v6029_v55, %v6025_v51 }
 0x2f5   : > { %v5445_v0 = vpack.c.bf16 %v11300_v28, %v11300_v28  ;;  %4070 = vst.msk [vmem:[#allocation3 + $0x68] sm:$0xf] %vm13139_vm9, %v3991_v53  ;;  %6326 = vrot.lane.b32.xlu0 %v6026_v41, %s8757_s29  ;;  %v8555_v50 = vld [vmem:[#allocation3 + $0x60] sm:$0xff]  ;;  %v11316_v24 = vpop.f32.mrf.mxu0  ;;  %vm13151_vm9 = vmmov %vm13132_vm3 }
 0x2f6   : > { %4497 = vst.msk [vmem:[#allocation3 + $0x68] sm:$0xf] %vm13141_vm1, %v13140_v1  ;;  %v5111_v43 = vpop.f32.mrf.mxu1  ;;  %v5572_v58 = vsel %vm9212_vm7, %v5564_v19, %v5571_v21  ;;  %v8576_v45 = vld [vmem:[#allocation3 + $0x60] sm:$0xff]  ;;  %v8625_v19 = vld [vmem:[%s12494_s3 + $0x38] sm:$0xff]  ;;  %v6031_v21 = vrot.slane %v6030_v20, 4  ;;  %vm13152_vm1 = vmmov %vm13144_vm0 }
 0x2f7   : > { %5487 = vst.msk [vmem:[#allocation4 + $0x14] sm:$0xf] %vm13142_vm11, %v5445_v0  ;;  %v5185_v29 = vadd.f32 %v5111_v43, %v4838_v16  ;;  %5839 = vrot.lane.b32.xlu1 %v5572_v58, %s8755_s20  ;;  %v5974_v30 = vsel %vm8882_vm6, %v5445_v0, 0  ;;  %v5519_v61 = vsel %vm9191_vm5, %v5445_v0, 0  ;;  %vm13146_vm5 = vmmov %vm13145_vm12  ;;  %v13147_v16 = vsel %vm8947_vm4, %v10971_v17, %v10973_v42  ;;  %7046 = vmatpush.bf16.msra.mxu2 %v8625_v19 }
 0x2f8   : > { %3616 = vst.msk [vmem:[#allocation3 + $0x6c] sm:$0xf] %vm13144_vm0, %v3545_v33  ;;  %v6033_v10 = vshll.u32 %v5974_v30, 16  ;;  %v6037_v55 = vshrl.u32 %v5974_v30, 16  ;;  %v5575_v53 = vshrl.u32 %v5519_v61, 16  ;;  %8072 = vmatmul.msk.bf16.gmra.mxu0 %vm13145_vm12, %v8555_v50  ;;  %8105 = vmatmul.msk.bf16.gmra.mxu2 %vm13146_vm5, %v8555_v50  ;;  %vm13149_vm13 = vmmov %vm13146_vm5  ;;  %v5578_v1 = vshll.u32 %v5519_v61, 16 }
 0x2f9   : > { %4071 = vst.msk [vmem:[#allocation3 + $0x6c] sm:$0xf] %vm13132_vm3, %v11263_v15  ;;  %v5221_v41 = vadd.f32 %v11205_v4, %v5185_v29  ;;  %8201 = vmatmul.msk.bf16.gmra.mxu1 %vm13149_vm13, %v8576_v45  ;;  %v5573_v17 = vrot.slane %v5568_v31, 4  ;;  %v4840_v45 = vadd.f32 %v11235_v5, %v11280_v52  ;;  %vm13155_vm11 = vmmov %vm13148_vm8 }
 0x2fa   : > { %4498 = vst.msk [vmem:[#allocation3 + $0x6c] sm:$0xf] %vm13148_vm8, %v13147_v16  ;;  %v6035_v0 = vrot.slane %v6033_v10, 5  ;;  %v11347_v15 = vrot.slane %v5575_v53, 7  ;;  %v6039_v43 = vrot.slane %v6037_v55, 4  ;;  %v13154_v55 = vsel %vm8947_vm4, %v11000_v12, %v11002_v35  ;;  %vm13157_vm3 = vmmov %vm13144_vm0 }
 0x2fb   : > { %v11345_v33 = vpop.f32.mrf.mxu2  ;;  %v11349_v58 = vmax.f32 %v5221_v41, 0.0  ;;  %vm13160_vm8 = vmmov %vm13146_vm5 }
 0x2fc   : > { %v3547_v50 = vpop.permute.xlu0 %3546  ;;  %v6036_v20 = vsel %vm8947_vm4, %v6031_v21, %v6035_v0  ;;  %v5580_v42 = vor.u32 %v5578_v1, %v11347_v15  ;;  %v3553_v30 = vpop.permute.xlu2 %3552  ;;  %v6040_v49 = vor.u32 %v6039_v43, %v6035_v0  ;;  %vm13161_vm13 = vmmov %vm13146_vm5 }
 0x2fd   : > { %v5446_v29 = vpack.c.bf16 %v11349_v58, %v11349_v58  ;;  %3617 = vst.msk [vmem:[#allocation3 + $0x70] sm:$0xf] %vm13150_vm14, %v3547_v50  ;;  %6328 = vrot.lane.b32.xlu0 %v6036_v20, %s8757_s29  ;;  %v11361_v51 = vpop.f32.mrf.mxu0  ;;  %vm13162_vm14 = vmmov %vm13144_vm0 }
 0x2fe   : > { %4072 = vst.msk [vmem:[#allocation3 + $0x70] sm:$0xf] %vm13151_vm9, %v3995_v62  ;;  %v5113_v61 = vpop.f32.mrf.mxu1  ;;  %v5581_v31 = vsel %vm9212_vm7, %v5573_v17, %v5580_v42  ;;  %v8602_v62 = vld [vmem:[%s12494_s3 + $0x8] sm:$0xff]  ;;  %v6041_v1 = vrot.slane %v6040_v49, 4  ;;  %v3941_v17 = vrot.slane %v11140_v2, 4 }
 0x2ff   : > { %5488 = vst.msk [vmem:[#allocation4 + $0x18] sm:$0xf] %vm13152_vm1, %v5446_v29  ;;  %v5186_v5 = vadd.f32 %v5113_v61, %v4840_v45  ;;  %5841 = vrot.lane.b32.xlu2 %v5581_v31, %s8755_s20  ;;  %v5975_v19 = vsel %vm8990_vm15, %v5446_v29, 0  ;;  %v5520_v10 = vsel %vm8882_vm6, %v5446_v29, 0  ;;  %6772 = vmatpush.bf16.msra.mxu0 %v8602_v62  ;;  %v4843_v45 = vadd.f32 %v11261_v22, %v11316_v24  ;;  %vm13156_vm15 = vmmov %vm13144_vm0 }
 0x300   : > { %4499 = vst.msk [vmem:[#allocation3 + $0x70] sm:$0xf] %vm13155_vm11, %v13154_v55  ;;  %v6043_v53 = vshll.u32 %v5975_v19, 16  ;;  %v6047_v41 = vshrl.u32 %v5975_v19, 16  ;;  %v5584_v21 = vshrl.u32 %v5520_v10, 16  ;;  %v5587_v31 = vshll.u32 %v5520_v10, 16  ;;  %vm13163_vm1 = vmmov %vm13144_vm0 }
 0x301   : > { %3620 = vst.msk [vmem:[#allocation3 + $0x7c] sm:$0xf] %vm13144_vm0, %v3553_v30  ;;  %v5222_v16 = vadd.f32 %v11205_v4, %v5186_v5  ;;  %v8556_v22 = vld [vmem:[#allocation3 + $0x68] sm:$0xff]  ;;  %vm13167_vm0 = vcmask 388352  }
 0x302   : > { %v6045_v43 = vrot.slane %v6043_v53, 5  ;;  %v6049_v50 = vrot.slane %v6047_v41, 4  ;;  %v5586_v42 = vrot.slane %v5584_v21, 7  ;;  %v13158_v5 = vld [vmem:[#allocation21_spill] sm:$0xff] }
 0x303   : > { %v11382_v0 = vpop.f32.mrf.mxu2  ;;  %v11384_v20 = vmax.f32 %v5222_v16, 0.0  ;;  %vm13159_vm12 = vnez %v13158_v5  ;;  %v8577_v19 = vld [vmem:[#allocation3 + $0x68] sm:$0xff] }
 0x304   : > { %v3549_v12 = vpop.permute.xlu1 %3548  ;;  %v6046_v35 = vsel %vm8947_vm4, %v6041_v1, %v6045_v43  ;;  %v6050_v30 = vor.u32 %v6049_v50, %v6045_v43  ;;  %v5589_v62 = vor.u32 %v5587_v31, %v5586_v42 }
 0x305   : > { %v5447_v29 = vpack.c.bf16 %v11384_v20, %v11384_v20  ;;  %3618 = vst.msk [vmem:[#allocation3 + $0x74] sm:$0xf] %vm13156_vm15, %v3549_v12  ;;  %6330 = vrot.lane.b32.xlu1 %v6046_v35, %s8757_s29  ;;  %4006 = vrot.lane.b32.xlu0 %v3941_v17, %s8756_s21  ;;  %v11396_v61 = vpop.f32.mrf.mxu0  ;;  %vm13168_vm15 = vmmov %vm13163_vm1  ;;  %s8708_s21 = scalar_lea.hbm %s12498_s7, 512 }
 0x306   : > { %v5116_v2 = vpop.f32.mrf.mxu1  ;;  %v6051_v21 = vrot.slane %v6050_v30, 4  ;;  %v4845_v30 = vadd.f32 %v11298_v27, %v11361_v51  ;;  %v13164_v51 = vld [vmem:[#allocation11_spill] sm:$0xff] }
 0x307   : > { %5489 = vst.msk [vmem:[#allocation4 + $0x1c] sm:$0xf] %vm13157_vm3, %v5447_v29  ;;  %v5187_v49 = vadd.f32 %v5116_v2, %v4843_v45  ;;  %6322 = vrot.lane.b32.xlu2 %v11233_v59, %s8757_s29  ;;  %v5976_v24 = vsel %vm8882_vm6, %v5447_v29, 0  ;;  %v5521_v52 = vsel %vm13159_vm12, %v5447_v29, 0  ;;  %v5582_v59 = vrot.slane %v11347_v15, 4  ;;  %vm13169_vm3 = vmmov %vm13151_vm9 }
 0x308   : > { %v6053_v55 = vshll.u32 %v5976_v24, 16  ;;  %v6057_v53 = vshrl.u32 %v5976_v24, 16  ;;  %v5593_v41 = vshrl.u32 %v5521_v52, 16  ;;  %8073 = vmatmul.msk.bf16.gmra.mxu0 %vm13146_vm5, %v8556_v22  ;;  %8106 = vmatmul.msk.bf16.gmra.mxu2 %vm13160_vm8, %v8556_v22  ;;  %v5596_v50 = vshll.u32 %v5521_v52, 16  ;;  %vm13170_vm12 = vmmov %vm13163_vm1 }
 0x309   : > { %v5223_v10 = vadd.f32 %v11205_v4, %v5187_v49  ;;  %8202 = vmatmul.msk.bf16.gmra.mxu1 %vm13161_vm13, %v8577_v19  ;;  %v5590_v45 = vsel %vm9212_vm7, %v5582_v59, %v5589_v62  ;;  %v5591_v2 = vrot.slane %v5586_v42, 4  ;;  %vm13165_vm11 = vnez %v13164_v51  ;;  %vm13174_vm8 = vmmov %vm13167_vm0 }
 0x30a   : > { %v6055_v1 = vrot.slane %v6053_v55, 5  ;;  %v5595_v43 = vrot.slane %v5593_v41, 7  ;;  %v6059_v17 = vrot.slane %v6057_v53, 4  ;;  %v13166_v55 = vsel %vm8947_vm4, %v11047_v3, %v11049_v57 }
 0x30b   : > { %v11410_v16 = vpop.f32.mrf.mxu2  ;;  %v11412_v12 = vmax.f32 %v5223_v10, 0.0 }
 0x30c   : > { %v3551_v35 = vpop.permute.xlu1 %3550  ;;  %v6056_v29 = vsel %vm8947_vm4, %v6051_v21, %v6055_v1  ;;  %v5598_v15 = vor.u32 %v5596_v50, %v5595_v43  ;;  %v3997_v49 = vpop.permute.xlu0 %3996  ;;  %v6060_v24 = vor.u32 %v6059_v17, %v6055_v1  ;;  %v5600_v57 = vrot.slane %v5595_v43, 4 }
 0x30d   : > { %v5448_v31 = vpack.c.bf16 %v11412_v12, %v11412_v12  ;;  %3619 = vst.msk [vmem:[#allocation3 + $0x78] sm:$0xf] %vm13162_vm14, %v3551_v35  ;;  %5843 = vrot.lane.b32.xlu1 %v5590_v45, %s8755_s20  ;;  %v3557_v22 = vpop.permute.xlu2 %3556  ;;  %6332 = vrot.lane.b32.xlu0 %v6056_v29, %s8757_s29  ;;  %v4734_v5 = vpop.f32.mrf.mxu0  ;;  %vm13175_vm14 = vmmov %vm13161_vm13 }
 0x30e   : > { %4073 = vst.msk [vmem:[#allocation3 + $0x74] sm:$0xf] %vm13151_vm9, %v3997_v49  ;;  %v5118_v42 = vpop.f32.mrf.mxu1  ;;  %v5599_v52 = vsel %vm9212_vm7, %v5591_v2, %v5598_v15  ;;  %v6061_v21 = vrot.slane %v6060_v24, 4  ;;  %v4848_v15 = vadd.f32 %v11345_v33, %v11396_v61  ;;  %vm13176_vm9 = vmmov %vm13161_vm13 }
 0x30f   : > { %5490 = vst.msk [vmem:[#allocation4 + $0x20] sm:$0xf] %vm13163_vm1, %v5448_v31  ;;  %v5188_v27 = vadd.f32 %v5118_v42, %v4845_v30  ;;  %5845 = vrot.lane.b32.xlu2 %v5599_v52, %s8755_s20  ;;  %v5977_v19 = vsel %vm13165_vm11, %v5448_v31, 0  ;;  %v5522_v62 = vsel %vm8882_vm6, %v5448_v31, 0  ;;  %vm13177_vm1 = vmmov %vm13169_vm3 }
 0x310   : > { %4500 = vst.msk [vmem:[#allocation3 + $0x74] sm:$0xf] %vm13167_vm0, %v13166_v55  ;;  %v6063_v53 = vshll.u32 %v5977_v19, 16  ;;  %v6067_v41 = vshrl.u32 %v5977_v19, 16  ;;  %v5602_v10 = vshrl.u32 %v5522_v62, 16  ;;  %v5605_v35 = vshll.u32 %v5522_v62, 16  ;;  %vm13179_vm11 = vmmov %vm13167_vm0 }
 0x311   : > { %3622 = vst.msk [vmem:[#allocation3 + $0x84] sm:$0xf] %vm13168_vm15, %v3557_v22  ;;  %v5224_v59 = vadd.f32 %v11205_v4, %v5188_v27  ;;  %v13171_v27 = vld [vmem:[#allocation22_spill] sm:$0xff]  ;;  %v13173_v19 = vsel %vm8947_vm4, %v11083_v14, %v11085_v34  ;;  %vm13180_vm0 = vmmov %vm13170_vm12 }
 0x312   : > { %v6065_v50 = vrot.slane %v6063_v53, 5  ;;  %v5604_v17 = vrot.slane %v5602_v10, 7  ;;  %v6069_v45 = vrot.slane %v6067_v41, 4  ;;  %vm13172_vm5 = vnez %v13171_v27 }
 0x313   : > { %v11442_v1 = vpop.f32.mrf.mxu2  ;;  %v11444_v29 = vmax.f32 %v5224_v59, 0.0 }
 0x314   : > { %v6066_v3 = vsel %vm8947_vm4, %v6061_v21, %v6065_v50  ;;  %v5607_v2 = vor.u32 %v5605_v35, %v5604_v17  ;;  %v3999_v31 = vpop.permute.xlu0 %3998  ;;  %v6070_v49 = vor.u32 %v6069_v45, %v6065_v50 }
 0x315   : > { %v5449_v30 = vpack.c.bf16 %v11444_v29, %v11444_v29  ;;  %6334 = vrot.lane.b32.xlu1 %v6066_v3, %s8757_s29  ;;  %4074 = vst.msk [vmem:[#allocation3 + $0x78] sm:$0xf] %vm13169_vm3, %v3999_v31  ;;  %v4737_v22 = vpop.f32.mrf.mxu0  ;;  %vm13183_vm3 = vmmov %vm13180_vm0 }
 0x316   : > { %v5121_v24 = vpop.f32.mrf.mxu1  ;;  %v5608_v42 = vsel %vm9212_vm7, %v5600_v57, %v5607_v2  ;;  %4501 = vst.msk [vmem:[#allocation3 + $0x78] sm:$0xf] %vm13174_vm8, %v13173_v19  ;;  %v6071_v10 = vrot.slane %v6070_v49, 4  ;;  %v5609_v57 = vrot.slane %v5604_v17, 4  ;;  %v13178_v49 = vsel %vm8947_vm4, %v11113_v60, %v11111_v63 }
 0x317   : > { %5491 = vst.msk [vmem:[#allocation4 + $0x24] sm:$0xf] %vm13170_vm12, %v5449_v30  ;;  %v5189_v43 = vadd.f32 %v5121_v24, %v4848_v15  ;;  %5847 = vrot.lane.b32.xlu2 %v5608_v42, %s8755_s20  ;;  %v8557_v33 = vld [vmem:[#allocation3 + $0x70] sm:$0xff]  ;;  %v5978_v52 = vsel %vm8882_vm6, %v5449_v30, 0  ;;  %v5523_v51 = vsel %vm13172_vm5, %v5449_v30, 0  ;;  %v4850_v15 = vadd.f32 %v11382_v0, %v4734_v5  ;;  %v13181_v42 = vld [vmem:[#allocation12_spill] sm:$0xff]  ;;  %vm13184_vm12 = vmmov %vm13177_vm1 }
 0x318   : > { %v8578_v61 = vld [vmem:[#allocation3 + $0x70] sm:$0xff]  ;;  %v6073_v62 = vshll.u32 %v5978_v52, 16  ;;  %v6077_v55 = vshrl.u32 %v5978_v52, 16  ;;  %v5611_v53 = vshrl.u32 %v5523_v51, 16  ;;  %8074 = vmatmul.msk.bf16.gmra.mxu0 %vm13161_vm13, %v8557_v33  ;;  %8107 = vmatmul.msk.bf16.gmra.mxu2 %vm13175_vm14, %v8557_v33  ;;  %v5614_v35 = vshll.u32 %v5523_v51, 16  ;;  %vm13185_vm5 = vmmov %vm13180_vm0 }
 0x319   : > { %v5225_v41 = vadd.f32 %v11205_v4, %v5189_v43  ;;  %8203 = vmatmul.msk.bf16.gmra.mxu1 %vm13176_vm9, %v8578_v61  ;;  %vm13182_vm15 = vnez %v13181_v42  ;;  %v13188_v42 = vsel %vm8947_vm4, %v11143_v56, %v11138_v7  ;;  %vm13189_vm13 = vmmov %vm13179_vm11 }
 0x31a   : > { %v6075_v21 = vrot.slane %v6073_v62, 5  ;;  %v5613_v50 = vrot.slane %v5611_v53, 7  ;;  %v6079_v14 = vrot.slane %v6077_v55, 4  ;;  %vm13190_vm14 = vmmov %vm13176_vm9 }
 0x31b   : > { %v11472_v59 = vpop.f32.mrf.mxu2  ;;  %v11474_v34 = vmax.f32 %v5225_v41, 0.0 }
 0x31c   : > { %v4001_v45 = vpop.permute.xlu1 %4000  ;;  %v6076_v3 = vsel %vm8947_vm4, %v6071_v10, %v6075_v21  ;;  %v5616_v2 = vor.u32 %v5614_v35, %v5613_v50  ;;  %v6080_v31 = vor.u32 %v6079_v14, %v6075_v21  ;;  %v5618_v35 = vrot.slane %v5613_v50, 4 }
 0x31d   : > { %v5450_v30 = vpack.c.bf16 %v11474_v34, %v11474_v34  ;;  %4075 = vst.msk [vmem:[#allocation3 + $0x7c] sm:$0xf] %vm13177_vm1, %v4001_v45  ;;  %6336 = vrot.lane.b32.xlu1 %v6076_v3, %s8757_s29  ;;  %v4739_v24 = vpop.f32.mrf.mxu0  ;;  %v4003_v45 = vpop.permute.xlu2 %4002  ;;  %v4853_v3 = vadd.f32 %v11410_v16, %v4737_v22  ;;  %vm13191_vm1 = vmmov %vm13176_vm9 }
 0x31e   : > { %4502 = vst.msk [vmem:[#allocation3 + $0x7c] sm:$0xf] %vm13179_vm11, %v13178_v49  ;;  %v5123_v17 = vpop.f32.mrf.mxu1  ;;  %v5617_v0 = vsel %vm9212_vm7, %v5609_v57, %v5616_v2  ;;  %v6081_v27 = vrot.slane %v6080_v31, 4  ;;  %vm13192_vm11 = vmmov %vm13184_vm12 }
 0x31f   : > { %5492 = vst.msk [vmem:[#allocation4 + $0x28] sm:$0xf] %vm13180_vm0, %v5450_v30  ;;  %v5190_v5 = vadd.f32 %v5123_v17, %v4850_v15  ;;  %5849 = vrot.lane.b32.xlu0 %v5617_v0, %s8755_s20  ;;  %v5979_v43 = vsel %vm13182_vm15, %v5450_v30, 0  ;;  %v5524_v33 = vsel %vm8882_vm6, %v5450_v30, 0  ;;  %v4429_v17 = vshrl.u32 %v11135_v6, 16  ;;  %v13186_v0 = vld [vmem:[#allocation24_spill] sm:$0xff] }
 0x320   : > { %v6083_v61 = vshll.u32 %v5979_v43, 16  ;;  %v6087_v63 = vshrl.u32 %v5979_v43, 16  ;;  %v5620_v60 = vshrl.u32 %v5524_v33, 16  ;;  %v5623_v55 = vshll.u32 %v5524_v33, 16 }
 0x321   : > { %v5226_v52 = vadd.f32 %v11205_v4, %v5190_v5  ;;  %vm13187_vm8 = vnez %v13186_v0 }
 0x322   : > { %v6085_v19 = vrot.slane %v6083_v61, 5  ;;  %v5622_v62 = vrot.slane %v5620_v60, 7  ;;  %v6089_v53 = vrot.slane %v6087_v63, 4 }
 0x323   : > { %v11498_v51 = vpop.f32.mrf.mxu2  ;;  %v11500_v41 = vmax.f32 %v5226_v52, 0.0 }
 0x324   : > { %v3555_v10 = vpop.permute.xlu1 %3554  ;;  %v6086_v21 = vsel %vm8947_vm4, %v6081_v27, %v6085_v19  ;;  %v5625_v14 = vor.u32 %v5623_v55, %v5622_v62  ;;  %v6090_v15 = vor.u32 %v6089_v53, %v6085_v19  ;;  %v4431_v55 = vrot.slane %v4429_v17, 4 }
 0x325   : > { %v5451_v57 = vpack.c.bf16 %v11500_v41, %v11500_v41  ;;  %3621 = vst.msk [vmem:[#allocation3 + $0x80] sm:$0xf] %vm13183_vm3, %v3555_v10  ;;  %6338 = vrot.lane.b32.xlu2 %v6086_v21, %s8757_s29  ;;  %v8558_v2 = vld [vmem:[#allocation3 + $0x78] sm:$0xff]  ;;  %v4742_v30 = vpop.f32.mrf.mxu0  ;;  %vm13195_vm3 = vsmask.f32 3328 }
 0x326   : > { %4076 = vst.msk [vmem:[#allocation3 + $0x80] sm:$0xf] %vm13184_vm12, %v4003_v45  ;;  %v5126_v31 = vpop.f32.mrf.mxu1  ;;  %v5626_v50 = vsel %vm9212_vm7, %v5618_v35, %v5625_v14  ;;  %v8579_v49 = vld [vmem:[#allocation3 + $0x78] sm:$0xff]  ;;  %v6091_v63 = vrot.slane %v6090_v15, 4  ;;  %v5627_v35 = vrot.slane %v5622_v62, 4  ;;  %v4855_v45 = vadd.f32 %v11442_v1, %v4739_v24  ;;  %v13193_v1 = vld [vmem:[#allocation13_spill] sm:$0xff]  ;;  %vm13196_vm12 = vmmov %vm13189_vm13 }
 0x327   : > { %5493 = vst.msk [vmem:[#allocation4 + $0x2c] sm:$0xf] %vm13185_vm5, %v5451_v57  ;;  %v5191_v16 = vadd.f32 %v5126_v31, %v4853_v3  ;;  %5851 = vrot.lane.b32.xlu0 %v5626_v50, %s8755_s20  ;;  %v5980_v22 = vsel %vm8882_vm6, %v5451_v57, 0  ;;  %v5525_v5 = vsel %vm13187_vm8, %v5451_v57, 0  ;;  %v4432_v50 = vor.u32 %v4431_v55, %v11138_v7  ;;  %vm11552_vm5 = vmand %vm13196_vm12, %vm13195_vm3 }
 0x328   : > { %4503 = vst.msk [vmem:[#allocation3 + $0x80] sm:$0xf] %vm13189_vm13, %v13188_v42  ;;  %v6093_v43 = vshll.u32 %v5980_v22, 16  ;;  %v6097_v6 = vshrl.u32 %v5980_v22, 16  ;;  %v5629_v33 = vshrl.u32 %v5525_v5, 16  ;;  %8075 = vmatmul.msk.bf16.gmra.mxu0 %vm13190_vm14, %v8558_v2  ;;  %8108 = vmatmul.msk.bf16.gmra.mxu2 %vm13176_vm9, %v8558_v2  ;;  %v5632_v19 = vshll.u32 %v5525_v5, 16  ;;  %vm13200_vm8 = vmmov %vm13180_vm0 }
 0x329   : > { %v5227_v61 = vadd.f32 %v11205_v4, %v5191_v16  ;;  %8204 = vmatmul.msk.bf16.gmra.mxu1 %vm13191_vm1, %v8579_v49  ;;  %vm13194_vm15 = vnez %v13193_v1  ;;  %v13197_v7 = vmov 0  ;;  %vm13203_vm14 = vmmov %vm13180_vm0 }
 0x32a   : > { %v6095_v52 = vrot.slane %v6093_v43, 5  ;;  %v5631_v27 = vrot.slane %v5629_v33, 7  ;;  %v6099_v56 = vrot.slane %v6097_v6, 4  ;;  %v13198_v7 = vsel %vm11552_vm5, 4294967295, %v13197_v7  ;;  %vm13204_vm9 = vmmov %vm13191_vm1 }
 0x32b   : > { %v11529_v60 = vpop.f32.mrf.mxu2  ;;  %v11531_v53 = vmax.f32 %v5227_v61, 0.0  ;;  %13199 = vst [vmem:[#allocation41_spill] sm:$0xff] %v13198_v7  ;;  %v4433_v61 = vrot.slane %v4432_v50, 4  ;;  %vm13210_vm3 = vmmov %vm13180_vm0 }
 0x32c   : > { %v6096_v10 = vsel %vm8947_vm4, %v6091_v63, %v6095_v52  ;;  %v4005_v21 = vpop.permute.xlu0 %4004  ;;  %v5634_v14 = vor.u32 %v5632_v19, %v5631_v27  ;;  %v6100_v57 = vor.u32 %v6099_v56, %v6095_v52  ;;  %v5636_v55 = vrot.slane %v5631_v27, 4 }
 0x32d   : > { %v5452_v3 = vpack.c.bf16 %v11531_v53, %v11531_v53  ;;  %6340 = vrot.lane.b32.xlu2 %v6096_v10, %s8757_s29  ;;  %4077 = vst.msk [vmem:[#allocation3 + $0x84] sm:$0xf] %vm13192_vm11, %v4005_v21  ;;  %v4744_v2 = vpop.f32.mrf.mxu0  ;;  %v4858_v21 = vadd.f32 %v11472_v59, %v4742_v30  ;;  %v13201_v30 = vld [vmem:[#allocation27_spill] sm:$0xff]  ;;  %vm13207_vm11 = vmmov %vm13204_vm9 }
 0x32e   : > { %v5128_v15 = vpop.f32.mrf.mxu1  ;;  %v5635_v31 = vsel %vm9212_vm7, %v5627_v35, %v5634_v14  ;;  %v6101_v5 = vrot.slane %v6100_v57, 4  ;;  %vm13202_vm13 = vnez %v13201_v30 }
 0x32f   : > { %5494 = vst.msk [vmem:[#allocation4 + $0x30] sm:$0xf] %vm13180_vm0, %v5452_v3  ;;  %v5192_v62 = vadd.f32 %v5128_v15, %v4855_v45  ;;  %5853 = vrot.lane.b32.xlu1 %v5635_v31, %s8755_s20  ;;  %v5981_v24 = vsel %vm13194_vm15, %v5452_v3, 0  ;;  %v5526_v49 = vsel %vm8882_vm6, %v5452_v3, 0 }
 0x330   : > { %v6103_v17 = vshll.u32 %v5981_v24, 16  ;;  %v6107_v16 = vshrl.u32 %v5981_v24, 16  ;;  %v5638_v22 = vshrl.u32 %v5526_v49, 16  ;;  %v5641_v6 = vshll.u32 %v5526_v49, 16 }
 0x331   : > { %v5228_v0 = vadd.f32 %v11205_v4, %v5192_v62 }
 0x332   : > { %v6105_v42 = vrot.slane %v6103_v17, 5  ;;  %v5640_v43 = vrot.slane %v5638_v22, 7  ;;  %v6109_v33 = vrot.slane %v6107_v16, 4 }
 0x333   : > { %v11556_v63 = vmax.f32 %v5228_v0, 0.0  ;;  %v11558_v52 = vpop.f32.mrf.mxu2 }
 0x334   : > { %v4506_v19 = vld [vmem:[#allocation3 + $0x84] sm:$0xf]  ;;  %v6106_v56 = vsel %vm8947_vm4, %v6101_v5, %v6105_v42  ;;  %v5643_v10 = vor.u32 %v5641_v6, %v5640_v43  ;;  %v6110_v45 = vor.u32 %v6109_v33, %v6105_v42  ;;  %v5645_v6 = vrot.slane %v5640_v43, 4 }
 0x335   : > { %v4507_v35 = vsel %vm11552_vm5, %v4433_v61, %v4506_v19  ;;  %v5453_v14 = vpack.c.bf16 %v11556_v63, %v11556_v63  ;;  %6342 = vrot.lane.b32.xlu0 %v6106_v56, %s8757_s29  ;;  %v4747_v3 = vpop.f32.mrf.mxu0  ;;  %v4860_v61 = vadd.f32 %v11498_v51, %v4744_v2  ;;  %v13205_v51 = vld [vmem:[#allocation14_spill] sm:$0xff] }
 0x336   : > { %4508 = vst [vmem:[#allocation3 + $0x84] sm:$0xf] %v4507_v35  ;;  %v5131_v57 = vpop.f32.mrf.mxu1  ;;  %v5644_v15 = vsel %vm9212_vm7, %v5636_v55, %v5643_v10  ;;  %v6111_v49 = vrot.slane %v6110_v45, 4  ;;  %vm13206_vm1 = vnez %v13205_v51 }
 0x337   : > { %5495 = vst.msk [vmem:[#allocation4 + $0x34] sm:$0xf] %vm13200_vm8, %v5453_v14  ;;  %v5193_v27 = vadd.f32 %v5131_v57, %v4858_v21  ;;  %5855 = vrot.lane.b32.xlu1 %v5644_v15, %s8755_s20  ;;  %v5982_v59 = vsel %vm8882_vm6, %v5453_v14, 0  ;;  %v5527_v31 = vsel %vm13202_vm13, %v5453_v14, 0  ;;  %vm13213_vm8 = vmmov %vm13180_vm0 }
 0x338   : > { %v6113_v50 = vshll.u32 %v5982_v59, 16  ;;  %v6117_v62 = vshrl.u32 %v5982_v59, 16  ;;  %v5647_v1 = vshrl.u32 %v5527_v31, 16  ;;  %v5650_v22 = vshll.u32 %v5527_v31, 16 }
 0x339   : > { %v5229_v24 = vadd.f32 %v11205_v4, %v5193_v27 }
 0x33a   : > { %v6115_v17 = vrot.slane %v6113_v50, 5  ;;  %v5649_v16 = vrot.slane %v5647_v1, 7  ;;  %v6119_v0 = vrot.slane %v6117_v62, 4 }
 0x33b   : > { %v11577_v5 = vmax.f32 %v5229_v24, 0.0  ;;  %v11584_v56 = vpop.f32.mrf.mxu2 }
 0x33c   : > { %v6116_v42 = vsel %vm8947_vm4, %v6111_v49, %v6115_v17  ;;  %v5652_v33 = vor.u32 %v5650_v22, %v5649_v16  ;;  %v6120_v21 = vor.u32 %v6119_v0, %v6115_v17  ;;  %v5654_v22 = vrot.slane %v5649_v16, 4 }
 0x33d   : > { %v5454_v19 = vpack.c.bf16 %v11577_v5, %v11577_v5  ;;  %6344 = vrot.lane.b32.xlu0 %v6116_v42, %s8757_s29  ;;  %v8562_v55 = vld [vmem:[#allocation3 + $0x80] sm:$0xff]  ;;  %v4749_v35 = vpop.f32.mrf.mxu0  ;;  %v4863_v42 = vadd.f32 %v11529_v60, %v4747_v3 }
 0x33e   : > { %v8580_v10 = vld [vmem:[#allocation3 + $0x80] sm:$0xff]  ;;  %v5133_v14 = vpop.f32.mrf.mxu1  ;;  %v5653_v45 = vsel %vm9212_vm7, %v5645_v6, %v5652_v33  ;;  %8076 = vmatmul.msk.bf16.gmra.mxu0 %vm13204_vm9, %v8562_v55  ;;  %v6121_v31 = vrot.slane %v6120_v21, 4  ;;  %v8605_v21 = vld [vmem:[%s12494_s3 + $0x18] sm:$0xff]  ;;  %vm13217_vm9 = vcmask 388352  }
 0x33f   : > { %5496 = vst.msk [vmem:[#allocation4 + $0x38] sm:$0xf] %vm13203_vm14, %v5454_v19  ;;  %v5194_v43 = vadd.f32 %v5133_v14, %v4860_v61  ;;  %5857 = vrot.lane.b32.xlu2 %v5653_v45, %s8755_s20  ;;  %v5983_v2 = vsel %vm13206_vm1, %v5454_v19, 0  ;;  %v5528_v57 = vsel %vm8882_vm6, %v5454_v19, 0  ;;  %8205 = vmatmul.msk.bf16.gmra.mxu1 %vm13207_vm11, %v8580_v10  ;;  %v13208_v60 = vld [vmem:[#allocation28_spill] sm:$0xff]  ;;  %vm13216_vm14 = vnez %v12945_v38  ;;  %vm13219_vm11 = vmmov %vm13180_vm0 }
 0x340   : > { %v6123_v15 = vshll.u32 %v5983_v2, 16  ;;  %v6127_v27 = vshrl.u32 %v5983_v2, 16  ;;  %v5656_v59 = vshrl.u32 %v5528_v57, 16  ;;  %v5659_v1 = vshll.u32 %v5528_v57, 16  ;;  %6658 = vmatpush.bf16.msra.mxu3 %v8605_v21 }
 0x341   : > { %v5230_v30 = vadd.f32 %v11205_v4, %v5194_v43  ;;  %vm13209_vm15 = vnez %v13208_v60  ;;  %vm13218_vm1 = vcmask 125952  }
 0x342   : > { %v6125_v50 = vrot.slane %v6123_v15, 5  ;;  %v5658_v62 = vrot.slane %v5656_v59, 7  ;;  %v6129_v24 = vrot.slane %v6127_v27, 4  ;;  %v8601_v15 = vld [vmem:[%s12494_s3] sm:$0xff] }
 0x343   : > { %v11598_v49 = vmax.f32 %v5230_v30, 0.0  ;;  %v11617_v14 = vpop.f32.mrf.mxu2  ;;  %6773 = vmatpush.bf16.msra.mxu0 %v8601_v15 }
 0x344   : > { %v6126_v17 = vsel %vm8947_vm4, %v6121_v31, %v6125_v50  ;;  %v5661_v0 = vor.u32 %v5659_v1, %v5658_v62  ;;  %v6130_v33 = vor.u32 %v6129_v24, %v6125_v50  ;;  %v5663_v24 = vrot.slane %v5658_v62, 4  ;;  %v13211_v62 = vld [vmem:[#allocation15_spill] sm:$0xff] }
 0x345   : > { %v5455_v6 = vpack.c.bf16 %v11598_v49, %v11598_v49  ;;  %6346 = vrot.lane.b32.xlu1 %v6126_v17, %s8757_s29  ;;  %v4752_v61 = vpop.f32.mrf.mxu0  ;;  %vm13212_vm12 = vnez %v13211_v62 }
 0x346   : > { %v5136_v19 = vpop.f32.mrf.mxu1  ;;  %v5662_v55 = vsel %vm9212_vm7, %v5654_v22, %v5661_v0  ;;  %v6131_v57 = vrot.slane %v6130_v33, 4  ;;  %v4865_v22 = vadd.f32 %v11558_v52, %v4749_v35 }
 0x347   : > { %5497 = vst.msk [vmem:[#allocation4 + $0x3c] sm:$0xf] %vm13180_vm0, %v5455_v6  ;;  %v5195_v10 = vadd.f32 %v5136_v19, %v4863_v42  ;;  %5859 = vrot.lane.b32.xlu2 %v5662_v55, %s8755_s20  ;;  %v5984_v16 = vsel %vm8882_vm6, %v5455_v6, 0  ;;  %v5529_v3 = vsel %vm13209_vm15, %v5455_v6, 0  ;;  %v6325_v21 = vpop.permute.xlu2 %6324  ;;  %vm13220_vm0 = vnez %v12954_v13  ;;  %vm13221_vm15 = vmmov %vm13218_vm1 }
 0x348   : > { %v6133_v45 = vshll.u32 %v5984_v16, 16  ;;  %v6137_v43 = vshrl.u32 %v5984_v16, 16  ;;  %v5665_v51 = vshrl.u32 %v5529_v3, 16  ;;  %v5668_v30 = vshll.u32 %v5529_v3, 16  ;;  %v8624_v3 = vld [vmem:[%s12494_s3 + $0x30] sm:$0xff] }
 0x349   : > { %v5231_v2 = vadd.f32 %v11205_v4, %v5195_v10  ;;  %7047 = vmatpush.bf16.msra.mxu2 %v8624_v3 }
 0x34a   : > { %v6135_v27 = vrot.slane %v6133_v45, 5  ;;  %v5667_v59 = vrot.slane %v5665_v51, 7  ;;  %v6139_v31 = vrot.slane %v6137_v43, 4 }
 0x34b   : > { %v11623_v50 = vmax.f32 %v5231_v2, 0.0  ;;  %v11643_v51 = vpop.f32.mrf.mxu2 }
 0x34c   : > { %v6136_v1 = vsel %vm8947_vm4, %v6131_v57, %v6135_v27  ;;  %v5670_v17 = vor.u32 %v5668_v30, %v5667_v59  ;;  %v6140_v42 = vor.u32 %v6139_v31, %v6135_v27 }
 0x34d   : > { %v5456_v0 = vpack.c.bf16 %v11623_v50, %v11623_v50  ;;  %6348 = vrot.lane.b32.xlu1 %v6136_v1, %s8757_s29  ;;  %v4754_v6 = vpop.f32.mrf.mxu0  ;;  %v5672_v1 = vrot.slane %v5667_v59, 4  ;;  %v5934_v59 = vld [vmem:[#allocation4 + $0x8] sm:$0xf] }
 0x34e   : > { %v5138_v33 = vpop.f32.mrf.mxu1  ;;  %v5671_v19 = vsel %vm9212_vm7, %v5663_v24, %v5670_v17  ;;  %v6141_v43 = vrot.slane %v6140_v42, 4  ;;  %v4868_v17 = vadd.f32 %v11584_v56, %v4752_v61  ;;  %v13214_v61 = vld [vmem:[#allocation30_spill] sm:$0xff] }
 0x34f   : > { %5498 = vst.msk [vmem:[#allocation4 + $0x40] sm:$0xf] %vm13210_vm3, %v5456_v0  ;;  %v5196_v55 = vadd.f32 %v5138_v33, %v4865_v22  ;;  %5861 = vrot.lane.b32.xlu0 %v5671_v19, %s8755_s20  ;;  %v5985_v10 = vsel %vm13212_vm12, %v5456_v0, 0  ;;  %v5530_v52 = vsel %vm8882_vm6, %v5456_v0, 0  ;;  %vm13215_vm13 = vnez %v13214_v61  ;;  %vm13224_vm12 = vmmov %vm13213_vm8 }
 0x350   : > { %v6143_v35 = vshll.u32 %v5985_v10, 16  ;;  %v6147_v16 = vshrl.u32 %v5985_v10, 16  ;;  %v5674_v60 = vshrl.u32 %v5530_v52, 16  ;;  %v5677_v15 = vshll.u32 %v5530_v52, 16 }
 0x351   : > { %v5232_v45 = vadd.f32 %v11205_v4, %v5196_v55 }
 0x352   : > { %v6145_v2 = vrot.slane %v6143_v35, 5  ;;  %v5676_v57 = vrot.slane %v5674_v60, 7  ;;  %v6149_v27 = vrot.slane %v6147_v16, 4  ;;  %v11668_v60 = vld [vmem:[%s12496_s5] ss:$0 sm:$0xff] }
 0x353   : > { %v11645_v30 = vmax.f32 %v5232_v45, 0.0 }
 0x354   : > { %v6146_v31 = vsel %vm8947_vm4, %v6141_v43, %v6145_v2  ;;  %v5679_v24 = vor.u32 %v5677_v15, %v5676_v57  ;;  %v6150_v22 = vor.u32 %v6149_v27, %v6145_v2 }
 0x355   : > { %v5457_v4 = vpack.c.bf16 %v11645_v30, %v11645_v30  ;;  %6350 = vrot.lane.b32.xlu2 %v6146_v31, %s8757_s29  ;;  %v11653_v0 = vpop.f32.mrf.mxu0 }
 0x356   : > { %v5141_v42 = vpop.f32.mrf.mxu1  ;;  %v5680_v33 = vsel %vm9212_vm7, %v5672_v1, %v5679_v24  ;;  %v6151_v43 = vrot.slane %v6150_v22, 4  ;;  %v11675_v1 = vpop.f32.mrf.mxu2 }
 0x357   : > { %5499 = vst.msk [vmem:[#allocation4 + $0x44] sm:$0xf] %vm13213_vm8, %v5457_v4  ;;  %v5197_v19 = vadd.f32 %v5141_v42, %v4868_v17  ;;  %5863 = vrot.lane.b32.xlu0 %v5680_v33, %s8755_s20  ;;  %v5986_v56 = vsel %vm8882_vm6, %v5457_v4, 0  ;;  %v5531_v62 = vsel %vm13215_vm13, %v5457_v4, 0  ;;  %v5681_v17 = vrot.slane %v5676_v57, 4  ;;  %vm13225_vm8 = vmmov %vm13217_vm9 }
 0x358   : > { %v5836_v55 = vpop.permute.xlu0 %5835  ;;  %v6153_v52 = vshll.u32 %v5986_v56, 16  ;;  %v6157_v35 = vshrl.u32 %v5986_v56, 16  ;;  %v5683_v16 = vshrl.u32 %v5531_v62, 16  ;;  %v5686_v27 = vshll.u32 %v5531_v62, 16  ;;  %v6421_v57 = vld [vmem:[#allocation4 + $0x4] sm:$0x8]  ;;  %vm13226_vm13 = vmmov %vm13218_vm1 }
 0x359   : > { %v5935_v10 = vsel %vm13216_vm14, %v5836_v55, %v5934_v59  ;;  %v5233_v3 = vadd.f32 %v11668_v60, %v5197_v19  ;;  %v5842_v45 = vpop.permute.xlu2 %5841  ;;  %v4870_v42 = vadd.f32 %v11617_v14, %v4754_v6  ;;  %vm13227_vm14 = vmmov %vm13218_vm1 }
 0x35a   : > { %5936 = vst [vmem:[#allocation4 + $0x8] sm:$0xf] %v5935_v10  ;;  %v6155_v2 = vrot.slane %v6153_v52, 5  ;;  %v5685_v15 = vrot.slane %v5683_v16, 7  ;;  %v6159_v38 = vrot.slane %v6157_v35, 4 }
 0x35b   : > { %6424 = vst.msk [vmem:[#allocation4 + $0x8] sm:$0xf] %vm13217_vm9, %v6325_v21  ;;  %v11672_v31 = vmax.f32 %v5233_v3, 0.0  ;;  %vm13229_vm9 = vmmov %vm13219_vm11 }
 0x35c   : > { %5939 = vst.msk [vmem:[#allocation4 + $0x14] sm:$0xf] %vm13218_vm1, %v5842_v45  ;;  %v6156_v24 = vsel %vm8947_vm4, %v6151_v43, %v6155_v2  ;;  %v5688_v4 = vor.u32 %v5686_v27, %v5685_v15  ;;  %v6160_v22 = vor.u32 %v6159_v38, %v6155_v2  ;;  %v13222_v45 = vld [vmem:[#allocation72_spill] sm:$0xff]  ;;  %vm13230_vm1 = vnez %v12969_v48 }
 0x35d   : > { %v5458_v21 = vpack.c.bf16 %v11672_v31, %v11672_v31  ;;  %6352 = vrot.lane.b32.xlu2 %v6156_v24, %s8757_s29  ;;  %v4759_v33 = vpop.f32.mrf.mxu0  ;;  %vm13223_vm3 = vnez %v13222_v45 }
 0x35e   : > { %v5143_v19 = vpop.f32.mrf.mxu1  ;;  %v5689_v59 = vsel %vm9212_vm7, %v5681_v17, %v5688_v4  ;;  %v6161_v16 = vrot.slane %v6160_v22, 4  ;;  %v5690_v17 = vrot.slane %v5685_v15, 4  ;;  %v4873_v22 = vadd.f32 %v11643_v51, %v11653_v0 }
 0x35f   : > { %5500 = vst.msk [vmem:[#allocation4 + $0x48] sm:$0xf] %vm13219_vm11, %v5458_v21  ;;  %v5198_v55 = vadd.f32 %v5143_v19, %v4870_v42  ;;  %5865 = vrot.lane.b32.xlu1 %v5689_v59, %s8755_s20  ;;  %v5987_v14 = vsel %vm13220_vm0, %v5458_v21, 0  ;;  %v5532_v6 = vsel %vm8882_vm6, %v5458_v21, 0  ;;  %v11704_v19 = vpop.f32.mrf.mxu2  ;;  %vm13231_vm11 = vmmov %vm13225_vm8 }
 0x360   : > { %v6163_v56 = vshll.u32 %v5987_v14, 16  ;;  %v6167_v61 = vshrl.u32 %v5987_v14, 16  ;;  %v5692_v62 = vshrl.u32 %v5532_v6, 16  ;;  %v5695_v3 = vshll.u32 %v5532_v6, 16 }
 0x361   : > { %v5234_v10 = vadd.f32 %v11668_v60, %v5198_v55  ;;  %v5838_v52 = vpop.permute.xlu1 %5837  ;;  %v6323_v35 = vpop.permute.xlu2 %6322 }
 0x362   : > { %5937 = vst.msk [vmem:[#allocation4 + $0xc] sm:$0xf] %vm13221_vm15, %v5838_v52  ;;  %v6422_v43 = vsel %vm13223_vm3, %v6323_v35, %v6421_v57  ;;  %v6165_v2 = vrot.slane %v6163_v56, 5  ;;  %v5694_v13 = vrot.slane %v5692_v62, 7  ;;  %v6169_v27 = vrot.slane %v6167_v61, 4  ;;  %vm13233_vm15 = vmmov %vm13226_vm13 }
 0x363   : > { %v11695_v38 = vmax.f32 %v5234_v10, 0.0  ;;  %6423 = vst [vmem:[#allocation4 + $0x4] sm:$0x8] %v6422_v43  ;;  %vm4078_vm3 = vcmask 122880  }
 0x364   : > { %v6166_v24 = vsel %vm8947_vm4, %v6161_v16, %v6165_v2  ;;  %v5697_v4 = vor.u32 %v5695_v3, %v5694_v13  ;;  %v6170_v21 = vor.u32 %v6169_v27, %v6165_v2 }
 0x365   : > { %v5459_v42 = vpack.c.bf16 %v11695_v38, %v11695_v38  ;;  %6354 = vrot.lane.b32.xlu0 %v6166_v24, %s8757_s29  ;;  %v4762_v59 = vpop.f32.mrf.mxu0  ;;  %v5699_v24 = vrot.slane %v5694_v13, 4 }
 0x366   : > { %v5698_v55 = vsel %vm9212_vm7, %v5690_v17, %v5697_v4  ;;  %v5146_v57 = vpop.f32.mrf.mxu1  ;;  %v6171_v52 = vrot.slane %v6170_v21, 4  ;;  %v4875_v4 = vadd.f32 %v11675_v1, %v4759_v33 }
 0x367   : > { %5501 = vst.msk [vmem:[#allocation4 + $0x4c] sm:$0xf] %vm13224_vm12, %v5459_v42  ;;  %5867 = vrot.lane.b32.xlu1 %v5698_v55, %s8755_s20  ;;  %v6327_v15 = vpop.permute.xlu0 %6326  ;;  %v5988_v14 = vsel %vm8882_vm6, %v5459_v42, 0  ;;  %v5533_v6 = vsel %vm12966_vm10, %v5459_v42, 0  ;;  %v5199_v56 = vadd.f32 %v5146_v57, %v4873_v22  ;;  %vm13228_vm10 = vcmask 392192   ;;  %v4879_v13 = vpop.f32.mrf.mxu2 }
 0x368   : > { %6425 = vst.msk [vmem:[#allocation4 + $0xc] sm:$0xf] %vm13225_vm8, %v6327_v15  ;;  %v6173_v51 = vshll.u32 %v5988_v14, 16  ;;  %v6177_v0 = vshrl.u32 %v5988_v14, 16  ;;  %v5701_v61 = vshrl.u32 %v5533_v6, 16  ;;  %v5704_v35 = vshll.u32 %v5533_v6, 16  ;;  %vm13232_vm0 = vmmov %vm13228_vm10 }
 0x369   : > { %v5840_v62 = vpop.permute.xlu1 %5839  ;;  %v5846_v10 = vpop.permute.xlu2 %5845  ;;  %v5235_v16 = vadd.f32 %v11668_v60, %v5199_v56  ;;  %vm13234_vm12 = vsmask.f32 256 }
 0x36a   : > { %5938 = vst.msk [vmem:[#allocation4 + $0x10] sm:$0xf] %vm13226_vm13, %v5840_v62  ;;  %v6175_v3 = vrot.slane %v6173_v51, 5  ;;  %v8585_v45 = vld [vmem:[#allocation4] sm:$0xff]  ;;  %v5703_v43 = vrot.slane %v5701_v61, 7  ;;  %v6179_v2 = vrot.slane %v6177_v0, 4  ;;  %vm11750_vm8 = vmand %vm4078_vm3, %vm13234_vm12 }
 0x36b   : > { %5941 = vst.msk [vmem:[#allocation4 + $0x1c] sm:$0xf] %vm13227_vm14, %v5846_v10  ;;  %v11718_v46 = vmax.f32 %v5235_v16, 0.0  ;;  %8321 = vmatmul.msk.bf16.vlgmr.msra.gmra.mxu0 %vm13228_vm10, %v8585_v45  ;;  %vm13238_vm13 = vmmov %vm13229_vm9  ;;  %vm13239_vm14 = vnez %v12977_v37 }
 0x36c   : > { %v6176_v27 = vsel %vm8947_vm4, %v6171_v52, %v6175_v3  ;;  %v5706_v17 = vor.u32 %v5704_v35, %v5703_v43  ;;  %v6180_v55 = vor.u32 %v6179_v2, %v6175_v3  ;;  %v5708_v2 = vrot.slane %v5703_v43, 4  ;;  %vm13240_vm10 = vmmov %vm13231_vm11 }
 0x36d   : > { %6356 = vrot.lane.b32.xlu0 %v6176_v27, %s8757_s29  ;;  %v5460_v42 = vpack.c.bf16 %v11718_v46, %v11718_v46  ;;  %v11727_v21 = vpop.f32.mrf.mxu0 }
 0x36e   : > { %v5707_v22 = vsel %vm9212_vm7, %v5699_v24, %v5706_v17  ;;  %v5148_v57 = vpop.f32.mrf.mxu1  ;;  %v6181_v10 = vrot.slane %v6180_v55, 4  ;;  %v4878_v24 = vadd.f32 %v11704_v19, %v4762_v59 }
 0x36f   : > { %5869 = vrot.lane.b32.xlu2 %v5707_v22, %s8755_s20  ;;  %v6329_v15 = vpop.permute.xlu0 %6328  ;;  %v8586_v14 = vld [vmem:[#allocation4 + $0x8] sm:$0xff]  ;;  %5502 = vst.msk [vmem:[#allocation4 + $0x50] sm:$0xf] %vm13229_vm9, %v5460_v42  ;;  %v5200_v6 = vadd.f32 %v5148_v57, %v4875_v4  ;;  %v5989_v1 = vsel %vm13230_vm1, %v5460_v42, 0  ;;  %v5534_v33 = vsel %vm8882_vm6, %v5460_v42, 0  ;;  %v13235_v4 = vmov 0  ;;  %vm13241_vm9 = vmmov %vm13232_vm0 }
 0x370   : > { %6426 = vst.msk [vmem:[#allocation4 + $0x10] sm:$0xf] %vm13231_vm11, %v6329_v15  ;;  %8289 = vmatmul.msk.bf16.vlgmr.msra.gmra.mxu3 %vm13232_vm0, %v8586_v14  ;;  %v6183_v51 = vshll.u32 %v5989_v1, 16  ;;  %v6187_v0 = vshrl.u32 %v5989_v1, 16  ;;  %v5710_v61 = vshrl.u32 %v5534_v33, 16  ;;  %v5713_v35 = vshll.u32 %v5534_v33, 16  ;;  %vm13242_vm1 = vmmov %vm13238_vm13 }
 0x371   : > { %v5848_v56 = vpop.permute.xlu2 %5847  ;;  %v5236_v62 = vadd.f32 %v11668_v60, %v5200_v6  ;;  %v13236_v4 = vsel %vm11750_vm8, 4294967295, %v13235_v4  ;;  %v4080_v42 = vld [vmem:[#allocation3 + $0x88] sm:$0x1]  ;;  %vm13243_vm11 = vnez %v12987_v32  ;;  %vm13244_vm0 = vmmov %vm13233_vm15 }
 0x372   : > { %5942 = vst.msk [vmem:[#allocation4 + $0x20] sm:$0xf] %vm13233_vm15, %v5848_v56  ;;  %v6185_v52 = vrot.slane %v6183_v51, 5  ;;  %v5712_v48 = vrot.slane %v5710_v61, 7  ;;  %v6189_v16 = vrot.slane %v6187_v0, 4  ;;  %v4882_v61 = vpop.f32.mrf.mxu2  ;;  %vm13245_vm15 = vmmov %vm13240_vm10 }
 0x373   : > { %v11741_v3 = vmax.f32 %v5236_v62, 0.0  ;;  %13237 = vst [vmem:[#allocation40_spill] sm:$0xff] %v13236_v4  ;;  %vm13246_vm3 = vmmov %vm13241_vm9 }
 0x374   : > { %v6186_v45 = vsel %vm8947_vm4, %v6181_v10, %v6185_v52  ;;  %v5715_v27 = vor.u32 %v5713_v35, %v5712_v48  ;;  %v6190_v22 = vor.u32 %v6189_v16, %v6185_v52  ;;  %vm13247_vm12 = vmmov %vm13246_vm3 }
 0x375   : > { %v5461_v17 = vpack.c.bf16 %v11741_v3, %v11741_v3  ;;  %6358 = vrot.lane.b32.xlu1 %v6186_v45, %s8757_s29  ;;  %v4767_v19 = vpop.f32.mrf.mxu0 }
 0x376   : > { %v5151_v55 = vpop.f32.mrf.mxu1  ;;  %v5716_v43 = vsel %vm9212_vm7, %v5708_v2, %v5715_v27  ;;  %v6191_v10 = vrot.slane %v6190_v22, 4  ;;  %v5717_v27 = vrot.slane %v5712_v48, 4 }
 0x377   : > { %v6331_v57 = vpop.permute.xlu1 %6330  ;;  %5503 = vst.msk [vmem:[#allocation4 + $0x54] sm:$0xf] %vm13238_vm13, %v5461_v17  ;;  %v5201_v59 = vadd.f32 %v5151_v55, %v4878_v24  ;;  %5871 = vrot.lane.b32.xlu2 %v5716_v43, %s8755_s20  ;;  %v4007_v15 = vpop.permute.xlu0 %4006  ;;  %v5990_v6 = vsel %vm8882_vm6, %v5461_v17, 0  ;;  %v5535_v1 = vsel %vm13239_vm14, %v5461_v17, 0  ;;  %v4880_v17 = vadd.f32 %v4879_v13, %v11727_v21  ;;  %vm13248_vm13 = vmmov %vm13246_vm3 }
 0x378   : > { %6427 = vst.msk [vmem:[#allocation4 + $0x14] sm:$0xf] %vm13240_vm10, %v6331_v57  ;;  %v4081_v33 = vsel %vm11750_vm8, %v4007_v15, %v4080_v42  ;;  %v6193_v56 = vshll.u32 %v5990_v6, 16  ;;  %v6197_v51 = vshrl.u32 %v5990_v6, 16  ;;  %v5719_v0 = vshrl.u32 %v5535_v1, 16  ;;  %vm13249_vm14 = vmmov %vm13242_vm1 }
 0x379   : > { %v5237_v62 = vadd.f32 %v11668_v60, %v5201_v59  ;;  %4082 = vst [vmem:[#allocation3 + $0x88] sm:$0x1] %v4081_v33  ;;  %v5722_v16 = vshll.u32 %v5535_v1, 16  ;;  %vm13250_vm10 = vnez %v12994_v25 }
 0x37a   : > { %v6195_v52 = vrot.slane %v6193_v56, 5  ;;  %v5721_v35 = vrot.slane %v5719_v0, 7  ;;  %v6199_v45 = vrot.slane %v6197_v51, 4 }
 0x37b   : > { %v11766_v2 = vmax.f32 %v5237_v62, 0.0  ;;  %8322 = vmatmul.msk.bf16.gmra.mxu0 %vm13241_vm9, %v8586_v14  ;;  %vm13251_vm9 = vmmov %vm13245_vm15 }
 0x37c   : > { %v6196_v37 = vsel %vm8947_vm4, %v6191_v10, %v6195_v52  ;;  %v5724_v24 = vor.u32 %v5722_v16, %v5721_v35  ;;  %v6200_v22 = vor.u32 %v6199_v45, %v6195_v52  ;;  %v4884_v45 = vpop.f32.mrf.mxu2 }
 0x37d   : > { %v5462_v42 = vpack.c.bf16 %v11766_v2, %v11766_v2  ;;  %6360 = vrot.lane.b32.xlu1 %v6196_v37, %s8757_s29  ;;  %v4769_v51 = vpop.f32.mrf.mxu0 }
 0x37e   : > { %v5153_v55 = vpop.f32.mrf.mxu1  ;;  %v5725_v43 = vsel %vm9212_vm7, %v5717_v27, %v5724_v24  ;;  %v6201_v32 = vrot.slane %v6200_v22, 4  ;;  %v5726_v24 = vrot.slane %v5721_v35, 4 }
 0x37f   : > { %v5844_v57 = vpop.permute.xlu1 %5843  ;;  %5504 = vst.msk [vmem:[#allocation4 + $0x58] sm:$0xf] %vm13242_vm1, %v5462_v42  ;;  %v5202_v14 = vadd.f32 %v5153_v55, %v4880_v17  ;;  %5873 = vrot.lane.b32.xlu0 %v5725_v43, %s8755_s20  ;;  %v6333_v48 = vpop.permute.xlu0 %6332  ;;  %v8587_v59 = vld [vmem:[#allocation4 + $0x10] sm:$0xff]  ;;  %v5991_v21 = vsel %vm13243_vm11, %v5462_v42, 0  ;;  %v5536_v13 = vsel %vm8882_vm6, %v5462_v42, 0  ;;  %v4883_v42 = vadd.f32 %v4882_v61, %v4767_v19  ;;  %vm13252_vm1 = vmmov %vm13246_vm3 }
 0x380   : > { %v8608_v15 = vld [vmem:[#allocation4 + $0x10] sm:$0xff]  ;;  %5940 = vst.msk [vmem:[#allocation4 + $0x18] sm:$0xf] %vm13244_vm0, %v5844_v57  ;;  %v8581_v6 = vld [vmem:[#allocation3 + $0x88] sm:$0xff]  ;;  %v6203_v1 = vshll.u32 %v5991_v21, 16  ;;  %v6207_v33 = vshrl.u32 %v5991_v21, 16  ;;  %8290 = vmatmul.msk.bf16.gmra.mxu3 %vm13246_vm3, %v8587_v59  ;;  %v6339_v57 = vpop.permute.xlu2 %6338  ;;  %vm13253_vm11 = vmmov %vm13249_vm14  ;;  %vm13254_vm0 = vnez %v13006_v54 }
 0x381   : > { %v5728_v56 = vshrl.u32 %v5536_v13, 16  ;;  %v5238_v0 = vadd.f32 %v11668_v60, %v5202_v14  ;;  %6428 = vst.msk [vmem:[#allocation4 + $0x18] sm:$0xf] %vm13245_vm15, %v6333_v48  ;;  %8419 = vmatmul.msk.bf16.vlgmr.msra.gmra.mxu2 %vm13247_vm12, %v8608_v15  ;;  %8206 = vmatmul.msk.bf16.gmra.mxu1 %vm13248_vm13, %v8581_v6  ;;  %v5731_v52 = vshll.u32 %v5536_v13, 16  ;;  %vm13255_vm15 = vmmov %vm13251_vm9  ;;  %vm13256_vm3 = vcmask 125952  }
 0x382   : > { %v6205_v62 = vrot.slane %v6203_v1, 5  ;;  %v6209_v16 = vrot.slane %v6207_v33, 4  ;;  %vm13257_vm12 = vmmov %vm13252_vm1 }
 0x383   : > { %v5730_v10 = vrot.slane %v5728_v56, 7  ;;  %v11789_v37 = vmax.f32 %v5238_v0, 0.0  ;;  %vm13258_vm13 = vmmov %vm13252_vm1 }
 0x384   : > { %v6206_v27 = vsel %vm8947_vm4, %v6201_v32, %v6205_v62  ;;  %v6210_v22 = vor.u32 %v6209_v16, %v6205_v62 }
 0x385   : > { %v5733_v17 = vor.u32 %v5731_v52, %v5730_v10  ;;  %v5463_v55 = vpack.c.bf16 %v11789_v37, %v11789_v37  ;;  %6362 = vrot.lane.b32.xlu2 %v6206_v27, %s8757_s29  ;;  %v4772_v62 = vpop.f32.mrf.mxu0  ;;  %v5735_v16 = vrot.slane %v5730_v10, 4 }
 0x386   : > { %v5156_v43 = vpop.f32.mrf.mxu1  ;;  %v6211_v1 = vrot.slane %v6210_v22, 4 }
 0x387   : > { %v6335_v14 = vpop.permute.xlu1 %6334  ;;  %v5734_v48 = vsel %vm9212_vm7, %v5726_v24, %v5733_v17  ;;  %5505 = vst.msk [vmem:[#allocation4 + $0x5c] sm:$0xf] %vm13249_vm14, %v5463_v55  ;;  %v5203_v15 = vadd.f32 %v5156_v43, %v4883_v42  ;;  %v5992_v19 = vsel %vm8882_vm6, %v5463_v55, 0  ;;  %v5537_v61 = vsel %vm13250_vm10, %v5463_v55, 0  ;;  %v4887_v24 = vpop.f32.mrf.mxu2  ;;  %vm13259_vm14 = vmmov %vm13251_vm9 }
 0x388   : > { %5875 = vrot.lane.b32.xlu0 %v5734_v48, %s8755_s20  ;;  %6429 = vst.msk [vmem:[#allocation4 + $0x1c] sm:$0xf] %vm13251_vm9, %v6335_v14  ;;  %v6213_v35 = vshll.u32 %v5992_v19, 16  ;;  %v6217_v21 = vshrl.u32 %v5992_v19, 16  ;;  %v5737_v13 = vshrl.u32 %v5537_v61, 16  ;;  %v5740_v0 = vshll.u32 %v5537_v61, 16  ;;  %vm13260_vm10 = vmmov %vm13253_vm11 }
 0x389   : > { %v5239_v6 = vadd.f32 %v11668_v60, %v5203_v15  ;;  %v4885_v17 = vadd.f32 %v4884_v45, %v4769_v51  ;;  %v6341_v15 = vpop.permute.xlu2 %6340  ;;  %vm13261_vm9 = vnez %v13014_v47 }
 0x38a   : > { %v6215_v33 = vrot.slane %v6213_v35, 5  ;;  %v5739_v56 = vrot.slane %v5737_v13, 7  ;;  %v6219_v32 = vrot.slane %v6217_v21, 4 }
 0x38b   : > { %v11806_v52 = vmax.f32 %v5239_v6, 0.0  ;;  %8323 = vmatmul.msk.bf16.gmra.mxu0 %vm13252_vm1, %v8587_v59  ;;  %vm13262_vm1 = vmmov %vm13256_vm3 }
 0x38c   : > { %v6216_v25 = vsel %vm8947_vm4, %v6211_v1, %v6215_v33  ;;  %v5742_v27 = vor.u32 %v5740_v0, %v5739_v56  ;;  %v6220_v55 = vor.u32 %v6219_v32, %v6215_v33 }
 0x38d   : > { %v5464_v42 = vpack.c.bf16 %v11806_v52, %v11806_v52  ;;  %6364 = vrot.lane.b32.xlu2 %v6216_v25, %s8757_s29 }
 0x38e   : > { %v5158_v22 = vpop.f32.mrf.mxu1  ;;  %v5743_v14 = vsel %vm9212_vm7, %v5735_v16, %v5742_v27  ;;  %v6221_v54 = vrot.slane %v6220_v55, 4  ;;  %v5744_v16 = vrot.slane %v5739_v56, 4 }
 0x38f   : > { %v6337_v43 = vpop.permute.xlu1 %6336  ;;  %5506 = vst.msk [vmem:[#allocation4 + $0x60] sm:$0xf] %vm13253_vm11, %v5464_v42  ;;  %v5204_v59 = vadd.f32 %v5158_v22, %v4885_v17  ;;  %5877 = vrot.lane.b32.xlu1 %v5743_v14, %s8755_s20  ;;  %v8588_v10 = vld [vmem:[#allocation4 + $0x18] sm:$0xff]  ;;  %v5993_v51 = vsel %vm13254_vm0, %v5464_v42, 0  ;;  %v5538_v45 = vsel %vm8882_vm6, %v5464_v42, 0  ;;  %v4888_v17 = vadd.f32 %v4887_v24, %v4772_v62  ;;  %v4774_v42 = vpop.f32.mrf.mxu0  ;;  %vm13263_vm11 = vmmov %vm13262_vm1 }
 0x390   : > { %v8609_v48 = vld [vmem:[#allocation4 + $0x18] sm:$0xff]  ;;  %6430 = vst.msk [vmem:[#allocation4 + $0x20] sm:$0xf] %vm13255_vm15, %v6337_v43  ;;  %v6223_v61 = vshll.u32 %v5993_v51, 16  ;;  %v6227_v35 = vshrl.u32 %v5993_v51, 16  ;;  %v5746_v21 = vshrl.u32 %v5538_v45, 16  ;;  %8291 = vmatmul.msk.bf16.gmra.mxu3 %vm13257_vm12, %v8588_v10  ;;  %v4889_v14 = vpop.f32.mrf.mxu2  ;;  %vm13264_vm0 = vmmov %vm13259_vm14 }
 0x391   : > { %v5850_v19 = vpop.permute.xlu0 %5849  ;;  %v5240_v13 = vadd.f32 %v11668_v60, %v5204_v59  ;;  %8420 = vmatmul.msk.bf16.gmra.mxu2 %vm13258_vm13, %v8609_v48  ;;  %v5749_v33 = vshll.u32 %v5538_v45, 16  ;;  %vm13265_vm15 = vmmov %vm13257_vm12 }
 0x392   : > { %5943 = vst.msk [vmem:[#allocation4 + $0x24] sm:$0xf] %vm13256_vm3, %v5850_v19  ;;  %v6225_v6 = vrot.slane %v6223_v61, 5  ;;  %v5748_v1 = vrot.slane %v5746_v21, 7  ;;  %v6229_v0 = vrot.slane %v6227_v35, 4  ;;  %vm13266_vm3 = vmmov %vm13260_vm10 }
 0x393   : > { %6431 = vst.msk [vmem:[#allocation4 + $0x24] sm:$0xf] %vm13259_vm14, %v6339_v57  ;;  %v11828_v32 = vmax.f32 %v5240_v13, 0.0  ;;  %vm13269_vm13 = vmmov %vm13262_vm1 }
 0x394   : > { %v6226_v25 = vsel %vm8947_vm4, %v6221_v54, %v6225_v6  ;;  %v5751_v27 = vor.u32 %v5749_v33, %v5748_v1  ;;  %v6230_v55 = vor.u32 %v6229_v0, %v6225_v6  ;;  %v5753_v0 = vrot.slane %v5748_v1, 4  ;;  %vm13270_vm14 = vmmov %vm13265_vm15 }
 0x395   : > { %v5465_v22 = vpack.c.bf16 %v11828_v32, %v11828_v32  ;;  %6366 = vrot.lane.b32.xlu0 %v6226_v25, %s8757_s29 }
 0x396   : > { %v5161_v57 = vpop.f32.mrf.mxu1  ;;  %v5752_v43 = vsel %vm9212_vm7, %v5744_v16, %v5751_v27  ;;  %v6231_v35 = vrot.slane %v6230_v55, 4  ;;  %v4890_v16 = vadd.f32 %v4889_v14, %v4774_v42 }
 0x397   : > { %5507 = vst.msk [vmem:[#allocation4 + $0x64] sm:$0xf] %vm13260_vm10, %v5465_v22  ;;  %v5205_v59 = vadd.f32 %v5161_v57, %v4888_v17  ;;  %5879 = vrot.lane.b32.xlu1 %v5752_v43, %s8755_s20  ;;  %v5994_v56 = vsel %vm8882_vm6, %v5465_v22, 0  ;;  %v5539_v62 = vsel %vm13261_vm9, %v5465_v22, 0  ;;  %v4777_v57 = vpop.f32.mrf.mxu0  ;;  %v13267_v43 = vld [vmem:[#allocation25_spill] sm:$0xff]  ;;  %vm13271_vm10 = vmmov %vm13270_vm14 }
 0x398   : > { %v6233_v51 = vshll.u32 %v5994_v56, 16  ;;  %v6237_v45 = vshrl.u32 %v5994_v56, 16  ;;  %v5755_v19 = vshrl.u32 %v5539_v62, 16  ;;  %v5758_v54 = vshll.u32 %v5539_v62, 16  ;;  %vm13272_vm9 = vmmov %vm13262_vm1 }
 0x399   : > { %v5858_v24 = vpop.permute.xlu2 %5857  ;;  %v5852_v48 = vpop.permute.xlu0 %5851  ;;  %v5241_v61 = vadd.f32 %v11668_v60, %v5205_v59  ;;  %vm13268_vm12 = vnez %v13267_v43 }
 0x39a   : > { %5947 = vst.msk [vmem:[#allocation4 + $0x34] sm:$0xf] %vm13262_vm1, %v5858_v24  ;;  %v6235_v21 = vrot.slane %v6233_v51, 5  ;;  %v5757_v13 = vrot.slane %v5755_v19, 7  ;;  %v6239_v6 = vrot.slane %v6237_v45, 4  ;;  %v8610_v1 = vld [vmem:[#allocation4 + $0x20] sm:$0xff]  ;;  %v4892_v19 = vpop.f32.mrf.mxu2 }
 0x39b   : > { %5944 = vst.msk [vmem:[#allocation4 + $0x28] sm:$0xf] %vm13263_vm11, %v5852_v48  ;;  %v11846_v33 = vmax.f32 %v5241_v61, 0.0  ;;  %8324 = vmatmul.msk.bf16.gmra.mxu0 %vm13265_vm15, %v8588_v10  ;;  %vm13275_vm11 = vmmov %vm13266_vm3 }
 0x39c   : > { %6432 = vst.msk [vmem:[#allocation4 + $0x28] sm:$0xf] %vm13264_vm0, %v6341_v15  ;;  %v6236_v47 = vsel %vm8947_vm4, %v6231_v35, %v6235_v21  ;;  %v5760_v25 = vor.u32 %v5758_v54, %v5757_v13  ;;  %v6240_v17 = vor.u32 %v6239_v6, %v6235_v21  ;;  %v8589_v15 = vld [vmem:[#allocation4 + $0x20] sm:$0xff]  ;;  %vm13276_vm15 = vmmov %vm13272_vm9 }
 0x39d   : > { %v5466_v27 = vpack.c.bf16 %v11846_v33, %v11846_v33  ;;  %6368 = vrot.lane.b32.xlu0 %v6236_v47, %s8757_s29 }
 0x39e   : > { %v5163_v22 = vpop.f32.mrf.mxu1  ;;  %v5761_v55 = vsel %vm9212_vm7, %v5753_v0, %v5760_v25  ;;  %v6241_v45 = vrot.slane %v6240_v17, 4  ;;  %v5762_v0 = vrot.slane %v5757_v13, 4 }
 0x39f   : > { %5508 = vst.msk [vmem:[#allocation4 + $0x68] sm:$0xf] %vm13266_vm3, %v5466_v27  ;;  %v5206_v10 = vadd.f32 %v5163_v22, %v4890_v16  ;;  %5881 = vrot.lane.b32.xlu2 %v5761_v55, %s8755_s20  ;;  %v5995_v42 = vsel %vm13268_vm12, %v5466_v27, 0  ;;  %v5540_v14 = vsel %vm8882_vm6, %v5466_v27, 0  ;;  %v4893_v16 = vadd.f32 %v4892_v19, %v4777_v57  ;;  %vm13277_vm3 = vmmov %vm13271_vm10 }
 0x3a0   : > { %v6243_v62 = vshll.u32 %v5995_v42, 16  ;;  %v6247_v24 = vshrl.u32 %v5995_v42, 16  ;;  %v5764_v48 = vshrl.u32 %v5540_v14, 16  ;;  %8292 = vmatmul.msk.bf16.gmra.mxu3 %vm13270_vm14, %v8589_v15  ;;  %v5767_v54 = vshll.u32 %v5540_v14, 16  ;;  %vm13278_vm12 = vmmov %vm13275_vm11 }
 0x3a1   : > { %v5854_v59 = vpop.permute.xlu1 %5853  ;;  %v5860_v56 = vpop.permute.xlu2 %5859  ;;  %v5242_v51 = vadd.f32 %v11668_v60, %v5206_v10  ;;  %8421 = vmatmul.msk.bf16.gmra.mxu2 %vm13271_vm10, %v8610_v1  ;;  %v13273_v1 = vld [vmem:[#allocation44_spill] sm:$0xff]  ;;  %vm13281_vm14 = vmmov %vm13264_vm0 }
 0x3a2   : > { %5945 = vst.msk [vmem:[#allocation4 + $0x2c] sm:$0xf] %vm13269_vm13, %v5854_v59  ;;  %v6245_v61 = vrot.slane %v6243_v62, 5  ;;  %v6249_v35 = vrot.slane %v6247_v24, 4  ;;  %v5766_v21 = vrot.slane %v5764_v48, 7  ;;  %vm13274_vm1 = vnez %v13273_v1  ;;  %v4779_v48 = vpop.f32.mrf.mxu0  ;;  %vm13282_vm10 = vmmov %vm13277_vm3 }
 0x3a3   : > { %5948 = vst.msk [vmem:[#allocation4 + $0x38] sm:$0xf] %vm13272_vm9, %v5860_v56  ;;  %v11868_v6 = vmax.f32 %v5242_v51, 0.0  ;;  %vm13283_vm9 = vmmov %vm13277_vm3 }
 0x3a4   : > { %v6246_v47 = vsel %vm8947_vm4, %v6241_v45, %v6245_v61  ;;  %v5769_v25 = vor.u32 %v5767_v54, %v5766_v21  ;;  %v6250_v22 = vor.u32 %v6249_v35, %v6245_v61  ;;  %v4894_v54 = vpop.f32.mrf.mxu2 }
 0x3a5   : > { %v5467_v27 = vpack.c.bf16 %v11868_v6, %v11868_v6  ;;  %6370 = vrot.lane.b32.xlu1 %v6246_v47, %s8757_s29 }
 0x3a6   : > { %v5166_v17 = vpop.f32.mrf.mxu1  ;;  %v5770_v55 = vsel %vm9212_vm7, %v5762_v0, %v5769_v25  ;;  %v6251_v24 = vrot.slane %v6250_v22, 4  ;;  %v5771_v0 = vrot.slane %v5766_v21, 4 }
 0x3a7   : > { %v6343_v10 = vpop.permute.xlu0 %6342  ;;  %v5541_v43 = vsel %vm13274_vm1, %v5467_v27, 0  ;;  %5509 = vst.msk [vmem:[#allocation4 + $0x6c] sm:$0xf] %vm13275_vm11, %v5467_v27  ;;  %v5207_v42 = vadd.f32 %v5166_v17, %v4893_v16  ;;  %5883 = vrot.lane.b32.xlu2 %v5770_v55, %s8755_s20  ;;  %v5996_v13 = vsel %vm8882_vm6, %v5467_v27, 0  ;;  %v4895_v16 = vadd.f32 %v4894_v54, %v4779_v48 }
 0x3a8   : > { %6433 = vst.msk [vmem:[#allocation4 + $0x2c] sm:$0xf] %vm13264_vm0, %v6343_v10  ;;  %v6253_v14 = vshll.u32 %v5996_v13, 16  ;;  %v6257_v59 = vshrl.u32 %v5996_v13, 16  ;;  %v5773_v56 = vshrl.u32 %v5541_v43, 16  ;;  %v5776_v19 = vshll.u32 %v5541_v43, 16 }
 0x3a9   : > { %v5856_v57 = vpop.permute.xlu1 %5855  ;;  %v5243_v62 = vadd.f32 %v11668_v60, %v5207_v42  ;;  %v13279_v42 = vld [vmem:[#allocation26_spill] sm:$0xff] }
 0x3aa   : > { %5946 = vst.msk [vmem:[#allocation4 + $0x30] sm:$0xf] %vm13276_vm15, %v5856_v57  ;;  %v6255_v51 = vrot.slane %v6253_v14, 5  ;;  %v5775_v45 = vrot.slane %v5773_v56, 7  ;;  %v6259_v61 = vrot.slane %v6257_v59, 4  ;;  %vm13280_vm13 = vnez %v13279_v42  ;;  %vm13286_vm15 = vmmov %vm13277_vm3 }
 0x3ab   : > { %v11886_v35 = vmax.f32 %v5243_v62, 0.0  ;;  %8325 = vmatmul.msk.bf16.gmra.mxu0 %vm13277_vm3, %v8589_v15  ;;  %vm13287_vm3 = vmmov %vm13264_vm0 }
 0x3ac   : > { %v6256_v47 = vsel %vm8947_vm4, %v6251_v24, %v6255_v51  ;;  %v5778_v25 = vor.u32 %v5776_v19, %v5775_v45  ;;  %v6260_v22 = vor.u32 %v6259_v61, %v6255_v51 }
 0x3ad   : > { %v5468_v27 = vpack.c.bf16 %v11886_v35, %v11886_v35  ;;  %6372 = vrot.lane.b32.xlu1 %v6256_v47, %s8757_s29  ;;  %v5780_v47 = vrot.slane %v5775_v45, 4 }
 0x3ae   : > { %v5168_v17 = vpop.f32.mrf.mxu1  ;;  %v5779_v55 = vsel %vm9212_vm7, %v5771_v0, %v5778_v25  ;;  %v6261_v62 = vrot.slane %v6260_v22, 4  ;;  %v4782_v25 = vpop.f32.mrf.mxu0 }
 0x3af   : > { %v5542_v15 = vsel %vm8882_vm6, %v5468_v27, 0  ;;  %5510 = vst.msk [vmem:[#allocation4 + $0x70] sm:$0xf] %vm13278_vm12, %v5468_v27  ;;  %v5208_v10 = vadd.f32 %v5168_v17, %v4895_v16  ;;  %5885 = vrot.lane.b32.xlu0 %v5779_v55, %s8755_s20  ;;  %v6345_v21 = vpop.permute.xlu0 %6344  ;;  %v8590_v1 = vld [vmem:[#allocation4 + $0x28] sm:$0xff]  ;;  %v5997_v13 = vsel %vm13280_vm13, %v5468_v27, 0  ;;  %v6351_v27 = vpop.permute.xlu2 %6350  ;;  %vm13288_vm12 = vcmask 125952   ;;  %vm13289_vm13 = vmmov %vm13283_vm9 }
 0x3b0   : > { %v8611_v43 = vld [vmem:[#allocation4 + $0x28] sm:$0xff]  ;;  %6434 = vst.msk [vmem:[#allocation4 + $0x30] sm:$0xf] %vm13281_vm14, %v6345_v21  ;;  %v6263_v57 = vshll.u32 %v5997_v13, 16  ;;  %v6267_v14 = vshrl.u32 %v5997_v13, 16  ;;  %v5782_v59 = vshrl.u32 %v5542_v15, 16  ;;  %8293 = vmatmul.msk.bf16.gmra.mxu3 %vm13282_vm10, %v8590_v1  ;;  %v4897_v21 = vpop.f32.mrf.mxu2  ;;  %vm13290_vm14 = vmmov %vm13283_vm9 }
 0x3b1   : > { %v5244_v56 = vadd.f32 %v11668_v60, %v5208_v10  ;;  %8422 = vmatmul.msk.bf16.gmra.mxu2 %vm13283_vm9, %v8611_v43  ;;  %v5785_v51 = vshll.u32 %v5542_v15, 16  ;;  %v13284_v15 = vld [vmem:[#allocation48_spill] sm:$0xff]  ;;  %vm13291_vm10 = vmmov %vm13264_vm0 }
 0x3b2   : > { %v6265_v24 = vrot.slane %v6263_v57, 5  ;;  %v5784_v48 = vrot.slane %v5782_v59, 7  ;;  %v6269_v19 = vrot.slane %v6267_v14, 4  ;;  %vm13285_vm1 = vnez %v13284_v15  ;;  %vm13292_vm9 = vmmov %vm13275_vm11 }
 0x3b3   : > { %v11906_v61 = vmax.f32 %v5244_v56, 0.0  ;;  %v4898_v56 = vadd.f32 %v4897_v21, %v4782_v25 }
 0x3b4   : > { %v6266_v54 = vsel %vm8947_vm4, %v6261_v62, %v6265_v24  ;;  %v5787_v0 = vor.u32 %v5785_v51, %v5784_v48  ;;  %v6270_v55 = vor.u32 %v6269_v19, %v6265_v24  ;;  %v5789_v19 = vrot.slane %v5784_v48, 4 }
 0x3b5   : > { %v5469_v16 = vpack.c.bf16 %v11906_v61, %v11906_v61  ;;  %6374 = vrot.lane.b32.xlu2 %v6266_v54, %s8757_s29 }
 0x3b6   : > { %v5788_v22 = vsel %vm9212_vm7, %v5780_v47, %v5787_v0  ;;  %v6271_v13 = vrot.slane %v6270_v55, 4 }
 0x3b7   : > { %v6347_v17 = vpop.permute.xlu1 %6346  ;;  %v5543_v10 = vsel %vm13285_vm1, %v5469_v16, 0  ;;  %5511 = vst.msk [vmem:[#allocation4 + $0x74] sm:$0xf] %vm13275_vm11, %v5469_v16  ;;  %5887 = vrot.lane.b32.xlu0 %v5788_v22, %s8755_s20  ;;  %v5998_v45 = vsel %vm8882_vm6, %v5469_v16, 0  ;;  %v6353_v15 = vpop.permute.xlu2 %6352  ;;  %vm13295_vm11 = vmmov %vm13288_vm12 }
 0x3b8   : > { %6435 = vst.msk [vmem:[#allocation4 + $0x34] sm:$0xf] %vm13264_vm0, %v6347_v17  ;;  %v6273_v43 = vshll.u32 %v5998_v45, 16  ;;  %v5791_v42 = vshrl.u32 %v5543_v10, 16  ;;  %v5794_v59 = vshll.u32 %v5543_v10, 16  ;;  %v6277_v62 = vshrl.u32 %v5998_v45, 16  ;;  %v4784_v17 = vpop.f32.mrf.mxu0  ;;  %v4899_v45 = vpop.f32.mrf.mxu2  ;;  %vm13296_vm0 = vmmov %vm13295_vm11 }
 0x3b9   : > { %v4900_v21 = vadd.f32 %v4899_v45, %v4784_v17 }
 0x3ba   : > { %v6275_v57 = vrot.slane %v6273_v43, 5  ;;  %v5793_v14 = vrot.slane %v5791_v42, 7  ;;  %v6279_v55 = vrot.slane %v6277_v62, 4  ;;  %v13293_v62 = vld [vmem:[#allocation29_spill] sm:$0xff] }
 0x3bb   : > { %8326 = vmatmul.msk.bf16.gmra.mxu0 %vm13286_vm15, %v8590_v1  ;;  %vm13294_vm1 = vnez %v13293_v62  ;;  %vm13297_vm15 = vmmov %vm13287_vm3 }
 0x3bc   : > { %v6276_v24 = vsel %vm8947_vm4, %v6271_v13, %v6275_v57  ;;  %v5171_v51 = vpop.f32.mrf.mxu1  ;;  %v5796_v54 = vor.u32 %v5794_v59, %v5793_v14  ;;  %v6280_v42 = vor.u32 %v6279_v55, %v6275_v57  ;;  %v5798_v45 = vrot.slane %v5793_v14, 4 }
 0x3bd   : > { %6376 = vrot.lane.b32.xlu2 %v6276_v24, %s8757_s29  ;;  %v5209_v47 = vadd.f32 %v5171_v51, %v4898_v56 }
 0x3be   : > { %v5797_v16 = vsel %vm9212_vm7, %v5789_v19, %v5796_v54 }
 0x3bf   : > { %v6349_v0 = vpop.permute.xlu1 %6348  ;;  %v5245_v22 = vadd.f32 %v11668_v60, %v5209_v47  ;;  %5889 = vrot.lane.b32.xlu1 %v5797_v16, %s8755_s20  ;;  %v8591_v1 = vld [vmem:[#allocation4 + $0x30] sm:$0xff]  ;;  %v6281_v47 = vrot.slane %v6280_v42, 4 }
 0x3c0   : > { %6436 = vst.msk [vmem:[#allocation4 + $0x38] sm:$0xf] %vm13287_vm3, %v6349_v0  ;;  %v8612_v25 = vld [vmem:[#allocation4 + $0x30] sm:$0xff]  ;;  %8294 = vmatmul.msk.bf16.gmra.mxu3 %vm13289_vm13, %v8591_v1  ;;  %vm13298_vm3 = vmmov %vm13289_vm13 }
 0x3c1   : > { %v5862_v48 = vpop.permute.xlu0 %5861  ;;  %v11931_v10 = vmax.f32 %v5245_v22, 0.0  ;;  %8423 = vmatmul.msk.bf16.gmra.mxu2 %vm13290_vm14, %v8612_v25  ;;  %vm13300_vm13 = vmmov %vm13292_vm9 }
 0x3c2   : > { %5949 = vst.msk [vmem:[#allocation4 + $0x3c] sm:$0xf] %vm13288_vm12, %v5862_v48  ;;  %vm13299_vm12 = vnez %v13072_v18  ;;  %vm13301_vm14 = vmmov %vm13296_vm0 }
 0x3c3   : > { %6437 = vst.msk [vmem:[#allocation4 + $0x3c] sm:$0xf] %vm13291_vm10, %v6351_v27  ;;  %v5470_v43 = vpack.c.bf16 %v11931_v10, %v11931_v10  ;;  %vm13302_vm10 = vmmov %vm13298_vm3 }
 0x3c4   : > { %v5173_v13 = vpop.f32.mrf.mxu1 }
 0x3c5   : > { %v5544_v59 = vsel %vm8882_vm6, %v5470_v43, 0  ;;  %5512 = vst.msk [vmem:[#allocation4 + $0x78] sm:$0xf] %vm13292_vm9, %v5470_v43  ;;  %v5210_v56 = vadd.f32 %v5173_v13, %v4900_v21  ;;  %v5999_v24 = vsel %vm13294_vm1, %v5470_v43, 0  ;;  %vm13303_vm9 = vmmov %vm13298_vm3 }
 0x3c6   : > { %v6283_v51 = vshll.u32 %v5999_v24, 16  ;;  %v6287_v19 = vshrl.u32 %v5999_v24, 16  ;;  %v5800_v54 = vshrl.u32 %v5544_v59, 16  ;;  %v5803_v22 = vshll.u32 %v5544_v59, 16  ;;  %vm13304_vm1 = vmmov %vm13296_vm0 }
 0x3c7   : > { %v5246_v27 = vadd.f32 %v11668_v60, %v5210_v56 }
 0x3c8   : > { %v6285_v17 = vrot.slane %v6283_v51, 5  ;;  %v5802_v57 = vrot.slane %v5800_v54, 7  ;;  %v6289_v25 = vrot.slane %v6287_v19, 4 }
 0x3c9   : > { %v5870_v0 = vpop.permute.xlu2 %5869  ;;  %v5864_v16 = vpop.permute.xlu0 %5863  ;;  %v11945_v55 = vmax.f32 %v5246_v27, 0.0 }
 0x3ca   : > { %5953 = vst.msk [vmem:[#allocation4 + $0x4c] sm:$0xf] %vm13295_vm11, %v5870_v0  ;;  %v6286_v48 = vsel %vm8947_vm4, %v6281_v47, %v6285_v17  ;;  %v5805_v21 = vor.u32 %v5803_v22, %v5802_v57  ;;  %v6290_v42 = vor.u32 %v6289_v25, %v6285_v17  ;;  %v8592_v56 = vld [vmem:[#allocation4 + $0x38] sm:$0xff]  ;;  %v5807_v47 = vrot.slane %v5802_v57, 4  ;;  %v4787_v17 = vpop.f32.mrf.mxu0  ;;  %vm13305_vm11 = vmmov %vm13297_vm15 }
 0x3cb   : > { %5950 = vst.msk [vmem:[#allocation4 + $0x40] sm:$0xf] %vm13296_vm0, %v5864_v16  ;;  %v5471_v60 = vpack.c.bf16 %v11945_v55, %v11945_v55  ;;  %6378 = vrot.lane.b32.xlu0 %v6286_v48, %s8757_s29  ;;  %8327 = vmatmul.msk.bf16.gmra.mxu0 %vm13298_vm3, %v8591_v1  ;;  %v8613_v1 = vld [vmem:[#allocation4 + $0x38] sm:$0xff] }
 0x3cc   : > { %6438 = vst.msk [vmem:[#allocation4 + $0x40] sm:$0xf] %vm13297_vm15, %v6353_v15  ;;  %v5806_v43 = vsel %vm9212_vm7, %v5798_v45, %v5805_v21  ;;  %v6291_v24 = vrot.slane %v6290_v42, 4  ;;  %vm13306_vm15 = vmmov %vm13298_vm3 }
 0x3cd   : > { %v5545_v13 = vsel %vm13299_vm12, %v5471_v60, 0  ;;  %5513 = vst.msk [vmem:[#allocation4 + $0x7c] sm:$0xf] %vm13300_vm13, %v5471_v60  ;;  %5891 = vrot.lane.b32.xlu1 %v5806_v43, %s8755_s20  ;;  %v11964_v14 = vsel %vm8882_vm6, %v5471_v60, 0  ;;  %vm13307_vm3 = vmmov %vm13305_vm11 }
 0x3ce   : > { %v6293_v15 = vshll.u32 %v11964_v14, 16  ;;  %v5809_v59 = vshrl.u32 %v5545_v13, 16  ;;  %v5812_v18 = vshll.u32 %v5545_v13, 16  ;;  %vm13308_vm12 = vmmov %vm13303_vm9 }
 0x3cf   : > { %vm13309_vm13 = vmmov %vm13303_vm9 }
 0x3d0   : > { %v11967_v51 = vrot.slane %v6293_v15, 5  ;;  %v11969_v19 = vrot.slane %v5809_v59, 7  ;;  %8295 = vmatmul.msk.bf16.gmra.mxu3 %vm13302_vm10, %v8592_v56  ;;  %vm13311_vm10 = vmmov %vm13303_vm9 }
 0x3d1   : > { %v5866_v62 = vpop.permute.xlu1 %5865  ;;  %v5872_v54 = vpop.permute.xlu2 %5871  ;;  %8424 = vmatmul.msk.bf16.gmra.mxu2 %vm13303_vm9, %v8613_v1  ;;  %vm13312_vm9 = vmmov %vm13307_vm3  ;;  %v5479_v1 = vld [vmem:[#allocation4 + $0x84] sm:$0x8] }
 0x3d2   : > { %5951 = vst.msk [vmem:[#allocation4 + $0x44] sm:$0xf] %vm13301_vm14, %v5866_v62  ;;  %v6296_v27 = vsel %vm8947_vm4, %v6291_v24, %v11967_v51  ;;  %v5814_v0 = vor.u32 %v5812_v18, %v11969_v19  ;;  %v4789_v21 = vpop.f32.mrf.mxu0  ;;  %vm13310_vm14 = vmmov %vm13307_vm3  ;;  %v5480_v18 = vsel %vm11285_vm2, 0, %v5479_v1 }
 0x3d3   : > { %5954 = vst.msk [vmem:[#allocation4 + $0x50] sm:$0xf] %vm13304_vm1, %v5872_v54  ;;  %6380 = vrot.lane.b32.xlu0 %v6296_v27, %s8757_s29  ;;  %vm13313_vm1 = vmmov %vm13311_vm10  ;;  %v4902_v54 = vpop.f32.mrf.mxu2 }
 0x3d4   : > { %v5815_v16 = vsel %vm9212_vm7, %v5807_v47, %v5814_v0  ;;  %5481 = vst [vmem:[#allocation4 + $0x84] sm:$0x8] %v5480_v18  ;;  %vm13319_vm2 = vmmov %vm13312_vm9 }
 0x3d5   : > { %5893 = vrot.lane.b32.xlu2 %v5815_v16, %s8755_s20 }
 0x3d7   : > { %v6355_v22 = vpop.permute.xlu0 %6354 }
 0x3d8   : > { %6439 = vst.msk [vmem:[#allocation4 + $0x44] sm:$0xf] %vm13305_vm11, %v6355_v22  ;;  %vm13314_vm11 = vmmov %vm13313_vm1 }
 0x3d9   : > { %v5868_v25 = vpop.permute.xlu1 %5867 }
 0x3da   : > { %5952 = vst.msk [vmem:[#allocation4 + $0x48] sm:$0xf] %vm13296_vm0, %v5868_v25 }
 0x3db   : > { %8328 = vmatmul.msk.bf16.gmra.mxu0 %vm13306_vm15, %v8592_v56  ;;  %vm13315_vm15 = vmmov %vm13307_vm3  ;;  %v4904_v23 = vpop.f32.mrf.mxu2 }
 0x3df   : > { %v6357_v48 = vpop.permute.xlu0 %6356  ;;  %v8593_v57 = vld [vmem:[#allocation4 + $0x40] sm:$0xff]  ;;  %v6363_v60 = vpop.permute.xlu2 %6362 }
 0x3e0   : > { %v8614_v45 = vld [vmem:[#allocation4 + $0x40] sm:$0xff]  ;;  %6440 = vst.msk [vmem:[#allocation4 + $0x48] sm:$0xf] %vm13307_vm3, %v6357_v48  ;;  %8296 = vmatmul.msk.bf16.gmra.mxu3 %vm13308_vm12, %v8593_v57  ;;  %vm13316_vm3 = vmmov %vm13296_vm0 }
 0x3e1   : > { %8425 = vmatmul.msk.bf16.gmra.mxu2 %vm13309_vm13, %v8614_v45  ;;  %vm13317_vm12 = vmmov %vm13296_vm0  ;;  %v6297_v45 = vshrl.u32 %v11964_v14, 16 }
 0x3e2   : > { %vm13318_vm13 = vmmov %vm13313_vm1 }
 0x3e3   : > { %v6299_v14 = vrot.slane %v6297_v45, 4 }
 0x3e7   : > { %v6359_v43 = vpop.permute.xlu1 %6358  ;;  %v6365_v62 = vpop.permute.xlu2 %6364 }
 0x3e8   : > { %6441 = vst.msk [vmem:[#allocation4 + $0x4c] sm:$0xf] %vm13310_vm14, %v6359_v43  ;;  %v6775_v42 = vpop.f32.mrf.mxu0  ;;  %vm13320_vm14 = vmmov %vm13313_vm1 }
 0x3eb   : > { %8329 = vmatmul.msk.bf16.gmra.mxu0 %vm13311_vm10, %v8593_v57  ;;  %v4903_v57 = vadd.f32 %v4902_v54, %v4787_v17  ;;  %vm13321_vm10 = vmmov %vm13313_vm1 }
 0x3ef   : > { %v6361_v13 = vpop.permute.xlu1 %6360  ;;  %v8594_v15 = vld [vmem:[#allocation4 + $0x48] sm:$0xff] }
 0x3f0   : > { %v8615_v59 = vld [vmem:[#allocation4 + $0x48] sm:$0xff]  ;;  %6442 = vst.msk [vmem:[#allocation4 + $0x50] sm:$0xf] %vm13312_vm9, %v6361_v13  ;;  %v6777_v56 = vpop.f32.mrf.mxu0  ;;  %8297 = vmatmul.msk.bf16.gmra.mxu3 %vm13313_vm1, %v8594_v15  ;;  %vm13322_vm9 = vmmov %vm13296_vm0 }
 0x3f1   : > { %v5874_v24 = vpop.permute.xlu0 %5873  ;;  %8426 = vmatmul.msk.bf16.gmra.mxu2 %vm13314_vm11, %v8615_v59  ;;  %vm13323_vm1 = vmmov %vm13296_vm0  ;;  %vm13324_vm11 = vcmask 257152  }
 0x3f2   : > { %5955 = vst.msk [vmem:[#allocation4 + $0x54] sm:$0xf] %vm13296_vm0, %v5874_v24  ;;  %vm13325_vm0 = vnez %v13082_v39  ;;  %v5816_v39 = vrot.slane %v11969_v19, 4 }
 0x3f3   : > { %6443 = vst.msk [vmem:[#allocation4 + $0x54] sm:$0xf] %vm13315_vm15, %v6363_v60  ;;  %v6660_v27 = vpop.f32.mrf.mxu3  ;;  %vm13326_vm15 = vmmov %vm13319_vm2 }
 0x3f4   : > { %v6776_v47 = vadd.f32 %v6775_v42, %v6660_v27 }
 0x3f8   : > { %v6780_v0 = vpop.f32.mrf.mxu0 }
 0x3f9   : > { %v5882_v16 = vpop.permute.xlu2 %5881 }
 0x3fa   : > { %v5876_v22 = vpop.permute.xlu0 %5875  ;;  %5959 = vst.msk [vmem:[#allocation4 + $0x64] sm:$0xf] %vm13316_vm3, %v5882_v16  ;;  %v8595_v43 = vld [vmem:[#allocation4 + $0x50] sm:$0xff]  ;;  %v4905_v16 = vadd.f32 %v4904_v23, %v4789_v21  ;;  %vm13327_vm3 = vmmov %vm13323_vm1 }
 0x3fb   : > { %5956 = vst.msk [vmem:[#allocation4 + $0x58] sm:$0xf] %vm13317_vm12, %v5876_v22  ;;  %v6662_v25 = vpop.f32.mrf.mxu3  ;;  %8330 = vmatmul.msk.bf16.gmra.mxu0 %vm13318_vm13, %v8594_v15  ;;  %v8616_v42 = vld [vmem:[#allocation4 + $0x50] sm:$0xff]  ;;  %vm13328_vm12 = vmmov %vm13321_vm10  ;;  %vm13329_vm13 = vnez %v13089_v44 }
 0x3fc   : > { %6444 = vst.msk [vmem:[#allocation4 + $0x58] sm:$0xf] %vm13319_vm2, %v6365_v62  ;;  %v6778_v48 = vadd.f32 %v6777_v56, %v6662_v25  ;;  %v8687_v15 = vld [vmem:[%s12496_s5] ss:$0 sm:$0xff] }
 0x3fe   : > { %v5176_v60 = vpop.f32.mrf.mxu1 }
 0x3ff   : > { %v5211_v13 = vadd.f32 %v5176_v60, %v4903_v57  ;;  %v6300_v60 = vor.u32 %v6299_v14, %v11967_v51 }
 0x400   : > { %v6782_v59 = vpop.f32.mrf.mxu0  ;;  %8298 = vmatmul.msk.bf16.gmra.mxu3 %vm13320_vm14, %v8595_v43  ;;  %vm13331_vm14 = vmmov %vm13324_vm11 }
 0x401   : > { %v5878_v1 = vpop.permute.xlu1 %5877  ;;  %v5884_v24 = vpop.permute.xlu2 %5883  ;;  %8427 = vmatmul.msk.bf16.gmra.mxu2 %vm13321_vm10, %v8616_v42  ;;  %v5247_v62 = vadd.f32 %v8687_v15, %v5211_v13  ;;  %v6301_v51 = vrot.slane %v6300_v60, 4 }
 0x402   : > { %5957 = vst.msk [vmem:[#allocation4 + $0x5c] sm:$0xf] %vm13322_vm9, %v5878_v1  ;;  %vm13332_vm9 = vmmov %vm13321_vm10 }
 0x403   : > { %5960 = vst.msk [vmem:[#allocation4 + $0x68] sm:$0xf] %vm13323_vm1, %v5884_v24  ;;  %v12010_v17 = vmax.f32 %v5247_v62, 0.0  ;;  %v6665_v56 = vpop.f32.mrf.mxu3  ;;  %vm13334_vm1 = vmmov %vm13332_vm9 }
 0x404   : > { %v7049_v18 = vpop.f32.mrf.mxu2  ;;  %v6781_v54 = vadd.f32 %v6780_v0, %v6665_v56 }
 0x405   : > { %v12012_v27 = vadd.f32 %v7049_v18, %v6776_v47  ;;  %v5472_v22 = vpack.c.bf16 %v12010_v17, %v12010_v17 }
 0x406   : > { %v5178_v57 = vpop.f32.mrf.mxu1 }
 0x407   : > { %v6367_v25 = vpop.permute.xlu0 %6366  ;;  %v5546_v42 = vsel %vm8882_vm6, %v5472_v22, 0  ;;  %5514 = vst.msk [vmem:[#allocation4 + $0x80] sm:$0xf] %vm13324_vm11, %v5472_v22  ;;  %v5212_v45 = vadd.f32 %v5178_v57, %v4905_v16  ;;  %v6001_v0 = vsel %vm13325_vm0, %v5472_v22, 0  ;;  %vm13336_vm11 = vmmov %vm13327_vm3 }
 0x408   : > { %v6785_v13 = vpop.f32.mrf.mxu0  ;;  %6445 = vst.msk [vmem:[#allocation4 + $0x5c] sm:$0xf] %vm13326_vm15, %v6367_v25  ;;  %v6303_v47 = vshll.u32 %v6001_v0, 16  ;;  %v5818_v23 = vshrl.u32 %v5546_v42, 16  ;;  %v5821_v14 = vshll.u32 %v5546_v42, 16  ;;  %v6307_v60 = vshrl.u32 %v6001_v0, 16  ;;  %vm13337_vm0 = vmmov %vm13334_vm1 }
 0x409   : > { %v5880_v21 = vpop.permute.xlu1 %5879  ;;  %v5248_v1 = vadd.f32 %v8687_v15, %v5212_v45  ;;  %vm13339_vm15 = vmmov %vm13337_vm0 }
 0x40a   : > { %5958 = vst.msk [vmem:[#allocation4 + $0x60] sm:$0xf] %vm13327_vm3, %v5880_v21  ;;  %v6305_v24 = vrot.slane %v6303_v47, 5  ;;  %v5820_v62 = vrot.slane %v5818_v23, 7 }
 0x40b   : > { %8331 = vmatmul.msk.bf16.gmra.mxu0 %vm13328_vm12, %v8595_v43  ;;  %v12025_v56 = vmax.f32 %v5248_v1, 0.0  ;;  %v6667_v18 = vpop.f32.mrf.mxu3  ;;  %vm13340_vm12 = vmmov %vm13319_vm2 }
 0x40c   : > { %v7051_v16 = vpop.f32.mrf.mxu2  ;;  %v12028_v22 = vadd.f32 %v6782_v59, %v6667_v18  ;;  %v6306_v15 = vsel %vm8947_vm4, %v6301_v51, %v6305_v24  ;;  %v5823_v57 = vor.u32 %v5821_v14, %v5820_v62 }
 0x40d   : > { %v12030_v25 = vadd.f32 %v7051_v16, %v6778_v48  ;;  %v5473_v43 = vpack.c.bf16 %v12025_v56, %v12025_v56  ;;  %6382 = vrot.lane.b32.xlu1 %v6306_v15, %s8757_s29  ;;  %v5825_v16 = vrot.slane %v5820_v62, 4  ;;  %v6309_v15 = vrot.slane %v6307_v60, 4 }
 0x40e   : > { %v5824_v45 = vsel %vm9212_vm7, %v5816_v39, %v5823_v57 }
 0x40f   : > { %v6369_v42 = vpop.permute.xlu0 %6368  ;;  %v5547_v19 = vsel %vm13329_vm13, %v5473_v43, 0  ;;  %v6002_v48 = vsel %vm8882_vm6, %v5473_v43, 0  ;;  %5895 = vrot.lane.b32.xlu0 %v5824_v45, %s8755_s20  ;;  %v8596_v59 = vld [vmem:[#allocation4 + $0x58] sm:$0xff]  ;;  %5515 = vst.msk [vmem:[#allocation4 + $0x84] sm:$0xf] %vm13331_vm14, %v5473_v43  ;;  %vm13333_vm6 = vmmov %vm13319_vm2  ;;  %v6375_v60 = vpop.permute.xlu2 %6374 }
 0x410   : > { %6446 = vst.msk [vmem:[#allocation4 + $0x60] sm:$0xf] %vm13319_vm2, %v6369_v42  ;;  %v12045_v21 = vpop.f32.mrf.mxu0  ;;  %v8617_v47 = vld [vmem:[#allocation4 + $0x58] sm:$0xff]  ;;  %v5827_v23 = vshrl.u32 %v5547_v19, 16  ;;  %v6313_v0 = vshll.u32 %v6002_v48, 16  ;;  %8299 = vmatmul.msk.bf16.gmra.mxu3 %vm13321_vm10, %v8596_v59  ;;  %v6317_v44 = vshrl.u32 %v6002_v48, 16  ;;  %v6310_v48 = vor.u32 %v6309_v15, %v6305_v24  ;;  %vm13341_vm13 = vmmov %vm13337_vm0 }
 0x411   : > { %13330 = vst [vmem:[#allocation43_spill] sm:$0xff] %v12045_v21  ;;  %8428 = vmatmul.msk.bf16.gmra.mxu2 %vm13332_vm9, %v8617_v47  ;;  %v5830_v8 = vshll.u32 %v5547_v19, 16  ;;  %vm13344_vm10 = vmmov %vm13337_vm0 }
 0x412   : > { %v5829_v1 = vrot.slane %v5827_v23, 7  ;;  %v6315_v51 = vrot.slane %v6313_v0, 5  ;;  %v6319_v39 = vrot.slane %v6317_v44, 4  ;;  %v6311_v40 = vrot.slane %v6310_v48, 4  ;;  %vm13345_vm9 = vmmov %vm13337_vm0 }
 0x413   : > { %v6670_v14 = vpop.f32.mrf.mxu3 }
 0x414   : > { %v7054_v18 = vpop.f32.mrf.mxu2  ;;  %v6786_v57 = vadd.f32 %v6785_v13, %v6670_v14  ;;  %v5834_v45 = vrot.slane %v5829_v1, 4  ;;  %v5832_v7 = vor.u32 %v5830_v8, %v5829_v1  ;;  %v6320_v4 = vor.u32 %v6319_v39, %v6315_v51 }
 0x415   : > { %v12050_v42 = vadd.f32 %v7054_v18, %v6781_v54  ;;  %v6316_v47 = vsel %vm8947_vm4, %v6311_v40, %v6315_v51  ;;  %vm13338_vm4 = vmmov %vm13319_vm2 }
 0x416   : > { %v5833_v21 = vsel %vm9212_vm7, %v5825_v16, %v5832_v7  ;;  %v6321_v19 = vrot.slane %v6320_v4, 4  ;;  %vm13335_vm7 = vmmov %vm13319_vm2 }
 0x417   : > { %v6371_v43 = vpop.permute.xlu1 %6370  ;;  %5899 = vrot.lane.b32.xlu0 %v5834_v45, %s8755_s20  ;;  %5897 = vrot.lane.b32.xlu2 %v5833_v21, %s8755_s20  ;;  %s8758_s20 = smov 32   ;;  %v6377_v44 = vpop.permute.xlu2 %6376  ;;  %vm13342_vm2 = vmmov %vm13327_vm3 }
 0x418   : > { %6447 = vst.msk [vmem:[#allocation4 + $0x64] sm:$0xf] %vm13333_vm6, %v6371_v43  ;;  %v6790_v62 = vpop.f32.mrf.mxu0  ;;  %6386 = vrot.lane.b32.xlu1 %v6321_v19, %s8757_s29  ;;  %vm13343_vm14 = vmmov %vm13342_vm2 }
 0x419   : > { %vm13346_vm6 = vmmov %vm13337_vm0 }
 0x41b   : > { %8332 = vmatmul.msk.bf16.gmra.mxu0 %vm13334_vm1, %v8596_v59  ;;  %v12059_v54 = vpop.f32.mrf.mxu3  ;;  %vm13347_vm1 = vmmov %vm13338_vm4 }
 0x41c   : > { %v12061_v13 = vpop.f32.mrf.mxu2 }
 0x41f   : > { %v6373_v7 = vpop.permute.xlu1 %6372  ;;  %v8597_v23 = vld [vmem:[#allocation4 + $0x60] sm:$0xff]  ;;  %5317 = vrot.lane.b32.xlu0 %v11265_v9, %s8758_s20  ;;  %6384 = vrot.lane.b32.xlu2 %v6316_v47, %s8757_s29  ;;  %v7132_v47 = vadd.f32 %v12061_v13, %v12028_v22 }
 0x420   : > { %v8618_v0 = vld [vmem:[#allocation4 + $0x60] sm:$0xff]  ;;  %6448 = vst.msk [vmem:[#allocation4 + $0x68] sm:$0xf] %vm13335_vm7, %v6373_v7  ;;  %v12069_v4 = vpop.f32.mrf.mxu0  ;;  %5313 = vrot.lane.b32.xlu1 %v11213_v11, %s8758_s20  ;;  %8300 = vmatmul.msk.bf16.gmra.mxu3 %vm13337_vm0, %v8597_v23  ;;  %vm13348_vm7 = vmmov %vm13342_vm2 }
 0x421   : > { %v5886_v24 = vpop.permute.xlu0 %5885  ;;  %8429 = vmatmul.msk.bf16.gmra.mxu2 %vm13339_vm15, %v8618_v0  ;;  %vm13351_vm15 = vmmov %vm13337_vm0 }
 0x422   : > { %5961 = vst.msk [vmem:[#allocation4 + $0x6c] sm:$0xf] %vm13336_vm11, %v5886_v24  ;;  %vm13349_vm11 = vmmov %vm13347_vm1  ;;  %v13353_v24 = vld [vmem:[#allocation43_spill] sm:$0xff] }
 0x423   : > { %6449 = vst.msk [vmem:[#allocation4 + $0x6c] sm:$0xf] %vm13338_vm4, %v6375_v60  ;;  %v6675_v36 = vpop.f32.mrf.mxu3  ;;  %vm13350_vm4 = vmmov %vm13337_vm0 }
 0x424   : > { %v7059_v59 = vpop.f32.mrf.mxu2  ;;  %v6791_v21 = vadd.f32 %v6790_v62, %v6675_v36  ;;  %v6788_v36 = vadd.f32 %v13353_v24, %v12059_v54 }
 0x425   : > { %v12077_v9 = vadd.f32 %v7059_v59, %v6786_v57 }
 0x427   : > { %5323 = vrot.lane.b32.xlu0 %v11384_v20, %s8758_s20  ;;  %5315 = vrot.lane.b32.xlu2 %v11237_v26, %s8758_s20 }
 0x428   : > { %v6795_v1 = vpop.f32.mrf.mxu0  ;;  %5319 = vrot.lane.b32.xlu1 %v11300_v28, %s8758_s20 }
 0x429   : > { %v5888_v11 = vpop.permute.xlu0 %5887 }
 0x42a   : > { %5962 = vst.msk [vmem:[#allocation4 + $0x70] sm:$0xf] %vm13327_vm3, %v5888_v11  ;;  %v8598_v26 = vld [vmem:[#allocation4 + $0x68] sm:$0xff]  ;;  %vm13352_vm3 = vmmov %vm13342_vm2 }
 0x42b   : > { %6450 = vst.msk [vmem:[#allocation4 + $0x70] sm:$0xf] %vm13340_vm12, %v6377_v44  ;;  %8333 = vmatmul.msk.bf16.gmra.mxu0 %vm13341_vm13, %v8597_v23  ;;  %v12088_v8 = vpop.f32.mrf.mxu3  ;;  %v8619_v18 = vld [vmem:[#allocation4 + $0x68] sm:$0xff]  ;;  %vm5409_vm12 = vcmask 392448   ;;  %vm13354_vm13 = vmmov %vm13347_vm1 }
 0x42c   : > { %v12090_v51 = vpop.f32.mrf.mxu2 }
 0x42d   : > { %v7134_v11 = vadd.f32 %v12090_v51, %v6788_v36 }
 0x42f   : > { %v5894_v14 = vpop.permute.xlu2 %5893  ;;  %5329 = vrot.lane.b32.xlu0 %v11474_v34, %s8758_s20  ;;  %5321 = vrot.lane.b32.xlu2 %v11349_v58, %s8758_s20 }
 0x430   : > { %5965 = vst.msk [vmem:[#allocation4 + $0x7c] sm:$0xf] %vm13342_vm2, %v5894_v14  ;;  %v12097_v20 = vpop.f32.mrf.mxu0  ;;  %5325 = vrot.lane.b32.xlu1 %v11412_v12, %s8758_s20  ;;  %8301 = vmatmul.msk.bf16.gmra.mxu3 %vm13344_vm10, %v8598_v26  ;;  %vm13356_vm10 = vmmov %vm13337_vm0 }
 0x431   : > { %v5890_v28 = vpop.permute.xlu1 %5889  ;;  %8430 = vmatmul.msk.bf16.gmra.mxu2 %vm13345_vm9, %v8619_v18  ;;  %vm13358_vm9 = vmmov %vm13337_vm0 }
 0x432   : > { %5963 = vst.msk [vmem:[#allocation4 + $0x74] sm:$0xf] %vm13343_vm14, %v5890_v28  ;;  %vm13355_vm14 = vmmov %vm13347_vm1 }
 0x433   : > { %v6680_v16 = vpop.f32.mrf.mxu3 }
 0x434   : > { %v7064_v39 = vpop.f32.mrf.mxu2  ;;  %v6796_v34 = vadd.f32 %v6795_v1, %v6680_v16 }
 0x435   : > { %v12104_v15 = vadd.f32 %v7064_v39, %v6791_v21 }
 0x437   : > { %5335 = vrot.lane.b32.xlu0 %v11556_v63, %s8758_s20  ;;  %5327 = vrot.lane.b32.xlu2 %v11444_v29, %s8758_s20 }
 0x438   : > { %v12110_v58 = vpop.f32.mrf.mxu0  ;;  %5331 = vrot.lane.b32.xlu1 %v11500_v41, %s8758_s20 }
 0x43b   : > { %8334 = vmatmul.msk.bf16.gmra.mxu0 %vm13346_vm6, %v8598_v26  ;;  %v12115_v12 = vpop.f32.mrf.mxu3  ;;  %vm13359_vm6 = vmmov %vm13337_vm0 }
 0x43c   : > { %v12117_v57 = vpop.f32.mrf.mxu2 }
 0x43d   : > { %v6379_v45 = vpop.permute.xlu0 %6378 }
 0x43e   : > { %6451 = vst.msk [vmem:[#allocation4 + $0x74] sm:$0xf] %vm13347_vm1, %v6379_v45  ;;  %vm13363_vm1 = vmmov %vm13337_vm0 }
 0x43f   : > { %v5892_v43 = vpop.permute.xlu1 %5891  ;;  %5341 = vrot.lane.b32.xlu0 %v11623_v50, %s8758_s20  ;;  %5333 = vrot.lane.b32.xlu2 %v11531_v53, %s8758_s20 }
 0x440   : > { %5964 = vst.msk [vmem:[#allocation4 + $0x78] sm:$0xf] %vm13348_vm7, %v5892_v43  ;;  %5337 = vrot.lane.b32.xlu1 %v11577_v5, %s8758_s20  ;;  %v12127_v29 = vpop.f32.mrf.mxu0  ;;  %vm7357_vm7 = vcmask 523648  }
 0x443   : > { %v12129_v41 = vpop.f32.mrf.mxu3 }
 0x444   : > { %v7069_v63 = vpop.f32.mrf.mxu2 }
 0x445   : > { %v12131_v19 = vadd.f32 %v7069_v63, %v6796_v34  ;;  %v6381_v62 = vpop.permute.xlu0 %6380  ;;  %v8599_v48 = vld [vmem:[#allocation4 + $0x70] sm:$0xff] }
 0x446   : > { %v8620_v60 = vld [vmem:[#allocation4 + $0x70] sm:$0xff]  ;;  %6452 = vst.msk [vmem:[#allocation4 + $0x78] sm:$0xf] %vm13349_vm11, %v6381_v62  ;;  %8302 = vmatmul.msk.bf16.gmra.mxu3 %vm13337_vm0, %v8599_v48 }
 0x447   : > { %8431 = vmatmul.msk.bf16.gmra.mxu2 %vm13350_vm4, %v8620_v60  ;;  %5347 = vrot.lane.b32.xlu0 %v11695_v38, %s8758_s20 }
 0x448   : > { %5339 = vrot.lane.b32.xlu2 %v11598_v49, %s8758_s20  ;;  %5343 = vrot.lane.b32.xlu1 %v11645_v30, %s8758_s20  ;;  %v12145_v50 = vpop.f32.mrf.mxu0 }
 0x44b   : > { %8335 = vmatmul.msk.bf16.gmra.mxu0 %vm13351_vm15, %v8599_v48  ;;  %v12143_v53 = vpop.f32.mrf.mxu3  ;;  %v5968_v48 = vld [vmem:[#allocation4 + $0x88] sm:$0x1] }
 0x44c   : > { %v7071_v5 = vpop.f32.mrf.mxu2 }
 0x44f   : > { %5353 = vrot.lane.b32.xlu0 %v11766_v2, %s8758_s20 }
 0x450   : > { %5345 = vrot.lane.b32.xlu2 %v11672_v31, %s8758_s20  ;;  %5349 = vrot.lane.b32.xlu1 %v11718_v46, %s8758_s20  ;;  %v12157_v30 = vpop.f32.mrf.mxu0 }
 0x453   : > { %v12153_v49 = vpop.f32.mrf.mxu3 }
 0x454   : > { %v12155_v38 = vpop.f32.mrf.mxu2  ;;  %v6806_v39 = vadd.f32 %v12145_v50, %v12153_v49 }
 0x457   : > { %5359 = vrot.lane.b32.xlu0 %v11828_v32, %s8758_s20 }
 0x458   : > { %5351 = vrot.lane.b32.xlu2 %v11741_v3, %s8758_s20  ;;  %5355 = vrot.lane.b32.xlu1 %v11789_v37, %s8758_s20  ;;  %v12173_v46 = vpop.f32.mrf.mxu0  ;;  %v12182_v37 = vld [vmem:[%s12497_s6] ss:$0 sm:$0xff] }
 0x459   : > { %v7169_v59 = vadd.f32 %v12182_v37, %v12077_v9  ;;  %v7173_v49 = vadd.f32 %v12182_v37, %v12131_v19 }
 0x45b   : > { %v12165_v2 = vpop.f32.mrf.mxu3  ;;  %v7201_v54 = vmax.f32 %v7169_v59, 0.0 }
 0x45c   : > { %v12167_v31 = vpop.f32.mrf.mxu2 }
 0x45f   : > { %5365 = vrot.lane.b32.xlu0 %v11886_v35, %s8758_s20 }
 0x460   : > { %5357 = vrot.lane.b32.xlu2 %v11806_v52, %s8758_s20  ;;  %5361 = vrot.lane.b32.xlu1 %v11846_v33, %s8758_s20  ;;  %v7165_v52 = vadd.f32 %v12182_v37, %v12012_v27  ;;  %v12192_v33 = vpop.f32.mrf.mxu0 }
 0x462   : > { %v7197_v7 = vmax.f32 %v7165_v52, 0.0 }
 0x463   : > { %v12177_v32 = vpop.f32.mrf.mxu3 }
 0x464   : > { %v7079_v3 = vpop.f32.mrf.mxu2 }
 0x465   : > { %v7141_v45 = vadd.f32 %v7079_v3, %v6806_v39 }
 0x467   : > { %5371 = vrot.lane.b32.xlu0 %v11945_v55, %s8758_s20  ;;  %v7166_v55 = vadd.f32 %v12182_v37, %v12030_v25 }
 0x468   : > { %5363 = vrot.lane.b32.xlu2 %v11868_v6, %s8758_s20  ;;  %5367 = vrot.lane.b32.xlu1 %v11906_v61, %s8758_s20  ;;  %v7168_v6 = vadd.f32 %v12182_v37, %v7132_v47  ;;  %v12213_v13 = vpop.f32.mrf.mxu0 }
 0x469   : > { %v7198_v0 = vmax.f32 %v7166_v55, 0.0 }
 0x46a   : > { %v7200_v23 = vmax.f32 %v7168_v6, 0.0 }
 0x46b   : > { %v12194_v35 = vpop.f32.mrf.mxu3 }
 0x46c   : > { %v12196_v40 = vpop.f32.mrf.mxu2  ;;  %v6813_v47 = vadd.f32 %v12192_v33, %v12194_v35 }
 0x46f   : > { %7261 = vrot.lane.b32.xlu0 %v7197_v7, %s8759_s13 }
 0x470   : > { %5369 = vrot.lane.b32.xlu2 %v11931_v10, %s8758_s20  ;;  %5373 = vrot.lane.b32.xlu1 %v12010_v17, %s8758_s20  ;;  %v7167_v10 = vadd.f32 %v12182_v37, %v12050_v42  ;;  %v7171_v17 = vadd.f32 %v12182_v37, %v12104_v15  ;;  %v6793_v42 = vadd.f32 %v12069_v4, %v12088_v8  ;;  %v12234_v28 = vpop.f32.mrf.mxu0 }
 0x471   : > { %v5898_v61 = vpop.permute.xlu2 %5897  ;;  %v7170_v4 = vadd.f32 %v12182_v37, %v7134_v11 }
 0x472   : > { %5967 = vst.msk [vmem:[#allocation4 + $0x84] sm:$0xf] %vm13352_vm3, %v5898_v61  ;;  %v7199_v44 = vmax.f32 %v7167_v10, 0.0  ;;  %v7203_v14 = vmax.f32 %v7171_v17, 0.0  ;;  %v7136_v9 = vadd.f32 %v12117_v57, %v6793_v42  ;;  %v6808_v10 = vadd.f32 %v12157_v30, %v12165_v2 }
 0x473   : > { %v12209_v27 = vpop.f32.mrf.mxu3  ;;  %v7202_v15 = vmax.f32 %v7170_v4, 0.0 }
 0x474   : > { %v12211_v22 = vpop.f32.mrf.mxu2  ;;  %v7172_v16 = vadd.f32 %v12182_v37, %v7136_v9  ;;  %v7142_v33 = vadd.f32 %v12196_v40, %v6808_v10  ;;  %v6811_v40 = vadd.f32 %v12173_v46, %v12177_v32 }
 0x476   : > { %v7204_v63 = vmax.f32 %v7172_v16, 0.0 }
 0x477   : > { %7267 = vrot.lane.b32.xlu0 %v7200_v23, %s8759_s13 }
 0x478   : > { %5375 = vrot.lane.b32.xlu2 %v12025_v56, %s8758_s20  ;;  %7263 = vrot.lane.b32.xlu1 %v7198_v0, %s8759_s13  ;;  %v6798_v56 = vadd.f32 %v12097_v20, %v12115_v12  ;;  %v6801_v12 = vadd.f32 %v12110_v58, %v12129_v41  ;;  %v6820_v50 = vpop.f32.mrf.mxu0  ;;  %v7177_v58 = vadd.f32 %v12182_v37, %v7141_v45  ;;  %v7205_v0 = vmax.f32 %v7173_v49, 0.0  ;;  %s8704_s20 = scalar_lea.hbm %s8703_s9, 256 }
 0x479   : > { %v6385_v25 = vpop.permute.xlu2 %6384  ;;  %v6455_v61 = vld [vmem:[#allocation4 + $0x84] sm:$0xf]  ;;  %p8705_p11 = scmp.ne.s32.totalorder %s8703_s9, %s8704_s20  ;;  %p8710_p1 = scmp.lt.s32.totalorder %s8708_s21, %s8704_s20 }
 0x47a   : > { %v7138_v26 = vadd.f32 %v7071_v5, %v6798_v56  ;;  %v7139_v62 = vadd.f32 %v12155_v38, %v6801_v12  ;;  %v6803_v38 = vadd.f32 %v12127_v29, %v12143_v53  ;;  %v7209_v17 = vmax.f32 %v7177_v58, 0.0 }
 0x47b   : > { %v12229_v1 = vpop.f32.mrf.mxu3  ;;  %v7178_v56 = vadd.f32 %v12182_v37, %v7142_v33  ;;  %p8706_p12 = pnand %p8705_p11, %p8840_p5  ;;  %p8711_p2 = por %p8710_p1, %p8709_p0 }
 0x47c   : > { %v7086_v21 = vpop.f32.mrf.mxu2  ;;  %v7174_v8 = vadd.f32 %v12182_v37, %v7138_v26  ;;  %v7175_v19 = vadd.f32 %v12182_v37, %v7139_v62  ;;  %v7140_v55 = vadd.f32 %v12167_v31, %v6803_v38  ;;  %v7143_v26 = vadd.f32 %v12211_v22, %v6811_v40 }
 0x47d   : > { %p8707_p13 = pneg %p8706_p12 }
 0x47e   : > { %v7206_v57 = vmax.f32 %v7174_v8, 0.0  ;;  %v7207_v24 = vmax.f32 %v7175_v19, 0.0  ;;  %v7176_v31 = vadd.f32 %v12182_v37, %v7140_v55  ;;  %v7179_v8 = vadd.f32 %v12182_v37, %v7143_v26 }
 0x47f   : > { %v6383_v18 = vpop.permute.xlu1 %6382  ;;  %7273 = vrot.lane.b32.xlu0 %v7203_v14, %s8759_s13  ;;  %v6816_v14 = vadd.f32 %v12213_v13, %v12209_v27  ;;  %p8712_p3 = pnand %p8711_p2, %p8707_p13 }
 0x480   : > { %7265 = vrot.lane.b32.xlu2 %v7199_v44, %s8759_s13  ;;  %6453 = vst.msk [vmem:[#allocation4 + $0x7c] sm:$0xf] %vm13354_vm13, %v6383_v18  ;;  %7269 = vrot.lane.b32.xlu1 %v7201_v54, %s8759_s13  ;;  %v6822_v59 = vpop.f32.mrf.mxu0  ;;  %v7208_v42 = vmax.f32 %v7176_v31, 0.0  ;;  %v7210_v18 = vmax.f32 %v7178_v56, 0.0  ;;  %v7211_v12 = vmax.f32 %v7179_v8, 0.0 }
 0x481   : > { %v5316_v51 = vpop.permute.xlu2 %5315  ;;  %v5896_v20 = vpop.permute.xlu0 %5895 }
 0x482   : > { %5411 = vst.msk [vmem:[%s10143_s19 + $0x8] sm:$0xff] %vm5409_vm12, %v5316_v51 }
 0x483   : > { %5966 = vst.msk [vmem:[#allocation4 + $0x80] sm:$0xf] %vm13342_vm2, %v5896_v20  ;;  %v6705_v43 = vpop.f32.mrf.mxu3  ;;  %v6818_v20 = vadd.f32 %v12234_v28, %v12229_v1 }
 0x484   : > { %v12249_v34 = vpop.f32.mrf.mxu2  ;;  %6454 = vst.msk [vmem:[#allocation4 + $0x80] sm:$0xf] %vm13355_vm14, %v6385_v25  ;;  %v7144_v25 = vadd.f32 %v7086_v21, %v6813_v47  ;;  %v6821_v21 = vadd.f32 %v6820_v50, %v6705_v43 }
 0x485   : > { %v7145_v46 = vadd.f32 %v12249_v34, %v6816_v14 }
 0x486   : > { %v7180_v36 = vadd.f32 %v12182_v37, %v7144_v25 }
 0x487   : > { %7279 = vrot.lane.b32.xlu0 %v7206_v57, %s8759_s13  ;;  %v8600_v60 = vld [vmem:[#allocation4 + $0x78] sm:$0xff]  ;;  %v7181_v16 = vadd.f32 %v12182_v37, %v7145_v46 }
 0x488   : > { %7271 = vrot.lane.b32.xlu2 %v7202_v15, %s8759_s13  ;;  %v8621_v5 = vld [vmem:[#allocation4 + $0x78] sm:$0xff]  ;;  %7275 = vrot.lane.b32.xlu1 %v7204_v63, %s8759_s13  ;;  %v7212_v54 = vmax.f32 %v7180_v36, 0.0  ;;  %v6825_v34 = vpop.f32.mrf.mxu0 }
 0x489   : > { %v5322_v41 = vpop.permute.xlu2 %5321  ;;  %v5900_v3 = vpop.permute.xlu0 %5899  ;;  %8303 = vmatmul.msk.bf16.gmra.mxu3 %vm13356_vm10, %v8600_v60  ;;  %8336 = vmatmul.msk.bf16.gmra.mxu0 %vm13358_vm9, %v8600_v60  ;;  %v7213_v63 = vmax.f32 %v7181_v16, 0.0 }
 0x48a   : > { %5414 = vst.msk [vmem:[%s10143_s19 + $0x20] sm:$0xff] %vm5409_vm12, %v5322_v41  ;;  %v5969_v7 = vsel %vm11750_vm8, %v5900_v3, %v5968_v48  ;;  %8432 = vmatmul.msk.bf16.gmra.mxu2 %vm13359_vm6, %v8621_v5  ;;  %v6387_v6 = vpop.permute.xlu1 %6386  ;;  %vm13362_vm8 = vmmov %vm13337_vm0 }
 0x48b   : > { %5970 = vst [vmem:[#allocation4 + $0x88] sm:$0x1] %v5969_v7  ;;  %v6456_v53 = vsel %vm11552_vm5, %v6387_v6, %v6455_v61  ;;  %v6707_v35 = vpop.f32.mrf.mxu3  ;;  %vm13361_vm5 = vmmov %vm13337_vm0 }
 0x48c   : > { %v7091_v23 = vpop.f32.mrf.mxu2  ;;  %6457 = vst [vmem:[#allocation4 + $0x84] sm:$0xf] %v6456_v53  ;;  %v6823_v57 = vadd.f32 %v6822_v59, %v6707_v35 }
 0x48d   : > { %v7146_v45 = vadd.f32 %v7091_v23, %v6818_v20 }
 0x48f   : > { %7285 = vrot.lane.b32.xlu0 %v7209_v17, %s8759_s13  ;;  %v7182_v1 = vadd.f32 %v12182_v37, %v7146_v45 }
 0x490   : > { %7277 = vrot.lane.b32.xlu2 %v7205_v0, %s8759_s13  ;;  %7281 = vrot.lane.b32.xlu1 %v7207_v24, %s8759_s13  ;;  %v6827_v3 = vpop.f32.mrf.mxu0 }
 0x491   : > { %v5328_v30 = vpop.permute.xlu2 %5327  ;;  %v5318_v2 = vpop.permute.xlu0 %5317  ;;  %v7214_v58 = vmax.f32 %v7182_v1, 0.0 }
 0x492   : > { %5417 = vst.msk [vmem:[%s10143_s19 + $0x38] sm:$0xff] %vm5409_vm12, %v5328_v30  ;;  %v5314_v44 = vpop.permute.xlu1 %5313  ;;  %v8623_v7 = vld [vmem:[#allocation4 + $0x88] sm:$0xff] }
 0x493   : > { %5412 = vst.msk [vmem:[%s10143_s19 + $0x10] sm:$0xff] %vm5409_vm12, %v5318_v2  ;;  %v8604_v32 = vld [vmem:[#allocation4 + $0x80] sm:$0xff]  ;;  %v6710_v51 = vpop.f32.mrf.mxu3 }
 0x494   : > { %5410 = vst.msk [vmem:[%s10143_s19] sm:$0xff] %vm5409_vm12, %v5314_v44  ;;  %v7094_v11 = vpop.f32.mrf.mxu2  ;;  %v8622_v4 = vld [vmem:[#allocation4 + $0x80] sm:$0xff]  ;;  %v6826_v50 = vadd.f32 %v6825_v34, %v6710_v51 }
 0x495   : > { %v7147_v9 = vadd.f32 %v7094_v11, %v6821_v21 }
 0x497   : > { %7291 = vrot.lane.b32.xlu0 %v7212_v54, %s8759_s13  ;;  %v7183_v27 = vadd.f32 %v12182_v37, %v7147_v9 }
 0x498   : > { %7283 = vrot.lane.b32.xlu2 %v7208_v42, %s8759_s13  ;;  %7287 = vrot.lane.b32.xlu1 %v7210_v18, %s8759_s13  ;;  %v6830_v10 = vpop.f32.mrf.mxu0 }
 0x499   : > { %v5334_v22 = vpop.permute.xlu2 %5333  ;;  %v5324_v13 = vpop.permute.xlu0 %5323  ;;  %8304 = vmatmul.msk.bf16.gmra.mxu3 %vm13361_vm5, %v8604_v32  ;;  %v7215_v43 = vmax.f32 %v7183_v27, 0.0 }
 0x49a   : > { %5420 = vst.msk [vmem:[%s10143_s19 + $0x50] sm:$0xff] %vm5409_vm12, %v5334_v22  ;;  %8433 = vmatmul.msk.bf16.gmra.mxu2 %vm13362_vm8, %v8622_v4  ;;  %v5320_v39 = vpop.permute.xlu1 %5319 }
 0x49b   : > { %5415 = vst.msk [vmem:[%s10143_s19 + $0x28] sm:$0xff] %vm5409_vm12, %v5324_v13  ;;  %v6712_v49 = vpop.f32.mrf.mxu3 }
 0x49c   : > { %5413 = vst.msk [vmem:[%s10143_s19 + $0x18] sm:$0xff] %vm5409_vm12, %v5320_v39  ;;  %v7096_v15 = vpop.f32.mrf.mxu2  ;;  %v6828_v55 = vadd.f32 %v6827_v3, %v6712_v49 }
 0x49d   : > { %v7148_v62 = vadd.f32 %v7096_v15, %v6823_v57 }
 0x49f   : > { %7297 = vrot.lane.b32.xlu0 %v7215_v43, %s8759_s13  ;;  %v7184_v60 = vadd.f32 %v12182_v37, %v7148_v62 }
 0x4a0   : > { %7289 = vrot.lane.b32.xlu2 %v7211_v12, %s8759_s13  ;;  %7293 = vrot.lane.b32.xlu1 %v7213_v63, %s8759_s13  ;;  %v6832_v44 = vpop.f32.mrf.mxu0 }
 0x4a1   : > { %v5330_v48 = vpop.permute.xlu0 %5329  ;;  %v7216_v52 = vmax.f32 %v7184_v60, 0.0 }
 0x4a2   : > { %v5340_v28 = vpop.permute.xlu2 %5339  ;;  %5418 = vst.msk [vmem:[%s10143_s19 + $0x40] sm:$0xff] %vm5409_vm12, %v5330_v48  ;;  %v5326_v5 = vpop.permute.xlu1 %5325 }
 0x4a3   : > { %5423 = vst.msk [vmem:[%s10143_s19 + $0x68] sm:$0xff] %vm5409_vm12, %v5340_v28  ;;  %v6715_v23 = vpop.f32.mrf.mxu3 }
 0x4a4   : > { %5416 = vst.msk [vmem:[%s10143_s19 + $0x30] sm:$0xff] %vm5409_vm12, %v5326_v5  ;;  %v7099_v41 = vpop.f32.mrf.mxu2  ;;  %v6831_v35 = vadd.f32 %v6830_v10, %v6715_v23 }
 0x4a5   : > { %v7149_v38 = vadd.f32 %v7099_v41, %v6826_v50 }
 0x4a7   : > { %v7185_v19 = vadd.f32 %v12182_v37, %v7149_v38 }
 0x4a8   : > { %7295 = vrot.lane.b32.xlu2 %v7214_v58, %s8759_s13  ;;  %7299 = vrot.lane.b32.xlu1 %v7216_v52, %s8759_s13  ;;  %v6835_v8 = vpop.f32.mrf.mxu0 }
 0x4a9   : > { %v5336_v6 = vpop.permute.xlu0 %5335  ;;  %v7217_v29 = vmax.f32 %v7185_v19, 0.0 }
 0x4aa   : > { %v5346_v47 = vpop.permute.xlu2 %5345  ;;  %8434 = vmatmul.msk.bf16.gmra.mxu2 %vm13363_vm1, %v8623_v7  ;;  %5421 = vst.msk [vmem:[%s10143_s19 + $0x58] sm:$0xff] %vm5409_vm12, %v5336_v6  ;;  %v5332_v61 = vpop.permute.xlu1 %5331 }
 0x4ab   : > { %5426 = vst.msk [vmem:[%s10143_s19 + $0x80] sm:$0xff] %vm5409_vm12, %v5346_v47  ;;  %v6717_v2 = vpop.f32.mrf.mxu3 }
 0x4ac   : > { %5419 = vst.msk [vmem:[%s10143_s19 + $0x48] sm:$0xff] %vm5409_vm12, %v5332_v61  ;;  %v7101_v53 = vpop.f32.mrf.mxu2  ;;  %v6833_v11 = vadd.f32 %v6832_v44, %v6717_v2 }
 0x4ad   : > { %v7150_v0 = vadd.f32 %v7101_v53, %v6828_v55 }
 0x4af   : > { %v7186_v17 = vadd.f32 %v12182_v37, %v7150_v0 }
 0x4b0   : > { %7301 = vrot.lane.b32.xlu2 %v7217_v29, %s8759_s13  ;;  %v6837_v12 = vpop.f32.mrf.mxu0 }
 0x4b1   : > { %v5342_v24 = vpop.permute.xlu0 %5341  ;;  %v7218_v33 = vmax.f32 %v7186_v17, 0.0 }
 0x4b2   : > { %v5352_v25 = vpop.permute.xlu2 %5351  ;;  %5424 = vst.msk [vmem:[%s10143_s19 + $0x70] sm:$0xff] %vm5409_vm12, %v5342_v24  ;;  %v5338_v31 = vpop.permute.xlu1 %5337 }
 0x4b3   : > { %5429 = vst.msk [vmem:[%s10143_s19 + $0x98] sm:$0xff] %vm5409_vm12, %v5352_v25  ;;  %7303 = vrot.lane.b32.xlu0 %v7218_v33, %s8759_s13  ;;  %v6720_v4 = vpop.f32.mrf.mxu3 }
 0x4b4   : > { %5422 = vst.msk [vmem:[%s10143_s19 + $0x60] sm:$0xff] %vm5409_vm12, %v5338_v31  ;;  %v7104_v36 = vpop.f32.mrf.mxu2  ;;  %v6836_v27 = vadd.f32 %v6835_v8, %v6720_v4 }
 0x4b5   : > { %v7151_v30 = vadd.f32 %v7104_v36, %v6831_v35 }
 0x4b7   : > { %v7187_v59 = vadd.f32 %v12182_v37, %v7151_v30 }
 0x4b8   : > { %v6840_v0 = vpop.f32.mrf.mxu0 }
 0x4b9   : > { %v5348_v56 = vpop.permute.xlu0 %5347  ;;  %v7219_v21 = vmax.f32 %v7187_v59, 0.0 }
 0x4ba   : > { %v5358_v40 = vpop.permute.xlu2 %5357  ;;  %5427 = vst.msk [vmem:[%s10143_s19 + $0x88] sm:$0xff] %vm5409_vm12, %v5348_v56  ;;  %v5344_v42 = vpop.permute.xlu1 %5343 }
 0x4bb   : > { %5432 = vst.msk [vmem:[%s10143_s19 + $0xb0] sm:$0xff] %vm5409_vm12, %v5358_v40  ;;  %7305 = vrot.lane.b32.xlu1 %v7219_v21, %s8759_s13  ;;  %v6722_v34 = vpop.f32.mrf.mxu3 }
 0x4bc   : > { %5425 = vst.msk [vmem:[%s10143_s19 + $0x78] sm:$0xff] %vm5409_vm12, %v5344_v42  ;;  %v7106_v14 = vpop.f32.mrf.mxu2  ;;  %v6838_v57 = vadd.f32 %v6837_v12, %v6722_v34 }
 0x4bd   : > { %v7152_v26 = vadd.f32 %v7106_v14, %v6833_v11 }
 0x4bf   : > { %v7188_v54 = vadd.f32 %v12182_v37, %v7152_v26 }
 0x4c0   : > { %v6842_v35 = vpop.f32.mrf.mxu0 }
 0x4c1   : > { %v5354_v18 = vpop.permute.xlu0 %5353  ;;  %v7220_v46 = vmax.f32 %v7188_v54, 0.0 }
 0x4c2   : > { %v5364_v9 = vpop.permute.xlu2 %5363  ;;  %5430 = vst.msk [vmem:[%s10143_s19 + $0xa0] sm:$0xff] %vm5409_vm12, %v5354_v18  ;;  %v5350_v32 = vpop.permute.xlu1 %5349 }
 0x4c3   : > { %5435 = vst.msk [vmem:[%s10143_s19 + $0xc8] sm:$0xff] %vm5409_vm12, %v5364_v9  ;;  %7307 = vrot.lane.b32.xlu2 %v7220_v46, %s8759_s13 }
 0x4c4   : > { %5428 = vst.msk [vmem:[%s10143_s19 + $0x90] sm:$0xff] %vm5409_vm12, %v5350_v32 }
 0x4c8   : > { %v6845_v14 = vpop.f32.mrf.mxu0 }
 0x4c9   : > { %v5360_v13 = vpop.permute.xlu0 %5359  ;;  %v6725_v29 = vpop.f32.mrf.mxu3 }
 0x4ca   : > { %v5370_v22 = vpop.permute.xlu2 %5369  ;;  %v7109_v51 = vpop.f32.mrf.mxu2  ;;  %5433 = vst.msk [vmem:[%s10143_s19 + $0xb8] sm:$0xff] %vm5409_vm12, %v5360_v13  ;;  %v6841_v31 = vadd.f32 %v6840_v0, %v6725_v29 }
 0x4cb   : > { %5438 = vst.msk [vmem:[%s10143_s19 + $0xe0] sm:$0xff] %vm5409_vm12, %v5370_v22  ;;  %v5356_v20 = vpop.permute.xlu1 %5355  ;;  %v7153_v16 = vadd.f32 %v7109_v51, %v6836_v27 }
 0x4cc   : > { %5431 = vst.msk [vmem:[%s10143_s19 + $0xa8] sm:$0xff] %vm5409_vm12, %v5356_v20 }
 0x4cd   : > { %v7189_v39 = vadd.f32 %v12182_v37, %v7153_v16 }
 0x4cf   : > { %v7221_v15 = vmax.f32 %v7189_v39, 0.0 }
 0x4d0   : > { %v6847_v22 = vpop.f32.mrf.mxu0 }
 0x4d1   : > { %v5366_v43 = vpop.permute.xlu0 %5365  ;;  %7309 = vrot.lane.b32.xlu0 %v7221_v15, %s8759_s13  ;;  %v6727_v24 = vpop.f32.mrf.mxu3 }
 0x4d2   : > { %v5376_v45 = vpop.permute.xlu2 %5375  ;;  %v7111_v63 = vpop.f32.mrf.mxu2  ;;  %5436 = vst.msk [vmem:[%s10143_s19 + $0xd0] sm:$0xff] %vm5409_vm12, %v5366_v43  ;;  %v6843_v44 = vadd.f32 %v6842_v35, %v6727_v24 }
 0x4d3   : > { %5441 = vst.msk [vmem:[%s10143_s19 + $0xf8] sm:$0xff] %vm5409_vm12, %v5376_v45  ;;  %v5362_v62 = vpop.permute.xlu1 %5361  ;;  %v7154_v1 = vadd.f32 %v7111_v63, %v6838_v57 }
 0x4d4   : > { %5434 = vst.msk [vmem:[%s10143_s19 + $0xc0] sm:$0xff] %vm5409_vm12, %v5362_v62 }
 0x4d5   : > { %v7190_v28 = vadd.f32 %v12182_v37, %v7154_v1 }
 0x4d7   : > { %v7222_v48 = vmax.f32 %v7190_v28, 0.0 }
 0x4d9   : > { %v5372_v5 = vpop.permute.xlu0 %5371  ;;  %7311 = vrot.lane.b32.xlu1 %v7222_v48, %s8759_s13 }
 0x4da   : > { %v7266_v60 = vpop.permute.xlu2 %7265  ;;  %5439 = vst.msk [vmem:[%s10143_s19 + $0xe8] sm:$0xff] %vm5409_vm12, %v5372_v5 }
 0x4db   : > { %7360 = vst.msk [vmem:[%s10143_s19 + $0x10] sm:$0xff] %vm7357_vm7, %v7266_v60  ;;  %v5368_v50 = vpop.permute.xlu1 %5367 }
 0x4dc   : > { %5437 = vst.msk [vmem:[%s10143_s19 + $0xd8] sm:$0xff] %vm5409_vm12, %v5368_v50 }
 0x4e1   : > { %v7262_v58 = vpop.permute.xlu0 %7261 }
 0x4e2   : > { %v7272_v49 = vpop.permute.xlu2 %7271  ;;  %7358 = vst.msk [vmem:[%s10143_s19] sm:$0xff] %vm7357_vm7, %v7262_v58 }
 0x4e3   : > { %7363 = vst.msk [vmem:[%s10143_s19 + $0x28] sm:$0xff] %vm7357_vm7, %v7272_v49  ;;  %v5374_v41 = vpop.permute.xlu1 %5373 }
 0x4e4   : > { %5440 = vst.msk [vmem:[%s10143_s19 + $0xf0] sm:$0xff] %vm5409_vm12, %v5374_v41 }
 0x4e9   : > { %v7268_v38 = vpop.permute.xlu0 %7267 }
 0x4ea   : > { %v7278_v3 = vpop.permute.xlu2 %7277  ;;  %7361 = vst.msk [vmem:[%s10143_s19 + $0x18] sm:$0xff] %vm7357_vm7, %v7268_v38 }
 0x4eb   : > { %7366 = vst.msk [vmem:[%s10143_s19 + $0x40] sm:$0xff] %vm7357_vm7, %v7278_v3  ;;  %v7264_v52 = vpop.permute.xlu1 %7263 }
 0x4ec   : > { %7359 = vst.msk [vmem:[%s10143_s19 + $0x8] sm:$0xff] %vm7357_vm7, %v7264_v52 }
 0x4f1   : > { %v7274_v19 = vpop.permute.xlu0 %7273 }
 0x4f2   : > { %v7284_v7 = vpop.permute.xlu2 %7283  ;;  %7364 = vst.msk [vmem:[%s10143_s19 + $0x30] sm:$0xff] %vm7357_vm7, %v7274_v19 }
 0x4f3   : > { %7369 = vst.msk [vmem:[%s10143_s19 + $0x58] sm:$0xff] %vm7357_vm7, %v7284_v7  ;;  %v7270_v47 = vpop.permute.xlu1 %7269 }
 0x4f4   : > { %7362 = vst.msk [vmem:[%s10143_s19 + $0x20] sm:$0xff] %vm7357_vm7, %v7270_v47 }
 0x4f9   : > { %v7280_v61 = vpop.permute.xlu0 %7279 }
 0x4fa   : > { %v7290_v6 = vpop.permute.xlu2 %7289  ;;  %7367 = vst.msk [vmem:[%s10143_s19 + $0x48] sm:$0xff] %vm7357_vm7, %v7280_v61 }
 0x4fb   : > { %7372 = vst.msk [vmem:[%s10143_s19 + $0x70] sm:$0xff] %vm7357_vm7, %v7290_v6  ;;  %v7276_v55 = vpop.permute.xlu1 %7275 }
 0x4fc   : > { %7365 = vst.msk [vmem:[%s10143_s19 + $0x38] sm:$0xff] %vm7357_vm7, %v7276_v55 }
 0x501   : > { %v7286_v23 = vpop.permute.xlu0 %7285 }
 0x502   : > { %v7296_v53 = vpop.permute.xlu2 %7295  ;;  %7370 = vst.msk [vmem:[%s10143_s19 + $0x60] sm:$0xff] %vm7357_vm7, %v7286_v23 }
 0x503   : > { %7375 = vst.msk [vmem:[%s10143_s19 + $0x88] sm:$0xff] %vm7357_vm7, %v7296_v53  ;;  %v7282_v10 = vpop.permute.xlu1 %7281 }
 0x504   : > { %7368 = vst.msk [vmem:[%s10143_s19 + $0x50] sm:$0xff] %vm7357_vm7, %v7282_v10 }
 0x506   : > { %v6850_v12 = vpop.f32.mrf.mxu0 }
 0x509   : > { %v7292_v25 = vpop.permute.xlu0 %7291 }
 0x50a   : > { %v7302_v17 = vpop.permute.xlu2 %7301  ;;  %7373 = vst.msk [vmem:[%s10143_s19 + $0x78] sm:$0xff] %vm7357_vm7, %v7292_v25 }
 0x50b   : > { %7378 = vst.msk [vmem:[%s10143_s19 + $0xa0] sm:$0xff] %vm7357_vm7, %v7302_v17  ;;  %v7288_v33 = vpop.permute.xlu1 %7287 }
 0x50c   : > { %7371 = vst.msk [vmem:[%s10143_s19 + $0x68] sm:$0xff] %vm7357_vm7, %v7288_v33  ;;  %v6730_v56 = vpop.f32.mrf.mxu3 }
 0x50d   : > { %v7114_v36 = vpop.f32.mrf.mxu2  ;;  %v6846_v18 = vadd.f32 %v6845_v14, %v6730_v56 }
 0x50e   : > { %v7155_v30 = vadd.f32 %v7114_v36, %v6841_v31  ;;  %v6852_v60 = vpop.f32.mrf.mxu0 }
 0x510   : > { %v7191_v2 = vadd.f32 %v12182_v37, %v7155_v30 }
 0x511   : > { %v7298_v59 = vpop.permute.xlu0 %7297 }
 0x512   : > { %v7223_v40 = vmax.f32 %v7191_v2, 0.0  ;;  %7376 = vst.msk [vmem:[%s10143_s19 + $0x90] sm:$0xff] %vm7357_vm7, %v7298_v59 }
 0x513   : > { %v7294_v21 = vpop.permute.xlu1 %7293 }
 0x514   : > { %7374 = vst.msk [vmem:[%s10143_s19 + $0x80] sm:$0xff] %vm7357_vm7, %v7294_v21  ;;  %7313 = vrot.lane.b32.xlu2 %v7223_v40, %s8759_s13  ;;  %v6732_v46 = vpop.f32.mrf.mxu3 }
 0x515   : > { %v7116_v42 = vpop.f32.mrf.mxu2  ;;  %v6848_v51 = vadd.f32 %v6847_v22, %v6732_v46 }
 0x516   : > { %v7156_v11 = vadd.f32 %v7116_v42, %v6843_v44 }
 0x518   : > { %v7192_v26 = vadd.f32 %v12182_v37, %v7156_v11 }
 0x51a   : > { %v7224_v54 = vmax.f32 %v7192_v26, 0.0 }
 0x51b   : > { %v7300_v9 = vpop.permute.xlu1 %7299 }
 0x51c   : > { %7377 = vst.msk [vmem:[%s10143_s19 + $0x98] sm:$0xff] %vm7357_vm7, %v7300_v9  ;;  %7315 = vrot.lane.b32.xlu0 %v7224_v54, %s8759_s13  ;;  %v6735_v34 = vpop.f32.mrf.mxu3 }
 0x51d   : > { %v7119_v32 = vpop.f32.mrf.mxu2  ;;  %v7308_v4 = vpop.permute.xlu2 %7307  ;;  %v6851_v45 = vadd.f32 %v6850_v12, %v6735_v34 }
 0x51e   : > { %v7157_v8 = vadd.f32 %v7119_v32, %v6846_v18  ;;  %7381 = vst.msk [vmem:[%s10143_s19 + $0xb8] sm:$0xff] %vm7357_vm7, %v7308_v4 }
 0x520   : > { %v7193_v27 = vadd.f32 %v12182_v37, %v7157_v8 }
 0x522   : > { %v7225_v13 = vmax.f32 %v7193_v27, 0.0 }
 0x524   : > { %7317 = vrot.lane.b32.xlu1 %v7225_v13, %s8759_s13  ;;  %v6737_v28 = vpop.f32.mrf.mxu3 }
 0x525   : > { %v7121_v20 = vpop.f32.mrf.mxu2  ;;  %v7304_v16 = vpop.permute.xlu0 %7303  ;;  %v6853_v5 = vadd.f32 %v6852_v60, %v6737_v28 }
 0x526   : > { %v7158_v39 = vadd.f32 %v7121_v20, %v6848_v51  ;;  %7379 = vst.msk [vmem:[%s10143_s19 + $0xa8] sm:$0xff] %vm7357_vm7, %v7304_v16 }
 0x528   : > { %v7194_v15 = vadd.f32 %v12182_v37, %v7158_v39 }
 0x52a   : > { %v7226_v57 = vmax.f32 %v7194_v15, 0.0 }
 0x52c   : > { %7319 = vrot.lane.b32.xlu2 %v7226_v57, %s8759_s13 }
 0x52d   : > { %v7124_v43 = vpop.f32.mrf.mxu2  ;;  %v7306_v63 = vpop.permute.xlu1 %7305 }
 0x52e   : > { %v7159_v62 = vadd.f32 %v7124_v43, %v6851_v45  ;;  %7380 = vst.msk [vmem:[%s10143_s19 + $0xb0] sm:$0xff] %vm7357_vm7, %v7306_v63 }
 0x530   : > { %v7195_v1 = vadd.f32 %v12182_v37, %v7159_v62 }
 0x532   : > { %v7227_v48 = vmax.f32 %v7195_v1, 0.0 }
 0x534   : > { %7321 = vrot.lane.b32.xlu0 %v7227_v48, %s8759_s13 }
 0x535   : > { %v7126_v50 = vpop.f32.mrf.mxu2 }
 0x536   : > { %v7160_v49 = vadd.f32 %v7126_v50, %v6853_v5 }
 0x538   : > { %v7196_v58 = vadd.f32 %v12182_v37, %v7160_v49 }
 0x53a   : > { %v7228_v41 = vmax.f32 %v7196_v58, 0.0 }
 0x53c   : > { %7323 = vrot.lane.b32.xlu1 %v7228_v41, %s8759_s13 }
 0x543   : > { %v7310_v3 = vpop.permute.xlu0 %7309 }
 0x544   : > { %7382 = vst.msk [vmem:[%s10143_s19 + $0xc0] sm:$0xff] %vm7357_vm7, %v7310_v3 }
 0x54b   : > { %v7312_v38 = vpop.permute.xlu1 %7311 }
 0x54c   : > { %7383 = vst.msk [vmem:[%s10143_s19 + $0xc8] sm:$0xff] %vm7357_vm7, %v7312_v38 }
 0x56e   : > { %v7314_v52 = vpop.permute.xlu2 %7313 }
 0x56f   : > { %7384 = vst.msk [vmem:[%s10143_s19 + $0xd0] sm:$0xff] %vm7357_vm7, %v7314_v52 }
 0x586   : > { %v7320_v7 = vpop.permute.xlu2 %7319 }
 0x587   : > { %7387 = vst.msk [vmem:[%s10143_s19 + $0xe8] sm:$0xff] %vm7357_vm7, %v7320_v7 }
 0x58e   : > { %v7316_v37 = vpop.permute.xlu0 %7315 }
 0x58f   : > { %7385 = vst.msk [vmem:[%s10143_s19 + $0xd8] sm:$0xff] %vm7357_vm7, %v7316_v37 }
 0x596   : > { %v7318_v19 = vpop.permute.xlu1 %7317 }
 0x597   : > { %7386 = vst.msk [vmem:[%s10143_s19 + $0xe0] sm:$0xff] %vm7357_vm7, %v7318_v19 }
 0x5a6   : > { %v7322_v47 = vpop.permute.xlu0 %7321 }
 0x5a7   : > { %7388 = vst.msk [vmem:[%s10143_s19 + $0xf0] sm:$0xff] %vm7357_vm7, %v7322_v47 }
 0x5ae   : > { %v7324_v6 = vpop.permute.xlu1 %7323 }
 0x5af   : > { %7389 = vst.msk [vmem:[%s10143_s19 + $0xf8] sm:$0xff] %vm7357_vm7, %v7324_v6 }
 0x5b0   : > { %8715 = shalt.err (!%p8712_p3)
}
 0x5b1   : > { %s8760_s23 = smov 128   ;;  %s8761_s19 = smov 8  }
 0x5b2   : > { %8628 = dma.vmem_to_hbm [thread:$0]  (%p8840_p5), %s7404_s18, 4096, %s7406_s22, %s7391_s8, %s8760_s23, %s8760_s23, %s8761_s19  }
 0x5b3 PF: > { %p8634_p4 = scmp.ge.s32.totalorder %s8750_s27, 2  ;;  %s7420_s15 = sand.u32 1, %s8738_s24  }
 0x5b4   : > { %s7421_s16 = scalar_lea.sflag [#allocation6], %s7420_s15 }
 0x5b5   : > { %p8631_p7 = pnand %p8634_p4, %p8844_p6 }
 0x5b7   : > { %p8632_p8 = pneg %p8631_p7 }
 0x5b9   : > { %8733 = dma.done.wait (%p8632_p8), %s7421_s16, 4096  }
 0x5ba   : > { %8735 = vsyncadd (%p8632_p8), %s7421_s16, 4294963200  ;;  %p17_p9 = scmp.ge.s32.totalorder %s8827_s30, 4   ;;  %s13364_s24 = smov %s8742_s25 }
 0x5bb   : > { %s13365_s25 = smov %s8746_s26  ;;  %s13366_s26 = smov %s8838_s10 }
 0x5bc   : > { %s13367_s27 = smov %s8827_s30  ;;  %19 = sbr.rel (!%p17_p9) target bundleno = 3 (0x3), region = 89 }
 0x5c1   :  { %7427 = vsyncpa [#allocation6], 1 }
 0x5c2   :  { %7429 = vsyncpa [#allocation6 + $0x1], 1 }

</bundles_post_ra>
